<compile_context>
chip_gen: v6e
topology: v6e:2x2x1
jax: 0.10.0
libtpu: 0.0.40
codegen_flags: <defaults>
</compile_context>

<pallas_src>
import functools

import jax
import jax.numpy as jnp
from jax import lax
from jax.experimental import pallas as pl
from jax.experimental.pallas import tpu as pltpu


# ----------------------------------------------------------------------------
# In-kernel helpers
# ----------------------------------------------------------------------------
def _upsample2x_nearest(x):
    """Nearest-neighbour 2x spatial upsample of an (H, W, C) value (in VMEM)."""
    H, W, C = x.shape
    # Duplicate columns: (H, W, C) -> (H, W, 2, C) -> (H, 2W, C).
    x = jnp.broadcast_to(x[:, :, None, :], (H, W, 2, C)).reshape(H, 2 * W, C)
    # Duplicate rows:    (H, 2W, C) -> (H, 2, 2W, C) -> (2H, 2W, C).
    x = jnp.broadcast_to(x[:, None, :, :], (H, 2, 2 * W, C)).reshape(
        2 * H, 2 * W, C)
    return x


def _build_im2col(x, lhs_ref):
    """Scatter the nine 3x3-tap windows of `x` (H, W, C) into the scratch
    `lhs_ref` of shape (H, W, 9*C).  The scratch is zero-filled first, so the
    unwritten border slivers implement the conv's zero padding of 1.  Returns
    the flattened (H*W, 9*C) matmul operand."""
    H, W, C = x.shape
    lhs_ref[...] = jnp.zeros_like(lhs_ref)
    for dy in range(3):
        for dx in range(3):
            k = dy * 3 + dx
            di0, di1 = max(0, 1 - dy), min(H, H + 1 - dy)
            dj0, dj1 = max(0, 1 - dx), min(W, W + 1 - dx)
            si0, si1 = di0 + dy - 1, di1 + dy - 1
            sj0, sj1 = dj0 + dx - 1, dj1 + dx - 1
            lhs_ref[di0:di1, dj0:dj1, k * C:(k + 1) * C] = \
                x[si0:si1, sj0:sj1, :]
    return lhs_ref[...].reshape(H * W, 9 * C)


# ----------------------------------------------------------------------------
# Fused decoder kernel (one grid step == one batch element, whole decoder)
# ----------------------------------------------------------------------------
def _decoder_kernel(*refs, glu_flags):
    """refs = (x_ref, *param_refs, o_ref, *im2col_scratch_refs)

    x_ref:   (1, H0, W0, C0) f32
    params:  per GLU stage  wa (9Cin, Ch) bf16, ba (1, Ch) f32,
                            wb (9Cin, Ch) bf16, bb (1, Ch) f32   (BN folded)
             final stage    w  (9Cin, nc) bf16
    o_ref:   (1, Hout*Wout, nc) f32
    scratch: one (H, W, 9*Cin) bf16 im2col buffer per stage
    """
    n_params = sum(4 if g else 1 for g in glu_flags)
    x_ref = refs[0]
    param_refs = refs[1:1 + n_params]
    o_ref = refs[1 + n_params]
    lhs_refs = refs[2 + n_params:]

    x = x_ref[0]                                      # (H0, W0, C0) f32
    p = 0
    for s, glu in enumerate(glu_flags):
        if glu:
            x = _upsample2x_nearest(x)                # nn.Upsample(2, 'nearest')
        H, W, C = x.shape
        # Single K=9*Cin MXU matmul per weight half (bf16 operands, f32 acc).
        lhs = _build_im2col(x.astype(jnp.bfloat16), lhs_refs[s])  # (H*W, 9C)
        if glu:
            wa, ba, wb, bb = param_refs[p:p + 4]
            p += 4
            ya = jnp.dot(lhs, wa[...],
                         preferred_element_type=jnp.float32) + ba[...]
            yb = jnp.dot(lhs, wb[...],
                         preferred_element_type=jnp.float32) + bb[...]
            # GLU: first half * sigmoid(second half). Weight-level split keeps
            # both halves vreg-aligned (no lane slicing); sigmoid -> EUP.
            y = ya * jax.nn.sigmoid(yb)               # (H*W, Cout/2) f32
            x = y.reshape(H, W, y.shape[-1])
        else:
            (wf,) = param_refs[p:p + 1]
            p += 1
            y = jnp.dot(lhs, wf[...], preferred_element_type=jnp.float32)
            o_ref[0] = y.astype(o_ref.dtype)          # (Hout*Wout, nc)


# ----------------------------------------------------------------------------
# Wrapper: one pallas_call for the whole decoder
# ----------------------------------------------------------------------------
def simple_decoder_forward(x_nchw, layers):
    """Fused Pallas forward of SimpleDecoder.  x_nchw: (N, C, H, W) float32."""
    N, C0, H0, W0 = x_nchw.shape
    x = jnp.transpose(x_nchw, (0, 2, 3, 1)).astype(jnp.float32)   # NHWC

    flat_params, glu_flags, lhs_scratch = [], [], []
    H, W, C = H0, W0, C0
    for lyr in layers:
        cin = C
        if lyr["glu"]:
            flat_params += [lyr["wa"], lyr["ba"], lyr["wb"], lyr["bb"]]
            glu_flags.append(True)
            H, W = 2 * H, 2 * W
            C = lyr["wa"].shape[1]
            assert lyr["wa"].shape[0] == 9 * cin
        else:
            flat_params += [lyr["w"]]
            glu_flags.append(False)
            C = lyr["w"].shape[1]
            assert lyr["w"].shape[0] == 9 * cin
        # Per-stage im2col operand, VMEM-resident only.
        lhs_scratch.append(pltpu.VMEM((H, W, 9 * cin), jnp.bfloat16))
    Hout, Wout, Cout = H, W, C

    kernel = functools.partial(_decoder_kernel, glu_flags=tuple(glu_flags))

    in_specs = [pl.BlockSpec((1, H0, W0, C0), lambda n: (n, 0, 0, 0))]
    in_specs += [pl.BlockSpec(prm.shape, lambda n: (0, 0))
                 for prm in flat_params]

    # TODO(synk): for real FastGAN resolutions, tile the grid over output rows
    # (8-row multiples with a 1-row halo) so per-stage buffers stay within
    # v5e's 16 MiB / v7x's 32 MiB default scoped-VMEM limits.
    out_flat = pl.pallas_call(
        kernel,
        out_shape=jax.ShapeDtypeStruct((N, Hout * Wout, Cout), jnp.float32),
        grid=(N,),
        in_specs=in_specs,
        out_specs=pl.BlockSpec((1, Hout * Wout, Cout), lambda n: (n, 0, 0)),
        scratch_shapes=lhs_scratch,
        compiler_params=pltpu.CompilerParams(
            # batch items are independent -> shard across TCs on v7x megacore
            dimension_semantics=("parallel",)),
    )(x, *flat_params)

    out = out_flat.reshape(N, Hout, Wout, Cout)
    return jnp.transpose(out, (0, 3, 1, 2))                       # NCHW


# ----------------------------------------------------------------------------
# Parameter construction (mirrors SimpleDecoder.__init__, eval mode)
# ----------------------------------------------------------------------------
def _spectral_norm(w):
    """Divide a conv weight (Cout, Cin, 3, 3) by its largest singular value.
    TODO(synk): torch spectral_norm uses a persistent one-step power-iteration
    estimate of sigma; the exact value is used here."""
    mat = w.reshape(w.shape[0], -1)
    return w / jnp.linalg.norm(mat, ord=2)


def _flatten_conv(w):
    """(Cout, Cin, 3, 3) torch OIHW -> (9*Cin, Cout) tap-major matmul weight."""
    cout, cin = w.shape[0], w.shape[1]
    return jnp.transpose(w, (2, 3, 1, 0)).reshape(9 * cin, cout)


def make_simple_decoder_params(nfc, in_res, out_res, nfc_in, nc=3, seed=0):
    decoder_nfc = {
        k: v // 2 for k, v in nfc.items()
        if k[0] >= in_res[0] and k[1] >= in_res[1]
        and k[0] <= out_res[0] and k[1] <= out_res[1]
    }
    sizes = sorted(decoder_nfc.keys(), key=lambda x: x[0])

    key = jax.random.PRNGKey(seed)
    eps = 1e-5
    layers = []
    current_nfc = nfc_in
    for i in range(len(sizes) - 1):
        next_nfc = decoder_nfc[sizes[i + 1]]
        cout = 2 * next_nfc
        key, wk = jax.random.split(key)
        w = 0.1 * jax.random.normal(wk, (cout, current_nfc, 3, 3), jnp.float32)
        w = _spectral_norm(w)
        # BatchNorm2d eval mode, default stats: gamma=1, beta=0, mean=0, var=1.
        # TODO(synk): train-mode batch statistics are not computed.
        gamma = jnp.ones((cout,), jnp.float32)
        beta = jnp.zeros((cout,), jnp.float32)
        r_mean = jnp.zeros((cout,), jnp.float32)
        r_var = jnp.ones((cout,), jnp.float32)
        scale = gamma / jnp.sqrt(r_var + eps)
        bias = beta - r_mean * scale
        wflat = _flatten_conv(w) * scale[None, :]      # BN scale folded into W
        half = cout // 2
        layers.append(dict(
            glu=True,
            wa=wflat[:, :half].astype(jnp.bfloat16),
            ba=bias[:half].reshape(1, half).astype(jnp.float32),
            wb=wflat[:, half:].astype(jnp.bfloat16),
            bb=bias[half:].reshape(1, half).astype(jnp.float32),
        ))
        current_nfc = next_nfc

    key, wk = jax.random.split(key)
    w = 0.1 * jax.random.normal(wk, (nc, current_nfc, 3, 3), jnp.float32)
    w = _spectral_norm(w)
    layers.append(dict(glu=False, w=_flatten_conv(w).astype(jnp.bfloat16)))
    return layers


# ----------------------------------------------------------------------------
# Pure-JAX reference (XLA conv) with identical bf16 weight quantisation
# ----------------------------------------------------------------------------
def _reference_forward(x_nchw, layers):
    x = jnp.transpose(x_nchw, (0, 2, 3, 1)).astype(jnp.float32)
    for lyr in layers:
        if lyr["glu"]:
            x = jnp.repeat(jnp.repeat(x, 2, axis=1), 2, axis=2)
            wflat = jnp.concatenate([lyr["wa"], lyr["wb"]], axis=-1)
            bias = jnp.concatenate([lyr["ba"], lyr["bb"]], axis=-1)[0]
        else:
            wflat = lyr["w"]
            bias = None
        cin, cout = wflat.shape[0] // 9, wflat.shape[1]
        w_hwio = wflat.reshape(3, 3, cin, cout)
        y = lax.conv_general_dilated(
            x.astype(jnp.bfloat16), w_hwio, (1, 1), "SAME",
            dimension_numbers=("NHWC", "HWIO", "NHWC"),
            preferred_element_type=jnp.float32)
        if bias is not None:
            y = y + bias
        if lyr["glu"]:
            half = cout // 2
            y = y[..., :half] * jax.nn.sigmoid(y[..., half:])
        x = y
    return jnp.transpose(x, (0, 3, 1, 2))


if __name__ == "__main__":
    # Small synthetic configuration consistent with the module's __init__.
    nfc = {(4, 4): 32, (8, 8): 16, (16, 16): 8}
    in_res, out_res = (4, 4), (16, 16)
    nfc_in, nc = 16, 3

    layers = make_simple_decoder_params(nfc, in_res, out_res, nfc_in, nc,
                                        seed=0)

    key = jax.random.PRNGKey(0)
    x = jax.random.normal(key, (2, nfc_in, in_res[0], in_res[1]), jnp.float32)

    out = jax.block_until_ready(simple_decoder_forward(x, layers))
    ref = jax.block_until_ready(_reference_forward(x, layers))

    assert out.shape == (2, nc, out_res[0], out_res[1]), out.shape
    max_err = float(jnp.max(jnp.abs(out - ref)))
    assert jnp.allclose(out, ref, atol=1e-3, rtol=1e-3), max_err

    print("KERNEL_OK")
</pallas_src>

<mosaic_0001>
module attributes {stable_mosaic.version = 11 : i64} {
  func.func @_decoder_kernel(%arg0: i32, %arg1: memref<1x4x4x16xf32, #tpu.memory_space<vmem>>, %arg2: memref<144x8xbf16, #tpu.memory_space<vmem>>, %arg3: memref<1x8xf32, #tpu.memory_space<vmem>>, %arg4: memref<144x8xbf16, #tpu.memory_space<vmem>>, %arg5: memref<1x8xf32, #tpu.memory_space<vmem>>, %arg6: memref<72x4xbf16, #tpu.memory_space<vmem>>, %arg7: memref<1x4xf32, #tpu.memory_space<vmem>>, %arg8: memref<72x4xbf16, #tpu.memory_space<vmem>>, %arg9: memref<1x4xf32, #tpu.memory_space<vmem>>, %arg10: memref<36x3xbf16, #tpu.memory_space<vmem>>, %arg11: memref<1x256x3xf32, #tpu.memory_space<vmem>>, %arg12: memref<8x8x144xbf16, #tpu.memory_space<vmem>>, %arg13: memref<16x16x72xbf16, #tpu.memory_space<vmem>>, %arg14: memref<16x16x36xbf16, #tpu.memory_space<vmem>>) attributes {dimension_semantics = [#tpu.dimension_semantics<parallel>], iteration_bounds = array<i64: 2>, scalar_prefetch = 0 : i64, scratch_operands = 3 : i64, tpu.core_type = #tpu.core_type<tc>, window_params = [{transform_indices = @transform_0, window_bounds = array<i64: 1, 4, 4, 16>}, {pipeline_mode = #tpu.pipeline_mode<synchronous>, transform_indices = @transform_1, window_bounds = array<i64: 144, 8>}, {pipeline_mode = #tpu.pipeline_mode<synchronous>, transform_indices = @transform_2, window_bounds = array<i64: 1, 8>}, {pipeline_mode = #tpu.pipeline_mode<synchronous>, transform_indices = @transform_3, window_bounds = array<i64: 144, 8>}, {pipeline_mode = #tpu.pipeline_mode<synchronous>, transform_indices = @transform_4, window_bounds = array<i64: 1, 8>}, {pipeline_mode = #tpu.pipeline_mode<synchronous>, transform_indices = @transform_5, window_bounds = array<i64: 72, 4>}, {pipeline_mode = #tpu.pipeline_mode<synchronous>, transform_indices = @transform_6, window_bounds = array<i64: 1, 4>}, {pipeline_mode = #tpu.pipeline_mode<synchronous>, transform_indices = @transform_7, window_bounds = array<i64: 72, 4>}, {pipeline_mode = #tpu.pipeline_mode<synchronous>, transform_indices = @transform_8, window_bounds = array<i64: 1, 4>}, {pipeline_mode = #tpu.pipeline_mode<synchronous>, transform_indices = @transform_9, window_bounds = array<i64: 36, 3>}, {transform_indices = @transform_10, window_bounds = array<i64: 1, 256, 3>}]} {
    %c0 = arith.constant 0 : index
    %c0_0 = arith.constant 0 : index
    %c0_1 = arith.constant 0 : index
    %c0_2 = arith.constant 0 : index
    %0 = vector.load %arg1[%c0, %c0_0, %c0_1, %c0_2] : memref<1x4x4x16xf32, #tpu.memory_space<vmem>>, vector<1x4x4x16xf32>
    %1 = vector.shape_cast %0 : vector<1x4x4x16xf32> to vector<4x4x16xf32>
    %2 = vector.shape_cast %1 : vector<4x4x16xf32> to vector<4x4x1x16xf32>
    %3 = vector.shape_cast %2 : vector<4x4x1x16xf32> to vector<4x4x1x16xf32>
    %4 = vector.broadcast %3 : vector<4x4x1x16xf32> to vector<4x4x2x16xf32>
    %5 = vector.shape_cast %4 : vector<4x4x2x16xf32> to vector<4x8x16xf32>
    %6 = vector.shape_cast %5 : vector<4x8x16xf32> to vector<4x1x8x16xf32>
    %7 = vector.shape_cast %6 : vector<4x1x8x16xf32> to vector<4x1x8x16xf32>
    %8 = vector.broadcast %7 : vector<4x1x8x16xf32> to vector<4x2x8x16xf32>
    %9 = vector.shape_cast %8 : vector<4x2x8x16xf32> to vector<8x8x16xf32>
    %10 = arith.truncf %9 : vector<8x8x16xf32> to vector<8x8x16xbf16>
    %cst = arith.constant 0.000000e+00 : bf16
    %11 = vector.broadcast %cst : bf16 to vector<8x8x144xbf16>
    %c0_3 = arith.constant 0 : index
    %c0_4 = arith.constant 0 : index
    %c0_5 = arith.constant 0 : index
    %12 = vector.load %arg12[%c0_3, %c0_4, %c0_5] : memref<8x8x144xbf16, #tpu.memory_space<vmem>>, vector<8x8x144xbf16>
    tpu.vector_store %arg12[%c0_3, %c0_4, %c0_5], %11 {strides = array<i32>} : memref<8x8x144xbf16, #tpu.memory_space<vmem>>, vector<8x8x144xbf16>,
    %13 = vector.extract_strided_slice %10 {offsets = [0, 0, 0], sizes = [7, 7, 16], strides = [1, 1, 1]} : vector<8x8x16xbf16> to vector<7x7x16xbf16>
    %c1 = arith.constant 1 : index
    %c1_6 = arith.constant 1 : index
    %c0_7 = arith.constant 0 : index
    %14 = vector.load %arg12[%c1, %c1_6, %c0_7] : memref<8x8x144xbf16, #tpu.memory_space<vmem>>, vector<7x7x16xbf16>
    tpu.vector_store %arg12[%c1, %c1_6, %c0_7], %13 {strides = array<i32>} : memref<8x8x144xbf16, #tpu.memory_space<vmem>>, vector<7x7x16xbf16>,
    %15 = vector.extract_strided_slice %10 {offsets = [0, 0, 0], sizes = [7, 8, 16], strides = [1, 1, 1]} : vector<8x8x16xbf16> to vector<7x8x16xbf16>
    %c1_8 = arith.constant 1 : index
    %c0_9 = arith.constant 0 : index
    %c16 = arith.constant 16 : index
    %16 = vector.load %arg12[%c1_8, %c0_9, %c16] : memref<8x8x144xbf16, #tpu.memory_space<vmem>>, vector<7x8x16xbf16>
    tpu.vector_store %arg12[%c1_8, %c0_9, %c16], %15 {strides = array<i32>} : memref<8x8x144xbf16, #tpu.memory_space<vmem>>, vector<7x8x16xbf16>,
    %17 = vector.extract_strided_slice %10 {offsets = [0, 1, 0], sizes = [7, 7, 16], strides = [1, 1, 1]} : vector<8x8x16xbf16> to vector<7x7x16xbf16>
    %c1_10 = arith.constant 1 : index
    %c0_11 = arith.constant 0 : index
    %c32 = arith.constant 32 : index
    %18 = vector.load %arg12[%c1_10, %c0_11, %c32] : memref<8x8x144xbf16, #tpu.memory_space<vmem>>, vector<7x7x16xbf16>
    tpu.vector_store %arg12[%c1_10, %c0_11, %c32], %17 {strides = array<i32>} : memref<8x8x144xbf16, #tpu.memory_space<vmem>>, vector<7x7x16xbf16>,
    %19 = vector.extract_strided_slice %10 {offsets = [0, 0, 0], sizes = [8, 7, 16], strides = [1, 1, 1]} : vector<8x8x16xbf16> to vector<8x7x16xbf16>
    %c0_12 = arith.constant 0 : index
    %c1_13 = arith.constant 1 : index
    %c48 = arith.constant 48 : index
    %20 = vector.load %arg12[%c0_12, %c1_13, %c48] : memref<8x8x144xbf16, #tpu.memory_space<vmem>>, vector<8x7x16xbf16>
    tpu.vector_store %arg12[%c0_12, %c1_13, %c48], %19 {strides = array<i32>} : memref<8x8x144xbf16, #tpu.memory_space<vmem>>, vector<8x7x16xbf16>,
    %c0_14 = arith.constant 0 : index
    %c0_15 = arith.constant 0 : index
    %c64 = arith.constant 64 : index
    %21 = vector.load %arg12[%c0_14, %c0_15, %c64] : memref<8x8x144xbf16, #tpu.memory_space<vmem>>, vector<8x8x16xbf16>
    tpu.vector_store %arg12[%c0_14, %c0_15, %c64], %10 {strides = array<i32>} : memref<8x8x144xbf16, #tpu.memory_space<vmem>>, vector<8x8x16xbf16>,
    %22 = vector.extract_strided_slice %10 {offsets = [0, 1, 0], sizes = [8, 7, 16], strides = [1, 1, 1]} : vector<8x8x16xbf16> to vector<8x7x16xbf16>
    %c0_16 = arith.constant 0 : index
    %c0_17 = arith.constant 0 : index
    %c80 = arith.constant 80 : index
    %23 = vector.load %arg12[%c0_16, %c0_17, %c80] : memref<8x8x144xbf16, #tpu.memory_space<vmem>>, vector<8x7x16xbf16>
    tpu.vector_store %arg12[%c0_16, %c0_17, %c80], %22 {strides = array<i32>} : memref<8x8x144xbf16, #tpu.memory_space<vmem>>, vector<8x7x16xbf16>,
    %24 = vector.extract_strided_slice %10 {offsets = [1, 0, 0], sizes = [7, 7, 16], strides = [1, 1, 1]} : vector<8x8x16xbf16> to vector<7x7x16xbf16>
    %c0_18 = arith.constant 0 : index
    %c1_19 = arith.constant 1 : index
    %c96 = arith.constant 96 : index
    %25 = vector.load %arg12[%c0_18, %c1_19, %c96] : memref<8x8x144xbf16, #tpu.memory_space<vmem>>, vector<7x7x16xbf16>
    tpu.vector_store %arg12[%c0_18, %c1_19, %c96], %24 {strides = array<i32>} : memref<8x8x144xbf16, #tpu.memory_space<vmem>>, vector<7x7x16xbf16>,
    %26 = vector.extract_strided_slice %10 {offsets = [1, 0, 0], sizes = [7, 8, 16], strides = [1, 1, 1]} : vector<8x8x16xbf16> to vector<7x8x16xbf16>
    %c0_20 = arith.constant 0 : index
    %c0_21 = arith.constant 0 : index
    %c112 = arith.constant 112 : index
    %27 = vector.load %arg12[%c0_20, %c0_21, %c112] : memref<8x8x144xbf16, #tpu.memory_space<vmem>>, vector<7x8x16xbf16>
    tpu.vector_store %arg12[%c0_20, %c0_21, %c112], %26 {strides = array<i32>} : memref<8x8x144xbf16, #tpu.memory_space<vmem>>, vector<7x8x16xbf16>,
    %28 = vector.extract_strided_slice %10 {offsets = [1, 1, 0], sizes = [7, 7, 16], strides = [1, 1, 1]} : vector<8x8x16xbf16> to vector<7x7x16xbf16>
    %c0_22 = arith.constant 0 : index
    %c0_23 = arith.constant 0 : index
    %c128 = arith.constant 128 : index
    %29 = vector.load %arg12[%c0_22, %c0_23, %c128] : memref<8x8x144xbf16, #tpu.memory_space<vmem>>, vector<7x7x16xbf16>
    tpu.vector_store %arg12[%c0_22, %c0_23, %c128], %28 {strides = array<i32>} : memref<8x8x144xbf16, #tpu.memory_space<vmem>>, vector<7x7x16xbf16>,
    %c0_24 = arith.constant 0 : index
    %c0_25 = arith.constant 0 : index
    %c0_26 = arith.constant 0 : index
    %30 = vector.load %arg12[%c0_24, %c0_25, %c0_26] : memref<8x8x144xbf16, #tpu.memory_space<vmem>>, vector<8x8x144xbf16>
    %31 = vector.shape_cast %30 : vector<8x8x144xbf16> to vector<64x144xbf16>
    %c0_27 = arith.constant 0 : index
    %c0_28 = arith.constant 0 : index
    %32 = vector.load %arg2[%c0_27, %c0_28] : memref<144x8xbf16, #tpu.memory_space<vmem>>, vector<144x8xbf16>
    %cst_29 = arith.constant dense<0.000000e+00> : vector<64x8xf32>
    %33 = tpu.matmul %31, %32, %cst_29 {dimension_numbers = #tpu.dot_dimension_numbers<[1], [0], [0], [1], [0, 0, 1, 1], [], []>} : vector<64x144xbf16>, vector<144x8xbf16>, vector<64x8xf32> -> vector<64x8xf32>
    %c0_30 = arith.constant 0 : index
    %c0_31 = arith.constant 0 : index
    %34 = vector.load %arg3[%c0_30, %c0_31] : memref<1x8xf32, #tpu.memory_space<vmem>>, vector<1x8xf32>
    %35 = vector.broadcast %34 : vector<1x8xf32> to vector<64x8xf32>
    %36 = arith.addf %33, %35 : vector<64x8xf32>
    %c0_32 = arith.constant 0 : index
    %c0_33 = arith.constant 0 : index
    %37 = vector.load %arg4[%c0_32, %c0_33] : memref<144x8xbf16, #tpu.memory_space<vmem>>, vector<144x8xbf16>
    %cst_34 = arith.constant dense<0.000000e+00> : vector<64x8xf32>
    %38 = tpu.matmul %31, %37, %cst_34 {dimension_numbers = #tpu.dot_dimension_numbers<[1], [0], [0], [1], [0, 0, 1, 1], [], []>} : vector<64x144xbf16>, vector<144x8xbf16>, vector<64x8xf32> -> vector<64x8xf32>
    %c0_35 = arith.constant 0 : index
    %c0_36 = arith.constant 0 : index
    %39 = vector.load %arg5[%c0_35, %c0_36] : memref<1x8xf32, #tpu.memory_space<vmem>>, vector<1x8xf32>
    %40 = vector.broadcast %39 : vector<1x8xf32> to vector<64x8xf32>
    %41 = arith.addf %38, %40 : vector<64x8xf32>
    %42 = arith.negf %41 : vector<64x8xf32>
    %43 = math.exp %42 : vector<64x8xf32>
    %cst_37 = arith.constant 1.000000e+00 : f32
    %44 = vector.broadcast %cst_37 : f32 to vector<64x8xf32>
    %45 = arith.addf %44, %43 : vector<64x8xf32>
    %46 = arith.divf %44, %45 : vector<64x8xf32>
    %47 = arith.mulf %36, %46 : vector<64x8xf32>
    %48 = vector.shape_cast %47 : vector<64x8xf32> to vector<8x8x8xf32>
    %49 = vector.shape_cast %48 : vector<8x8x8xf32> to vector<8x8x1x8xf32>
    %50 = vector.shape_cast %49 : vector<8x8x1x8xf32> to vector<8x8x1x8xf32>
    %51 = vector.broadcast %50 : vector<8x8x1x8xf32> to vector<8x8x2x8xf32>
    %52 = vector.shape_cast %51 : vector<8x8x2x8xf32> to vector<8x16x8xf32>
    %53 = vector.shape_cast %52 : vector<8x16x8xf32> to vector<8x1x16x8xf32>
    %54 = vector.shape_cast %53 : vector<8x1x16x8xf32> to vector<8x1x16x8xf32>
    %55 = vector.broadcast %54 : vector<8x1x16x8xf32> to vector<8x2x16x8xf32>
    %56 = vector.shape_cast %55 : vector<8x2x16x8xf32> to vector<16x16x8xf32>
    %57 = arith.truncf %56 : vector<16x16x8xf32> to vector<16x16x8xbf16>
    %cst_38 = arith.constant 0.000000e+00 : bf16
    %58 = vector.broadcast %cst_38 : bf16 to vector<16x16x72xbf16>
    %c0_39 = arith.constant 0 : index
    %c0_40 = arith.constant 0 : index
    %c0_41 = arith.constant 0 : index
    %59 = vector.load %arg13[%c0_39, %c0_40, %c0_41] : memref<16x16x72xbf16, #tpu.memory_space<vmem>>, vector<16x16x72xbf16>
    tpu.vector_store %arg13[%c0_39, %c0_40, %c0_41], %58 {strides = array<i32>} : memref<16x16x72xbf16, #tpu.memory_space<vmem>>, vector<16x16x72xbf16>,
    %60 = vector.extract_strided_slice %57 {offsets = [0, 0, 0], sizes = [15, 15, 8], strides = [1, 1, 1]} : vector<16x16x8xbf16> to vector<15x15x8xbf16>
    %c1_42 = arith.constant 1 : index
    %c1_43 = arith.constant 1 : index
    %c0_44 = arith.constant 0 : index
    %61 = vector.load %arg13[%c1_42, %c1_43, %c0_44] : memref<16x16x72xbf16, #tpu.memory_space<vmem>>, vector<15x15x8xbf16>
    tpu.vector_store %arg13[%c1_42, %c1_43, %c0_44], %60 {strides = array<i32>} : memref<16x16x72xbf16, #tpu.memory_space<vmem>>, vector<15x15x8xbf16>,
    %62 = vector.extract_strided_slice %57 {offsets = [0, 0, 0], sizes = [15, 16, 8], strides = [1, 1, 1]} : vector<16x16x8xbf16> to vector<15x16x8xbf16>
    %c1_45 = arith.constant 1 : index
    %c0_46 = arith.constant 0 : index
    %c8 = arith.constant 8 : index
    %63 = vector.load %arg13[%c1_45, %c0_46, %c8] : memref<16x16x72xbf16, #tpu.memory_space<vmem>>, vector<15x16x8xbf16>
    tpu.vector_store %arg13[%c1_45, %c0_46, %c8], %62 {strides = array<i32>} : memref<16x16x72xbf16, #tpu.memory_space<vmem>>, vector<15x16x8xbf16>,
    %64 = vector.extract_strided_slice %57 {offsets = [0, 1, 0], sizes = [15, 15, 8], strides = [1, 1, 1]} : vector<16x16x8xbf16> to vector<15x15x8xbf16>
    %c1_47 = arith.constant 1 : index
    %c0_48 = arith.constant 0 : index
    %c16_49 = arith.constant 16 : index
    %65 = vector.load %arg13[%c1_47, %c0_48, %c16_49] : memref<16x16x72xbf16, #tpu.memory_space<vmem>>, vector<15x15x8xbf16>
    tpu.vector_store %arg13[%c1_47, %c0_48, %c16_49], %64 {strides = array<i32>} : memref<16x16x72xbf16, #tpu.memory_space<vmem>>, vector<15x15x8xbf16>,
    %66 = vector.extract_strided_slice %57 {offsets = [0, 0, 0], sizes = [16, 15, 8], strides = [1, 1, 1]} : vector<16x16x8xbf16> to vector<16x15x8xbf16>
    %c0_50 = arith.constant 0 : index
    %c1_51 = arith.constant 1 : index
    %c24 = arith.constant 24 : index
    %67 = vector.load %arg13[%c0_50, %c1_51, %c24] : memref<16x16x72xbf16, #tpu.memory_space<vmem>>, vector<16x15x8xbf16>
    tpu.vector_store %arg13[%c0_50, %c1_51, %c24], %66 {strides = array<i32>} : memref<16x16x72xbf16, #tpu.memory_space<vmem>>, vector<16x15x8xbf16>,
    %c0_52 = arith.constant 0 : index
    %c0_53 = arith.constant 0 : index
    %c32_54 = arith.constant 32 : index
    %68 = vector.load %arg13[%c0_52, %c0_53, %c32_54] : memref<16x16x72xbf16, #tpu.memory_space<vmem>>, vector<16x16x8xbf16>
    tpu.vector_store %arg13[%c0_52, %c0_53, %c32_54], %57 {strides = array<i32>} : memref<16x16x72xbf16, #tpu.memory_space<vmem>>, vector<16x16x8xbf16>,
    %69 = vector.extract_strided_slice %57 {offsets = [0, 1, 0], sizes = [16, 15, 8], strides = [1, 1, 1]} : vector<16x16x8xbf16> to vector<16x15x8xbf16>
    %c0_55 = arith.constant 0 : index
    %c0_56 = arith.constant 0 : index
    %c40 = arith.constant 40 : index
    %70 = vector.load %arg13[%c0_55, %c0_56, %c40] : memref<16x16x72xbf16, #tpu.memory_space<vmem>>, vector<16x15x8xbf16>
    tpu.vector_store %arg13[%c0_55, %c0_56, %c40], %69 {strides = array<i32>} : memref<16x16x72xbf16, #tpu.memory_space<vmem>>, vector<16x15x8xbf16>,
    %71 = vector.extract_strided_slice %57 {offsets = [1, 0, 0], sizes = [15, 15, 8], strides = [1, 1, 1]} : vector<16x16x8xbf16> to vector<15x15x8xbf16>
    %c0_57 = arith.constant 0 : index
    %c1_58 = arith.constant 1 : index
    %c48_59 = arith.constant 48 : index
    %72 = vector.load %arg13[%c0_57, %c1_58, %c48_59] : memref<16x16x72xbf16, #tpu.memory_space<vmem>>, vector<15x15x8xbf16>
    tpu.vector_store %arg13[%c0_57, %c1_58, %c48_59], %71 {strides = array<i32>} : memref<16x16x72xbf16, #tpu.memory_space<vmem>>, vector<15x15x8xbf16>,
    %73 = vector.extract_strided_slice %57 {offsets = [1, 0, 0], sizes = [15, 16, 8], strides = [1, 1, 1]} : vector<16x16x8xbf16> to vector<15x16x8xbf16>
    %c0_60 = arith.constant 0 : index
    %c0_61 = arith.constant 0 : index
    %c56 = arith.constant 56 : index
    %74 = vector.load %arg13[%c0_60, %c0_61, %c56] : memref<16x16x72xbf16, #tpu.memory_space<vmem>>, vector<15x16x8xbf16>
    tpu.vector_store %arg13[%c0_60, %c0_61, %c56], %73 {strides = array<i32>} : memref<16x16x72xbf16, #tpu.memory_space<vmem>>, vector<15x16x8xbf16>,
    %75 = vector.extract_strided_slice %57 {offsets = [1, 1, 0], sizes = [15, 15, 8], strides = [1, 1, 1]} : vector<16x16x8xbf16> to vector<15x15x8xbf16>
    %c0_62 = arith.constant 0 : index
    %c0_63 = arith.constant 0 : index
    %c64_64 = arith.constant 64 : index
    %76 = vector.load %arg13[%c0_62, %c0_63, %c64_64] : memref<16x16x72xbf16, #tpu.memory_space<vmem>>, vector<15x15x8xbf16>
    tpu.vector_store %arg13[%c0_62, %c0_63, %c64_64], %75 {strides = array<i32>} : memref<16x16x72xbf16, #tpu.memory_space<vmem>>, vector<15x15x8xbf16>,
    %c0_65 = arith.constant 0 : index
    %c0_66 = arith.constant 0 : index
    %c0_67 = arith.constant 0 : index
    %77 = vector.load %arg13[%c0_65, %c0_66, %c0_67] : memref<16x16x72xbf16, #tpu.memory_space<vmem>>, vector<16x16x72xbf16>
    %78 = vector.shape_cast %77 : vector<16x16x72xbf16> to vector<256x72xbf16>
    %c0_68 = arith.constant 0 : index
    %c0_69 = arith.constant 0 : index
    %79 = vector.load %arg6[%c0_68, %c0_69] : memref<72x4xbf16, #tpu.memory_space<vmem>>, vector<72x4xbf16>
    %cst_70 = arith.constant dense<0.000000e+00> : vector<256x4xf32>
    %80 = tpu.matmul %78, %79, %cst_70 {dimension_numbers = #tpu.dot_dimension_numbers<[1], [0], [0], [1], [0, 0, 1, 1], [], []>} : vector<256x72xbf16>, vector<72x4xbf16>, vector<256x4xf32> -> vector<256x4xf32>
    %c0_71 = arith.constant 0 : index
    %c0_72 = arith.constant 0 : index
    %81 = vector.load %arg7[%c0_71, %c0_72] : memref<1x4xf32, #tpu.memory_space<vmem>>, vector<1x4xf32>
    %82 = vector.broadcast %81 : vector<1x4xf32> to vector<256x4xf32>
    %83 = arith.addf %80, %82 : vector<256x4xf32>
    %c0_73 = arith.constant 0 : index
    %c0_74 = arith.constant 0 : index
    %84 = vector.load %arg8[%c0_73, %c0_74] : memref<72x4xbf16, #tpu.memory_space<vmem>>, vector<72x4xbf16>
    %cst_75 = arith.constant dense<0.000000e+00> : vector<256x4xf32>
    %85 = tpu.matmul %78, %84, %cst_75 {dimension_numbers = #tpu.dot_dimension_numbers<[1], [0], [0], [1], [0, 0, 1, 1], [], []>} : vector<256x72xbf16>, vector<72x4xbf16>, vector<256x4xf32> -> vector<256x4xf32>
    %c0_76 = arith.constant 0 : index
    %c0_77 = arith.constant 0 : index
    %86 = vector.load %arg9[%c0_76, %c0_77] : memref<1x4xf32, #tpu.memory_space<vmem>>, vector<1x4xf32>
    %87 = vector.broadcast %86 : vector<1x4xf32> to vector<256x4xf32>
    %88 = arith.addf %85, %87 : vector<256x4xf32>
    %89 = arith.negf %88 : vector<256x4xf32>
    %90 = math.exp %89 : vector<256x4xf32>
    %cst_78 = arith.constant 1.000000e+00 : f32
    %91 = vector.broadcast %cst_78 : f32 to vector<256x4xf32>
    %92 = arith.addf %91, %90 : vector<256x4xf32>
    %93 = arith.divf %91, %92 : vector<256x4xf32>
    %94 = arith.mulf %83, %93 : vector<256x4xf32>
    %95 = vector.shape_cast %94 : vector<256x4xf32> to vector<16x16x4xf32>
    %96 = arith.truncf %95 : vector<16x16x4xf32> to vector<16x16x4xbf16>
    %cst_79 = arith.constant 0.000000e+00 : bf16
    %97 = vector.broadcast %cst_79 : bf16 to vector<16x16x36xbf16>
    %c0_80 = arith.constant 0 : index
    %c0_81 = arith.constant 0 : index
    %c0_82 = arith.constant 0 : index
    %98 = vector.load %arg14[%c0_80, %c0_81, %c0_82] : memref<16x16x36xbf16, #tpu.memory_space<vmem>>, vector<16x16x36xbf16>
    tpu.vector_store %arg14[%c0_80, %c0_81, %c0_82], %97 {strides = array<i32>} : memref<16x16x36xbf16, #tpu.memory_space<vmem>>, vector<16x16x36xbf16>,
    %99 = vector.extract_strided_slice %96 {offsets = [0, 0, 0], sizes = [15, 15, 4], strides = [1, 1, 1]} : vector<16x16x4xbf16> to vector<15x15x4xbf16>
    %c1_83 = arith.constant 1 : index
    %c1_84 = arith.constant 1 : index
    %c0_85 = arith.constant 0 : index
    %100 = vector.load %arg14[%c1_83, %c1_84, %c0_85] : memref<16x16x36xbf16, #tpu.memory_space<vmem>>, vector<15x15x4xbf16>
    tpu.vector_store %arg14[%c1_83, %c1_84, %c0_85], %99 {strides = array<i32>} : memref<16x16x36xbf16, #tpu.memory_space<vmem>>, vector<15x15x4xbf16>,
    %101 = vector.extract_strided_slice %96 {offsets = [0, 0, 0], sizes = [15, 16, 4], strides = [1, 1, 1]} : vector<16x16x4xbf16> to vector<15x16x4xbf16>
    %c1_86 = arith.constant 1 : index
    %c0_87 = arith.constant 0 : index
    %c4 = arith.constant 4 : index
    %102 = vector.load %arg14[%c1_86, %c0_87, %c4] : memref<16x16x36xbf16, #tpu.memory_space<vmem>>, vector<15x16x4xbf16>
    tpu.vector_store %arg14[%c1_86, %c0_87, %c4], %101 {strides = array<i32>} : memref<16x16x36xbf16, #tpu.memory_space<vmem>>, vector<15x16x4xbf16>,
    %103 = vector.extract_strided_slice %96 {offsets = [0, 1, 0], sizes = [15, 15, 4], strides = [1, 1, 1]} : vector<16x16x4xbf16> to vector<15x15x4xbf16>
    %c1_88 = arith.constant 1 : index
    %c0_89 = arith.constant 0 : index
    %c8_90 = arith.constant 8 : index
    %104 = vector.load %arg14[%c1_88, %c0_89, %c8_90] : memref<16x16x36xbf16, #tpu.memory_space<vmem>>, vector<15x15x4xbf16>
    tpu.vector_store %arg14[%c1_88, %c0_89, %c8_90], %103 {strides = array<i32>} : memref<16x16x36xbf16, #tpu.memory_space<vmem>>, vector<15x15x4xbf16>,
    %105 = vector.extract_strided_slice %96 {offsets = [0, 0, 0], sizes = [16, 15, 4], strides = [1, 1, 1]} : vector<16x16x4xbf16> to vector<16x15x4xbf16>
    %c0_91 = arith.constant 0 : index
    %c1_92 = arith.constant 1 : index
    %c12 = arith.constant 12 : index
    %106 = vector.load %arg14[%c0_91, %c1_92, %c12] : memref<16x16x36xbf16, #tpu.memory_space<vmem>>, vector<16x15x4xbf16>
    tpu.vector_store %arg14[%c0_91, %c1_92, %c12], %105 {strides = array<i32>} : memref<16x16x36xbf16, #tpu.memory_space<vmem>>, vector<16x15x4xbf16>,
    %c0_93 = arith.constant 0 : index
    %c0_94 = arith.constant 0 : index
    %c16_95 = arith.constant 16 : index
    %107 = vector.load %arg14[%c0_93, %c0_94, %c16_95] : memref<16x16x36xbf16, #tpu.memory_space<vmem>>, vector<16x16x4xbf16>
    tpu.vector_store %arg14[%c0_93, %c0_94, %c16_95], %96 {strides = array<i32>} : memref<16x16x36xbf16, #tpu.memory_space<vmem>>, vector<16x16x4xbf16>,
    %108 = vector.extract_strided_slice %96 {offsets = [0, 1, 0], sizes = [16, 15, 4], strides = [1, 1, 1]} : vector<16x16x4xbf16> to vector<16x15x4xbf16>
    %c0_96 = arith.constant 0 : index
    %c0_97 = arith.constant 0 : index
    %c20 = arith.constant 20 : index
    %109 = vector.load %arg14[%c0_96, %c0_97, %c20] : memref<16x16x36xbf16, #tpu.memory_space<vmem>>, vector<16x15x4xbf16>
    tpu.vector_store %arg14[%c0_96, %c0_97, %c20], %108 {strides = array<i32>} : memref<16x16x36xbf16, #tpu.memory_space<vmem>>, vector<16x15x4xbf16>,
    %110 = vector.extract_strided_slice %96 {offsets = [1, 0, 0], sizes = [15, 15, 4], strides = [1, 1, 1]} : vector<16x16x4xbf16> to vector<15x15x4xbf16>
    %c0_98 = arith.constant 0 : index
    %c1_99 = arith.constant 1 : index
    %c24_100 = arith.constant 24 : index
    %111 = vector.load %arg14[%c0_98, %c1_99, %c24_100] : memref<16x16x36xbf16, #tpu.memory_space<vmem>>, vector<15x15x4xbf16>
    tpu.vector_store %arg14[%c0_98, %c1_99, %c24_100], %110 {strides = array<i32>} : memref<16x16x36xbf16, #tpu.memory_space<vmem>>, vector<15x15x4xbf16>,
    %112 = vector.extract_strided_slice %96 {offsets = [1, 0, 0], sizes = [15, 16, 4], strides = [1, 1, 1]} : vector<16x16x4xbf16> to vector<15x16x4xbf16>
    %c0_101 = arith.constant 0 : index
    %c0_102 = arith.constant 0 : index
    %c28 = arith.constant 28 : index
    %113 = vector.load %arg14[%c0_101, %c0_102, %c28] : memref<16x16x36xbf16, #tpu.memory_space<vmem>>, vector<15x16x4xbf16>
    tpu.vector_store %arg14[%c0_101, %c0_102, %c28], %112 {strides = array<i32>} : memref<16x16x36xbf16, #tpu.memory_space<vmem>>, vector<15x16x4xbf16>,
    %114 = vector.extract_strided_slice %96 {offsets = [1, 1, 0], sizes = [15, 15, 4], strides = [1, 1, 1]} : vector<16x16x4xbf16> to vector<15x15x4xbf16>
    %c0_103 = arith.constant 0 : index
    %c0_104 = arith.constant 0 : index
    %c32_105 = arith.constant 32 : index
    %115 = vector.load %arg14[%c0_103, %c0_104, %c32_105] : memref<16x16x36xbf16, #tpu.memory_space<vmem>>, vector<15x15x4xbf16>
    tpu.vector_store %arg14[%c0_103, %c0_104, %c32_105], %114 {strides = array<i32>} : memref<16x16x36xbf16, #tpu.memory_space<vmem>>, vector<15x15x4xbf16>,
    %c0_106 = arith.constant 0 : index
    %c0_107 = arith.constant 0 : index
    %c0_108 = arith.constant 0 : index
    %116 = vector.load %arg14[%c0_106, %c0_107, %c0_108] : memref<16x16x36xbf16, #tpu.memory_space<vmem>>, vector<16x16x36xbf16>
    %117 = vector.shape_cast %116 : vector<16x16x36xbf16> to vector<256x36xbf16>
    %c0_109 = arith.constant 0 : index
    %c0_110 = arith.constant 0 : index
    %118 = vector.load %arg10[%c0_109, %c0_110] : memref<36x3xbf16, #tpu.memory_space<vmem>>, vector<36x3xbf16>
    %cst_111 = arith.constant dense<0.000000e+00> : vector<256x3xf32>
    %119 = tpu.matmul %117, %118, %cst_111 {dimension_numbers = #tpu.dot_dimension_numbers<[1], [0], [0], [1], [0, 0, 1, 1], [], []>} : vector<256x36xbf16>, vector<36x3xbf16>, vector<256x3xf32> -> vector<256x3xf32>
    %c0_112 = arith.constant 0 : index
    %c0_113 = arith.constant 0 : index
    %c0_114 = arith.constant 0 : index
    %120 = vector.load %arg11[%c0_112, %c0_113, %c0_114] : memref<1x256x3xf32, #tpu.memory_space<vmem>>, vector<1x256x3xf32>
    %121 = vector.shape_cast %120 : vector<1x256x3xf32> to vector<256x3xf32>
    %122 = vector.shape_cast %119 : vector<256x3xf32> to vector<1x256x3xf32>
    tpu.vector_store %arg11[%c0_112, %c0_113, %c0_114], %122 {strides = array<i32>} : memref<1x256x3xf32, #tpu.memory_space<vmem>>, vector<1x256x3xf32>,
    return
  }
  func.func @transform_0(%arg0: i32) -> (i32, i32, i32, i32) {
    %c0_i32 = arith.constant 0 : i32
    %c0_i32_0 = arith.constant 0 : i32
    %c0_i32_1 = arith.constant 0 : i32
    %c0_i32_2 = arith.constant 0 : i32
    return %arg0, %c0_i32, %c0_i32_0, %c0_i32_1 : i32, i32, i32, i32
  }
  func.func @transform_1(%arg0: i32) -> (i32, i32) {
    %c0_i32 = arith.constant 0 : i32
    %c0_i32_0 = arith.constant 0 : i32
    %c0_i32_1 = arith.constant 0 : i32
    return %c0_i32, %c0_i32_0 : i32, i32
  }
  func.func @transform_2(%arg0: i32) -> (i32, i32) {
    %c0_i32 = arith.constant 0 : i32
    %c0_i32_0 = arith.constant 0 : i32
    %c0_i32_1 = arith.constant 0 : i32
    return %c0_i32, %c0_i32_0 : i32, i32
  }
  func.func @transform_3(%arg0: i32) -> (i32, i32) {
    %c0_i32 = arith.constant 0 : i32
    %c0_i32_0 = arith.constant 0 : i32
    %c0_i32_1 = arith.constant 0 : i32
    return %c0_i32, %c0_i32_0 : i32, i32
  }
  func.func @transform_4(%arg0: i32) -> (i32, i32) {
    %c0_i32 = arith.constant 0 : i32
    %c0_i32_0 = arith.constant 0 : i32
    %c0_i32_1 = arith.constant 0 : i32
    return %c0_i32, %c0_i32_0 : i32, i32
  }
  func.func @transform_5(%arg0: i32) -> (i32, i32) {
    %c0_i32 = arith.constant 0 : i32
    %c0_i32_0 = arith.constant 0 : i32
    %c0_i32_1 = arith.constant 0 : i32
    return %c0_i32, %c0_i32_0 : i32, i32
  }
  func.func @transform_6(%arg0: i32) -> (i32, i32) {
    %c0_i32 = arith.constant 0 : i32
    %c0_i32_0 = arith.constant 0 : i32
    %c0_i32_1 = arith.constant 0 : i32
    return %c0_i32, %c0_i32_0 : i32, i32
  }
  func.func @transform_7(%arg0: i32) -> (i32, i32) {
    %c0_i32 = arith.constant 0 : i32
    %c0_i32_0 = arith.constant 0 : i32
    %c0_i32_1 = arith.constant 0 : i32
    return %c0_i32, %c0_i32_0 : i32, i32
  }
  func.func @transform_8(%arg0: i32) -> (i32, i32) {
    %c0_i32 = arith.constant 0 : i32
    %c0_i32_0 = arith.constant 0 : i32
    %c0_i32_1 = arith.constant 0 : i32
    return %c0_i32, %c0_i32_0 : i32, i32
  }
  func.func @transform_9(%arg0: i32) -> (i32, i32) {
    %c0_i32 = arith.constant 0 : i32
    %c0_i32_0 = arith.constant 0 : i32
    %c0_i32_1 = arith.constant 0 : i32
    return %c0_i32, %c0_i32_0 : i32, i32
  }
  func.func @transform_10(%arg0: i32) -> (i32, i32, i32) {
    %c0_i32 = arith.constant 0 : i32
    %c0_i32_0 = arith.constant 0 : i32
    %c0_i32_1 = arith.constant 0 : i32
    return %arg0, %c0_i32, %c0_i32_0 : i32, i32, i32
  }
}

</mosaic_0001>

<bundles_post_ra>
// kernel: tpu_custom_call.1
= control target key start
LH: loop header
LB: loop body
LE: loop exit
PB: predicated region body
PF: predicated region fallthrough
CT: control target
= control target key end

     0   :  { %s7293_s13 = smov 0   ;;  %s11333_s0 = inlined_call_operand.vmem [shape: f32[2,4,4,16], index: 0, kind: input, shape index: {}]   ;;  %s11334_s1 = inlined_call_operand.vmem [shape: bf16[144,8], index: 1, kind: input, shape index: {}]   ;;  %s11335_s2 = inlined_call_operand.vmem [shape: f32[1,8], index: 2, kind: input, shape index: {}]   ;;  %s11336_s3 = inlined_call_operand.vmem [shape: bf16[144,8], index: 3, kind: input, shape index: {}]   ;;  %s11337_s4 = inlined_call_operand.vmem [shape: f32[1,8], index: 4, kind: input, shape index: {}]   ;;  %s11338_s5 = inlined_call_operand.vmem [shape: bf16[72,4], index: 5, kind: input, shape index: {}]   ;;  %s11339_s6 = inlined_call_operand.vmem [shape: f32[1,4], index: 6, kind: input, shape index: {}]   ;;  %s11340_s7 = inlined_call_operand.vmem [shape: bf16[72,4], index: 7, kind: input, shape index: {}]   ;;  %s11341_s8 = inlined_call_operand.vmem [shape: f32[1,4], index: 8, kind: input, shape index: {}]   ;;  %s11342_s9 = inlined_call_operand.vmem [shape: bf16[36,3], index: 9, kind: input, shape index: {}]   ;;  %s11343_s10 = inlined_call_operand.vmem [shape: f32[2,256,3], index: 10, kind: output, shape index: {}]  }
   0x1 LB: > { %s6460_s14 = sadd.s32 4294967295, %s7218_s13   ;;  %p6464_p0 = scmp.ge.s32.totalorder %s7218_s13, 1  ;;  %s7218_s13 = sphi %s7293_s13, %s20_s13  }
   0x2   : > { %p312_p1 = scmp.lt.s32.totalorder %s7218_s13, 3 }
   0x4   : > { %p313_p2 = pnand %p6464_p0, %p312_p1 }
   0x6   : > { %316 = sbr.rel (%p313_p2) target bundleno = 1894 (0x766), region = 60 }
   0xb   : > { %p350_p3 = scmp.lt.s32.totalorder %s6460_s14, 1  ;;  %v380_v0 = vlaneseq  ;;  %v7220_v1 = vmov 1966171168   ;;  %v7221_v3 = vmov 1983009808   ;;  %vm11347_vm0 = vcmask 1043456  }
   0xc   : > { %v378_v2 = vunpack.c.l.s4 %v7220_v1  ;;  %v532_v4 = vunpack.c.l.s4 %v7221_v3  ;;  %vm606_vm1 = vcmask 130052   ;;  %v11344_v7 = vmov 0   ;;  %s7223_s23 = smov 16   ;;  %s7224_s12 = smov 64  }
   0xd   : > { %s11592_s14 = smov (!%p350_p3, %s6460_s14), 1  ;;  %v381_v5 = vshrl.u32 %v380_v0, 7  ;;  %vm607_vm2 = vmor %vm606_vm1, %vm11347_vm0  ;;  %1071 = vmatprep.subr.bf16.mxu0 %v11344_v7  ;;  %1215 = vmatprep.subr.bf16.mxu1 %v11344_v7  ;;  %vm11348_vm3 = vsmask.f32 3328  ;;  %vm11346_vm4 = vsmask.f32 7938 }
   0xe   : > { %v379_v6 = vunpack.c.0.s8 %v378_v2  ;;  %608 = vst.msk [vmem:[#allocation2] sm:$0xff] %vm607_vm2, %v11344_v7  ;;  %609 = vst.msk [vmem:[#allocation2 + $0x8] sm:$0xff] %vm607_vm2, %v11344_v7  ;;  %s6698_s15 = sshll.u32 %s11592_s14, 4  ;;  %v533_v8 = vunpack.c.0.s8 %v532_v4  ;;  %vm661_vm5 = vcmask 125952   ;;  %s7226_s20 = smov 48   ;;  %vm697_vm8 = vcmask 257152  }
   0xf   : > { %610 = vst.msk [vmem:[#allocation2 + $0x10] sm:$0xff] %vm607_vm2, %v11344_v7  ;;  %611 = vst.msk [vmem:[#allocation2 + $0x18] sm:$0xff] %vm607_vm2, %v11344_v7  ;;  %s354_s18 = scalar_lea.vmem %s11333_s0, %s6698_s15  ;;  %v7320_v10 = vsub.s32 0, %v381_v5  ;;  %s7225_s15 = smov 32   ;;  %vm733_vm9 = vcmask 388352   ;;  %vm769_vm11 = vcmask 519552  }
  0x10   : > { %612 = vst.msk [vmem:[#allocation2 + $0x20] sm:$0xff] %vm607_vm2, %v11344_v7  ;;  %613 = vst.msk [vmem:[#allocation2 + $0x28] sm:$0xff] %vm607_vm2, %v11344_v7  ;;  %v7318_v9 = vsub.s32 %v379_v6, %v381_v5  ;;  %v6469_v11 = vld.sshfl [vmem:[%s354_s18] sm:$0x33 pattern:$0x75316420]  ;;  %v7323_v15 = vsub.s32 %v533_v8, %v381_v5 }
  0x11   : > { %614 = vst.msk [vmem:[#allocation2 + $0x30] sm:$0xff] %vm607_vm2, %v11344_v7  ;;  %615 = vst.msk [vmem:[#allocation2 + $0x38] sm:$0xff] %vm607_vm2, %v11344_v7  ;;  %v376_v12 = vcombine.high %v6469_v11, %v6469_v11  ;;  %v6471_v14 = vld.sshfl [vmem:[%s354_s18 + $0x8] sm:$0x33 pattern:$0x75316420] }
  0x12   : > { %v383_v13 = vrot.slane %v6469_v11, %v7318_v9  ;;  %v424_v16 = vcombine.high %v6471_v14, %v6471_v14  ;;  %v431_v17 = vrot.slane %v6471_v14, %v7318_v9  ;;  %v6470_v18 = vld.sshfl [vmem:[%s354_s18 + $0x4] sm:$0x33 pattern:$0x75316420]  ;;  %v6975_v5 = vld [vmem:[%s11334_s1 + $0x38] sm:$0xff]   ;;  %vm7387_vm6 = vmand %vm661_vm5, %vm11348_vm3  ;;  %s7228_s25 = smov 96  }
  0x13   : > { %v390_v19 = vrot.slane %v376_v12, %v7318_v9  ;;  %v400_v22 = vcombine.high %v6470_v18, %v6470_v18  ;;  %v407_v26 = vrot.slane %v6470_v18, %v7318_v9  ;;  %v6472_v35 = vld.sshfl [vmem:[%s354_s18 + $0xc] sm:$0x33 pattern:$0x75316420]  ;;  %v6976_v8 = vld [vmem:[%s11336_s3 + $0x38] sm:$0xff]   ;;  %1072 = vmatpush1.bf16.msra.mxu0 %v6975_v5  ;;  %vm7395_vm7 = vmand %vm661_vm5, %vm11346_vm4  ;;  %s7227_s18 = smov 80  }
  0x14   : > { %v391_v20 = vcombine.high %v383_v13, %v383_v13  ;;  %v468_v21 = vrot.slane %v383_v13, %v7320_v10  ;;  %v438_v23 = vrot.slane %v424_v16, %v7318_v9  ;;  %v439_v24 = vcombine.high %v431_v17, %v431_v17  ;;  %1216 = vmatpush1.bf16.msra.mxu1 %v6976_v8  ;;  %s7229_s30 = smov 112   ;;  %vm7556_vm10 = vmand %vm733_vm9, %vm11348_vm3  ;;  %s7230_s19 = smov 56  }
  0x15   : > { %v500_v25 = vrot.slane %v431_v17, %v7320_v10  ;;  %v392_v27 = vcombine.high %v390_v19, %v390_v19  ;;  %v472_v28 = vrot.slane %v390_v19, %v7320_v10  ;;  %v414_v30 = vrot.slane %v400_v22, %v7318_v9  ;;  %1073 = vmatprep.subr.bf16.mxu0 %v11344_v7  ;;  %vm7565_vm12 = vmand %vm769_vm11, %vm11346_vm4  ;;  %s7231_s21 = smov 8   ;;  %s7232_s22 = smov 24  }
  0x16   : > { %v476_v29 = vrot.slane %v391_v20, %v7320_v10  ;;  %v440_v31 = vcombine.high %v438_v23, %v438_v23  ;;  %v504_v32 = vrot.slane %v438_v23, %v7320_v10  ;;  %v508_v33 = vrot.slane %v439_v24, %v7320_v10  ;;  %v664_v23 = vld [vmem:[#allocation2 + $0x8] sm:$0xf]  ;;  %v667_v24 = vld [vmem:[#allocation2 + $0x10] sm:$0xf]  ;;  %1217 = vmatprep.subr.bf16.mxu1 %v11344_v7  ;;  %s7233_s24 = smov 40   ;;  %s6699_s17 = sshll.u32 %s11592_s14, 8 }
  0x17   : > { %v415_v34 = vcombine.high %v407_v26, %v407_v26  ;;  %v480_v36 = vrot.slane %v392_v27, %v7320_v10  ;;  %v529_v37 = vcombine.low %v468_v21, %v472_v28  ;;  %v416_v38 = vcombine.high %v414_v30, %v414_v30  ;;  %v914_v28 = vld [vmem:[#allocation2 + $0x4] sm:$0xf]  ;;  %v6988_v27 = vld [vmem:[%s11336_s3 + $0x8] sm:$0xff]   ;;  %s11065_s14 = scalar_lea.vmem %s11343_s10, %s6699_s17 }
  0x18   : > { %v484_v39 = vrot.slane %v407_v26, %v7320_v10  ;;  %v512_v40 = vrot.slane %v440_v31, %v7320_v10  ;;  %v563_v41 = vcombine.low %v500_v25, %v504_v32  ;;  %v488_v42 = vrot.slane %v414_v30, %v7320_v10  ;;  %v6977_v25 = vld [vmem:[%s11334_s1 + $0x30] sm:$0xff]  }
  0x19   : > { %v492_v43 = vrot.slane %v415_v34, %v7320_v10  ;;  %v530_v44 = vcombine.low %v476_v29, %v480_v36  ;;  %v537_v45 = vrot.slane %v529_v37, %v7323_v15  ;;  %v496_v46 = vrot.slane %v416_v38, %v7320_v10  ;;  %v6978_v26 = vld [vmem:[%s11336_s3 + $0x30] sm:$0xff]   ;;  %1074 = vmatpush1.bf16.msra.mxu0 %v6977_v25 }
  0x1a   : > { %v448_v47 = vcombine.high %v6472_v35, %v6472_v35  ;;  %v564_v48 = vcombine.low %v508_v33, %v512_v40  ;;  %v571_v49 = vrot.slane %v563_v41, %v7323_v15  ;;  %v546_v50 = vcombine.low %v484_v39, %v488_v42  ;;  %v676_v33 = vld [vmem:[#allocation2 + $0x28] sm:$0xf]  ;;  %v679_v34 = vld [vmem:[#allocation2 + $0x30] sm:$0xf]  ;;  %v670_v40 = vld [vmem:[#allocation2 + $0x18] sm:$0xf]  ;;  %1218 = vmatpush1.bf16.msra.mxu1 %v6978_v26 }
  0x1b   : > { %v455_v51 = vrot.slane %v6472_v35, %v7318_v9  ;;  %v544_v52 = vrot.slane %v530_v44, %v7323_v15  ;;  %v547_v53 = vcombine.low %v492_v43, %v496_v46  ;;  %v673_v41 = vld [vmem:[#allocation2 + $0x20] sm:$0xf]  ;;  %v923_v42 = vld [vmem:[#allocation2 + $0x1c] sm:$0xf]  ;;  %v917_v46 = vld [vmem:[#allocation2 + $0xc] sm:$0xf]  ;;  %1075 = vmatprep.subr.bf16.mxu0 %v11344_v7  ;;  %1219 = vmatprep.subr.bf16.mxu1 %v11344_v7 }
  0x1c   : > { %v462_v54 = vrot.slane %v448_v47, %v7318_v9  ;;  %v578_v55 = vrot.slane %v564_v48, %v7323_v15  ;;  %v554_v56 = vrot.slane %v546_v50, %v7323_v15  ;;  %v920_v47 = vld [vmem:[#allocation2 + $0x14] sm:$0xf]  ;;  %v926_v48 = vld [vmem:[#allocation2 + $0x24] sm:$0xf]  ;;  %vm807_vm13 = vcmask 650752  }
  0x1d   : > { %v463_v57 = vcombine.high %v455_v51, %v455_v51  ;;  %v516_v58 = vrot.slane %v455_v51, %v7320_v10  ;;  %v545_v59 = vcombine.low %v537_v45, %v544_v52  ;;  %v561_v60 = vrot.slane %v547_v53, %v7323_v15  ;;  %v6979_v53 = vld [vmem:[%s11334_s1 + $0x28] sm:$0xff]   ;;  %v932_v26 = vld [vmem:[#allocation2 + $0x34] sm:$0xf] }
  0x1e   : > { %v464_v61 = vcombine.high %v462_v54, %v462_v54  ;;  %v520_v62 = vrot.slane %v462_v54, %v7320_v10  ;;  %v579_v63 = vcombine.low %v571_v49, %v578_v55  ;;  %v6980_v54 = vld [vmem:[%s11336_s3 + $0x28] sm:$0xff]   ;;  %1076 = vmatpush1.bf16.msra.mxu0 %v6979_v53  ;;  %vm828_vm14 = vcmask 781952  }
  0x1f   : > { %v524_v0 = vrot.slane %v463_v57, %v7320_v10  ;;  %v7353_v1 = vpack.c.bf16 %v545_v59, %v545_v59  ;;  %v562_v2 = vcombine.low %v554_v56, %v561_v60  ;;  %1220 = vmatpush1.bf16.msra.mxu1 %v6980_v54  ;;  %1077 = vmatprep.subr.bf16.mxu0 %v11344_v7  ;;  %vm7587_vm15 = vmand %vm828_vm14, %vm11348_vm3  ;;  %vm866_vm1 = vcmask 913152  }
  0x20   : > { %v528_v3 = vrot.slane %v464_v61, %v7320_v10  ;;  %v580_v4 = vcombine.low %v516_v58, %v520_v62  ;;  %v7359_v6 = vpack.c.bf16 %v579_v63, %v579_v63  ;;  %1221 = vmatprep.subr.bf16.mxu1 %v11344_v7  ;;  %vm7602_vm2 = vmand %vm866_vm1, %vm11346_vm4  ;;  %vm901_vm5 = vcmask 1044352  }
  0x21   : > { %685 = vrot.lane.b32.xlu0 %v7353_v1, %s7223_s23  ;;  %v7366_v11 = vpack.c.bf16 %v562_v2, %v562_v2  ;;  %v629_v12 = vshrl.u32 %v7353_v1, 16  ;;  %v632_v13 = vshll.u32 %v7353_v1, 16  ;;  %vm2362_vm9 = vsmask.f32 4368 }
  0x22   : > { %689 = vrot.lane.b32.xlu1 %v7359_v6, %s7223_s23  ;;  %v643_v14 = vshrl.u32 %v7359_v6, 16  ;;  %v646_v16 = vshll.u32 %v7359_v6, 16  ;;  %v581_v17 = vcombine.low %v524_v0, %v528_v3  ;;  %v588_v18 = vrot.slane %v580_v4, %v7323_v15 }
  0x23   : > { %v705_v19 = vrot.slane %v629_v12, 4  ;;  %v706_v20 = vrot.slane %v632_v13, 5  ;;  %v636_v21 = vshrl.u32 %v7366_v11, 16  ;;  %v639_v22 = vshll.u32 %v7366_v11, 16 }
  0x24   : > { %v631_v29 = vrot.slane %v629_v12, 7  ;;  %v645_v30 = vrot.slane %v643_v14, 7  ;;  %v713_v31 = vrot.slane %v643_v14, 4  ;;  %v714_v32 = vrot.slane %v646_v16, 5  ;;  %v6981_v12 = vld [vmem:[%s11334_s1 + $0x20] sm:$0xff]  }
  0x25   : > { %687 = vrot.lane.b32.xlu0 %v7366_v11, %s7223_s23  ;;  %v707_v35 = vor.u32 %v706_v20, %v705_v19  ;;  %v709_v36 = vrot.slane %v636_v21, 4  ;;  %v710_v37 = vrot.slane %v639_v22, 5  ;;  %v638_v38 = vrot.slane %v636_v21, 7  ;;  %1078 = vmatpush1.bf16.msra.mxu0 %v6981_v12  ;;  %v929_v21 = vld [vmem:[#allocation2 + $0x2c] sm:$0xf] }
  0x26   : > { %v7399_v43 = vor.u32 %v632_v13, %v631_v29  ;;  %v715_v44 = vor.u32 %v714_v32, %v713_v31  ;;  %v595_v45 = vrot.slane %v581_v17, %v7323_v15  ;;  %v7406_v52 = vor.u32 %v646_v16, %v645_v30  ;;  %v6982_v13 = vld [vmem:[%s11336_s3 + $0x20] sm:$0xff]   ;;  %v682_v17 = vld [vmem:[#allocation2 + $0x38] sm:$0xf]  ;;  %1079 = vmatprep.subr.bf16.mxu0 %v11344_v7  ;;  %v6985_v30 = vld [vmem:[%s11334_s1 + $0x10] sm:$0xff]  }
  0x27   : > { %v7402_v49 = vrot.slane %v707_v35, 4  ;;  %v711_v50 = vor.u32 %v710_v37, %v709_v36  ;;  %v7404_v51 = vor.u32 %v639_v22, %v638_v38  ;;  %1222 = vmatpush1.bf16.msra.mxu1 %v6982_v13  ;;  %v6983_v22 = vld [vmem:[%s11334_s1 + $0x18] sm:$0xff]   ;;  %v6986_v31 = vld [vmem:[%s11336_s3 + $0x10] sm:$0xff]   ;;  %v6989_v35 = vld [vmem:[%s11334_s1] sm:$0xff]   ;;  %vm2509_vm11 = vcmask 60416  }
  0x28   : > { %v7416_v55 = vrot.slane %v715_v44, 4  ;;  %v596_v56 = vcombine.low %v588_v18, %v595_v45  ;;  %v665_v57 = vsel %vm7395_vm7, %v7399_v43, %v664_v23  ;;  %v668_v58 = vsel %vm7395_vm7, %v7399_v43, %v667_v24  ;;  %v6984_v23 = vld [vmem:[%s11336_s3 + $0x18] sm:$0xff]   ;;  %1223 = vmatprep.subr.bf16.mxu1 %v11344_v7  ;;  %v6990_v36 = vld [vmem:[%s11336_s3] sm:$0xff]   ;;  %vm8147_vm14 = vmand %vm2509_vm11, %vm11346_vm4 }
  0x29   : > { %795 = vrot.lane.b32.xlu0 %v7353_v1, %s7224_s12  ;;  %721 = vrot.lane.b32.xlu1 %v7402_v49, %s7225_s15  ;;  %v915_v59 = vsel %vm7387_vm6, %v7402_v49, %v914_v28  ;;  %v7431_v60 = vrot.slane %v711_v50, 4  ;;  %666 = vst [vmem:[#allocation2 + $0x8] sm:$0xf] %v665_v57  ;;  %669 = vst [vmem:[#allocation2 + $0x10] sm:$0xf] %v668_v58  ;;  %v677_v61 = vsel %vm7395_vm7, %v7406_v52, %v676_v33  ;;  %v6991_v37 = vld [vmem:[%s11334_s1 + $0x40] sm:$0xff]  }
  0x2a   : > { %v680_v62 = vsel %vm7395_vm7, %v7406_v52, %v679_v34  ;;  %916 = vst [vmem:[#allocation2 + $0x4] sm:$0xf] %v915_v59  ;;  %v7439_v63 = vpack.c.bf16 %v596_v56, %v596_v56  ;;  %678 = vst [vmem:[#allocation2 + $0x28] sm:$0xf] %v677_v61  ;;  %v671_v0 = vsel %vm7395_vm7, %v7404_v51, %v670_v40  ;;  %1080 = vmatpush1.bf16.msra.mxu0 %v6983_v22  ;;  %v6987_v34 = vld [vmem:[%s11334_s1 + $0x8] sm:$0xff]   ;;  %v6992_v38 = vld [vmem:[%s11336_s3 + $0x40] sm:$0xff]  }
  0x2b   : > { %681 = vst [vmem:[#allocation2 + $0x30] sm:$0xf] %v680_v62  ;;  %v674_v2 = vsel %vm7395_vm7, %v7404_v51, %v673_v41  ;;  %v924_v3 = vsel %vm7387_vm6, %v7416_v55, %v923_v42  ;;  %v918_v4 = vsel %vm7387_vm6, %v7431_v60, %v917_v46  ;;  %v921_v5 = vsel %vm7387_vm6, %v7431_v60, %v920_v47  ;;  %v771_v47 = vld [vmem:[#allocation2] sm:$0xf] }
  0x2c   : > { %672 = vst [vmem:[#allocation2 + $0x18] sm:$0xf] %v671_v0  ;;  %675 = vst [vmem:[#allocation2 + $0x20] sm:$0xf] %v674_v2  ;;  %v927_v8 = vsel %vm7387_vm6, %v7416_v55, %v926_v48  ;;  %v650_v14 = vshrl.u32 %v7439_v63, 16  ;;  %v653_v16 = vshll.u32 %v7439_v63, 16  ;;  %1224 = vmatpush1.bf16.msra.mxu1 %v6984_v23  ;;  %1081 = vmatprep.subr.bf16.mxu0 %v11344_v7 }
  0x2d   : > { %925 = vst [vmem:[#allocation2 + $0x1c] sm:$0xf] %v924_v3  ;;  %919 = vst [vmem:[#allocation2 + $0xc] sm:$0xf] %v918_v4  ;;  %723 = vrot.lane.b32.xlu0 %v7431_v60, %s7225_s15  ;;  %757 = vrot.lane.b32.xlu1 %v7399_v43, %s7226_s20  ;;  %v7726_v4 = vld [vmem:[%s11337_s4] ss:$0 sm:$0xff] }
  0x2e   : > { %922 = vst [vmem:[#allocation2 + $0x14] sm:$0xf] %v921_v5  ;;  %928 = vst [vmem:[#allocation2 + $0x24] sm:$0xf] %v927_v8  ;;  %v652_v18 = vrot.slane %v650_v14, 7  ;;  %v718_v19 = vrot.slane %v653_v16, 5  ;;  %1225 = vmatprep.subr.bf16.mxu1 %v11344_v7  ;;  %1082 = vmatpush1.bf16.msra.mxu0 %v6985_v30 }
  0x2f   : > { %v717_v20 = vrot.slane %v650_v14, 4  ;;  %1083 = vmatprep.subr.bf16.mxu0 %v11344_v7  ;;  %vm11349_vm1 = vcmask 257216  }
  0x30   : > { %v655_v24 = vor.u32 %v653_v16, %v652_v18  ;;  %1226 = vmatpush1.bf16.msra.mxu1 %v6986_v31 }
  0x31   : > { %v719_v25 = vor.u32 %v718_v19, %v717_v20  ;;  %759 = vrot.lane.b32.xlu0 %v7404_v51, %s7226_s20  ;;  %797 = vrot.lane.b32.xlu1 %v7366_v11, %s7224_s12 }
  0x32   : > { %v683_v28 = vsel %vm7395_vm7, %v655_v24, %v682_v17  ;;  %1227 = vmatprep.subr.bf16.mxu1 %v11344_v7  ;;  %1084 = vmatpush1.bf16.msra.mxu0 %v6987_v34  ;;  %vm2288_vm7 = vcmask 584704  }
  0x33   : > { %v720_v29 = vrot.slane %v719_v25, 4  ;;  %684 = vst [vmem:[#allocation2 + $0x38] sm:$0xf] %v683_v28  ;;  %1085 = vmatprep.subr.bf16.mxu0 %v11344_v7  ;;  %2291 = vst.msk [vmem:[#allocation3 + $0x8] sm:$0xf] %vm2288_vm7, %v11344_v7 }
  0x34   : > { %1228 = vmatpush1.bf16.msra.mxu1 %v6988_v27  ;;  %2293 = vst.msk [vmem:[#allocation3 + $0x10] sm:$0xf] %vm2288_vm7, %v11344_v7  ;;  %2289 = vst.msk [vmem:[#allocation3] sm:$0xf] %vm2288_vm7, %v11344_v7 }
  0x35   : > { %v930_v32 = vsel %vm7387_vm6, %v720_v29, %v929_v21  ;;  %v933_v33 = vsel %vm7387_vm6, %v720_v29, %v932_v26  ;;  %799 = vrot.lane.b32.xlu0 %v7359_v6, %s7224_s12  ;;  %761 = vrot.lane.b32.xlu1 %v7406_v52, %s7226_s20  ;;  %vm1058_vm6 = vcmask 130048   ;;  %2290 = vst.msk [vmem:[#allocation3 + $0x4] sm:$0xf] %vm2288_vm7, %v11344_v7  ;;  %2292 = vst.msk [vmem:[#allocation3 + $0xc] sm:$0xf] %vm2288_vm7, %v11344_v7 }
  0x36   : > { %931 = vst [vmem:[#allocation2 + $0x2c] sm:$0xf] %v930_v32  ;;  %934 = vst [vmem:[#allocation2 + $0x34] sm:$0xf] %v933_v33  ;;  %1229 = vmatprep.subr.bf16.mxu1 %v11344_v7  ;;  %1086 = vmatpush1.bf16.msra.mxu0 %v6989_v35 }
  0x37   : > { %1101 = vmatprep.subr.bf16.mxu0 %v11344_v7  ;;  %2294 = vst.msk [vmem:[#allocation3 + $0x14] sm:$0xf] %vm2288_vm7, %v11344_v7  ;;  %2295 = vst.msk [vmem:[#allocation3 + $0x18] sm:$0xf] %vm2288_vm7, %v11344_v7 }
  0x38   : > { %1230 = vmatpush1.bf16.msra.mxu1 %v6990_v36  ;;  %2296 = vst.msk [vmem:[#allocation3 + $0x1c] sm:$0xf] %vm2288_vm7, %v11344_v7  ;;  %2297 = vst.msk [vmem:[#allocation3 + $0x20] sm:$0xf] %vm2288_vm7, %v11344_v7 }
  0x39   : > { %816 = vrot.lane.b32.xlu0 %v7402_v49, %s7227_s18  ;;  %725 = vrot.lane.b32.xlu1 %v7416_v55, %s7225_s15  ;;  %2298 = vst.msk [vmem:[#allocation3 + $0x24] sm:$0xf] %vm2288_vm7, %v11344_v7  ;;  %2299 = vst.msk [vmem:[#allocation3 + $0x28] sm:$0xf] %vm2288_vm7, %v11344_v7 }
  0x3a   : > { %1245 = vmatprep.subr.bf16.mxu1 %v11344_v7  ;;  %1102 = vmatpush2.bf16.msra.mxu0 %v6991_v37  ;;  %2300 = vst.msk [vmem:[#allocation3 + $0x2c] sm:$0xf] %vm2288_vm7, %v11344_v7  ;;  %2301 = vst.msk [vmem:[#allocation3 + $0x30] sm:$0xf] %vm2288_vm7, %v11344_v7 }
  0x3b   : > { %2302 = vst.msk [vmem:[#allocation3 + $0x34] sm:$0xf] %vm2288_vm7, %v11344_v7  ;;  %2303 = vst.msk [vmem:[#allocation3 + $0x38] sm:$0xf] %vm2288_vm7, %v11344_v7 }
  0x3c   : > { %1246 = vmatpush2.bf16.msra.mxu1 %v6992_v38  ;;  %2304 = vst.msk [vmem:[#allocation3 + $0x3c] sm:$0xf] %vm2288_vm7, %v11344_v7  ;;  %2305 = vst.msk [vmem:[#allocation3 + $0x40] sm:$0xf] %vm2288_vm7, %v11344_v7 }
  0x3d   : > { %854 = vrot.lane.b32.xlu0 %v7399_v43, %s7228_s25  ;;  %856 = vrot.lane.b32.xlu1 %v7404_v51, %s7228_s25  ;;  %2306 = vst.msk [vmem:[#allocation3 + $0x44] sm:$0xf] %vm2288_vm7, %v11344_v7  ;;  %2307 = vst.msk [vmem:[#allocation3 + $0x48] sm:$0xf] %vm2288_vm7, %v11344_v7 }
  0x3e   : > { %2308 = vst.msk [vmem:[#allocation3 + $0x4c] sm:$0xf] %vm2288_vm7, %v11344_v7  ;;  %2309 = vst.msk [vmem:[#allocation3 + $0x50] sm:$0xf] %vm2288_vm7, %v11344_v7 }
  0x3f   : > { %2310 = vst.msk [vmem:[#allocation3 + $0x54] sm:$0xf] %vm2288_vm7, %v11344_v7  ;;  %2311 = vst.msk [vmem:[#allocation3 + $0x58] sm:$0xf] %vm2288_vm7, %v11344_v7 }
  0x40   : > { %2312 = vst.msk [vmem:[#allocation3 + $0x5c] sm:$0xf] %vm2288_vm7, %v11344_v7  ;;  %2313 = vst.msk [vmem:[#allocation3 + $0x60] sm:$0xf] %vm2288_vm7, %v11344_v7 }
  0x41   : > { %889 = vrot.lane.b32.xlu0 %v7353_v1, %s7229_s30  ;;  %818 = vrot.lane.b32.xlu1 %v7431_v60, %s7227_s18  ;;  %2314 = vst.msk [vmem:[#allocation3 + $0x64] sm:$0xf] %vm2288_vm7, %v11344_v7  ;;  %2315 = vst.msk [vmem:[#allocation3 + $0x68] sm:$0xf] %vm2288_vm7, %v11344_v7 }
  0x42   : > { %2316 = vst.msk [vmem:[#allocation3 + $0x6c] sm:$0xf] %vm2288_vm7, %v11344_v7  ;;  %2317 = vst.msk [vmem:[#allocation3 + $0x70] sm:$0xf] %vm2288_vm7, %v11344_v7 }
  0x43   : > { %2318 = vst.msk [vmem:[#allocation3 + $0x74] sm:$0xf] %vm2288_vm7, %v11344_v7  ;;  %2319 = vst.msk [vmem:[#allocation3 + $0x78] sm:$0xf] %vm2288_vm7, %v11344_v7 }
  0x44   : > { %2320 = vst.msk [vmem:[#allocation3 + $0x7c] sm:$0xf] %vm2288_vm7, %v11344_v7  ;;  %vm2773_vm7 = vcmask 191616  }
  0x45   : > { %691 = vrot.lane.b32.xlu0 %v7439_v63, %s7223_s23  ;;  %891 = vrot.lane.b32.xlu1 %v7366_v11, %s7229_s30 }
  0x49   : > { %858 = vrot.lane.b32.xlu0 %v7406_v52, %s7228_s25  ;;  %820 = vrot.lane.b32.xlu1 %v7416_v55, %s7227_s18 }
  0x4d   : > { %763 = vrot.lane.b32.xlu0 %v655_v24, %s7226_s20  ;;  %893 = vrot.lane.b32.xlu1 %v7359_v6, %s7229_s30 }
  0x51   : > { %727 = vrot.lane.b32.xlu1 %v720_v29, %s7225_s15  ;;  %801 = vrot.lane.b32.xlu0 %v7439_v63, %s7224_s12 }
  0x55   : > { %860 = vrot.lane.b32.xlu1 %v655_v24, %s7228_s25  ;;  %895 = vrot.lane.b32.xlu0 %v7439_v63, %s7229_s30 }
  0x59   : > { %822 = vrot.lane.b32.xlu1 %v720_v29, %s7227_s18 }
  0x93   : > { %v686_v1 = vpop.permute.xlu0 %685 }
  0x94   : > { %698 = vst.msk [vmem:[#allocation2 + $0x8] sm:$0xf] %vm697_vm8, %v686_v1  ;;  %699 = vst.msk [vmem:[#allocation2 + $0x10] sm:$0xf] %vm697_vm8, %v686_v1  ;;  %v690_v11 = vpop.permute.xlu1 %689 }
  0x95   : > { %702 = vst.msk [vmem:[#allocation2 + $0x28] sm:$0xf] %vm697_vm8, %v690_v11  ;;  %703 = vst.msk [vmem:[#allocation2 + $0x30] sm:$0xf] %vm697_vm8, %v690_v11 }
  0x97   : > { %v688_v6 = vpop.permute.xlu0 %687 }
  0x98   : > { %700 = vst.msk [vmem:[#allocation2 + $0x18] sm:$0xf] %vm697_vm8, %v688_v6  ;;  %701 = vst.msk [vmem:[#allocation2 + $0x20] sm:$0xf] %vm697_vm8, %v688_v6 }
  0x9b   : > { %v796_v40 = vpop.permute.xlu0 %795  ;;  %v722_v41 = vpop.permute.xlu1 %721  ;;  %v736_v42 = vld [vmem:[#allocation2 + $0x8] sm:$0xf]  ;;  %v739_v43 = vld [vmem:[#allocation2 + $0x10] sm:$0xf] }
  0x9c   : > { %v737_v44 = vsel %vm7556_vm10, %v722_v41, %v736_v42  ;;  %v740_v45 = vsel %vm7556_vm10, %v722_v41, %v739_v43  ;;  %v748_v12 = vld [vmem:[#allocation2 + $0x28] sm:$0xf]  ;;  %v751_v13 = vld [vmem:[#allocation2 + $0x30] sm:$0xf] }
  0x9d   : > { %738 = vst [vmem:[#allocation2 + $0x8] sm:$0xf] %v737_v44  ;;  %741 = vst [vmem:[#allocation2 + $0x10] sm:$0xf] %v740_v45 }
  0x9f   : > { %v742_v48 = vld [vmem:[#allocation2 + $0x18] sm:$0xf]  ;;  %v745_v49 = vld [vmem:[#allocation2 + $0x20] sm:$0xf]  ;;  %v724_v50 = vpop.permute.xlu0 %723  ;;  %v758_v51 = vpop.permute.xlu1 %757 }
  0xa0   : > { %v743_v52 = vsel %vm7556_vm10, %v724_v50, %v742_v48  ;;  %v746_v53 = vsel %vm7556_vm10, %v724_v50, %v745_v49  ;;  %v772_v54 = vsel %vm7565_vm12, %v758_v51, %v771_v47 }
  0xa1   : > { %744 = vst [vmem:[#allocation2 + $0x18] sm:$0xf] %v743_v52  ;;  %747 = vst [vmem:[#allocation2 + $0x20] sm:$0xf] %v746_v53  ;;  %v6995_v53 = vld [vmem:[#allocation2 + $0x4] ss:$8 sps:$4 sm:$0xff]  }
  0xa2   : > { %773 = vst [vmem:[#allocation2] sm:$0xf] %v772_v54  ;;  %6495 = vmatprep.mubr.msk.bf16.mxu0 %vm1058_vm6, %v6995_v53  ;;  %6509 = vmatprep.mubr.msk.bf16.mxu1 %vm1058_vm6, %v6995_v53 }
  0xa3   : > { %808 = vst.msk [vmem:[#allocation2] sm:$0xf] %vm807_vm13, %v796_v40  ;;  %v760_v55 = vpop.permute.xlu0 %759  ;;  %v798_v56 = vpop.permute.xlu1 %797 }
  0xa4   : > { %v774_v57 = vld [vmem:[#allocation2 + $0x8] sm:$0xf]  ;;  %v777_v58 = vld [vmem:[#allocation2 + $0x10] sm:$0xf] }
  0xa5   : > { %v775_v59 = vsel %vm7565_vm12, %v758_v51, %v774_v57  ;;  %v778_v60 = vsel %vm7565_vm12, %v760_v55, %v777_v58 }
  0xa6   : > { %776 = vst [vmem:[#allocation2 + $0x8] sm:$0xf] %v775_v59  ;;  %779 = vst [vmem:[#allocation2 + $0x10] sm:$0xf] %v778_v60 }
  0xa7   : > { %809 = vst.msk [vmem:[#allocation2 + $0x8] sm:$0xf] %vm807_vm13, %v796_v40  ;;  %810 = vst.msk [vmem:[#allocation2 + $0x10] sm:$0xf] %vm807_vm13, %v798_v56  ;;  %v800_v61 = vpop.permute.xlu0 %799  ;;  %v762_v62 = vpop.permute.xlu1 %761 }
  0xa8   : > { %v780_v63 = vld [vmem:[#allocation2 + $0x18] sm:$0xf]  ;;  %v783_v0 = vld [vmem:[#allocation2 + $0x20] sm:$0xf] }
  0xa9   : > { %v781_v2 = vsel %vm7565_vm12, %v760_v55, %v780_v63  ;;  %v784_v3 = vsel %vm7565_vm12, %v762_v62, %v783_v0 }
  0xaa   : > { %782 = vst [vmem:[#allocation2 + $0x18] sm:$0xf] %v781_v2  ;;  %785 = vst [vmem:[#allocation2 + $0x20] sm:$0xf] %v784_v3  ;;  %v830_v8 = vld [vmem:[#allocation2] sm:$0xf] }
  0xab   : > { %811 = vst.msk [vmem:[#allocation2 + $0x18] sm:$0xf] %vm807_vm13, %v798_v56  ;;  %812 = vst.msk [vmem:[#allocation2 + $0x20] sm:$0xf] %vm807_vm13, %v800_v61  ;;  %v817_v5 = vpop.permute.xlu0 %816  ;;  %v726_v14 = vpop.permute.xlu1 %725 }
  0xac   : > { %v831_v16 = vsel %vm7587_vm15, %v817_v5, %v830_v8  ;;  %v749_v17 = vsel %vm7556_vm10, %v726_v14, %v748_v12  ;;  %v752_v18 = vsel %vm7556_vm10, %v726_v14, %v751_v13  ;;  %v6999_v12 = vld [vmem:[#allocation2 + $0x24] ss:$8 sps:$4 sm:$0xff]  }
  0xad   : > { %832 = vst [vmem:[#allocation2] sm:$0xf] %v831_v16  ;;  %750 = vst [vmem:[#allocation2 + $0x28] sm:$0xf] %v749_v17 }
  0xae   : > { %753 = vst [vmem:[#allocation2 + $0x30] sm:$0xf] %v752_v18  ;;  %v833_v19 = vld [vmem:[#allocation2 + $0x8] sm:$0xf]  ;;  %v836_v28 = vld [vmem:[#allocation2 + $0x10] sm:$0xf] }
  0xaf   : > { %v834_v20 = vsel %vm7587_vm15, %v817_v5, %v833_v19  ;;  %v855_v21 = vpop.permute.xlu0 %854  ;;  %v857_v22 = vpop.permute.xlu1 %856  ;;  %v7002_v18 = vld [vmem:[#allocation2 + $0x34] ss:$8 sps:$4 sm:$0xff]  }
  0xb0   : > { %835 = vst [vmem:[#allocation2 + $0x8] sm:$0xf] %v834_v20 }
  0xb2   : > { %v839_v24 = vld [vmem:[#allocation2 + $0x18] sm:$0xf]  ;;  %v842_v1 = vld [vmem:[#allocation2 + $0x20] sm:$0xf] }
  0xb3   : > { %v890_v25 = vpop.permute.xlu0 %889  ;;  %v819_v26 = vpop.permute.xlu1 %818 }
  0xb4   : > { %v786_v29 = vld [vmem:[#allocation2 + $0x28] sm:$0xf]  ;;  %v868_v30 = vld [vmem:[#allocation2] sm:$0xf]  ;;  %v837_v31 = vsel %vm7587_vm15, %v819_v26, %v836_v28  ;;  %v840_v32 = vsel %vm7587_vm15, %v819_v26, %v839_v24 }
  0xb5   : > { %v787_v33 = vsel %vm7565_vm12, %v762_v62, %v786_v29  ;;  %v869_v34 = vsel %vm7602_vm2, %v855_v21, %v868_v30  ;;  %838 = vst [vmem:[#allocation2 + $0x10] sm:$0xf] %v837_v31  ;;  %841 = vst [vmem:[#allocation2 + $0x18] sm:$0xf] %v840_v32  ;;  %v789_v48 = vld [vmem:[#allocation2 + $0x30] sm:$0xf] }
  0xb6   : > { %788 = vst [vmem:[#allocation2 + $0x28] sm:$0xf] %v787_v33  ;;  %870 = vst [vmem:[#allocation2] sm:$0xf] %v869_v34  ;;  %v6996_v62 = vld [vmem:[#allocation2 + $0x14] ss:$8 sps:$4 sm:$0xff]  }
  0xb7   : > { %813 = vst.msk [vmem:[#allocation2 + $0x28] sm:$0xf] %vm807_vm13, %v800_v61  ;;  %v871_v27 = vld [vmem:[#allocation2 + $0x8] sm:$0xf]  ;;  %v692_v35 = vpop.permute.xlu0 %691  ;;  %v892_v36 = vpop.permute.xlu1 %891 }
  0xb8   : > { %902 = vst.msk [vmem:[#allocation2] sm:$0xf] %vm901_vm5, %v890_v25  ;;  %v872_v37 = vsel %vm7602_vm2, %v857_v22, %v871_v27 }
  0xb9   : > { %704 = vst.msk [vmem:[#allocation2 + $0x38] sm:$0xf] %vm697_vm8, %v692_v35  ;;  %873 = vst [vmem:[#allocation2 + $0x8] sm:$0xf] %v872_v37  ;;  %v7738_v37 = vld [vmem:[%s11335_s2] ss:$0 sm:$0xff] }
  0xba   : > { %903 = vst.msk [vmem:[#allocation2 + $0x8] sm:$0xf] %vm901_vm5, %v892_v36  ;;  %vm2361_vm8 = vsmask.f32 256 }
  0xbb   : > { %v859_v38 = vpop.permute.xlu0 %858  ;;  %v821_v11 = vpop.permute.xlu1 %820 }
  0xbc   : > { %v874_v6 = vld [vmem:[#allocation2 + $0x10] sm:$0xf]  ;;  %v877_v40 = vld [vmem:[#allocation2 + $0x18] sm:$0xf]  ;;  %v843_v41 = vsel %vm7587_vm15, %v821_v11, %v842_v1 }
  0xbd   : > { %v875_v42 = vsel %vm7602_vm2, %v857_v22, %v874_v6  ;;  %v878_v43 = vsel %vm7602_vm2, %v859_v38, %v877_v40  ;;  %844 = vst [vmem:[#allocation2 + $0x20] sm:$0xf] %v843_v41 }
  0xbe   : > { %876 = vst [vmem:[#allocation2 + $0x10] sm:$0xf] %v875_v42  ;;  %879 = vst [vmem:[#allocation2 + $0x18] sm:$0xf] %v878_v43  ;;  %v845_v44 = vld [vmem:[#allocation2 + $0x28] sm:$0xf] }
  0xbf   : > { %904 = vst.msk [vmem:[#allocation2 + $0x10] sm:$0xf] %vm901_vm5, %v892_v36  ;;  %v846_v45 = vsel %vm7587_vm15, %v821_v11, %v845_v44  ;;  %v764_v47 = vpop.permute.xlu0 %763  ;;  %v894_v49 = vpop.permute.xlu1 %893 }
  0xc0   : > { %847 = vst [vmem:[#allocation2 + $0x28] sm:$0xf] %v846_v45  ;;  %v790_v50 = vsel %vm7565_vm12, %v764_v47, %v789_v48  ;;  %905 = vst.msk [vmem:[#allocation2 + $0x18] sm:$0xf] %vm901_vm5, %v894_v49  ;;  %v754_v51 = vld [vmem:[#allocation2 + $0x38] sm:$0xf] }
  0xc1   : > { %791 = vst [vmem:[#allocation2 + $0x30] sm:$0xf] %v790_v50  ;;  %v6993_v52 = vld [vmem:[#allocation2] ss:$8 sps:$4 sm:$0xff]  }
  0xc2   : > { %1104 = vmatmul.mubr.bf16.vlgmr.msra.gmra.mxu0 %v6993_v52  ;;  %1248 = vmatmul.mubr.bf16.vlgmr.msra.gmra.mxu1 %v6993_v52 }
  0xc3   : > { %v728_v54 = vpop.permute.xlu1 %727  ;;  %v802_v55 = vpop.permute.xlu0 %801  ;;  %6496 = vmatprep.mubr.msk.bf16.mxu0 %vm1058_vm6, %v6996_v62  ;;  %6510 = vmatprep.mubr.msk.bf16.mxu1 %vm1058_vm6, %v6996_v62 }
  0xc4   : > { %v880_v56 = vld [vmem:[#allocation2 + $0x20] sm:$0xf]  ;;  %v755_v57 = vsel %vm7556_vm10, %v728_v54, %v754_v51  ;;  %814 = vst.msk [vmem:[#allocation2 + $0x30] sm:$0xf] %vm807_vm13, %v802_v55  ;;  %vm7942_vm10 = vmor %vm2361_vm8, %vm2362_vm9  ;;  %vm3195_vm8 = vcmask 454016  }
  0xc5   : > { %v881_v58 = vsel %vm7602_vm2, %v859_v38, %v880_v56  ;;  %756 = vst [vmem:[#allocation2 + $0x38] sm:$0xf] %v755_v57  ;;  %vm8610_vm9 = vmand %vm3195_vm8, %vm11346_vm4 }
  0xc6   : > { %882 = vst [vmem:[#allocation2 + $0x20] sm:$0xf] %v881_v58 }
  0xc7   : > { %906 = vst.msk [vmem:[#allocation2 + $0x20] sm:$0xf] %vm901_vm5, %v894_v49  ;;  %v883_v59 = vld [vmem:[#allocation2 + $0x28] sm:$0xf]  ;;  %v861_v60 = vpop.permute.xlu1 %860  ;;  %v896_v61 = vpop.permute.xlu0 %895  ;;  %v6998_v39 = vld [vmem:[#allocation2 + $0x10] ss:$8 sps:$4 sm:$0xff]  }
  0xc8   : > { %v884_v63 = vsel %vm7602_vm2, %v861_v60, %v883_v59 }
  0xc9   : > { %885 = vst [vmem:[#allocation2 + $0x28] sm:$0xf] %v884_v63 }
  0xca   : > { %907 = vst.msk [vmem:[#allocation2 + $0x28] sm:$0xf] %vm901_vm5, %v896_v61  ;;  %1112 = vmatmul.mubr.bf16.gmra.mxu0 %v6998_v39  ;;  %1256 = vmatmul.mubr.bf16.gmra.mxu1 %v6998_v39 }
  0xcb   : > { %v848_v0 = vld [vmem:[#allocation2 + $0x30] sm:$0xf]  ;;  %v823_v2 = vpop.permute.xlu1 %822  ;;  %6511 = vmatprep.mubr.msk.bf16.mxu1 %vm1058_vm6, %v6999_v12  ;;  %6497 = vmatprep.mubr.msk.bf16.mxu0 %vm1058_vm6, %v6999_v12 }
  0xcc   : > { %v792_v3 = vld [vmem:[#allocation2 + $0x38] sm:$0xf]  ;;  %v849_v5 = vsel %vm7587_vm15, %v823_v2, %v848_v0 }
  0xcd   : > { %v793_v8 = vsel %vm7565_vm12, %v764_v47, %v792_v3  ;;  %850 = vst [vmem:[#allocation2 + $0x30] sm:$0xf] %v849_v5  ;;  %vm2651_vm12 = vsmask.f32 7440 }
  0xce   : > { %794 = vst [vmem:[#allocation2 + $0x38] sm:$0xf] %v793_v8 }
  0xcf   : > { %815 = vst.msk [vmem:[#allocation2 + $0x38] sm:$0xf] %vm807_vm13, %v802_v55  ;;  %vm8039_vm13 = vmor %vm11348_vm3, %vm2651_vm12  ;;  %vm3306_vm12 = vcmask 519616  }
  0xd1   : > { %v7001_v13 = vld [vmem:[#allocation2 + $0x20] ss:$8 sps:$4 sm:$0xff]  }
  0xd2   : > { %1264 = vmatmul.mubr.bf16.gmra.mxu1 %v7001_v13  ;;  %1120 = vmatmul.mubr.bf16.gmra.mxu0 %v7001_v13 }
  0xd3   : > { %6512 = vmatprep.mubr.msk.bf16.mxu1 %vm1058_vm6, %v7002_v18  ;;  %6498 = vmatprep.mubr.msk.bf16.mxu0 %vm1058_vm6, %v7002_v18  ;;  %vm3080_vm6 = vcmask 388416  }
  0xd4   : > { %v886_v14 = vld [vmem:[#allocation2 + $0x30] sm:$0xf] }
  0xd5   : > { %v887_v16 = vsel %vm7602_vm2, %v861_v60, %v886_v14  ;;  %vm8562_vm2 = vmand %vm11349_vm1, %vm11346_vm4 }
  0xd6   : > { %v851_v17 = vld [vmem:[#allocation2 + $0x38] sm:$0xf]  ;;  %888 = vst [vmem:[#allocation2 + $0x30] sm:$0xf] %v887_v16  ;;  %vm8634_vm4 = vmand %vm2773_vm7, %vm11348_vm3 }
  0xd7   : > { %v852_v46 = vsel %vm7587_vm15, %v823_v2, %v851_v17  ;;  %908 = vst.msk [vmem:[#allocation2 + $0x30] sm:$0xf] %vm901_vm5, %v896_v61  ;;  %vm2620_vm15 = vcmask 126016   ;;  %vm2999_vm5 = vcmask 322816  }
  0xd8   : > { %853 = vst [vmem:[#allocation2 + $0x38] sm:$0xf] %v852_v46 }
  0xdf   : > { %v7004_v19 = vld [vmem:[#allocation2 + $0x30] ss:$8 sps:$4 sm:$0xff]  }
  0xe0   : > { %1272 = vmatmul.mubr.bf16.gmra.mxu1 %v7004_v19  ;;  %1128 = vmatmul.mubr.bf16.gmra.mxu0 %v7004_v19 }
 0x182   : > { %v1105_v20 = vpop.f32.mrf.mxu0  ;;  %v1249_v21 = vpop.f32.mrf.mxu1 }
 0x183   : > { %v1250_v22 = vadd.f32 %v7726_v4, %v1249_v21  ;;  %v1106_v14 = vadd.f32 %v7738_v37, %v1105_v20 }
 0x184   : > { %v1107_v23 = vpop.f32.mrf.mxu0  ;;  %v1251_v24 = vpop.f32.mrf.mxu1 }
 0x185   : > { %v6513_v25 = vmul.f32 -1.442695, %v1250_v22 }
 0x186   : > { %v7729_v26 = vpop.f32.mrf.mxu0  ;;  %v1252_v28 = vpop.f32.mrf.mxu1 }
 0x187   : > { %7050 = vpow2.f32 %v6513_v25  ;;  %v1253_v29 = vadd.f32 %v7726_v4, %v1252_v28 }
 0x188   : > { %v1110_v30 = vpop.f32.mrf.mxu0  ;;  %v1254_v31 = vpop.f32.mrf.mxu1 }
 0x189   : > { %v6514_v32 = vmul.f32 -1.442695, %v1253_v29  ;;  %v1109_v31 = vadd.f32 %v7738_v37, %v7729_v26 }
 0x18a   : > { %v7732_v33 = vpop.f32.mrf.mxu0  ;;  %v1257_v34 = vpop.f32.mrf.mxu1 }
 0x18b   : > { %7052 = vpow2.f32 %v6514_v32  ;;  %v1258_v27 = vadd.f32 %v7726_v4, %v1257_v34 }
 0x18c   : > { %v1115_v35 = vpop.f32.mrf.mxu0  ;;  %v1259_v36 = vpop.f32.mrf.mxu1 }
 0x18d   : > { %v6515_v38 = vmul.f32 -1.442695, %v1258_v27 }
 0x18e   : > { %v1116_v1 = vpop.f32.mrf.mxu0  ;;  %v1260_v11 = vpop.f32.mrf.mxu1 }
 0x18f   : > { %v7741_v6 = vadd.f32 %v7738_v37, %v1116_v1  ;;  %v1261_v40 = vadd.f32 %v7726_v4, %v1260_v11  ;;  %7054 = vpow2.f32 %v6515_v38 }
 0x190   : > { %v1118_v41 = vpop.f32.mrf.mxu0  ;;  %v1262_v42 = vpop.f32.mrf.mxu1 }
 0x191   : > { %v6516_v43 = vmul.f32 -1.442695, %v1261_v40 }
 0x192   : > { %v1265_v44 = vpop.f32.mrf.mxu1  ;;  %v1121_v45 = vpop.f32.mrf.mxu0 }
 0x193   : > { %7056 = vpow2.f32 %v6516_v43  ;;  %v1266_v47 = vadd.f32 %v7726_v4, %v1265_v44  ;;  %v7746_v48 = vadd.f32 %v7738_v37, %v1121_v45 }
 0x194   : > { %v7051_v49 = vpop.eup %7050  ;;  %v1267_v50 = vpop.f32.mrf.mxu1 }
 0x195   : > { %v1123_v51 = vpop.f32.mrf.mxu0  ;;  %v1304_v52 = vadd.f32 1.0, %v7051_v49  ;;  %v6517_v53 = vmul.f32 -1.442695, %v1266_v47 }
 0x196   : > { %v1268_v54 = vpop.f32.mrf.mxu1 }
 0x197   : > { %v1124_v55 = vpop.f32.mrf.mxu0  ;;  %7058 = vrcp.f32 %v1304_v52  ;;  %v1269_v56 = vadd.f32 %v7726_v4, %v1268_v54 }
 0x198   : > { %v7750_v57 = vadd.f32 %v7738_v37, %v1124_v55  ;;  %v7053_v58 = vpop.eup %7052  ;;  %7060 = vpow2.f32 %v6517_v53  ;;  %v1270_v60 = vpop.f32.mrf.mxu1 }
 0x199   : > { %v1126_v59 = vpop.f32.mrf.mxu0  ;;  %v1305_v61 = vadd.f32 1.0, %v7053_v58  ;;  %v6518_v62 = vmul.f32 -1.442695, %v1269_v56 }
 0x19b   : > { %7062 = vrcp.f32 %v1305_v61 }
 0x19c   : > { %7064 = vpow2.f32 %v6518_v62  ;;  %v7055_v63 = vpop.eup %7054 }
 0x19d   : > { %v1306_v16 = vadd.f32 1.0, %v7055_v63 }
 0x1a0   : > { %v7057_v39 = vpop.eup %7056  ;;  %v1273_v0 = vpop.f32.mrf.mxu1 }
 0x1a1   : > { %v1129_v2 = vpop.f32.mrf.mxu0  ;;  %v1307_v3 = vadd.f32 1.0, %v7057_v39  ;;  %v1274_v5 = vadd.f32 %v7726_v4, %v1273_v0 }
 0x1a2   : > { %v7754_v8 = vadd.f32 %v7738_v37, %v1129_v2  ;;  %v1275_v12 = vpop.f32.mrf.mxu1 }
 0x1a3   : > { %v1131_v13 = vpop.f32.mrf.mxu0  ;;  %7066 = vrcp.f32 %v1307_v3  ;;  %v6519_v17 = vmul.f32 -1.442695, %v1274_v5 }
 0x1a4   : > { %v7059_v46 = vpop.eup %7058  ;;  %v1276_v18 = vpop.f32.mrf.mxu1 }
 0x1a5   : > { %v1132_v19 = vpop.f32.mrf.mxu0  ;;  %v7061_v21 = vpop.eup %7060  ;;  %v1328_v22 = vmul.f32 %v7059_v46, %v1106_v14  ;;  %7068 = vpow2.f32 %v6519_v17  ;;  %v1277_v23 = vadd.f32 %v7726_v4, %v1276_v18 }
 0x1a6   : > { %v7759_v24 = vadd.f32 %v7738_v37, %v1132_v19  ;;  %v1308_v25 = vadd.f32 1.0, %v7061_v21  ;;  %v1278_v29 = vpop.f32.mrf.mxu1  ;;  %7070 = vrcp.f32 %v1306_v16 }
 0x1a7   : > { %v1134_v28 = vpop.f32.mrf.mxu0  ;;  %v1344_v30 = vcombine.high %v1328_v22, %v1328_v22  ;;  %v1351_v20 = vrot.slane %v1328_v22, %v7318_v9  ;;  %v6520_v35 = vmul.f32 -1.442695, %v1277_v23  ;;  %v1114_v22 = vadd.f32 %v7738_v37, %v7732_v33 }
 0x1a8   : > { %v7063_v32 = vpop.eup %7062  ;;  %7072 = vrcp.f32 %v1308_v25 }
 0x1a9   : > { %v7065_v34 = vpop.eup %7064  ;;  %v1329_v27 = vmul.f32 %v7063_v32, %v1109_v31  ;;  %v1359_v36 = vcombine.high %v1351_v20, %v1351_v20  ;;  %v1367_v4 = vrot.slane %v1351_v20, %v7318_v9  ;;  %v1358_v1 = vrot.slane %v1344_v30, %v7318_v9 }
 0x1aa   : > { %v1309_v38 = vadd.f32 1.0, %v7065_v34 }
 0x1ab   : > { %v1400_v11 = vrot.slane %v1329_v27, %v7318_v9  ;;  %v1381_v40 = vrot.slane %v1359_v36, %v7318_v9  ;;  %v1389_v41 = vcombine.high %v1367_v4, %v1367_v4  ;;  %v1360_v42 = vcombine.high %v1358_v1, %v1358_v1 }
 0x1ac   : > { %7074 = vrcp.f32 %v1309_v38  ;;  %v1374_v26 = vrot.slane %v1358_v1, %v7318_v9  ;;  %v1739_v44 = vrot.slane %v1367_v4, %v7320_v10  ;;  %v1393_v13 = vcombine.high %v1329_v27, %v1329_v27 }
 0x1ad   : > { %7076 = vpow2.f32 %v6520_v35  ;;  %v1391_v43 = vcombine.high %v1381_v40, %v1381_v40  ;;  %v1743_v45 = vrot.slane %v1381_v40, %v7320_v10  ;;  %v1388_v47 = vrot.slane %v1360_v42, %v7318_v9 }
 0x1ae   : > { %v1390_v49 = vcombine.high %v1374_v26, %v1374_v26  ;;  %v1408_v50 = vcombine.high %v1400_v11, %v1400_v11  ;;  %v1747_v51 = vrot.slane %v1389_v41, %v7320_v10  ;;  %v1755_v56 = vrot.slane %v1374_v26, %v7320_v10 }
 0x1af   : > { %v1751_v52 = vrot.slane %v1391_v43, %v7320_v10  ;;  %v1992_v53 = vcombine.low %v1739_v44, %v1743_v45  ;;  %v1392_v55 = vcombine.high %v1388_v47, %v1388_v47  ;;  %v1759_v58 = vrot.slane %v1388_v47, %v7320_v10 }
 0x1b0   : > { %v7067_v54 = vpop.eup %7066  ;;  %v1763_v62 = vrot.slane %v1390_v49, %v7320_v10  ;;  %v1430_v0 = vrot.slane %v1408_v50, %v7318_v9  ;;  %v1416_v5 = vrot.slane %v1400_v11, %v7318_v9  ;;  %v1407_v20 = vrot.slane %v1393_v13, %v7318_v9 }
 0x1b1   : > { %v7777_v59 = vmul.f32 %v7067_v54, %v7741_v6  ;;  %v1993_v60 = vcombine.low %v1747_v51, %v1751_v52  ;;  %v1767_v63 = vrot.slane %v1392_v55, %v7320_v10  ;;  %v2009_v39 = vcombine.low %v1755_v56, %v1759_v58 }
 0x1b2   : > { %v7069_v61 = vpop.eup %7068  ;;  %v2000_v2 = vrot.slane %v1992_v53, %v7323_v15  ;;  %v1440_v21 = vcombine.high %v1430_v0, %v1430_v0  ;;  %v1438_v25 = vcombine.high %v1416_v5, %v1416_v5  ;;  %v1775_v33 = vrot.slane %v1430_v0, %v7320_v10 }
 0x1b3   : > { %v2007_v3 = vrot.slane %v1993_v60, %v7323_v15  ;;  %v7071_v12 = vpop.eup %7070  ;;  %v2010_v14 = vcombine.low %v1763_v62, %v1767_v63  ;;  %v1310_v16 = vadd.f32 1.0, %v7069_v61  ;;  %v2017_v18 = vrot.slane %v2009_v39, %v7323_v15 }
 0x1b4   : > { %v7794_v32 = vmul.f32 %v7071_v12, %v1114_v22  ;;  %v1783_v35 = vrot.slane %v1440_v21, %v7320_v10  ;;  %v1771_v4 = vrot.slane %v1416_v5, %v7320_v10  ;;  %v1779_v38 = vrot.slane %v1438_v25, %v7320_v10 }
 0x1b5   : > { %v7073_v6 = vpop.eup %7072  ;;  %v2008_v17 = vcombine.low %v2000_v2, %v2007_v3  ;;  %v2024_v19 = vrot.slane %v2010_v14, %v7323_v15  ;;  %7078 = vrcp.f32 %v1310_v16  ;;  %v1409_v41 = vcombine.high %v1407_v20, %v1407_v20 }
 0x1b6   : > { %v1332_v46 = vmul.f32 %v7073_v6, %v7746_v48  ;;  %v1442_v42 = vcombine.high %v7794_v32, %v7794_v32  ;;  %v2027_v49 = vcombine.low %v1779_v38, %v1783_v35  ;;  %v7820_v50 = vrot.slane %v7794_v32, %v7318_v9 }
 0x1b7   : > { %v7790_v23 = vpack.c.bf16 %v2008_v17, %v2008_v17  ;;  %v2025_v30 = vcombine.low %v2017_v18, %v2024_v19  ;;  %v1423_v53 = vrot.slane %v1407_v20, %v7318_v9  ;;  %v1491_v54 = vcombine.high %v7777_v59, %v7777_v59 }
 0x1b8   : > { %v1540_v28 = vcombine.high %v1332_v46, %v1332_v46  ;;  %v1547_v29 = vrot.slane %v1332_v46, %v7318_v9  ;;  %v1437_v58 = vrot.slane %v1409_v41, %v7318_v9  ;;  %v7831_v60 = vrot.slane %v7777_v59, %v7318_v9 }
 0x1b9   : > { %v7075_v31 = vpop.eup %7074  ;;  %3258 = vrot.lane.b32.xlu1 %v7790_v23, %s7230_s19  ;;  %2572 = vrot.lane.b32.xlu0 %v7790_v23, %s7231_s21  ;;  %v7804_v36 = vpack.c.bf16 %v2025_v30, %v2025_v30  ;;  %v2041_v2 = vrot.slane %v2027_v49, %v7323_v15  ;;  %v1439_v13 = vcombine.high %v1423_v53, %v1423_v53  ;;  %v2365_v30 = vshrl.u32 %v7790_v23, 16 }
 0x1ba   : > { %v7077_v37 = vpop.eup %7076  ;;  %v1554_v48 = vrot.slane %v1540_v28, %v7318_v9  ;;  %v1555_v34 = vcombine.high %v1547_v29, %v1547_v29  ;;  %v1333_v27 = vmul.f32 %v7075_v31, %v7750_v57  ;;  %v1563_v11 = vrot.slane %v1547_v29, %v7318_v9 }
 0x1bb   : > { %v1311_v43 = vadd.f32 1.0, %v7077_v37  ;;  %v2026_v57 = vcombine.low %v1771_v4, %v1775_v33  ;;  %v1441_v16 = vcombine.high %v1437_v58, %v1437_v58  ;;  %v1787_v17 = vrot.slane %v1423_v53, %v7320_v10 }
 0x1bc   : > { %v1556_v1 = vcombine.high %v1554_v48, %v1554_v48  ;;  %v1577_v40 = vrot.slane %v1555_v34, %v7318_v9  ;;  %v1589_v26 = vcombine.high %v1333_v27, %v1333_v27  ;;  %v1570_v44 = vrot.slane %v1554_v48, %v7318_v9 }
 0x1bd   : > { %2951 = vrot.lane.b32.xlu0 %v7790_v23, %s7225_s15  ;;  %2574 = vrot.lane.b32.xlu1 %v7804_v36, %s7231_s21  ;;  %v1596_v52 = vrot.slane %v1333_v27, %v7318_v9  ;;  %v1585_v55 = vcombine.high %v1563_v11, %v1563_v11  ;;  %v1867_v62 = vrot.slane %v1563_v11, %v7320_v10  ;;  %7080 = vrcp.f32 %v1311_v43 }
 0x1be   : > { %v1584_v45 = vrot.slane %v1556_v1, %v7318_v9  ;;  %v1587_v47 = vcombine.high %v1577_v40, %v1577_v40  ;;  %v1871_v51 = vrot.slane %v1577_v40, %v7320_v10  ;;  %v1603_v56 = vrot.slane %v1589_v26, %v7318_v9 }
 0x1bf   : > { %v1586_v63 = vcombine.high %v1570_v44, %v1570_v44  ;;  %v2034_v0 = vrot.slane %v2026_v57, %v7323_v15  ;;  %v1604_v12 = vcombine.high %v1596_v52, %v1596_v52  ;;  %v7845_v14 = vrot.slane %v1585_v55, %v7320_v10 }
 0x1c0   : > { %v1588_v61 = vcombine.high %v1584_v45, %v1584_v45  ;;  %v7837_v39 = vrot.slane %v1587_v47, %v7320_v10  ;;  %v1887_v3 = vrot.slane %v1584_v45, %v7320_v10  ;;  %v7842_v5 = vcombine.low %v1867_v62, %v1871_v51 }
 0x1c1   : > { %2953 = vrot.lane.b32.xlu0 %v7804_v36, %s7225_s15  ;;  %v1605_v6 = vcombine.high %v1603_v56, %v1603_v56  ;;  %v1883_v46 = vrot.slane %v1570_v44, %v7320_v10  ;;  %v7853_v19 = vrot.slane %v1596_v52, %v7318_v9  ;;  %v7856_v21 = vrot.slane %v1603_v56, %v7318_v9 }
 0x1c2   : > { %v7850_v18 = vrot.slane %v1588_v61, %v7320_v10  ;;  %v7079_v22 = vpop.eup %7078  ;;  %v7861_v25 = vrot.slane %v1586_v63, %v7320_v10  ;;  %v2129_v28 = vcombine.low %v7845_v14, %v7837_v39  ;;  %v2042_v29 = vcombine.low %v2034_v0, %v2041_v2  ;;  %v2511_v39 = vld [vmem:[#allocation3 + $0x8] sm:$0xf] }
 0x1c3   : > { %v2136_v20 = vrot.slane %v7842_v5, %v7323_v15  ;;  %v7868_v31 = vcombine.low %v1883_v46, %v1887_v3  ;;  %v7871_v33 = vrot.slane %v1604_v12, %v7318_v9  ;;  %v1791_v37 = vrot.slane %v1437_v58, %v7320_v10  ;;  %v2520_v5 = vld [vmem:[#allocation3 + $0x18] sm:$0xf] }
 0x1c4   : > { %v7875_v48 = vrot.slane %v1605_v6, %v7318_v9  ;;  %v7877_v34 = vpack.c.bf16 %v2042_v29, %v2042_v29  ;;  %v1795_v27 = vrot.slane %v1439_v13, %v7320_v10  ;;  %v1799_v35 = vrot.slane %v1441_v16, %v7320_v10 }
 0x1c5   : > { %3260 = vrot.lane.b32.xlu0 %v7804_v36, %s7230_s19  ;;  %v2146_v4 = vcombine.low %v7861_v25, %v7850_v18  ;;  %v1634_v38 = vcombine.high %v7853_v19, %v7853_v19  ;;  %v1635_v1 = vcombine.high %v7856_v21, %v7856_v21  ;;  %v2043_v11 = vcombine.low %v1787_v17, %v1791_v37 }
 0x1c6   : > { %3262 = vrot.lane.b32.xlu1 %v7877_v34, %s7230_s19  ;;  %v2044_v40 = vcombine.low %v1795_v27, %v1799_v35  ;;  %v1334_v41 = vmul.f32 %v7079_v22, %v7754_v8  ;;  %v1457_v26 = vcombine.high %v7820_v50, %v7820_v50  ;;  %v2373_v43 = vshrl.u32 %v7804_v36, 16 }
 0x1c7   : > { %v1636_v57 = vcombine.high %v7871_v33, %v7871_v33  ;;  %v2051_v44 = vrot.slane %v2043_v11, %v7323_v15  ;;  %v2367_v45 = vrot.slane %v2365_v30, 7  ;;  %v1465_v47 = vrot.slane %v7820_v50, %v7318_v9 }
 0x1c8   : > { %v2058_v49 = vrot.slane %v2044_v40, %v7323_v15  ;;  %v1638_v51 = vcombine.high %v1334_v41, %v1334_v41  ;;  %v1645_v8 = vrot.slane %v1334_v41, %v7318_v9  ;;  %v1479_v52 = vrot.slane %v1457_v26, %v7318_v9 }
 0x1c9   : > { %2576 = vrot.lane.b32.xlu0 %v7877_v34, %s7231_s21  ;;  %v1899_v53 = vrot.slane %v7853_v19, %v7320_v10  ;;  %v1903_v55 = vrot.slane %v7871_v33, %v7320_v10  ;;  %v1487_v56 = vcombine.high %v1465_v47, %v1465_v47  ;;  %v2375_v58 = vrot.slane %v2373_v43, 7 }
 0x1ca   : > { %v7081_v61 = vpop.eup %7080  ;;  %v2059_v62 = vcombine.low %v2051_v44, %v2058_v49  ;;  %v2368_v50 = vshll.u32 %v7790_v23, 16  ;;  %v1652_v63 = vrot.slane %v1638_v51, %v7318_v9  ;;  %v1803_v0 = vrot.slane %v1465_v47, %v7320_v10 }
 0x1cb   : > { %v1653_v2 = vcombine.high %v1645_v8, %v1645_v8  ;;  %v1489_v3 = vcombine.high %v1479_v52, %v1479_v52  ;;  %v1807_v12 = vrot.slane %v1479_v52, %v7320_v10  ;;  %v2376_v13 = vshll.u32 %v7804_v36, 16 }
 0x1cc   : > { %v1637_v6 = vcombine.high %v7875_v48, %v7875_v48  ;;  %v7921_v16 = vrot.slane %v1634_v38, %v7320_v10  ;;  %v7923_v17 = vpack.c.bf16 %v2059_v62, %v2059_v62  ;;  %v7925_v46 = vor.u32 %v2368_v50, %v2367_v45 }
 0x1cd   : > { %2955 = vrot.lane.b32.xlu0 %v7877_v34, %s7225_s15  ;;  %v1811_v19 = vrot.slane %v1487_v56, %v7320_v10  ;;  %v1815_v22 = vrot.slane %v1489_v3, %v7320_v10  ;;  %v2060_v29 = vcombine.low %v1803_v0, %v1807_v12  ;;  %v2378_v33 = vor.u32 %v2376_v13, %v2375_v58 }
 0x1ce   : > { %v7932_v37 = vrot.slane %v1636_v57, %v7320_v10  ;;  %v1919_v27 = vrot.slane %v7875_v48, %v7320_v10  ;;  %2578 = vrot.lane.b32.xlu1 %v7923_v17, %s7231_s21  ;;  %v1654_v35 = vcombine.high %v1652_v63, %v1652_v63  ;;  %v1661_v11 = vrot.slane %v1645_v8, %v7318_v9 }
 0x1cf   : > { %v1675_v40 = vrot.slane %v1653_v2, %v7318_v9  ;;  %v2061_v41 = vcombine.low %v1811_v19, %v1815_v22  ;;  %v2371_v48 = vrot.slane %v2367_v45, 4  ;;  %v1915_v26 = vrot.slane %v7856_v21, %v7320_v10 }
 0x1d0   : > { %v7951_v57 = vrot.slane %v1635_v1, %v7320_v10  ;;  %v7954_v44 = vrot.slane %v1637_v6, %v7320_v10  ;;  %v7956_v47 = vcombine.low %v1899_v53, %v1903_v55  ;;  %v1668_v49 = vrot.slane %v1652_v63, %v7318_v9 }
 0x1d1   : > { %3147 = vrot.lane.b32.xlu0 %v7925_v46, %s7226_s20  ;;  %v2068_v51 = vrot.slane %v2060_v29, %v7323_v15  ;;  %v2075_v8 = vrot.slane %v2061_v41, %v7323_v15  ;;  %v7963_v45 = vsel %vm7942_vm10, %v2371_v48, %v2378_v33  ;;  %v2163_v21 = vcombine.low %v7921_v16, %v7932_v37 }
 0x1d2   : > { %v7967_v1 = vcombine.low %v1915_v26, %v1919_v27  ;;  %2836 = vrot.lane.b32.xlu1 %v7925_v46, %s7232_s22  ;;  %v1682_v52 = vrot.slane %v1654_v35, %v7318_v9  ;;  %v1335_v53 = vmul.f32 %v7081_v61, %v7759_v24  ;;  %2515 = vst.msk [vmem:[#allocation3 + $0xc] sm:$0xf] %vm2509_vm11, %v7963_v45  ;;  %2519 = vst.msk [vmem:[#allocation3 + $0x14] sm:$0xf] %vm2509_vm11, %v7963_v45 }
 0x1d3   : > { %v1683_v55 = vcombine.high %v1661_v11, %v1661_v11  ;;  %v1685_v56 = vcombine.high %v1675_v40, %v1675_v40  ;;  %v2076_v58 = vcombine.low %v2068_v51, %v2075_v8  ;;  %v2653_v62 = vrot.slane %v2365_v30, 4 }
 0x1d4   : > { %v1687_v63 = vcombine.high %v1335_v53, %v1335_v53  ;;  %v1694_v0 = vrot.slane %v1335_v53, %v7318_v9  ;;  %v2654_v2 = vrot.slane %v2368_v50, 5  ;;  %v1456_v24 = vrot.slane %v1442_v42, %v7318_v9 }
 0x1d5   : > { %v1684_v61 = vcombine.high %v1668_v49, %v1668_v49  ;;  %v1931_v3 = vrot.slane %v1661_v11, %v7320_v10  ;;  %v1935_v12 = vrot.slane %v1675_v40, %v7320_v10  ;;  %v7986_v6 = vpack.c.bf16 %v2076_v58, %v2076_v58 }
 0x1d6   : > { %v2170_v23 = vrot.slane %v7956_v47, %v7323_v15  ;;  %v2180_v30 = vcombine.low %v7951_v57, %v7954_v44  ;;  %2957 = vrot.lane.b32.xlu1 %v7923_v17, %s7225_s15  ;;  %v1686_v50 = vcombine.high %v1682_v52, %v1682_v52  ;;  %v1458_v19 = vcombine.high %v1456_v24, %v1456_v24 }
 0x1d7   : > { %v7995_v32 = vrot.slane %v1683_v55, %v7320_v10  ;;  %v7998_v42 = vrot.slane %v1685_v56, %v7320_v10  ;;  %2580 = vrot.lane.b32.xlu0 %v7986_v6, %s7231_s21  ;;  %v1701_v22 = vrot.slane %v1687_v63, %v7318_v9  ;;  %v1472_v29 = vrot.slane %v1456_v24, %v7318_v9 }
 0x1d8   : > { %v1947_v33 = vrot.slane %v1668_v49, %v7320_v10  ;;  %v1951_v27 = vrot.slane %v1682_v52, %v7320_v10  ;;  %v1702_v35 = vcombine.high %v1694_v0, %v1694_v0  ;;  %v2655_v11 = vor.u32 %v2654_v2, %v2653_v62 }
 0x1d9   : > { %v8007_v40 = vrot.slane %v1684_v61, %v7320_v10  ;;  %v8009_v41 = vcombine.low %v1931_v3, %v1935_v12  ;;  %v1486_v48 = vrot.slane %v1458_v19, %v7318_v9  ;;  %v1488_v26 = vcombine.high %v1472_v29, %v1472_v29 }
 0x1da   : > { %3264 = vrot.lane.b32.xlu1 %v7923_v17, %s7230_s19  ;;  %v8015_v51 = vrot.slane %v1686_v50, %v7320_v10  ;;  %v1710_v49 = vrot.slane %v1694_v0, %v7318_v9  ;;  %v8020_v8 = vrot.slane %v2376_v13, 5  ;;  %v8024_v52 = vrot.slane %v2373_v43, 4 }
 0x1db   : > { %v1703_v55 = vcombine.high %v1701_v22, %v1701_v22  ;;  %2959 = vrot.lane.b32.xlu0 %v7986_v6, %s7225_s15  ;;  %v1490_v56 = vcombine.high %v1486_v48, %v1486_v48  ;;  %v2381_v58 = vshrl.u32 %v7877_v34, 16  ;;  %v8031_v62 = vcombine.low %v1947_v33, %v1951_v27 }
 0x1dc   : > { %v8034_v63 = vrot.slane %v1701_v22, %v7318_v9  ;;  %v1724_v13 = vrot.slane %v1702_v35, %v7318_v9  ;;  %v2656_v36 = vrot.slane %v2655_v11, 4  ;;  %v1819_v0 = vrot.slane %v1472_v29, %v7320_v10 }
 0x1dd   : > { %v1823_v2 = vrot.slane %v1486_v48, %v7320_v10  ;;  %v1827_v24 = vrot.slane %v1488_v26, %v7320_v10  ;;  %v1831_v61 = vrot.slane %v1490_v56, %v7320_v10  ;;  %v1732_v50 = vcombine.high %v1710_v49, %v1710_v49 }
 0x1de   : > { %2838 = vrot.lane.b32.xlu1 %v7963_v45, %s7232_s22  ;;  %v2660_v19 = vor.u32 %v8024_v52, %v8020_v8  ;;  %v8056_v22 = vrot.slane %v1703_v55, %v7318_v9  ;;  %v8060_v27 = vrot.slane %v2381_v58, 7  ;;  %v1963_v35 = vrot.slane %v1710_v49, %v7320_v10 }
 0x1df   : > { %3266 = vrot.lane.b32.xlu0 %v7986_v6, %s7230_s19  ;;  %v2077_v29 = vcombine.low %v1819_v0, %v1823_v2  ;;  %v2078_v33 = vcombine.low %v1827_v24, %v1831_v61  ;;  %v2658_v11 = vsel %vm8039_vm13, %v2656_v36, %v8020_v8  ;;  %v1506_v48 = vcombine.high %v7831_v60, %v7831_v60 }
 0x1e0   : > { %v1514_v26 = vrot.slane %v7831_v60, %v7318_v9  ;;  %v1733_v52 = vcombine.high %v8034_v63, %v8034_v63  ;;  %v1734_v55 = vcombine.high %v1724_v13, %v1724_v13  ;;  %v1967_v56 = vrot.slane %v1724_v13, %v7320_v10 }
 0x1e1   : > { %v2092_v0 = vrot.slane %v2078_v33, %v7323_v15  ;;  %v8075_v49 = vrot.slane %v1732_v50, %v7320_v10  ;;  %v2085_v8 = vrot.slane %v2077_v29, %v7323_v15  ;;  %v1528_v36 = vrot.slane %v1506_v48, %v7318_v9 }
 0x1e2   : > { %3032 = vrot.lane.b32.xlu1 %v2658_v11, %s7233_s24  ;;  %v1536_v2 = vcombine.high %v1514_v26, %v1514_v26  ;;  %v1735_v60 = vcombine.high %v8056_v22, %v8056_v22  ;;  %v1979_v24 = vrot.slane %v8034_v63, %v7320_v10  ;;  %v2384_v13 = vshll.u32 %v7877_v34, 16 }
 0x1e3   : > { %2725 = vrot.lane.b32.xlu0 %v2658_v11, %s7223_s23  ;;  %v2389_v61 = vshrl.u32 %v7923_v17, 16  ;;  %v2093_v50 = vcombine.low %v2085_v8, %v2092_v0  ;;  %v1538_v33 = vcombine.high %v1528_v36, %v1528_v36  ;;  %v1835_v7 = vrot.slane %v1514_v26, %v7320_v10 }
 0x1e4   : > { %v1839_v29 = vrot.slane %v1528_v36, %v7320_v10  ;;  %v8090_v48 = vrot.slane %v1734_v55, %v7320_v10  ;;  %v1983_v12 = vrot.slane %v8056_v22, %v7320_v10  ;;  %v2392_v63 = vshll.u32 %v7923_v17, 16 }
 0x1e5   : > { %v2391_v3 = vrot.slane %v2389_v61, 7  ;;  %v8096_v53 = vrot.slane %v1733_v52, %v7320_v10  ;;  %v1843_v34 = vrot.slane %v1536_v2, %v7320_v10  ;;  %v1847_v26 = vrot.slane %v1538_v33, %v7320_v10 }
 0x1e6   : > { %3337 = vrot.lane.b32.xlu1 %v2658_v11, %s7224_s12  ;;  %v2094_v0 = vcombine.low %v1835_v7, %v1839_v29  ;;  %v8101_v8 = vcombine.low %v1963_v35, %v1967_v56  ;;  %v2387_v22 = vrot.slane %v8060_v27, 4  ;;  %v1505_v17 = vrot.slane %v1491_v54, %v7318_v9 }
 0x1e7   : > { %3149 = vrot.lane.b32.xlu0 %v7963_v45, %s7226_s20  ;;  %v2394_v55 = vor.u32 %v2392_v63, %v2391_v3  ;;  %v8110_v52 = vpack.c.bf16 %v2093_v50, %v2093_v50  ;;  %v2095_v11 = vcombine.low %v1843_v34, %v1847_v26  ;;  %v2662_v36 = vrot.slane %v2381_v58, 4 }
 0x1e8   : > { %v2663_v2 = vrot.slane %v2384_v13, 5  ;;  %v2661_v33 = vrot.slane %v2660_v19, 4  ;;  %v2397_v45 = vshrl.u32 %v7986_v6, 16  ;;  %v1507_v35 = vcombine.high %v1505_v17, %v1505_v17 }
 0x1e9   : > { %v8114_v7 = vsel %vm7942_vm10, %v2387_v22, %v2394_v55  ;;  %v8118_v3 = vrot.slane %v1735_v60, %v7320_v10  ;;  %v2102_v59 = vrot.slane %v2094_v0, %v7323_v15  ;;  %v2109_v54 = vrot.slane %v2095_v11, %v7323_v15 }
 0x1ea   : > { %2582 = vrot.lane.b32.xlu1 %v8110_v52, %s7231_s21  ;;  %v1521_v58 = vrot.slane %v1505_v17, %v7318_v9  ;;  %2523 = vst.msk [vmem:[#allocation3 + $0x1c] sm:$0xf] %vm2509_vm11, %v8114_v7  ;;  %2527 = vst.msk [vmem:[#allocation3 + $0x24] sm:$0xf] %vm2509_vm11, %v8114_v7  ;;  %v2231_v19 = vcombine.low %v8075_v49, %v8090_v48  ;;  %v8132_v56 = vrot.slane %v2392_v63, 5  ;;  %v8139_v26 = vrot.slane %v2389_v61, 4 }
 0x1eb   : > { %3034 = vrot.lane.b32.xlu0 %v2661_v33, %s7233_s24  ;;  %v1535_v60 = vrot.slane %v1507_v35, %v7318_v9  ;;  %v2143_v50 = vrot.slane %v2129_v28, %v7323_v15  ;;  %v2110_v29 = vcombine.low %v2102_v59, %v2109_v54  ;;  %v2664_v34 = vor.u32 %v2663_v2, %v2662_v36 }
 0x1ec   : > { %v1537_v0 = vcombine.high %v1521_v58, %v1521_v58  ;;  %v2399_v22 = vrot.slane %v2397_v45, 7  ;;  %v1851_v17 = vrot.slane %v1521_v58, %v7320_v10  ;;  %v8151_v14 = vcombine.low %v1979_v24, %v1983_v12  ;;  %v2516_v24 = vld [vmem:[#allocation3 + $0x10] sm:$0xf] }
 0x1ed   : > { %v1539_v55 = vcombine.high %v1535_v60, %v1535_v60  ;;  %v1855_v63 = vrot.slane %v1535_v60, %v7320_v10  ;;  %v8155_v28 = vor.u32 %v2384_v13, %v8060_v27  ;;  %v8157_v61 = vpack.c.bf16 %v2110_v29, %v2110_v29 }
 0x1ee   : > { %2727 = vrot.lane.b32.xlu1 %v2661_v33, %s7223_s23  ;;  %v2405_v11 = vshrl.u32 %v8110_v52, 16  ;;  %v1859_v36 = vrot.slane %v1537_v0, %v7320_v10  ;;  %v2144_v12 = vcombine.low %v2136_v20, %v2143_v50  ;;  %v2665_v59 = vrot.slane %v2664_v34, 4 }
 0x1ef   : > { %3339 = vrot.lane.b32.xlu0 %v2661_v33, %s7224_s12  ;;  %v1863_v2 = vrot.slane %v1539_v55, %v7320_v10  ;;  %v2111_v35 = vcombine.low %v1851_v17, %v1855_v63  ;;  %v2408_v27 = vshll.u32 %v8110_v52, 16  ;;  %v2512_v33 = vsel %vm8147_vm14, %v7925_v46, %v2511_v39 }
 0x1f0   : > { %v2407_v13 = vrot.slane %v2405_v11, 7  ;;  %v2669_v54 = vor.u32 %v8139_v26, %v8132_v56  ;;  %v2400_v10 = vshll.u32 %v7986_v6, 16  ;;  %v2403_v60 = vrot.slane %v2399_v22, 4  ;;  %2513 = vst [vmem:[#allocation3 + $0x8] sm:$0xf] %v2512_v33 }
 0x1f1   : > { %v2112_v58 = vcombine.low %v1859_v36, %v1863_v2  ;;  %v2160_v50 = vrot.slane %v2146_v4, %v7323_v15  ;;  %v2517_v29 = vsel %vm8147_vm14, %v7925_v46, %v2516_v24  ;;  %v2413_v34 = vshrl.u32 %v8157_v61, 16  ;;  %v2524_v26 = vld [vmem:[#allocation3 + $0x20] sm:$0xf]  ;;  %v2532_v33 = vld [vmem:[#allocation3 + $0x30] sm:$0xf] }
 0x1f2   : > { %2840 = vrot.lane.b32.xlu1 %v8155_v28, %s7232_s22  ;;  %v2410_v20 = vor.u32 %v2408_v27, %v2407_v13  ;;  %v2119_v0 = vrot.slane %v2111_v35, %v7323_v15  ;;  %v8191_v17 = vpack.c.bf16 %v2144_v12, %v2144_v12  ;;  %2518 = vst [vmem:[#allocation3 + $0x10] sm:$0xf] %v2517_v29  ;;  %v2416_v18 = vshll.u32 %v8157_v61, 16 }
 0x1f3   : > { %3268 = vrot.lane.b32.xlu0 %v8110_v52, %s7230_s19  ;;  %v2126_v55 = vrot.slane %v2112_v58, %v7323_v15  ;;  %v8196_v25 = vor.u32 %v2400_v10, %v2399_v22  ;;  %v2153_v46 = vrot.slane %v7868_v31, %v7323_v15  ;;  %v2521_v63 = vsel %vm8147_vm14, %v8155_v28, %v2520_v5  ;;  %v2528_v22 = vld [vmem:[#allocation3 + $0x28] sm:$0xf] }
 0x1f4   : > { %v8200_v4 = vsel %vm7942_vm10, %v2403_v60, %v2410_v20  ;;  %v2238_v39 = vrot.slane %v8101_v8, %v7323_v15  ;;  %v2248_v36 = vcombine.low %v8096_v53, %v8118_v3  ;;  %2522 = vst [vmem:[#allocation3 + $0x18] sm:$0xf] %v2521_v63  ;;  %v2525_v31 = vsel %vm8147_vm14, %v8155_v28, %v2524_v26 }
 0x1f5   : > { %v2127_v2 = vcombine.low %v2119_v0, %v2126_v55  ;;  %2531 = vst.msk [vmem:[#allocation3 + $0x2c] sm:$0xf] %vm2509_vm11, %v8200_v4  ;;  %2535 = vst.msk [vmem:[#allocation3 + $0x34] sm:$0xf] %vm2509_vm11, %v8200_v4  ;;  %v2161_v35 = vcombine.low %v2153_v46, %v2160_v50  ;;  %v2177_v12 = vrot.slane %v2163_v21, %v7323_v15  ;;  %v2680_v24 = vrot.slane %v2413_v34, 4 }
 0x1f6   : > { %2961 = vrot.lane.b32.xlu1 %v8110_v52, %s7225_s15  ;;  %2526 = vst [vmem:[#allocation3 + $0x20] sm:$0xf] %v2525_v31  ;;  %v2681_v13 = vrot.slane %v2416_v18, 5  ;;  %v8229_v58 = vsel %vm8039_vm13, %v2665_v59, %v8132_v56  ;;  %v8231_v60 = vrot.slane %v2669_v54, 4  ;;  %v2429_v20 = vshrl.u32 %v8191_v17, 16 }
 0x1f7   : > { %2584 = vrot.lane.b32.xlu0 %v8157_v61, %s7231_s21  ;;  %v8233_v5 = vpack.c.bf16 %v2127_v2, %v2127_v2  ;;  %v2415_v16 = vrot.slane %v2413_v34, 7  ;;  %v2194_v21 = vrot.slane %v2180_v30, %v7323_v15  ;;  %v2529_v50 = vsel %vm8147_vm14, %v8196_v25, %v2528_v22 }
 0x1f8   : > { %v2682_v37 = vor.u32 %v2681_v13, %v2680_v24  ;;  %v2187_v54 = vrot.slane %v7967_v1, %v7323_v15  ;;  %2530 = vst [vmem:[#allocation3 + $0x28] sm:$0xf] %v2529_v50  ;;  %v2533_v29 = vsel %vm8147_vm14, %v8196_v25, %v2532_v33  ;;  %v8252_v57 = vpack.c.bf16 %v2161_v35, %v2161_v35  ;;  %v2536_v13 = vld [vmem:[#allocation3 + $0x38] sm:$0xf] }
 0x1f9   : > { %v2421_v56 = vshrl.u32 %v8233_v5, 16  ;;  %v2424_v59 = vshll.u32 %v8233_v5, 16  ;;  %v2178_v44 = vcombine.low %v2170_v23, %v2177_v12  ;;  %v2431_v34 = vrot.slane %v2429_v20, 7  ;;  %2534 = vst [vmem:[#allocation3 + $0x30] sm:$0xf] %v2533_v29 }
 0x1fa   : > { %3151 = vrot.lane.b32.xlu1 %v8155_v28, %s7226_s20  ;;  %v2683_v30 = vrot.slane %v2682_v37, 4  ;;  %v2195_v0 = vcombine.low %v2187_v54, %v2194_v21  ;;  %v8265_v28 = vrot.slane %v2397_v45, 4  ;;  %v8267_v46 = vor.u32 %v2416_v18, %v2415_v16 }
 0x1fb   : > { %2729 = vrot.lane.b32.xlu0 %v8229_v58, %s7223_s23  ;;  %v2423_v1 = vrot.slane %v2421_v56, 7  ;;  %v8259_v26 = vrot.slane %v2424_v59, 5  ;;  %v8261_v55 = vrot.slane %v2421_v56, 4  ;;  %v2419_v47 = vrot.slane %v2415_v16, 4 }
 0x1fc   : > { %v2432_v23 = vshll.u32 %v8191_v17, 16  ;;  %v11433_v22 = vcombine.low %v7995_v32, %v7998_v42  ;;  %v8285_v18 = vrot.slane %v2400_v10, 5  ;;  %v8287_v35 = vpack.c.bf16 %v2178_v44, %v2178_v44  ;;  %v2540_v10 = vld [vmem:[#allocation3 + $0x40] sm:$0xf] }
 0x1fd   : > { %v2426_v63 = vor.u32 %v2424_v59, %v2423_v1  ;;  %v8273_v2 = vsel %vm8039_vm13, %v2683_v30, %v8259_v26  ;;  %v2687_v31 = vor.u32 %v8261_v55, %v8259_v26  ;;  %v2437_v12 = vshrl.u32 %v8252_v57, 16 }
 0x1fe   : > { %v2211_v45 = vrot.slane %v11433_v22, %v7323_v15  ;;  %2963 = vrot.lane.b32.xlu1 %v8157_v61, %s7225_s15  ;;  %v2440_v24 = vshll.u32 %v8252_v57, 16  ;;  %v8297_v42 = vpack.c.bf16 %v2195_v0, %v2195_v0  ;;  %v2435_v33 = vrot.slane %v2431_v34, 4 }
 0x1ff   : > { %2731 = vrot.lane.b32.xlu0 %v8231_v60, %s7223_s23  ;;  %v8295_v32 = vsel %vm7942_vm10, %v2419_v47, %v2426_v63  ;;  %v2689_v6 = vrot.slane %v2429_v20, 4  ;;  %v2439_v16 = vrot.slane %v2437_v12, 7  ;;  %v2690_v37 = vrot.slane %v2432_v23, 5 }
 0x200   : > { %2539 = vst.msk [vmem:[#allocation3 + $0x3c] sm:$0xf] %vm2509_vm11, %v8295_v32  ;;  %2543 = vst.msk [vmem:[#allocation3 + $0x44] sm:$0xf] %vm2509_vm11, %v8295_v32  ;;  %v8303_v21 = vrot.slane %v2440_v24, 5  ;;  %v2221_v50 = vrot.slane %v8031_v62, %v7323_v15  ;;  %v11434_v56 = vrot.slane %v8009_v41, %v7323_v15  ;;  %v11435_v20 = vcombine.low %v8007_v40, %v8015_v51 }
 0x201   : > { %v8314_v29 = vrot.slane %v2437_v12, 4  ;;  %v2537_v44 = vsel %vm8147_vm14, %v8267_v46, %v2536_v13  ;;  %v2442_v30 = vor.u32 %v2440_v24, %v2439_v16  ;;  %v2691_v62 = vor.u32 %v2690_v37, %v2689_v6  ;;  %v7006_v12 = vld [vmem:[%s11338_s5 + $0x20] ss:$0 sps:$4 sm:$0xff]   ;;  %v2544_v6 = vld [vmem:[#allocation3 + $0x48] sm:$0xf] }
 0x202   : > { %v2212_v59 = vcombine.low %v11434_v56, %v2211_v45  ;;  %v2228_v54 = vrot.slane %v11435_v20, %v7323_v15  ;;  %3270 = vrot.lane.b32.xlu1 %v8157_v61, %s7230_s19  ;;  %2538 = vst [vmem:[#allocation3 + $0x38] sm:$0xf] %v2537_v44  ;;  %v2541_v41 = vsel %vm8147_vm14, %v8267_v46, %v2540_v10  ;;  %v2445_v1 = vshrl.u32 %v8287_v35, 16  ;;  %v2548_v10 = vld [vmem:[#allocation3 + $0x50] sm:$0xf] }
 0x203   : > { %3038 = vrot.lane.b32.xlu0 %v8231_v60, %s7233_s24  ;;  %v8327_v40 = vor.u32 %v2432_v23, %v2431_v34  ;;  %v2696_v0 = vor.u32 %v8314_v29, %v8303_v21  ;;  %2542 = vst [vmem:[#allocation3 + $0x40] sm:$0xf] %v2541_v41  ;;  %v2448_v61 = vshll.u32 %v8287_v35, 16  ;;  %v8334_v47 = vsel %vm7942_vm10, %v2435_v33, %v2442_v30 }
 0x204   : > { %v2229_v51 = vcombine.low %v2221_v50, %v2228_v54  ;;  %v2692_v63 = vrot.slane %v2691_v62, 4  ;;  %v2447_v22 = vrot.slane %v2445_v1, 7  ;;  %v2245_v45 = vrot.slane %v2231_v19, %v7323_v15  ;;  %2547 = vst.msk [vmem:[#allocation3 + $0x4c] sm:$0xf] %vm2509_vm11, %v8334_v47  ;;  %2551 = vst.msk [vmem:[#allocation3 + $0x54] sm:$0xf] %vm2509_vm11, %v8334_v47  ;;  %6945 = vmatprep.subr.msk.bf16.mxu0 %vm11347_vm0, %v7006_v12 }
 0x205   : > { %v8340_v34 = vpack.c.bf16 %v2212_v59, %v2212_v59  ;;  %v2453_v24 = vshrl.u32 %v8297_v42, 16  ;;  %v2456_v13 = vshll.u32 %v8297_v42, 16  ;;  %v3653_v16 = vsel %vm11347_vm0, %v7006_v12, 0  ;;  %6946 = vmatprep.subr.msk.bf16.mxu1 %vm11347_vm0, %v7006_v12 }
 0x206   : > { %v8346_v23 = vpack.c.bf16 %v2229_v51, %v2229_v51  ;;  %2842 = vrot.lane.b32.xlu1 %v8114_v7, %s7232_s22  ;;  %v8358_v49 = vsel %vm8039_vm13, %v2692_v63, %v8303_v21  ;;  %v8360_v48 = vor.u32 %v2448_v61, %v2447_v22  ;;  %v2246_v19 = vcombine.low %v2238_v39, %v2245_v45 }
 0x207   : > { %v2451_v33 = vrot.slane %v2447_v22, 4  ;;  %3343 = vrot.lane.b32.xlu0 %v8231_v60, %s7224_s12  ;;  %v2455_v37 = vrot.slane %v2453_v24, 7  ;;  %v2698_v50 = vrot.slane %v2445_v1, 4  ;;  %v2699_v56 = vrot.slane %v2448_v61, 5  ;;  %6814 = vmatpush3.bf16.msra.mxu0 %v3653_v16 }
 0x208   : > { %v8369_v59 = vpack.c.bf16 %v2246_v19, %v2246_v19  ;;  %v8371_v20 = vrot.slane %v2456_v13, 5  ;;  %v2255_v8 = vrot.slane %v8151_v14, %v7323_v15  ;;  %v2262_v39 = vrot.slane %v2248_v36, %v7323_v15  ;;  %6940 = vmatpush3.bf16.msra.mxu1 %v3653_v16 }
 0x209   : > { %v2458_v60 = vor.u32 %v2456_v13, %v2455_v37  ;;  %v2700_v54 = vor.u32 %v2699_v56, %v2698_v50  ;;  %v2545_v44 = vsel %vm8147_vm14, %v8327_v40, %v2544_v6  ;;  %v2549_v30 = vsel %vm8147_vm14, %v8327_v40, %v2548_v10  ;;  %v2552_v13 = vld [vmem:[#allocation3 + $0x58] sm:$0xf]  ;;  %v7008_v6 = vld [vmem:[%s11338_s5 + $0x10] sm:$0xff]   ;;  %v2556_v50 = vld [vmem:[#allocation3 + $0x60] sm:$0xf] }
 0x20a   : > { %3153 = vrot.lane.b32.xlu1 %v8114_v7, %s7226_s20  ;;  %v2263_v14 = vcombine.low %v2255_v8, %v2262_v39  ;;  %2546 = vst [vmem:[#allocation3 + $0x48] sm:$0xf] %v2545_v44  ;;  %2550 = vst [vmem:[#allocation3 + $0x50] sm:$0xf] %v2549_v30  ;;  %v8388_v15 = vrot.slane %v2453_v24, 4  ;;  %v2461_v53 = vshrl.u32 %v8340_v34, 16  ;;  %v2673_v19 = vor.u32 %v8285_v18, %v8265_v28 }
 0x20b   : > { %v2469_v3 = vshrl.u32 %v8346_v23, 16  ;;  %2844 = vrot.lane.b32.xlu0 %v8196_v25, %s7232_s22  ;;  %v8396_v36 = vsel %vm7942_vm10, %v2451_v33, %v2458_v60  ;;  %v2701_v62 = vrot.slane %v2700_v54, 4  ;;  %v2472_v41 = vshll.u32 %v8346_v23, 16  ;;  %v7007_v33 = vld [vmem:[%s11338_s5 + $0x18] sm:$0xff]   ;;  %v2560_v44 = vld [vmem:[#allocation3 + $0x68] sm:$0xf] }
 0x20c   : > { %v2464_v7 = vshll.u32 %v8340_v34, 16  ;;  %2555 = vst.msk [vmem:[#allocation3 + $0x5c] sm:$0xf] %vm2509_vm11, %v8396_v36  ;;  %2559 = vst.msk [vmem:[#allocation3 + $0x64] sm:$0xf] %vm2509_vm11, %v8396_v36  ;;  %v8404_v1 = vpack.c.bf16 %v2263_v14, %v2263_v14  ;;  %v2705_v51 = vor.u32 %v8388_v15, %v8371_v20  ;;  %v2463_v61 = vrot.slane %v2461_v53, 7  ;;  %6815 = vmatprep.subr.bf16.mxu0 %v7007_v33 }
 0x20d   : > { %v2471_v63 = vrot.slane %v2469_v3, 7  ;;  %v8411_v22 = vsel %vm8039_vm13, %v2701_v62, %v8371_v20  ;;  %v2707_v45 = vrot.slane %v2461_v53, 4  ;;  %v8413_v24 = vrot.slane %v2472_v41, 5  ;;  %6936 = vmatprep.subr.bf16.mxu1 %v7007_v33  ;;  %6816 = vmatpush3.bf16.msra.mxu0 %v7007_v33  ;;  %v2564_v62 = vld [vmem:[#allocation3 + $0x70] sm:$0xf] }
 0x20e   : > { %v2708_v12 = vrot.slane %v2464_v7, 5  ;;  %3036 = vrot.lane.b32.xlu1 %v8229_v58, %s7233_s24  ;;  %v2467_v10 = vrot.slane %v2463_v61, 4  ;;  %v8425_v37 = vor.u32 %v2464_v7, %v2463_v61  ;;  %v2477_v8 = vshrl.u32 %v8369_v59, 16  ;;  %6941 = vmatpush3.bf16.msra.mxu1 %v7007_v33  ;;  %v7009_v7 = vld [vmem:[%s11338_s5 + $0x8] sm:$0xff]  }
 0x20f   : > { %v2474_v16 = vor.u32 %v2472_v41, %v2471_v63  ;;  %3155 = vrot.lane.b32.xlu0 %v8196_v25, %s7226_s20  ;;  %v2480_v28 = vshll.u32 %v8369_v59, 16  ;;  %v8431_v18 = vrot.slane %v2469_v3, 4  ;;  %v2485_v60 = vshrl.u32 %v8404_v1, 16  ;;  %v2568_v41 = vld [vmem:[#allocation3 + $0x78] sm:$0xf]  ;;  %6817 = vmatprep.subr.bf16.mxu0 %v7008_v6 }
 0x210   : > { %v2709_v56 = vor.u32 %v2708_v12, %v2707_v45  ;;  %v2488_v54 = vshll.u32 %v8404_v1, 16  ;;  %v2553_v25 = vsel %vm8147_vm14, %v8360_v48, %v2552_v13  ;;  %v2479_v14 = vrot.slane %v2477_v8, 7  ;;  %6937 = vmatprep.subr.bf16.mxu1 %v7008_v6 }
 0x211   : > { %v8435_v39 = vsel %vm7942_vm10, %v2467_v10, %v2474_v16  ;;  %v2714_v53 = vor.u32 %v8431_v18, %v8413_v24  ;;  %2554 = vst [vmem:[#allocation3 + $0x58] sm:$0xf] %v2553_v25  ;;  %v2557_v3 = vsel %vm8147_vm14, %v8360_v48, %v2556_v50  ;;  %v2487_v61 = vrot.slane %v2485_v60, 7  ;;  %6818 = vmatpush3.bf16.msra.mxu0 %v7008_v6 }
 0x212   : > { %2563 = vst.msk [vmem:[#allocation3 + $0x6c] sm:$0xf] %vm2509_vm11, %v8435_v39  ;;  %2567 = vst.msk [vmem:[#allocation3 + $0x74] sm:$0xf] %vm2509_vm11, %v8435_v39  ;;  %v2710_v30 = vrot.slane %v2709_v56, 4  ;;  %3341 = vrot.lane.b32.xlu1 %v8229_v58, %s7224_s12  ;;  %v2716_v63 = vrot.slane %v2477_v8, 4  ;;  %v8465_v58 = vor.u32 %v2480_v28, %v2479_v14  ;;  %v2561_v56 = vsel %vm8147_vm14, %v8425_v37, %v2560_v44 }
 0x213   : > { %2558 = vst [vmem:[#allocation3 + $0x60] sm:$0xf] %v2557_v3  ;;  %v2717_v45 = vrot.slane %v2480_v28, 5  ;;  %v8456_v12 = vrot.slane %v2488_v54, 5  ;;  %2588 = vrot.lane.b32.xlu0 %v8191_v17, %s7231_s21  ;;  %v2483_v33 = vrot.slane %v2479_v14, 4  ;;  %v2490_v10 = vor.u32 %v2488_v54, %v2487_v61  ;;  %6942 = vmatpush3.bf16.msra.mxu1 %v7008_v6  ;;  %v7010_v54 = vld [vmem:[%s11338_s5] sm:$0xff]  }
 0x214   : > { %v8463_v13 = vsel %vm8039_vm13, %v2710_v30, %v8413_v24  ;;  %v8467_v50 = vrot.slane %v2485_v60, 4  ;;  %2562 = vst [vmem:[#allocation3 + $0x68] sm:$0xf] %v2561_v56  ;;  %v2565_v8 = vsel %vm8147_vm14, %v8425_v37, %v2564_v62  ;;  %v2569_v28 = vsel %vm8147_vm14, %v8465_v58, %v2568_v41  ;;  %6819 = vmatprep.subr.bf16.mxu0 %v7009_v7 }
 0x215   : > { %v2718_v16 = vor.u32 %v2717_v45, %v2716_v63  ;;  %v2674_v60 = vrot.slane %v2673_v19, 4  ;;  %v8485_v25 = vsel %vm7942_vm10, %v2483_v33, %v2490_v10  ;;  %2566 = vst [vmem:[#allocation3 + $0x70] sm:$0xf] %v2565_v8  ;;  %2570 = vst [vmem:[#allocation3 + $0x78] sm:$0xf] %v2569_v28  ;;  %6938 = vmatprep.subr.bf16.mxu1 %v7009_v7  ;;  %v2675_v9 = vrot.slane %v2408_v27, 5 }
 0x216   : > { %2586 = vrot.lane.b32.xlu1 %v8233_v5, %s7231_s21  ;;  %v2723_v30 = vor.u32 %v8467_v50, %v8456_v12  ;;  %2571 = vst.msk [vmem:[#allocation3 + $0x7c] sm:$0xf] %vm2509_vm11, %v8485_v25  ;;  %6820 = vmatpush3.bf16.msra.mxu0 %v7009_v7  ;;  %v2677_v27 = vrot.slane %v2405_v11, 4  ;;  %v2886_v63 = vld [vmem:[#allocation3] sm:$0xf]  ;;  %vm8620_vm11 = vmand %vm3080_vm6, %vm11348_vm3  ;;  %vm3385_vm14 = vcmask 585216  }
 0x217   : > { %v2719_v44 = vrot.slane %v2718_v16, 4  ;;  %3274 = vrot.lane.b32.xlu0 %v8191_v17, %s7230_s19  ;;  %6943 = vmatpush3.bf16.msra.mxu1 %v7009_v7  ;;  %v2676_v6 = vsel %vm8039_vm13, %v2674_v60, %v2675_v9  ;;  %vm8670_vm0 = vmand %vm3385_vm14, %vm11348_vm3  ;;  %vm3603_vm3 = vcmask 588800  }
 0x218   : > { %6821 = vmatprep.subr.bf16.mxu0 %v7010_v54  ;;  %6939 = vmatprep.subr.bf16.mxu1 %v7010_v54  ;;  %v2678_v14 = vor.u32 %v2677_v27, %v2675_v9 }
 0x219   : > { %v8498_v19 = vsel %vm8039_vm13, %v2719_v44, %v8456_v12 }
 0x21a   : > { %2965 = vrot.lane.b32.xlu1 %v8233_v5, %s7225_s15  ;;  %6822 = vmatpush3.bf16.msra.mxu0 %v7010_v54  ;;  %v2679_v3 = vrot.slane %v2678_v14, 4 }
 0x21b   : > { %2733 = vrot.lane.b32.xlu0 %v2676_v6, %s7223_s23  ;;  %6944 = vmatpush3.bf16.msra.mxu1 %v7010_v54 }
 0x21e   : > { %3272 = vrot.lane.b32.xlu1 %v8233_v5, %s7230_s19 }
 0x21f   : > { %3157 = vrot.lane.b32.xlu0 %v8200_v4, %s7226_s20 }
 0x222   : > { %2967 = vrot.lane.b32.xlu1 %v8191_v17, %s7225_s15 }
 0x223   : > { %2969 = vrot.lane.b32.xlu0 %v8252_v57, %s7225_s15 }
 0x226   : > { %2846 = vrot.lane.b32.xlu1 %v8200_v4, %s7232_s22 }
 0x227   : > { %2735 = vrot.lane.b32.xlu0 %v2679_v3, %s7223_s23 }
 0x22a   : > { %3040 = vrot.lane.b32.xlu1 %v2676_v6, %s7233_s24 }
 0x22b   : > { %v8518_v52 = vpop.permute.xlu1 %3258  ;;  %v2573_v11 = vpop.permute.xlu0 %2572  ;;  %3042 = vrot.lane.b32.xlu0 %v2679_v3, %s7233_s24 }
 0x22c   : > { %2621 = vst.msk [vmem:[#allocation3 + $0x8] sm:$0xf] %vm2620_vm15, %v2573_v11  ;;  %2623 = vst.msk [vmem:[#allocation3 + $0x10] sm:$0xf] %vm2620_vm15, %v2573_v11 }
 0x22e   : > { %3345 = vrot.lane.b32.xlu1 %v2676_v6, %s7224_s12 }
 0x22f   : > { %v8524_v17 = vpop.permute.xlu0 %2951  ;;  %v2575_v5 = vpop.permute.xlu1 %2574  ;;  %3347 = vrot.lane.b32.xlu0 %v2679_v3, %s7224_s12 }
 0x230   : > { %2622 = vst.msk [vmem:[#allocation3 + $0xc] sm:$0xf] %vm2620_vm15, %v2575_v5  ;;  %2624 = vst.msk [vmem:[#allocation3 + $0x14] sm:$0xf] %vm2620_vm15, %v2575_v5 }
 0x232   : > { %2590 = vrot.lane.b32.xlu1 %v8252_v57, %s7231_s21 }
 0x233   : > { %v8530_v4 = vpop.permute.xlu0 %2953  ;;  %2848 = vrot.lane.b32.xlu0 %v8267_v46, %s7232_s22 }
 0x236   : > { %3276 = vrot.lane.b32.xlu1 %v8252_v57, %s7230_s19 }
 0x237   : > { %v8536_v62 = vpop.permute.xlu0 %3260  ;;  %3159 = vrot.lane.b32.xlu0 %v8267_v46, %s7226_s20 }
 0x238   : > { %v8546_v7 = vpop.permute.xlu1 %3262 }
 0x23a   : > { %2971 = vrot.lane.b32.xlu1 %v8287_v35, %s7225_s15 }
 0x23b   : > { %v2577_v41 = vpop.permute.xlu0 %2576  ;;  %2592 = vrot.lane.b32.xlu0 %v8287_v35, %s7231_s21 }
 0x23c   : > { %2625 = vst.msk [vmem:[#allocation3 + $0x18] sm:$0xf] %vm2620_vm15, %v2577_v41  ;;  %2627 = vst.msk [vmem:[#allocation3 + $0x20] sm:$0xf] %vm2620_vm15, %v2577_v41  ;;  %v2777_v41 = vld [vmem:[#allocation3 + $0xc] sm:$0xf] }
 0x23e   : > { %2850 = vrot.lane.b32.xlu1 %v8295_v32, %s7232_s22 }
 0x23f   : > { %v8550_v61 = vpop.permute.xlu0 %2955  ;;  %3278 = vrot.lane.b32.xlu0 %v8287_v35, %s7230_s19 }
 0x240   : > { %v2579_v57 = vpop.permute.xlu1 %2578 }
 0x241   : > { %2626 = vst.msk [vmem:[#allocation3 + $0x1c] sm:$0xf] %vm2620_vm15, %v2579_v57  ;;  %2628 = vst.msk [vmem:[#allocation3 + $0x24] sm:$0xf] %vm2620_vm15, %v2579_v57  ;;  %v2781_v57 = vld [vmem:[#allocation3 + $0x14] sm:$0xf] }
 0x242   : > { %3161 = vrot.lane.b32.xlu1 %v8295_v32, %s7226_s20 }
 0x243   : > { %2737 = vrot.lane.b32.xlu0 %v8273_v2, %s7223_s23  ;;  %v3148_v45 = vpop.permute.xlu0 %3147 }
 0x244   : > { %v2837_v35 = vpop.permute.xlu1 %2836 }
 0x245   : > { %v2887_v33 = vsel %vm8562_vm2, %v2837_v35, %v2886_v63 }
 0x246   : > { %2888 = vst [vmem:[#allocation3] sm:$0xf] %v2887_v33  ;;  %3044 = vrot.lane.b32.xlu1 %v8273_v2, %s7233_s24 }
 0x247   : > { %2852 = vrot.lane.b32.xlu0 %v8327_v40, %s7232_s22  ;;  %3000 = vst.msk [vmem:[#allocation3] sm:$0xf] %vm2999_vm5, %v8524_v17 }
 0x248   : > { %v8576_v32 = vpop.permute.xlu1 %2957  ;;  %v2785_v29 = vld [vmem:[#allocation3 + $0x1c] sm:$0xf] }
 0x249   : > { %v2581_v10 = vpop.permute.xlu0 %2580 }
 0x24a   : > { %3349 = vrot.lane.b32.xlu1 %v8273_v2, %s7224_s12  ;;  %2629 = vst.msk [vmem:[#allocation3 + $0x28] sm:$0xf] %vm2620_vm15, %v2581_v10  ;;  %2631 = vst.msk [vmem:[#allocation3 + $0x30] sm:$0xf] %vm2620_vm15, %v2581_v10  ;;  %v2688_v2 = vrot.slane %v2687_v31, 4 }
 0x24b   : > { %2973 = vrot.lane.b32.xlu0 %v8297_v42, %s7225_s15 }
 0x24c   : > { %v8584_v16 = vpop.permute.xlu1 %3264 }
 0x24d   : > { %v8586_v56 = vpop.permute.xlu0 %2959 }
 0x24e   : > { %2594 = vrot.lane.b32.xlu1 %v8297_v42, %s7231_s21 }
 0x24f   : > { %3280 = vrot.lane.b32.xlu0 %v8297_v42, %s7230_s19 }
 0x250   : > { %v2839_v8 = vpop.permute.xlu1 %2838 }
 0x251   : > { %2890 = vst.msk [vmem:[#allocation3 + $0x4] sm:$0xf] %vm11349_vm1, %v2839_v8  ;;  %v8596_v28 = vpop.permute.xlu0 %3266 }
 0x252   : > { %3001 = vst.msk [vmem:[#allocation3 + $0x4] sm:$0xf] %vm2999_vm5, %v8530_v4  ;;  %2739 = vrot.lane.b32.xlu1 %v2688_v2, %s7223_s23 }
 0x253   : > { %3046 = vrot.lane.b32.xlu0 %v2688_v2, %s7233_s24 }
 0x254   : > { %v3033_v60 = vpop.permute.xlu1 %3032 }
 0x255   : > { %3081 = vst.msk [vmem:[#allocation3] sm:$0xf] %vm3080_vm6, %v3033_v60  ;;  %v2726_v42 = vpop.permute.xlu0 %2725 }
 0x256   : > { %3163 = vrot.lane.b32.xlu1 %v8327_v40, %s7226_s20  ;;  %2774 = vst.msk [vmem:[#allocation3 + $0x8] sm:$0xf] %vm2773_vm7, %v2726_v42  ;;  %2780 = vst.msk [vmem:[#allocation3 + $0x10] sm:$0xf] %vm2773_vm7, %v2726_v42 }
 0x257   : > { %3351 = vrot.lane.b32.xlu0 %v2688_v2, %s7224_s12 }
 0x258   : > { %v3338_v26 = vpop.permute.xlu1 %3337 }
 0x259   : > { %v3150_v55 = vpop.permute.xlu0 %3149  ;;  %v3084_v14 = vld [vmem:[#allocation3 + $0x4] sm:$0xf] }
 0x25a   : > { %2975 = vrot.lane.b32.xlu1 %v8340_v34, %s7225_s15 }
 0x25b   : > { %2596 = vrot.lane.b32.xlu0 %v8340_v34, %s7231_s21 }
 0x25c   : > { %v3197_v54 = vld [vmem:[#allocation3] sm:$0xf]  ;;  %v2583_v44 = vpop.permute.xlu1 %2582 }
 0x25d   : > { %v3198_v9 = vsel %vm8610_vm9, %v3148_v45, %v3197_v54  ;;  %v2891_v6 = vld [vmem:[#allocation3 + $0x8] sm:$0xf]  ;;  %2630 = vst.msk [vmem:[#allocation3 + $0x2c] sm:$0xf] %vm2620_vm15, %v2583_v44  ;;  %2632 = vst.msk [vmem:[#allocation3 + $0x34] sm:$0xf] %vm2620_vm15, %v2583_v44  ;;  %v3035_v27 = vpop.permute.xlu0 %3034 }
 0x25e   : > { %3199 = vst [vmem:[#allocation3] sm:$0xf] %v3198_v9  ;;  %v2892_v3 = vsel %vm8562_vm2, %v2837_v35, %v2891_v6  ;;  %3282 = vrot.lane.b32.xlu1 %v8340_v34, %s7230_s19  ;;  %v3085_v5 = vsel %vm8620_vm11, %v3035_v27, %v3084_v14 }
 0x25f   : > { %3307 = vst.msk [vmem:[#allocation3] sm:$0xf] %vm3306_vm12, %v8518_v52  ;;  %2893 = vst [vmem:[#allocation3 + $0x8] sm:$0xf] %v2892_v3  ;;  %2741 = vrot.lane.b32.xlu0 %v8358_v49, %s7223_s23 }
 0x260   : > { %3086 = vst [vmem:[#allocation3 + $0x4] sm:$0xf] %v3085_v5  ;;  %3386 = vst.msk [vmem:[#allocation3] sm:$0xf] %vm3385_vm14, %v3338_v26  ;;  %v2728_v34 = vpop.permute.xlu1 %2727 }
 0x261   : > { %3002 = vst.msk [vmem:[#allocation3 + $0x8] sm:$0xf] %vm2999_vm5, %v8524_v17  ;;  %v2778_v52 = vsel %vm8634_vm4, %v2728_v34, %v2777_v41  ;;  %v2782_v63 = vsel %vm8634_vm4, %v2728_v34, %v2781_v57  ;;  %v3340_v45 = vpop.permute.xlu0 %3339  ;;  %v2895_v17 = vld [vmem:[#allocation3 + $0x10] sm:$0xf] }
 0x262   : > { %3201 = vst.msk [vmem:[#allocation3 + $0x4] sm:$0xf] %vm3195_vm8, %v3150_v55  ;;  %2779 = vst [vmem:[#allocation3 + $0xc] sm:$0xf] %v2778_v52  ;;  %2854 = vrot.lane.b32.xlu1 %v8334_v47, %s7232_s22  ;;  %v2697_v55 = vrot.slane %v2696_v0, 4 }
 0x263   : > { %3087 = vst.msk [vmem:[#allocation3 + $0x8] sm:$0xf] %vm3080_vm6, %v3033_v60  ;;  %2783 = vst [vmem:[#allocation3 + $0x14] sm:$0xf] %v2782_v63  ;;  %3048 = vrot.lane.b32.xlu0 %v8358_v49, %s7233_s24  ;;  %v2789_v0 = vld [vmem:[#allocation3 + $0x24] sm:$0xf] }
 0x264   : > { %3308 = vst.msk [vmem:[#allocation3 + $0x4] sm:$0xf] %vm3306_vm12, %v8536_v62  ;;  %v2841_v35 = vpop.permute.xlu1 %2840 }
 0x265   : > { %2894 = vst.msk [vmem:[#allocation3 + $0xc] sm:$0xf] %vm11349_vm1, %v2839_v8  ;;  %v2896_v33 = vsel %vm8562_vm2, %v2841_v35, %v2895_v17  ;;  %v8664_v62 = vpop.permute.xlu0 %3268 }
 0x266   : > { %3003 = vst.msk [vmem:[#allocation3 + $0xc] sm:$0xf] %vm2999_vm5, %v8530_v4  ;;  %2897 = vst [vmem:[#allocation3 + $0x10] sm:$0xf] %v2896_v33  ;;  %3165 = vrot.lane.b32.xlu1 %v8334_v47, %s7226_s20 }
 0x267   : > { %3004 = vst.msk [vmem:[#allocation3 + $0x10] sm:$0xf] %vm2999_vm5, %v8550_v61  ;;  %3353 = vrot.lane.b32.xlu0 %v8358_v49, %s7224_s12 }
 0x268   : > { %v8678_v8 = vpop.permute.xlu1 %2961 }
 0x269   : > { %v2585_v60 = vpop.permute.xlu0 %2584 }
 0x26a   : > { %2598 = vrot.lane.b32.xlu1 %v8346_v23, %s7231_s21  ;;  %v3202_v47 = vld [vmem:[#allocation3 + $0x8] sm:$0xf]  ;;  %2633 = vst.msk [vmem:[#allocation3 + $0x38] sm:$0xf] %vm2620_vm15, %v2585_v60  ;;  %2635 = vst.msk [vmem:[#allocation3 + $0x40] sm:$0xf] %vm2620_vm15, %v2585_v60 }
 0x26b   : > { %v3389_v4 = vld [vmem:[#allocation3 + $0x4] sm:$0xf]  ;;  %2856 = vrot.lane.b32.xlu0 %v8360_v48, %s7232_s22 }
 0x26c   : > { %v3390_v2 = vsel %vm8670_vm0, %v3340_v45, %v3389_v4  ;;  %v8690_v26 = vpop.permute.xlu1 %3151 }
 0x26d   : > { %3391 = vst [vmem:[#allocation3 + $0x4] sm:$0xf] %v3390_v2  ;;  %v3088_v42 = vld [vmem:[#allocation3 + $0xc] sm:$0xf]  ;;  %v3203_v54 = vsel %vm8610_vm9, %v8690_v26, %v3202_v47  ;;  %v2730_v44 = vpop.permute.xlu0 %2729 }
 0x26e   : > { %v3089_v49 = vsel %vm8620_vm11, %v3035_v27, %v3088_v42  ;;  %3204 = vst [vmem:[#allocation3 + $0x8] sm:$0xf] %v3203_v54  ;;  %2743 = vrot.lane.b32.xlu1 %v2697_v55, %s7223_s23  ;;  %2784 = vst.msk [vmem:[#allocation3 + $0x18] sm:$0xf] %vm2773_vm7, %v2730_v44 }
 0x26f   : > { %3090 = vst [vmem:[#allocation3 + $0xc] sm:$0xf] %v3089_v49  ;;  %2788 = vst.msk [vmem:[#allocation3 + $0x20] sm:$0xf] %vm2773_vm7, %v2730_v44  ;;  %2977 = vrot.lane.b32.xlu0 %v8346_v23, %s7225_s15  ;;  %v2706_v44 = vrot.slane %v2705_v51, 4 }
 0x270   : > { %3309 = vst.msk [vmem:[#allocation3 + $0x8] sm:$0xf] %vm3306_vm12, %v8546_v7  ;;  %v8705_v21 = vpop.permute.xlu1 %2963 }
 0x271   : > { %v2732_v9 = vpop.permute.xlu0 %2731 }
 0x272   : > { %3050 = vrot.lane.b32.xlu1 %v2697_v55, %s7233_s24  ;;  %v2786_v27 = vsel %vm8634_vm4, %v2732_v9, %v2785_v29  ;;  %v2790_v14 = vsel %vm8634_vm4, %v2732_v9, %v2789_v0 }
 0x273   : > { %2787 = vst [vmem:[#allocation3 + $0x1c] sm:$0xf] %v2786_v27  ;;  %2791 = vst [vmem:[#allocation3 + $0x24] sm:$0xf] %v2790_v14  ;;  %3167 = vrot.lane.b32.xlu0 %v8360_v48, %s7226_s20 }
 0x274   : > { %v7005_v6 = vld [vmem:[#allocation3] sm:$0xff]   ;;  %v8715_v3 = vpop.permute.xlu1 %3270 }
 0x275   : > { %6823 = vmatprep.mubr.msk.bf16.mxu0 %vm3603_vm3, %v7005_v6  ;;  %v2899_v5 = vld [vmem:[#allocation3 + $0x18] sm:$0xf]  ;;  %v3039_v34 = vpop.permute.xlu0 %3038 }
 0x276   : > { %v2900_v41 = vsel %vm8562_vm2, %v2841_v35, %v2899_v5  ;;  %3355 = vrot.lane.b32.xlu1 %v2697_v55, %s7224_s12 }
 0x277   : > { %2901 = vst [vmem:[#allocation3 + $0x18] sm:$0xf] %v2900_v41  ;;  %2600 = vrot.lane.b32.xlu0 %v8369_v59, %s7231_s21  ;;  %v2797_v41 = vld [vmem:[#allocation3 + $0x34] sm:$0xf] }
 0x278   : > { %3006 = vst.msk [vmem:[#allocation3 + $0x18] sm:$0xf] %vm2999_vm5, %v8550_v61  ;;  %v2843_v57 = vpop.permute.xlu1 %2842  ;;  %v2903_v61 = vld [vmem:[#allocation3 + $0x20] sm:$0xf] }
 0x279   : > { %2898 = vst.msk [vmem:[#allocation3 + $0x14] sm:$0xf] %vm11349_vm1, %v2843_v57  ;;  %2902 = vst.msk [vmem:[#allocation3 + $0x1c] sm:$0xf] %vm11349_vm1, %v2843_v57  ;;  %v3344_v48 = vpop.permute.xlu0 %3343 }
 0x27a   : > { %3005 = vst.msk [vmem:[#allocation3 + $0x14] sm:$0xf] %vm2999_vm5, %v8576_v32  ;;  %3007 = vst.msk [vmem:[#allocation3 + $0x1c] sm:$0xf] %vm2999_vm5, %v8576_v32  ;;  %3284 = vrot.lane.b32.xlu1 %v8346_v23, %s7230_s19 }
 0x27b   : > { %2858 = vrot.lane.b32.xlu0 %v8396_v36, %s7232_s22 }
 0x27c   : > { %v3154_v52 = vpop.permute.xlu1 %3153 }
 0x27d   : > { %3205 = vst.msk [vmem:[#allocation3 + $0xc] sm:$0xf] %vm3195_vm8, %v3154_v52  ;;  %v8735_v63 = vpop.permute.xlu0 %2844 }
 0x27e   : > { %3310 = vst.msk [vmem:[#allocation3 + $0xc] sm:$0xf] %vm3306_vm12, %v8584_v16  ;;  %2979 = vrot.lane.b32.xlu1 %v8369_v59, %s7225_s15  ;;  %v2904_v32 = vsel %vm8562_vm2, %v8735_v63, %v2903_v61 }
 0x27f   : > { %2905 = vst [vmem:[#allocation3 + $0x20] sm:$0xf] %v2904_v32  ;;  %3169 = vrot.lane.b32.xlu0 %v8396_v36, %s7226_s20 }
 0x280   : > { %v3037_v23 = vpop.permute.xlu1 %3036  ;;  %3008 = vst.msk [vmem:[#allocation3 + $0x20] sm:$0xf] %vm2999_vm5, %v8586_v56 }
 0x281   : > { %v3092_v45 = vld [vmem:[#allocation3 + $0x14] sm:$0xf]  ;;  %v3096_v17 = vld [vmem:[#allocation3 + $0x1c] sm:$0xf]  ;;  %3091 = vst.msk [vmem:[#allocation3 + $0x10] sm:$0xf] %vm3080_vm6, %v3037_v23  ;;  %v8750_v35 = vpop.permute.xlu0 %3155 }
 0x282   : > { %3095 = vst.msk [vmem:[#allocation3 + $0x18] sm:$0xf] %vm3080_vm6, %v3037_v23  ;;  %v3093_v33 = vsel %vm8620_vm11, %v3039_v34, %v3092_v45  ;;  %v3097_v4 = vsel %vm8620_vm11, %v3039_v34, %v3096_v17  ;;  %3286 = vrot.lane.b32.xlu1 %v8369_v59, %s7230_s19  ;;  %v2793_v34 = vld [vmem:[#allocation3 + $0x2c] sm:$0xf] }
 0x283   : > { %3094 = vst [vmem:[#allocation3 + $0x14] sm:$0xf] %v3093_v33  ;;  %3098 = vst [vmem:[#allocation3 + $0x1c] sm:$0xf] %v3097_v4  ;;  %3052 = vrot.lane.b32.xlu0 %v8411_v22, %s7233_s24 }
 0x284   : > { %3209 = vst.msk [vmem:[#allocation3 + $0x14] sm:$0xf] %vm3195_vm8, %v3154_v52  ;;  %v3342_v36 = vpop.permute.xlu1 %3341 }
 0x285   : > { %3312 = vst.msk [vmem:[#allocation3 + $0x14] sm:$0xf] %vm3306_vm12, %v8584_v16  ;;  %v3393_v2 = vld [vmem:[#allocation3 + $0xc] sm:$0xf]  ;;  %v2589_v60 = vpop.permute.xlu0 %2588 }
 0x286   : > { %3392 = vst.msk [vmem:[#allocation3 + $0x8] sm:$0xf] %vm3385_vm14, %v3342_v36  ;;  %v3394_v47 = vsel %vm8670_vm0, %v3344_v48, %v3393_v2  ;;  %2745 = vrot.lane.b32.xlu1 %v8411_v22, %s7223_s23  ;;  %v2715_v2 = vrot.slane %v2714_v53, 4 }
 0x287   : > { %2637 = vst.msk [vmem:[#allocation3 + $0x48] sm:$0xf] %vm2620_vm15, %v2589_v60  ;;  %2639 = vst.msk [vmem:[#allocation3 + $0x50] sm:$0xf] %vm2620_vm15, %v2589_v60  ;;  %3357 = vrot.lane.b32.xlu0 %v8411_v22, %s7224_s12 }
 0x288   : > { %3395 = vst [vmem:[#allocation3 + $0xc] sm:$0xf] %v3394_v47  ;;  %v3206_v59 = vld [vmem:[#allocation3 + $0x10] sm:$0xf]  ;;  %v2587_v42 = vpop.permute.xlu1 %2586 }
 0x289   : > { %v3210_v16 = vld [vmem:[#allocation3 + $0x18] sm:$0xf]  ;;  %v3207_v49 = vsel %vm8610_vm9, %v8690_v26, %v3206_v59  ;;  %2634 = vst.msk [vmem:[#allocation3 + $0x3c] sm:$0xf] %vm2620_vm15, %v2587_v42  ;;  %2636 = vst.msk [vmem:[#allocation3 + $0x44] sm:$0xf] %vm2620_vm15, %v2587_v42  ;;  %v8780_v54 = vpop.permute.xlu0 %3274 }
 0x28a   : > { %v3211_v55 = vsel %vm8610_vm9, %v8750_v35, %v3210_v16  ;;  %3208 = vst [vmem:[#allocation3 + $0x10] sm:$0xf] %v3207_v49  ;;  %2602 = vrot.lane.b32.xlu1 %v8404_v1, %s7231_s21  ;;  %v2724_v42 = vrot.slane %v2723_v30, 4 }
 0x28b   : > { %3212 = vst [vmem:[#allocation3 + $0x18] sm:$0xf] %v3211_v55  ;;  %3311 = vst.msk [vmem:[#allocation3 + $0x10] sm:$0xf] %vm3306_vm12, %v8546_v7  ;;  %2981 = vrot.lane.b32.xlu0 %v8404_v1, %s7225_s15  ;;  %v8919_v55 = vld [vmem:[%s11340_s7 + $0x20] ss:$0 sps:$4 sm:$0xff]  }
 0x28c   : > { %3313 = vst.msk [vmem:[#allocation3 + $0x18] sm:$0xf] %vm3306_vm12, %v8596_v28  ;;  %v3397_v22 = vld [vmem:[#allocation3 + $0x14] sm:$0xf]  ;;  %v8791_v26 = vpop.permute.xlu1 %2965 }
 0x28d   : > { %3396 = vst.msk [vmem:[#allocation3 + $0x10] sm:$0xf] %vm3385_vm14, %v3342_v36  ;;  %v3398_v29 = vsel %vm8670_vm0, %v3344_v48, %v3397_v22  ;;  %v2734_v0 = vpop.permute.xlu0 %2733 }
 0x28e   : > { %3399 = vst [vmem:[#allocation3 + $0x14] sm:$0xf] %v3398_v29  ;;  %2747 = vrot.lane.b32.xlu1 %v2706_v44, %s7223_s23  ;;  %2792 = vst.msk [vmem:[#allocation3 + $0x28] sm:$0xf] %vm2773_vm7, %v2734_v0 }
 0x28f   : > { %v8799_v7 = vld [vmem:[#allocation3 + $0x8] sm:$0xff]   ;;  %2796 = vst.msk [vmem:[#allocation3 + $0x30] sm:$0xf] %vm2773_vm7, %v2734_v0  ;;  %3288 = vrot.lane.b32.xlu0 %v8404_v1, %s7230_s19  ;;  %s7235_s19 = smov 28  }
 0x290   : > { %v8805_v9 = vpop.permute.xlu1 %3272  ;;  %6824 = vmatmul.mubr.msk.bf16.vlgmr.msra.gmra.mxu0 %vm3603_vm3, %v8799_v7 }
 0x291   : > { %v3158_v20 = vpop.permute.xlu0 %3157 }
 0x292   : > { %3054 = vrot.lane.b32.xlu1 %v2706_v44, %s7233_s24  ;;  %3213 = vst.msk [vmem:[#allocation3 + $0x1c] sm:$0xf] %vm3195_vm8, %v3158_v20 }
 0x293   : > { %3314 = vst.msk [vmem:[#allocation3 + $0x1c] sm:$0xf] %vm3306_vm12, %v8664_v62  ;;  %2862 = vrot.lane.b32.xlu0 %v8435_v39, %s7232_s22 }
 0x294   : > { %v8815_v15 = vpop.permute.xlu1 %2967 }
 0x295   : > { %v2907_v51 = vld [vmem:[#allocation3 + $0x28] sm:$0xf]  ;;  %v8817_v1 = vld [vmem:[#allocation3 + $0x10] sm:$0xff]   ;;  %v8819_v6 = vpop.permute.xlu0 %2969 }
 0x296   : > { %v2908_v27 = vsel %vm8562_vm2, %v8735_v63, %v2907_v51  ;;  %3359 = vrot.lane.b32.xlu1 %v2706_v44, %s7224_s12  ;;  %6827 = vmatprep.mubr.msk.bf16.mxu0 %vm3603_vm3, %v8817_v1 }
 0x297   : > { %2909 = vst [vmem:[#allocation3 + $0x28] sm:$0xf] %v2908_v27  ;;  %3056 = vrot.lane.b32.xlu0 %v8463_v13, %s7233_s24 }
 0x298   : > { %3010 = vst.msk [vmem:[#allocation3 + $0x28] sm:$0xf] %vm2999_vm5, %v8586_v56  ;;  %v2847_v14 = vpop.permute.xlu1 %2846 }
 0x299   : > { %2906 = vst.msk [vmem:[#allocation3 + $0x24] sm:$0xf] %vm11349_vm1, %v2847_v14  ;;  %v2736_v5 = vpop.permute.xlu0 %2735 }
 0x29a   : > { %3009 = vst.msk [vmem:[#allocation3 + $0x24] sm:$0xf] %vm2999_vm5, %v8678_v8  ;;  %2860 = vrot.lane.b32.xlu1 %v8425_v37, %s7232_s22  ;;  %v2794_v57 = vsel %vm8634_vm4, %v2736_v5, %v2793_v34  ;;  %v2798_v48 = vsel %vm8634_vm4, %v2736_v5, %v2797_v41  ;;  %v3401_v23 = vld [vmem:[#allocation3 + $0x1c] sm:$0xf]  ;;  %v2805_v41 = vld [vmem:[#allocation3 + $0x44] sm:$0xf] }
 0x29b   : > { %2795 = vst [vmem:[#allocation3 + $0x2c] sm:$0xf] %v2794_v57  ;;  %2799 = vst [vmem:[#allocation3 + $0x34] sm:$0xf] %v2798_v48  ;;  %3361 = vrot.lane.b32.xlu0 %v8463_v13, %s7224_s12 }
 0x29c   : > { %v3041_v56 = vpop.permute.xlu1 %3040  ;;  %2910 = vst.msk [vmem:[#allocation3 + $0x2c] sm:$0xf] %vm11349_vm1, %v2847_v14 }
 0x29d   : > { %3099 = vst.msk [vmem:[#allocation3 + $0x20] sm:$0xf] %vm3080_vm6, %v3041_v56  ;;  %3103 = vst.msk [vmem:[#allocation3 + $0x28] sm:$0xf] %vm3080_vm6, %v3041_v56  ;;  %v3043_v52 = vpop.permute.xlu0 %3042 }
 0x29e   : > { %3011 = vst.msk [vmem:[#allocation3 + $0x2c] sm:$0xf] %vm2999_vm5, %v8678_v8  ;;  %3171 = vrot.lane.b32.xlu1 %v8425_v37, %s7226_s20 }
 0x29f   : > { %2864 = vrot.lane.b32.xlu0 %v8465_v58, %s7232_s22 }
 0x2a0   : > { %v3346_v61 = vpop.permute.xlu1 %3345 }
 0x2a1   : > { %3400 = vst.msk [vmem:[#allocation3 + $0x18] sm:$0xf] %vm3385_vm14, %v3346_v61  ;;  %v3100_v63 = vld [vmem:[#allocation3 + $0x24] sm:$0xf]  ;;  %v3348_v32 = vpop.permute.xlu0 %3347 }
 0x2a2   : > { %2749 = vrot.lane.b32.xlu1 %v8463_v13, %s7223_s23  ;;  %v3101_v45 = vsel %vm8620_vm11, %v3043_v52, %v3100_v63  ;;  %v3402_v8 = vsel %vm8670_vm0, %v3348_v32, %v3401_v23 }
 0x2a3   : > { %3102 = vst [vmem:[#allocation3 + $0x24] sm:$0xf] %v3101_v45  ;;  %3403 = vst [vmem:[#allocation3 + $0x1c] sm:$0xf] %v3402_v8  ;;  %3175 = vrot.lane.b32.xlu0 %v8465_v58, %s7226_s20  ;;  %v2911_v58 = vld [vmem:[#allocation3 + $0x30] sm:$0xf] }
 0x2a4   : > { %v3214_v37 = vld [vmem:[#allocation3 + $0x20] sm:$0xf]  ;;  %3217 = vst.msk [vmem:[#allocation3 + $0x24] sm:$0xf] %vm3195_vm8, %v3158_v20  ;;  %v2591_v33 = vpop.permute.xlu1 %2590  ;;  %v3218_v60 = vld [vmem:[#allocation3 + $0x28] sm:$0xf] }
 0x2a5   : > { %v3104_v17 = vld [vmem:[#allocation3 + $0x2c] sm:$0xf]  ;;  %v3215_v13 = vsel %vm8610_vm9, %v8750_v35, %v3214_v37  ;;  %3316 = vst.msk [vmem:[#allocation3 + $0x24] sm:$0xf] %vm3306_vm12, %v8664_v62  ;;  %v2849_v36 = vpop.permute.xlu0 %2848 }
 0x2a6   : > { %v3105_v4 = vsel %vm8620_vm11, %v3043_v52, %v3104_v17  ;;  %2638 = vst.msk [vmem:[#allocation3 + $0x4c] sm:$0xf] %vm2620_vm15, %v2591_v33  ;;  %2640 = vst.msk [vmem:[#allocation3 + $0x54] sm:$0xf] %vm2620_vm15, %v2591_v33  ;;  %3173 = vrot.lane.b32.xlu1 %v8435_v39, %s7226_s20  ;;  %v2912_v35 = vsel %vm8562_vm2, %v2849_v36, %v2911_v58 }
 0x2a7   : > { %3216 = vst [vmem:[#allocation3 + $0x20] sm:$0xf] %v3215_v13  ;;  %3106 = vst [vmem:[#allocation3 + $0x2c] sm:$0xf] %v3105_v4  ;;  %2866 = vrot.lane.b32.xlu0 %v8485_v25, %s7232_s22 }
 0x2a8   : > { %3315 = vst.msk [vmem:[#allocation3 + $0x20] sm:$0xf] %vm3306_vm12, %v8596_v28  ;;  %2913 = vst [vmem:[#allocation3 + $0x30] sm:$0xf] %v2912_v35  ;;  %v8879_v62 = vpop.permute.xlu1 %3276 }
 0x2a9   : > { %3404 = vst.msk [vmem:[#allocation3 + $0x20] sm:$0xf] %vm3385_vm14, %v3346_v61  ;;  %v3160_v39 = vpop.permute.xlu0 %3159 }
 0x2aa   : > { %3012 = vst.msk [vmem:[#allocation3 + $0x30] sm:$0xf] %vm2999_vm5, %v8705_v21  ;;  %2751 = vrot.lane.b32.xlu1 %v2715_v2, %s7223_s23  ;;  %v3219_v28 = vsel %vm8610_vm9, %v3160_v39, %v3218_v60  ;;  %v8889_v47 = vld [vmem:[#allocation3 + $0x18] sm:$0xff]  }
 0x2ab   : > { %3220 = vst [vmem:[#allocation3 + $0x28] sm:$0xf] %v3219_v28  ;;  %3177 = vrot.lane.b32.xlu0 %v8485_v25, %s7226_s20  ;;  %6828 = vmatmul.mubr.msk.bf16.gmra.mxu0 %vm3603_vm3, %v8889_v47  ;;  %s7234_s20 = smov 4  }
 0x2ac   : > { %v3405_v59 = vld [vmem:[#allocation3 + $0x24] sm:$0xf]  ;;  %v8893_v16 = vpop.permute.xlu1 %2971  ;;  %3317 = vst.msk [vmem:[#allocation3 + $0x28] sm:$0xf] %vm3306_vm12, %v8715_v3 }
 0x2ad   : > { %v3406_v24 = vsel %vm8670_vm0, %v3348_v32, %v3405_v59  ;;  %v2593_v18 = vpop.permute.xlu0 %2592 }
 0x2ae   : > { %3407 = vst [vmem:[#allocation3 + $0x24] sm:$0xf] %v3406_v24  ;;  %3058 = vrot.lane.b32.xlu1 %v2715_v2, %s7233_s24  ;;  %2641 = vst.msk [vmem:[#allocation3 + $0x58] sm:$0xf] %vm2620_vm15, %v2593_v18 }
 0x2af   : > { %2643 = vst.msk [vmem:[#allocation3 + $0x60] sm:$0xf] %vm2620_vm15, %v2593_v18  ;;  %3060 = vrot.lane.b32.xlu0 %v8498_v19, %s7233_s24 }
 0x2b0   : > { %v2851_v53 = vpop.permute.xlu1 %2850 }
 0x2b1   : > { %2914 = vst.msk [vmem:[#allocation3 + $0x34] sm:$0xf] %vm11349_vm1, %v2851_v53  ;;  %v8907_v25 = vpop.permute.xlu0 %3278  ;;  %vm11446_vm1 = vcmask 1043456  }
 0x2b2   : > { %3013 = vst.msk [vmem:[#allocation3 + $0x34] sm:$0xf] %vm2999_vm5, %v8791_v26  ;;  %3363 = vrot.lane.b32.xlu1 %v2715_v2, %s7224_s12  ;;  %6947 = vmatprep.subr.msk.bf16.mxu1 %vm11446_vm1, %v8919_v55  ;;  %vm11447_vm1 = vcmask 257216  }
 0x2b3   : > { %3062 = vrot.lane.b32.xlu0 %v2724_v42, %s7233_s24  ;;  %s7237_s24 = smov 20  }
 0x2b4   : > { %v3162_v49 = vpop.permute.xlu1 %3161 }
 0x2b5   : > { %3221 = vst.msk [vmem:[#allocation3 + $0x2c] sm:$0xf] %vm3195_vm8, %v3162_v49  ;;  %v8922_v22 = vld [vmem:[#allocation3 + $0x20] sm:$0xff]   ;;  %v2738_v44 = vpop.permute.xlu0 %2737 }
 0x2b6   : > { %3318 = vst.msk [vmem:[#allocation3 + $0x2c] sm:$0xf] %vm3306_vm12, %v8805_v9  ;;  %2753 = vrot.lane.b32.xlu1 %v8498_v19, %s7223_s23  ;;  %6831 = vmatprep.mubr.msk.bf16.mxu0 %vm3603_vm3, %v8922_v22 }
 0x2b7   : > { %2800 = vst.msk [vmem:[#allocation3 + $0x38] sm:$0xf] %vm2773_vm7, %v2738_v44  ;;  %2804 = vst.msk [vmem:[#allocation3 + $0x40] sm:$0xf] %vm2773_vm7, %v2738_v44  ;;  %3367 = vrot.lane.b32.xlu0 %v2724_v42, %s7224_s12 }
 0x2b8   : > { %v3045_v12 = vpop.permute.xlu1 %3044 }
 0x2b9   : > { %3107 = vst.msk [vmem:[#allocation3 + $0x30] sm:$0xf] %vm3080_vm6, %v3045_v12  ;;  %v8936_v50 = vpop.permute.xlu0 %2852  ;;  %v3108_v61 = vld [vmem:[#allocation3 + $0x34] sm:$0xf] }
 0x2ba   : > { %3365 = vrot.lane.b32.xlu1 %v8498_v19, %s7224_s12  ;;  %s7236_s12 = smov 12  }
 0x2bc   : > { %v3350_v30 = vpop.permute.xlu1 %3349 }
 0x2bd   : > { %3408 = vst.msk [vmem:[#allocation3 + $0x28] sm:$0xf] %vm3385_vm14, %v3350_v30  ;;  %v8941_v20 = vpop.permute.xlu0 %2973  ;;  %v3409_v8 = vld [vmem:[#allocation3 + $0x2c] sm:$0xf] }
 0x2be   : > { %v2915_v29 = vld [vmem:[#allocation3 + $0x38] sm:$0xf]  ;;  %v2919_v0 = vld [vmem:[#allocation3 + $0x40] sm:$0xf]  ;;  %2755 = vrot.lane.b32.xlu1 %v2724_v42, %s7223_s23 }
 0x2bf   : > { %v2916_v51 = vsel %vm8562_vm2, %v2849_v36, %v2915_v29  ;;  %v2920_v27 = vsel %vm8562_vm2, %v8936_v50, %v2919_v0 }
 0x2c0   : > { %2917 = vst [vmem:[#allocation3 + $0x38] sm:$0xf] %v2916_v51  ;;  %2921 = vst [vmem:[#allocation3 + $0x40] sm:$0xf] %v2920_v27  ;;  %v3222_v14 = vld [vmem:[#allocation3 + $0x30] sm:$0xf]  ;;  %v2595_v19 = vpop.permute.xlu1 %2594 }
 0x2c1   : > { %3014 = vst.msk [vmem:[#allocation3 + $0x38] sm:$0xf] %vm2999_vm5, %v8705_v21  ;;  %3016 = vst.msk [vmem:[#allocation3 + $0x40] sm:$0xf] %vm2999_vm5, %v8815_v15  ;;  %v3223_v5 = vsel %vm8610_vm9, %v3160_v39, %v3222_v14  ;;  %v8958_v34 = vpop.permute.xlu0 %3280  ;;  %v2801_v21 = vld [vmem:[#allocation3 + $0x3c] sm:$0xf] }
 0x2c2   : > { %3111 = vst.msk [vmem:[#allocation3 + $0x38] sm:$0xf] %vm3080_vm6, %v3045_v12  ;;  %3224 = vst [vmem:[#allocation3 + $0x30] sm:$0xf] %v3223_v5 }
 0x2c3   : > { %2642 = vst.msk [vmem:[#allocation3 + $0x5c] sm:$0xf] %vm2620_vm15, %v2595_v19  ;;  %2644 = vst.msk [vmem:[#allocation3 + $0x64] sm:$0xf] %vm2620_vm15, %v2595_v19 }
 0x2c4   : > { %3319 = vst.msk [vmem:[#allocation3 + $0x30] sm:$0xf] %vm3306_vm12, %v8715_v3  ;;  %v2740_v57 = vpop.permute.xlu1 %2739 }
 0x2c5   : > { %3412 = vst.msk [vmem:[#allocation3 + $0x30] sm:$0xf] %vm3385_vm14, %v3350_v30  ;;  %v2802_v48 = vsel %vm8634_vm4, %v2740_v57, %v2801_v21  ;;  %v2806_v56 = vsel %vm8634_vm4, %v2740_v57, %v2805_v41  ;;  %v3047_v52 = vpop.permute.xlu0 %3046  ;;  %v2813_v30 = vld [vmem:[#allocation3 + $0x54] sm:$0xf] }
 0x2c6   : > { %2803 = vst [vmem:[#allocation3 + $0x3c] sm:$0xf] %v2802_v48  ;;  %2807 = vst [vmem:[#allocation3 + $0x44] sm:$0xf] %v2806_v56  ;;  %v3109_v63 = vsel %vm8620_vm11, %v3047_v52, %v3108_v61 }
 0x2c7   : > { %2918 = vst.msk [vmem:[#allocation3 + $0x3c] sm:$0xf] %vm11447_vm1, %v2851_v53  ;;  %3110 = vst [vmem:[#allocation3 + $0x34] sm:$0xf] %v3109_v63 }
 0x2c8   : > { %3015 = vst.msk [vmem:[#allocation3 + $0x3c] sm:$0xf] %vm2999_vm5, %v8791_v26  ;;  %v3164_v32 = vpop.permute.xlu1 %3163 }
 0x2c9   : > { %v3226_v3 = vld [vmem:[#allocation3 + $0x38] sm:$0xf]  ;;  %3225 = vst.msk [vmem:[#allocation3 + $0x34] sm:$0xf] %vm3195_vm8, %v3162_v49  ;;  %v3352_v45 = vpop.permute.xlu0 %3351 }
 0x2ca   : > { %v3227_v23 = vsel %vm8610_vm9, %v3164_v32, %v3226_v3  ;;  %3320 = vst.msk [vmem:[#allocation3 + $0x34] sm:$0xf] %vm3306_vm12, %v8805_v9  ;;  %v3410_v37 = vsel %vm8670_vm0, %v3352_v45, %v3409_v8 }
 0x2cb   : > { %3228 = vst [vmem:[#allocation3 + $0x38] sm:$0xf] %v3227_v23  ;;  %3411 = vst [vmem:[#allocation3 + $0x2c] sm:$0xf] %v3410_v37 }
 0x2cc   : > { %3321 = vst.msk [vmem:[#allocation3 + $0x38] sm:$0xf] %vm3306_vm12, %v8780_v54  ;;  %v8981_v26 = vpop.permute.xlu1 %2975 }
 0x2cd   : > { %v2597_v17 = vpop.permute.xlu0 %2596 }
 0x2ce   : > { %2645 = vst.msk [vmem:[#allocation3 + $0x68] sm:$0xf] %vm2620_vm15, %v2597_v17  ;;  %2647 = vst.msk [vmem:[#allocation3 + $0x70] sm:$0xf] %vm2620_vm15, %v2597_v17 }
 0x2cf   : > { %v3112_v33 = vld [vmem:[#allocation3 + $0x3c] sm:$0xf] }
 0x2d0   : > { %v3113_v9 = vsel %vm8620_vm11, %v3047_v52, %v3112_v33  ;;  %v8987_v4 = vpop.permute.xlu1 %3282 }
 0x2d1   : > { %v3413_v13 = vld [vmem:[#allocation3 + $0x34] sm:$0xf]  ;;  %3114 = vst [vmem:[#allocation3 + $0x3c] sm:$0xf] %v3113_v9  ;;  %v2742_v36 = vpop.permute.xlu0 %2741 }
 0x2d2   : > { %v3414_v58 = vsel %vm8670_vm0, %v3352_v45, %v3413_v13  ;;  %2808 = vst.msk [vmem:[#allocation3 + $0x48] sm:$0xf] %vm2773_vm7, %v2742_v36  ;;  %2812 = vst.msk [vmem:[#allocation3 + $0x50] sm:$0xf] %vm2773_vm7, %v2742_v36  ;;  %v8993_v35 = vld [vmem:[#allocation3 + $0x28] sm:$0xff]  }
 0x2d3   : > { %3415 = vst [vmem:[#allocation3 + $0x34] sm:$0xf] %v3414_v58  ;;  %6832 = vmatmul.mubr.msk.bf16.gmra.mxu0 %vm3603_vm3, %v8993_v35 }
 0x2d4   : > { %v2855_v2 = vpop.permute.xlu1 %2854 }
 0x2d5   : > { %2922 = vst.msk [vmem:[#allocation3 + $0x44] sm:$0xf] %vm11447_vm1, %v2855_v2  ;;  %v3049_v39 = vpop.permute.xlu0 %3048 }
 0x2d6   : > { %3017 = vst.msk [vmem:[#allocation3 + $0x44] sm:$0xf] %vm2999_vm5, %v8819_v6 }
 0x2d7   : > { %3115 = vst.msk [vmem:[#allocation3 + $0x40] sm:$0xf] %vm3080_vm6, %v3049_v39 }
 0x2d8   : > { %v3166_v60 = vpop.permute.xlu1 %3165 }
 0x2d9   : > { %v2923_v28 = vld [vmem:[#allocation3 + $0x48] sm:$0xf]  ;;  %3229 = vst.msk [vmem:[#allocation3 + $0x3c] sm:$0xf] %vm3195_vm8, %v3166_v60  ;;  %v3354_v59 = vpop.permute.xlu0 %3353  ;;  %v2927_v49 = vld [vmem:[#allocation3 + $0x50] sm:$0xf] }
 0x2da   : > { %v9002_v24 = vld [vmem:[#allocation3 + $0x30] sm:$0xff]   ;;  %v2924_v18 = vsel %vm8562_vm2, %v8936_v50, %v2923_v28  ;;  %3322 = vst.msk [vmem:[#allocation3 + $0x3c] sm:$0xf] %vm3306_vm12, %v8879_v62  ;;  %v2817_v28 = vld [vmem:[#allocation3 + $0x5c] sm:$0xf] }
 0x2db   : > { %3416 = vst.msk [vmem:[#allocation3 + $0x38] sm:$0xf] %vm3385_vm14, %v3354_v59  ;;  %2925 = vst [vmem:[#allocation3 + $0x48] sm:$0xf] %v2924_v18  ;;  %6835 = vmatprep.mubr.msk.bf16.mxu0 %vm3603_vm3, %v9002_v24 }
 0x2dc   : > { %3018 = vst.msk [vmem:[#allocation3 + $0x48] sm:$0xf] %vm2999_vm5, %v8815_v15  ;;  %v2599_v53 = vpop.permute.xlu1 %2598  ;;  %v2809_v15 = vld [vmem:[#allocation3 + $0x4c] sm:$0xf] }
 0x2dd   : > { %3119 = vst.msk [vmem:[#allocation3 + $0x48] sm:$0xf] %vm3080_vm6, %v3049_v39  ;;  %v9017_v44 = vpop.permute.xlu0 %2856 }
 0x2de   : > { %v3230_v42 = vld [vmem:[#allocation3 + $0x40] sm:$0xf]  ;;  %2646 = vst.msk [vmem:[#allocation3 + $0x6c] sm:$0xf] %vm2620_vm15, %v2599_v53  ;;  %2648 = vst.msk [vmem:[#allocation3 + $0x74] sm:$0xf] %vm2620_vm15, %v2599_v53  ;;  %v2928_v50 = vsel %vm8562_vm2, %v9017_v44, %v2927_v49 }
 0x2df   : > { %v3231_v12 = vsel %vm8610_vm9, %v3164_v32, %v3230_v42  ;;  %2929 = vst [vmem:[#allocation3 + $0x50] sm:$0xf] %v2928_v50 }
 0x2e0   : > { %3232 = vst [vmem:[#allocation3 + $0x40] sm:$0xf] %v3231_v12  ;;  %v2744_v29 = vpop.permute.xlu1 %2743  ;;  %3020 = vst.msk [vmem:[#allocation3 + $0x50] sm:$0xf] %vm2999_vm5, %v8893_v16 }
 0x2e1   : > { %3323 = vst.msk [vmem:[#allocation3 + $0x40] sm:$0xf] %vm3306_vm12, %v8780_v54  ;;  %v2810_v0 = vsel %vm8634_vm4, %v2744_v29, %v2809_v15  ;;  %v2814_v51 = vsel %vm8634_vm4, %v2744_v29, %v2813_v30  ;;  %v9033_v27 = vpop.permute.xlu0 %2977  ;;  %v3116_v54 = vld [vmem:[#allocation3 + $0x44] sm:$0xf]  ;;  %v3417_v57 = vld [vmem:[#allocation3 + $0x3c] sm:$0xf] }
 0x2e2   : > { %3420 = vst.msk [vmem:[#allocation3 + $0x40] sm:$0xf] %vm3385_vm14, %v3354_v59  ;;  %2811 = vst [vmem:[#allocation3 + $0x4c] sm:$0xf] %v2810_v0  ;;  %v2821_v59 = vld [vmem:[#allocation3 + $0x64] sm:$0xf] }
 0x2e3   : > { %2815 = vst [vmem:[#allocation3 + $0x54] sm:$0xf] %v2814_v51  ;;  %2926 = vst.msk [vmem:[#allocation3 + $0x4c] sm:$0xf] %vm11447_vm1, %v2855_v2 }
 0x2e4   : > { %3019 = vst.msk [vmem:[#allocation3 + $0x4c] sm:$0xf] %vm2999_vm5, %v8819_v6  ;;  %v3051_v14 = vpop.permute.xlu1 %3050  ;;  %v3234_v19 = vld [vmem:[#allocation3 + $0x48] sm:$0xf] }
 0x2e5   : > { %v3117_v5 = vsel %vm8620_vm11, %v3051_v14, %v3116_v54  ;;  %v3168_v21 = vpop.permute.xlu0 %3167 }
 0x2e6   : > { %3118 = vst [vmem:[#allocation3 + $0x44] sm:$0xf] %v3117_v5  ;;  %v3235_v41 = vsel %vm8610_vm9, %v3168_v21, %v3234_v19 }
 0x2e7   : > { %3233 = vst.msk [vmem:[#allocation3 + $0x44] sm:$0xf] %vm3195_vm8, %v3166_v60  ;;  %3236 = vst [vmem:[#allocation3 + $0x48] sm:$0xf] %v3235_v41 }
 0x2e8   : > { %3324 = vst.msk [vmem:[#allocation3 + $0x44] sm:$0xf] %vm3306_vm12, %v8879_v62  ;;  %v3356_v48 = vpop.permute.xlu1 %3355  ;;  %3325 = vst.msk [vmem:[#allocation3 + $0x48] sm:$0xf] %vm3306_vm12, %v8907_v25 }
 0x2e9   : > { %v3418_v6 = vsel %vm8670_vm0, %v3356_v48, %v3417_v57  ;;  %v2601_v56 = vpop.permute.xlu0 %2600 }
 0x2ea   : > { %3419 = vst [vmem:[#allocation3 + $0x3c] sm:$0xf] %v3418_v6  ;;  %2649 = vst.msk [vmem:[#allocation3 + $0x78] sm:$0xf] %vm2620_vm15, %v2601_v56 }
 0x2eb   : > { %v3120_v52 = vld [vmem:[#allocation3 + $0x4c] sm:$0xf] }
 0x2ec   : > { %v3121_v61 = vsel %vm8620_vm11, %v3051_v14, %v3120_v52  ;;  %v9052_v63 = vpop.permute.xlu1 %3284 }
 0x2ed   : > { %3122 = vst [vmem:[#allocation3 + $0x4c] sm:$0xf] %v3121_v61  ;;  %v2859_v62 = vpop.permute.xlu0 %2858  ;;  %v7023_v61 = vld [vmem:[%s11340_s7 + $0x18] sm:$0xff]  }
 0x2ee   : > { %2930 = vst.msk [vmem:[#allocation3 + $0x54] sm:$0xf] %vm11447_vm1, %v2859_v62 }
 0x2ef   : > { %v3421_v3 = vld [vmem:[#allocation3 + $0x44] sm:$0xf]  ;;  %3021 = vst.msk [vmem:[#allocation3 + $0x54] sm:$0xf] %vm2999_vm5, %v8941_v20 }
 0x2f0   : > { %v3422_v32 = vsel %vm8670_vm0, %v3356_v48, %v3421_v3  ;;  %v9059_v23 = vpop.permute.xlu1 %2979  ;;  %v7025_v3 = vld [vmem:[%s11340_s7 + $0x10] sm:$0xff]  }
 0x2f1   : > { %3423 = vst [vmem:[#allocation3 + $0x44] sm:$0xf] %v3422_v32  ;;  %v9061_v45 = vld [vmem:[#allocation3 + $0x38] sm:$0xff]   ;;  %v3170_v8 = vpop.permute.xlu0 %3169 }
 0x2f2   : > { %3237 = vst.msk [vmem:[#allocation3 + $0x4c] sm:$0xf] %vm3195_vm8, %v3170_v8  ;;  %6836 = vmatmul.mubr.msk.bf16.gmra.mxu0 %vm3603_vm3, %v9061_v45 }
 0x2f3   : > { %3326 = vst.msk [vmem:[#allocation3 + $0x4c] sm:$0xf] %vm3306_vm12, %v8958_v34 }
 0x2f4   : > { %v9068_v37 = vpop.permute.xlu1 %3286 }
 0x2f5   : > { %v3053_v17 = vpop.permute.xlu0 %3052 }
 0x2f6   : > { %3123 = vst.msk [vmem:[#allocation3 + $0x50] sm:$0xf] %vm3080_vm6, %v3053_v17 }
 0x2f8   : > { %v2746_v33 = vpop.permute.xlu1 %2745  ;;  %v9071_v9 = vld [vmem:[#allocation3 + $0x40] sm:$0xff]  }
 0x2f9   : > { %2816 = vst.msk [vmem:[#allocation3 + $0x58] sm:$0xf] %vm2773_vm7, %v2746_v33  ;;  %2820 = vst.msk [vmem:[#allocation3 + $0x60] sm:$0xf] %vm2773_vm7, %v2746_v33  ;;  %v3358_v13 = vpop.permute.xlu0 %3357  ;;  %6839 = vmatprep.mubr.msk.bf16.mxu1 %vm3603_vm3, %v9071_v9 }
 0x2fa   : > { %3424 = vst.msk [vmem:[#allocation3 + $0x48] sm:$0xf] %vm3385_vm14, %v3358_v13 }
 0x2fc   : > { %v2603_v58 = vpop.permute.xlu1 %2602 }
 0x2fd   : > { %v3238_v36 = vld [vmem:[#allocation3 + $0x50] sm:$0xf]  ;;  %2650 = vst.msk [vmem:[#allocation3 + $0x7c] sm:$0xf] %vm2620_vm15, %v2603_v58  ;;  %v9079_v2 = vpop.permute.xlu0 %2981  ;;  %vm11448_vm15 = vmmov %vm11447_vm1  ;;  %v7027_v58 = vld [vmem:[%s11340_s7 + $0x8] sm:$0xff]  }
 0x2fe   : > { %v3239_v39 = vsel %vm8610_vm9, %v3168_v21, %v3238_v36  ;;  %v2825_v36 = vld [vmem:[#allocation3 + $0x6c] sm:$0xf] }
 0x2ff   : > { %3240 = vst [vmem:[#allocation3 + $0x50] sm:$0xf] %v3239_v39 }
 0x300   : > { %v2931_v60 = vld [vmem:[#allocation3 + $0x58] sm:$0xf]  ;;  %3327 = vst.msk [vmem:[#allocation3 + $0x50] sm:$0xf] %vm3306_vm12, %v8907_v25  ;;  %v2748_v18 = vpop.permute.xlu1 %2747  ;;  %v3124_v25 = vld [vmem:[#allocation3 + $0x54] sm:$0xf] }
 0x301   : > { %v2932_v53 = vsel %vm8562_vm2, %v9017_v44, %v2931_v60  ;;  %3428 = vst.msk [vmem:[#allocation3 + $0x50] sm:$0xf] %vm3385_vm14, %v3358_v13  ;;  %v2818_v42 = vsel %vm8634_vm4, %v2748_v18, %v2817_v28  ;;  %v2822_v49 = vsel %vm8634_vm4, %v2748_v18, %v2821_v59  ;;  %v9093_v12 = vpop.permute.xlu0 %3288  ;;  %v2935_v54 = vld [vmem:[#allocation3 + $0x60] sm:$0xf]  ;;  %v2829_v28 = vld [vmem:[#allocation3 + $0x74] sm:$0xf] }
 0x302   : > { %2933 = vst [vmem:[#allocation3 + $0x58] sm:$0xf] %v2932_v53  ;;  %2819 = vst [vmem:[#allocation3 + $0x5c] sm:$0xf] %v2818_v42 }
 0x303   : > { %2823 = vst [vmem:[#allocation3 + $0x64] sm:$0xf] %v2822_v49  ;;  %3022 = vst.msk [vmem:[#allocation3 + $0x58] sm:$0xf] %vm2999_vm5, %v8893_v16  ;;  %v3425_v16 = vld [vmem:[#allocation3 + $0x4c] sm:$0xf] }
 0x304   : > { %2934 = vst.msk [vmem:[#allocation3 + $0x5c] sm:$0xf] %vm11448_vm15, %v2859_v62  ;;  %v3055_v44 = vpop.permute.xlu1 %3054  ;;  %vm11449_vm15 = vcmask 1043456  }
 0x305   : > { %3127 = vst.msk [vmem:[#allocation3 + $0x58] sm:$0xf] %vm3080_vm6, %v3053_v17  ;;  %v3125_v50 = vsel %vm8620_vm11, %v3055_v44, %v3124_v25  ;;  %v9103_v15 = vpop.permute.xlu0 %2862  ;;  %v3860_v52 = vsel %vm11449_vm15, %v8919_v55, 0  ;;  %v7030_v25 = vld [vmem:[%s11340_s7] sm:$0xff]   ;;  %vm11450_vm15 = vmmov %vm11447_vm1 }
 0x306   : > { %3023 = vst.msk [vmem:[#allocation3 + $0x5c] sm:$0xf] %vm2999_vm5, %v8941_v20  ;;  %3126 = vst [vmem:[#allocation3 + $0x54] sm:$0xf] %v3125_v50 }
 0x307   : > { %2938 = vst.msk [vmem:[#allocation3 + $0x64] sm:$0xf] %vm11447_vm1, %v9103_v15 }
 0x308   : > { %3241 = vst.msk [vmem:[#allocation3 + $0x54] sm:$0xf] %vm3195_vm8, %v3170_v8  ;;  %v3360_v20 = vpop.permute.xlu1 %3359 }
 0x309   : > { %3025 = vst.msk [vmem:[#allocation3 + $0x64] sm:$0xf] %vm2999_vm5, %v9033_v27  ;;  %v3426_v30 = vsel %vm8670_vm0, %v3360_v20, %v3425_v16  ;;  %v9114_v29 = vpop.permute.xlu0 %3056 }
 0x30a   : > { %3328 = vst.msk [vmem:[#allocation3 + $0x54] sm:$0xf] %vm3306_vm12, %v8958_v34  ;;  %3427 = vst [vmem:[#allocation3 + $0x4c] sm:$0xf] %v3426_v30 }
 0x30c   : > { %v2861_v14 = vpop.permute.xlu1 %2860  ;;  %v3242_v41 = vld [vmem:[#allocation3 + $0x58] sm:$0xf] }
 0x30d   : > { %v3128_v0 = vld [vmem:[#allocation3 + $0x5c] sm:$0xf]  ;;  %v2936_v19 = vsel %vm8562_vm2, %v2861_v14, %v2935_v54  ;;  %v3362_v5 = vpop.permute.xlu0 %3361 }
 0x30e   : > { %v3129_v51 = vsel %vm8620_vm11, %v3055_v44, %v3128_v0  ;;  %2937 = vst [vmem:[#allocation3 + $0x60] sm:$0xf] %v2936_v19 }
 0x30f   : > { %3130 = vst [vmem:[#allocation3 + $0x5c] sm:$0xf] %v3129_v51  ;;  %3024 = vst.msk [vmem:[#allocation3 + $0x60] sm:$0xf] %vm2999_vm5, %v8981_v26 }
 0x310   : > { %3131 = vst.msk [vmem:[#allocation3 + $0x60] sm:$0xf] %vm3080_vm6, %v9114_v29  ;;  %v3172_v57 = vpop.permute.xlu1 %3171  ;;  %v3132_v44 = vld [vmem:[#allocation3 + $0x64] sm:$0xf] }
 0x311   : > { %v3429_v34 = vld [vmem:[#allocation3 + $0x54] sm:$0xf]  ;;  %v3243_v48 = vsel %vm8610_vm9, %v3172_v57, %v3242_v41  ;;  %v9128_v6 = vld [vmem:[#allocation3 + $0x48] sm:$0xff]   ;;  %v9130_v56 = vpop.permute.xlu0 %2864 }
 0x312   : > { %v3430_v21 = vsel %vm8670_vm0, %v3360_v20, %v3429_v34  ;;  %3244 = vst [vmem:[#allocation3 + $0x58] sm:$0xf] %v3243_v48  ;;  %6840 = vmatmul.mubr.msk.bf16.vlgmr.msra.gmra.mxu1 %vm3603_vm3, %v9128_v6 }
 0x313   : > { %3431 = vst [vmem:[#allocation3 + $0x54] sm:$0xf] %v3430_v21  ;;  %3329 = vst.msk [vmem:[#allocation3 + $0x58] sm:$0xf] %vm3306_vm12, %v8987_v4  ;;  %6856 = vmatpush3.bf16.msra.mxu1 %v3860_v52  ;;  %v2833_v52 = vld [vmem:[#allocation3 + $0x7c] sm:$0xf] }
 0x314   : > { %3432 = vst.msk [vmem:[#allocation3 + $0x58] sm:$0xf] %vm3385_vm14, %v3362_v5  ;;  %v2750_v62 = vpop.permute.xlu1 %2749  ;;  %6857 = vmatprep.subr.bf16.mxu1 %v7023_v61 }
 0x315   : > { %2824 = vst.msk [vmem:[#allocation3 + $0x68] sm:$0xf] %vm2773_vm7, %v2750_v62  ;;  %2828 = vst.msk [vmem:[#allocation3 + $0x70] sm:$0xf] %vm2773_vm7, %v2750_v62  ;;  %v9144_v55 = vpop.permute.xlu0 %3175 }
 0x317   : > { %v3246_v32 = vld [vmem:[#allocation3 + $0x60] sm:$0xf]  ;;  %6858 = vmatpush3.bf16.msra.mxu1 %v7023_v61 }
 0x318   : > { %v3247_v8 = vsel %vm8610_vm9, %v3172_v57, %v3246_v32  ;;  %v3174_v17 = vpop.permute.xlu1 %3173  ;;  %6859 = vmatprep.subr.bf16.mxu1 %v7025_v3 }
 0x319   : > { %3248 = vst [vmem:[#allocation3 + $0x60] sm:$0xf] %v3247_v8  ;;  %3245 = vst.msk [vmem:[#allocation3 + $0x5c] sm:$0xf] %vm3195_vm8, %v3174_v17  ;;  %v9154_v13 = vpop.permute.xlu0 %2866 }
 0x31a   : > { %v9151_v33 = vld [vmem:[#allocation3 + $0x50] sm:$0xff]   ;;  %3331 = vst.msk [vmem:[#allocation3 + $0x60] sm:$0xf] %vm3306_vm12, %v8987_v4  ;;  %3330 = vst.msk [vmem:[#allocation3 + $0x5c] sm:$0xf] %vm3306_vm12, %v9052_v63 }
 0x31b   : > { %6843 = vmatprep.mubr.msk.bf16.mxu1 %vm3603_vm3, %v9151_v33  ;;  %3436 = vst.msk [vmem:[#allocation3 + $0x60] sm:$0xf] %vm3385_vm14, %v3362_v5  ;;  %6860 = vmatpush3.bf16.msra.mxu1 %v7025_v3 }
 0x31c   : > { %v2939_v39 = vld [vmem:[#allocation3 + $0x68] sm:$0xf]  ;;  %v2943_v60 = vld [vmem:[#allocation3 + $0x70] sm:$0xf]  ;;  %v2752_v59 = vpop.permute.xlu1 %2751  ;;  %6861 = vmatprep.subr.bf16.mxu1 %v7027_v58 }
 0x31d   : > { %v2940_v18 = vsel %vm8562_vm2, %v2861_v14, %v2939_v39  ;;  %v2944_v4 = vsel %vm8562_vm2, %v9130_v56, %v2943_v60  ;;  %v2826_v53 = vsel %vm8634_vm4, %v2752_v59, %v2825_v36  ;;  %v2830_v42 = vsel %vm8634_vm4, %v2752_v59, %v2829_v28  ;;  %v3178_v49 = vpop.permute.xlu0 %3177 }
 0x31e   : > { %2941 = vst [vmem:[#allocation3 + $0x68] sm:$0xf] %v2940_v18  ;;  %2945 = vst [vmem:[#allocation3 + $0x70] sm:$0xf] %v2944_v4 }
 0x31f   : > { %2827 = vst [vmem:[#allocation3 + $0x6c] sm:$0xf] %v2826_v53  ;;  %2831 = vst [vmem:[#allocation3 + $0x74] sm:$0xf] %v2830_v42  ;;  %6862 = vmatpush3.bf16.msra.mxu1 %v7027_v58 }
 0x320   : > { %3026 = vst.msk [vmem:[#allocation3 + $0x68] sm:$0xf] %vm2999_vm5, %v8981_v26  ;;  %3028 = vst.msk [vmem:[#allocation3 + $0x70] sm:$0xf] %vm2999_vm5, %v9059_v23  ;;  %v3059_v26 = vpop.permute.xlu1 %3058  ;;  %6863 = vmatprep.subr.bf16.mxu1 %v7030_v25 }
 0x321   : > { %2942 = vst.msk [vmem:[#allocation3 + $0x6c] sm:$0xf] %vm11447_vm1, %v9103_v15  ;;  %v3133_v50 = vsel %vm8620_vm11, %v3059_v26, %v3132_v44  ;;  %v3061_v16 = vpop.permute.xlu0 %3060 }
 0x322   : > { %2946 = vst.msk [vmem:[#allocation3 + $0x74] sm:$0xf] %vm11450_vm15, %v9154_v13  ;;  %3134 = vst [vmem:[#allocation3 + $0x64] sm:$0xf] %v3133_v50 }
 0x323   : > { %3135 = vst.msk [vmem:[#allocation3 + $0x68] sm:$0xf] %vm3080_vm6, %v9114_v29  ;;  %3139 = vst.msk [vmem:[#allocation3 + $0x70] sm:$0xf] %vm3080_vm6, %v3061_v16  ;;  %6864 = vmatpush3.bf16.msra.mxu1 %v7030_v25 }
 0x324   : > { %3027 = vst.msk [vmem:[#allocation3 + $0x6c] sm:$0xf] %vm2999_vm5, %v9033_v27  ;;  %3029 = vst.msk [vmem:[#allocation3 + $0x74] sm:$0xf] %vm2999_vm5, %v9079_v2  ;;  %v3433_v27 = vld [vmem:[#allocation3 + $0x5c] sm:$0xf]  ;;  %v3364_v15 = vpop.permute.xlu1 %3363 }
 0x325   : > { %3249 = vst.msk [vmem:[#allocation3 + $0x64] sm:$0xf] %vm3195_vm8, %v3174_v17  ;;  %v3434_v20 = vsel %vm8670_vm0, %v3364_v15, %v3433_v27  ;;  %v3063_v30 = vpop.permute.xlu0 %3062 }
 0x326   : > { %3332 = vst.msk [vmem:[#allocation3 + $0x64] sm:$0xf] %vm3306_vm12, %v9052_v63  ;;  %3435 = vst [vmem:[#allocation3 + $0x5c] sm:$0xf] %v3434_v20 }
 0x328   : > { %v2754_v19 = vpop.permute.xlu1 %2753 }
 0x329   : > { %2832 = vst.msk [vmem:[#allocation3 + $0x78] sm:$0xf] %vm2773_vm7, %v2754_v19  ;;  %vm11451_vm7 = vmmov %vm11447_vm1 }
 0x32a   : > { %v3250_v29 = vld [vmem:[#allocation3 + $0x68] sm:$0xf]  ;;  %v3254_v5 = vld [vmem:[#allocation3 + $0x70] sm:$0xf] }
 0x32b   : > { %v3136_v0 = vld [vmem:[#allocation3 + $0x6c] sm:$0xf]  ;;  %v3140_v51 = vld [vmem:[#allocation3 + $0x74] sm:$0xf]  ;;  %v3251_v54 = vsel %vm8610_vm9, %v9144_v55, %v3250_v29  ;;  %v3255_v34 = vsel %vm8610_vm9, %v9144_v55, %v3254_v5  ;;  %vm5394_vm9 = vcmask 158848  }
 0x32c   : > { %v3137_v14 = vsel %vm8620_vm11, %v3059_v26, %v3136_v0  ;;  %v3141_v63 = vsel %vm8620_vm11, %v3063_v30, %v3140_v51  ;;  %3252 = vst [vmem:[#allocation3 + $0x68] sm:$0xf] %v3251_v54  ;;  %3256 = vst [vmem:[#allocation3 + $0x70] sm:$0xf] %v3255_v34  ;;  %v3366_v57 = vpop.permute.xlu1 %3365 }
 0x32d   : > { %3138 = vst [vmem:[#allocation3 + $0x6c] sm:$0xf] %v3137_v14  ;;  %3142 = vst [vmem:[#allocation3 + $0x74] sm:$0xf] %v3141_v63  ;;  %v3437_v21 = vld [vmem:[#allocation3 + $0x64] sm:$0xf] }
 0x32e   : > { %3333 = vst.msk [vmem:[#allocation3 + $0x68] sm:$0xf] %vm3306_vm12, %v9068_v37  ;;  %v3438_v41 = vsel %vm8670_vm0, %v3364_v15, %v3437_v21  ;;  %3335 = vst.msk [vmem:[#allocation3 + $0x70] sm:$0xf] %vm3306_vm12, %v9068_v37  ;;  %v7022_v31 = vld [vmem:[#allocation3 + $0x58] sm:$0xff]   ;;  %v3368_v37 = vpop.permute.xlu0 %3367 }
 0x32f   : > { %3253 = vst.msk [vmem:[#allocation3 + $0x6c] sm:$0xf] %vm3195_vm8, %v3178_v49  ;;  %3257 = vst.msk [vmem:[#allocation3 + $0x74] sm:$0xf] %vm3195_vm8, %v3178_v49  ;;  %6844 = vmatmul.mubr.msk.bf16.gmra.mxu1 %vm3603_vm3, %v7022_v31  ;;  %v9383_v49 = vld [vmem:[%s11341_s8] ss:$0 sm:$0xff] }
 0x330   : > { %3334 = vst.msk [vmem:[#allocation3 + $0x6c] sm:$0xf] %vm3306_vm12, %v9093_v12  ;;  %3336 = vst.msk [vmem:[#allocation3 + $0x74] sm:$0xf] %vm3306_vm12, %v9093_v12  ;;  %v2947_v48 = vld [vmem:[#allocation3 + $0x78] sm:$0xf]  ;;  %v2756_v61 = vpop.permute.xlu1 %2755 }
 0x331   : > { %3439 = vst [vmem:[#allocation3 + $0x64] sm:$0xf] %v3438_v41  ;;  %3440 = vst.msk [vmem:[#allocation3 + $0x68] sm:$0xf] %vm3385_vm14, %v3366_v57  ;;  %v2948_v12 = vsel %vm8562_vm2, %v9130_v56, %v2947_v48  ;;  %v2834_v62 = vsel %vm8634_vm4, %v2756_v61, %v2833_v52  ;;  %vm11460_vm4 = vsmask.f32 7938 }
 0x332   : > { %3444 = vst.msk [vmem:[#allocation3 + $0x70] sm:$0xf] %vm3385_vm14, %v3366_v57  ;;  %2949 = vst [vmem:[#allocation3 + $0x78] sm:$0xf] %v2948_v12  ;;  %vm5051_vm12 = vcmask 93248   ;;  %vm5689_vm14 = vcmask 224448  }
 0x333   : > { %2835 = vst [vmem:[#allocation3 + $0x7c] sm:$0xf] %v2834_v62  ;;  %3030 = vst.msk [vmem:[#allocation3 + $0x78] sm:$0xf] %vm2999_vm5, %v9059_v23 }
 0x334   : > { %2950 = vst.msk [vmem:[#allocation3 + $0x7c] sm:$0xf] %vm11451_vm7, %v9154_v13  ;;  %v7210_v13 = vld [vmem:[#allocation3] sm:$0xff]   ;;  %vm11530_vm1 = vmmov %vm11460_vm4  ;;  %vm11533_vm7 = vsmask.f32 3328 }
 0x335   : > { %3143 = vst.msk [vmem:[#allocation3 + $0x78] sm:$0xf] %vm3080_vm6, %v3061_v16  ;;  %vm11526_vm6 = vmmov %vm11460_vm4 }
 0x336   : > { %3031 = vst.msk [vmem:[#allocation3 + $0x7c] sm:$0xf] %vm2999_vm5, %v9079_v2  ;;  %vm4795_vm5 = vcmask 60448   ;;  %vm10380_vm15 = vmand %vm5689_vm14, %vm11530_vm1 }
 0x337   : > { %v3441_v55 = vld [vmem:[#allocation3 + $0x6c] sm:$0xf]  ;;  %v3445_v3 = vld [vmem:[#allocation3 + $0x74] sm:$0xf] }
 0x338   : > { %v3442_v32 = vsel %vm8670_vm0, %v3368_v37, %v3441_v55  ;;  %v3446_v8 = vsel %vm8670_vm0, %v3368_v37, %v3445_v3  ;;  %v7024_v46 = vld [vmem:[#allocation3 + $0x60] sm:$0xff]   ;;  %vm4263_vm0 = vcmask 289792  }
 0x339   : > { %3443 = vst [vmem:[#allocation3 + $0x6c] sm:$0xf] %v3442_v32  ;;  %3447 = vst [vmem:[#allocation3 + $0x74] sm:$0xf] %v3446_v8  ;;  %6847 = vmatprep.mubr.msk.bf16.mxu1 %vm3603_vm3, %v7024_v46 }
 0x33d   : > { %v3144_v11 = vld [vmem:[#allocation3 + $0x7c] sm:$0xf] }
 0x33e   : > { %v3145_v56 = vsel %vm8620_vm11, %v3063_v30, %v3144_v11  ;;  %vm5532_vm11 = vcmask 191648  }
 0x33f   : > { %3146 = vst [vmem:[#allocation3 + $0x7c] sm:$0xf] %v3145_v56 }
 0x340   : > { %v7026_v23 = vld [vmem:[#allocation3 + $0x68] sm:$0xff]   ;;  %v7028_v10 = vld [vmem:[#allocation3 + $0x70] sm:$0xff]  }
 0x341   : > { %6848 = vmatmul.mubr.msk.bf16.gmra.mxu1 %vm3603_vm3, %v7026_v23 }
 0x342   : > { %6851 = vmatprep.mubr.msk.bf16.mxu1 %vm3603_vm3, %v7028_v10 }
 0x346   : > { %v7029_v17 = vld [vmem:[#allocation3 + $0x78] sm:$0xff]  }
 0x349   : > { %6852 = vmatmul.mubr.msk.bf16.gmra.mxu1 %vm3603_vm3, %v7029_v17 }
 0x34a   : > { %6865 = vmatprep.mubr.msk.bf16.mxu1 %vm3603_vm3, %v7210_v13 }
 0x350   : > { %v9354_v2 = vpop.f32.mrf.mxu0 }
 0x351   : > { %6866 = vmatmul.mubr.msk.bf16.vlgmr.msra.gmra.mxu1 %vm3603_vm3, %v8799_v7 }
 0x352   : > { %6869 = vmatprep.mubr.msk.bf16.mxu1 %vm3603_vm3, %v8817_v1  ;;  %v11452_v1 = vmov 0   ;;  %v9360_v58 = vpop.f32.mrf.mxu0 }
 0x353   : > { %4268 = vst.msk [vmem:[#allocation4 + $0x10] sm:$0xf] %vm4263_vm0, %v11452_v1  ;;  %4264 = vst.msk [vmem:[#allocation4] sm:$0xf] %vm4263_vm0, %v11452_v1 }
 0x354   : > { %4265 = vst.msk [vmem:[#allocation4 + $0x4] sm:$0xf] %vm4263_vm0, %v11452_v1  ;;  %4266 = vst.msk [vmem:[#allocation4 + $0x8] sm:$0xf] %vm4263_vm0, %v11452_v1  ;;  %v9366_v60 = vpop.f32.mrf.mxu0 }
 0x355   : > { %4267 = vst.msk [vmem:[#allocation4 + $0xc] sm:$0xf] %vm4263_vm0, %v11452_v1  ;;  %4269 = vst.msk [vmem:[#allocation4 + $0x14] sm:$0xf] %vm4263_vm0, %v11452_v1 }
 0x356   : > { %4270 = vst.msk [vmem:[#allocation4 + $0x18] sm:$0xf] %vm4263_vm0, %v11452_v1  ;;  %4271 = vst.msk [vmem:[#allocation4 + $0x1c] sm:$0xf] %vm4263_vm0, %v11452_v1  ;;  %v9372_v18 = vpop.f32.mrf.mxu0 }
 0x357   : > { %4272 = vst.msk [vmem:[#allocation4 + $0x20] sm:$0xf] %vm4263_vm0, %v11452_v1  ;;  %4273 = vst.msk [vmem:[#allocation4 + $0x24] sm:$0xf] %vm4263_vm0, %v11452_v1 }
 0x358   : > { %4274 = vst.msk [vmem:[#allocation4 + $0x28] sm:$0xf] %vm4263_vm0, %v11452_v1  ;;  %4275 = vst.msk [vmem:[#allocation4 + $0x2c] sm:$0xf] %vm4263_vm0, %v11452_v1 }
 0x359   : > { %6870 = vmatmul.mubr.msk.bf16.gmra.mxu1 %vm3603_vm3, %v8889_v47  ;;  %4276 = vst.msk [vmem:[#allocation4 + $0x30] sm:$0xf] %vm4263_vm0, %v11452_v1  ;;  %4277 = vst.msk [vmem:[#allocation4 + $0x34] sm:$0xf] %vm4263_vm0, %v11452_v1 }
 0x35a   : > { %6873 = vmatprep.mubr.msk.bf16.mxu1 %vm3603_vm3, %v8922_v22  ;;  %4278 = vst.msk [vmem:[#allocation4 + $0x38] sm:$0xf] %vm4263_vm0, %v11452_v1  ;;  %4279 = vst.msk [vmem:[#allocation4 + $0x3c] sm:$0xf] %vm4263_vm0, %v11452_v1 }
 0x35b   : > { %4280 = vst.msk [vmem:[#allocation4 + $0x40] sm:$0xf] %vm4263_vm0, %v11452_v1  ;;  %4281 = vst.msk [vmem:[#allocation4 + $0x44] sm:$0xf] %vm4263_vm0, %v11452_v1 }
 0x35c   : > { %4282 = vst.msk [vmem:[#allocation4 + $0x48] sm:$0xf] %vm4263_vm0, %v11452_v1  ;;  %4283 = vst.msk [vmem:[#allocation4 + $0x4c] sm:$0xf] %vm4263_vm0, %v11452_v1 }
 0x35d   : > { %4284 = vst.msk [vmem:[#allocation4 + $0x50] sm:$0xf] %vm4263_vm0, %v11452_v1  ;;  %4285 = vst.msk [vmem:[#allocation4 + $0x54] sm:$0xf] %vm4263_vm0, %v11452_v1 }
 0x35e   : > { %4286 = vst.msk [vmem:[#allocation4 + $0x58] sm:$0xf] %vm4263_vm0, %v11452_v1  ;;  %4287 = vst.msk [vmem:[#allocation4 + $0x5c] sm:$0xf] %vm4263_vm0, %v11452_v1 }
 0x35f   : > { %4288 = vst.msk [vmem:[#allocation4 + $0x60] sm:$0xf] %vm4263_vm0, %v11452_v1  ;;  %4289 = vst.msk [vmem:[#allocation4 + $0x64] sm:$0xf] %vm4263_vm0, %v11452_v1 }
 0x360   : > { %4290 = vst.msk [vmem:[#allocation4 + $0x68] sm:$0xf] %vm4263_vm0, %v11452_v1  ;;  %4291 = vst.msk [vmem:[#allocation4 + $0x6c] sm:$0xf] %vm4263_vm0, %v11452_v1 }
 0x361   : > { %6874 = vmatmul.mubr.msk.bf16.gmra.mxu1 %vm3603_vm3, %v8993_v35  ;;  %4292 = vst.msk [vmem:[#allocation4 + $0x70] sm:$0xf] %vm4263_vm0, %v11452_v1  ;;  %4293 = vst.msk [vmem:[#allocation4 + $0x74] sm:$0xf] %vm4263_vm0, %v11452_v1 }
 0x362   : > { %6877 = vmatprep.mubr.msk.bf16.mxu1 %vm3603_vm3, %v9002_v24  ;;  %4294 = vst.msk [vmem:[#allocation4 + $0x78] sm:$0xf] %vm4263_vm0, %v11452_v1  ;;  %4295 = vst.msk [vmem:[#allocation4 + $0x7c] sm:$0xf] %vm4263_vm0, %v11452_v1 }
 0x363   : > { %vm10392_vm0 = vmand %vm5051_vm12, %vm11533_vm7 }
 0x369   : > { %6878 = vmatmul.mubr.msk.bf16.gmra.mxu1 %vm3603_vm3, %v9061_v45 }
 0x36a   : > { %6881 = vmatprep.mubr.msk.bf16.mxu1 %vm3603_vm3, %v9071_v9 }
 0x36b   : > { %v9376_v53 = vpop.f32.mrf.mxu0 }
 0x36d   : > { %v9385_v44 = vpop.f32.mrf.mxu0 }
 0x36f   : > { %v9389_v20 = vpop.f32.mrf.mxu0 }
 0x371   : > { %6882 = vmatmul.mubr.msk.bf16.gmra.mxu1 %vm3603_vm3, %v9128_v6  ;;  %v9393_v19 = vpop.f32.mrf.mxu0 }
 0x372   : > { %6885 = vmatprep.mubr.msk.bf16.mxu1 %vm3603_vm3, %v9151_v33 }
 0x379   : > { %6886 = vmatmul.mubr.msk.bf16.gmra.mxu1 %vm3603_vm3, %v7022_v31 }
 0x37a   : > { %6889 = vmatprep.mubr.msk.bf16.mxu1 %vm3603_vm3, %v7024_v46 }
 0x381   : > { %6890 = vmatmul.mubr.msk.bf16.gmra.mxu1 %vm3603_vm3, %v7026_v23 }
 0x382   : > { %6893 = vmatprep.mubr.msk.bf16.mxu1 %vm3603_vm3, %v7028_v10 }
 0x389   : > { %6894 = vmatmul.mubr.msk.bf16.gmra.mxu1 %vm3603_vm3, %v7029_v17  ;;  %vm4642_vm3 = vcmask 27648  }
 0x38a   : > { %vm9708_vm2 = vmand %vm4642_vm3, %vm11460_vm4  ;;  %vm5963_vm4 = vcmask 290048  }
 0x393   : > { %v9396_v21 = vpop.f32.mrf.mxu0 }
 0x395   : > { %v9400_v12 = vpop.f32.mrf.mxu0 }
 0x397   : > { %v9404_v11 = vpop.f32.mrf.mxu0 }
 0x3d2   : > { %v9274_v40 = vpop.f32.mrf.mxu1 }
 0x3d4   : > { %v9276_v7 = vpop.f32.mrf.mxu1 }
 0x3d6   : > { %v9342_v47 = vpop.f32.mrf.mxu1 }
 0x3d8   : > { %v9344_v22 = vpop.f32.mrf.mxu1 }
 0x3ef   : > { %v9346_v35 = vpop.f32.mrf.mxu1 }
 0x3f1   : > { %v9348_v24 = vpop.f32.mrf.mxu1 }
 0x3f3   : > { %v9350_v45 = vpop.f32.mrf.mxu1 }
 0x3f5   : > { %v9352_v9 = vpop.f32.mrf.mxu1 }
 0x401   : > { %v9356_v6 = vpop.f32.mrf.mxu1 }
 0x403   : > { %v9358_v33 = vpop.f32.mrf.mxu1 }
 0x405   : > { %v9362_v36 = vpop.f32.mrf.mxu1 }
 0x407   : > { %v9364_v39 = vpop.f32.mrf.mxu1 }
 0x409   : > { %v9368_v28 = vpop.f32.mrf.mxu1 }
 0x40b   : > { %v9370_v59 = vpop.f32.mrf.mxu1 }
 0x40d   : > { %v9374_v4 = vpop.f32.mrf.mxu1 }
 0x40f   : > { %v9378_v42 = vpop.f32.mrf.mxu1 }
 0x410   : > { %11453 = vst [vmem:[#allocation5_spill] sm:$0xff] %v9378_v42 }
 0x411   : > { %v6867_v25 = vpop.f32.mrf.mxu1 }
 0x412   : > { %v3905_v26 = vadd.f32 %v6867_v25, %v9383_v49 }
 0x413   : > { %v3896_v50 = vpop.f32.mrf.mxu1 }
 0x414   : > { %v6599_v16 = vmul.f32 -1.442695, %v3905_v26  ;;  %v3897_v27 = vadd.f32 %v9383_v49, %v3896_v50 }
 0x415   : > { %v6868_v15 = vpop.f32.mrf.mxu1 }
 0x416   : > { %7082 = vpow2.f32 %v6599_v16  ;;  %v6597_v30 = vmul.f32 -1.442695, %v3897_v27  ;;  %v3908_v29 = vadd.f32 %v6868_v15, %v9383_v49  ;;  %v3724_v27 = vpop.f32.mrf.mxu0 }
 0x417   : > { %v3899_v0 = vpop.f32.mrf.mxu1 }
 0x418   : > { %7084 = vpow2.f32 %v6597_v30  ;;  %v6600_v51 = vmul.f32 -1.442695, %v3908_v29  ;;  %v3900_v54 = vadd.f32 %v9383_v49, %v3899_v0 }
 0x419   : > { %v6871_v14 = vpop.f32.mrf.mxu1 }
 0x41a   : > { %7086 = vpow2.f32 %v6600_v51  ;;  %v6598_v63 = vmul.f32 -1.442695, %v3900_v54  ;;  %v3921_v5 = vadd.f32 %v6871_v14, %v9383_v49  ;;  %v9409_v54 = vpop.f32.mrf.mxu0 }
 0x41b   : > { %v3912_v34 = vpop.f32.mrf.mxu1 }
 0x41c   : > { %7088 = vpow2.f32 %v6598_v63  ;;  %v6603_v41 = vmul.f32 -1.442695, %v3921_v5  ;;  %v3913_v57 = vadd.f32 %v9383_v49, %v3912_v34 }
 0x41d   : > { %v6872_v31 = vpop.f32.mrf.mxu1 }
 0x41e   : > { %7090 = vpow2.f32 %v6603_v41  ;;  %v6601_v48 = vmul.f32 -1.442695, %v3913_v57  ;;  %v3924_v52 = vadd.f32 %v6872_v31, %v9383_v49  ;;  %v9415_v41 = vld [vmem:[%s11339_s6] ss:$0 sm:$0xff] }
 0x41f   : > { %v3915_v61 = vpop.f32.mrf.mxu1 }
 0x420   : > { %7092 = vpow2.f32 %v6601_v48  ;;  %v6604_v62 = vmul.f32 -1.442695, %v3924_v52  ;;  %v3916_v37 = vadd.f32 %v9383_v49, %v3915_v61 }
 0x421   : > { %v6875_v55 = vpop.f32.mrf.mxu1 }
 0x422   : > { %7094 = vpow2.f32 %v6604_v62  ;;  %v6602_v3 = vmul.f32 -1.442695, %v3916_v37  ;;  %v3937_v32 = vadd.f32 %v6875_v55, %v9383_v49  ;;  %v3698_v37 = vadd.f32 %v9354_v2, %v9415_v41  ;;  %v3737_v55 = vpop.f32.mrf.mxu0 }
 0x423   : > { %v7083_v8 = vpop.eup %7082  ;;  %v3928_v46 = vpop.f32.mrf.mxu1  ;;  %v9431_v2 = vadd.f32 %v9376_v53, %v9415_v41 }
 0x424   : > { %v4121_v23 = vadd.f32 1.0, %v7083_v8  ;;  %7096 = vpow2.f32 %v6602_v3  ;;  %v6607_v56 = vmul.f32 -1.442695, %v3937_v32  ;;  %v3929_v10 = vadd.f32 %v9383_v49, %v3928_v46 }
 0x425   : > { %v7085_v17 = vpop.eup %7084  ;;  %v6876_v13 = vpop.f32.mrf.mxu1  ;;  %v3690_v46 = vadd.f32 %v9415_v41, %v9360_v58  ;;  %v9436_v58 = vadd.f32 %v9415_v41, %v9385_v44  ;;  %v9449_v44 = vadd.f32 %v9396_v21, %v9415_v41  ;;  %v9461_v21 = vadd.f32 %v9415_v41, %v3724_v27 }
 0x426   : > { %7098 = vrcp.f32 %v4121_v23  ;;  %v4119_v1 = vadd.f32 1.0, %v7085_v17  ;;  %v6605_v25 = vmul.f32 -1.442695, %v3929_v10  ;;  %v3940_v26 = vadd.f32 %v6876_v13, %v9383_v49 }
 0x427   : > { %v7087_v50 = vpop.eup %7086  ;;  %7100 = vpow2.f32 %v6607_v56  ;;  %v3931_v16 = vpop.f32.mrf.mxu1  ;;  %v3701_v23 = vadd.f32 %v9366_v60, %v9415_v41  ;;  %v9427_v56 = vadd.f32 %v9415_v41, %v9372_v18  ;;  %v9440_v60 = vadd.f32 %v9389_v20, %v9415_v41 }
 0x428   : > { %7102 = vrcp.f32 %v4119_v1  ;;  %v4122_v15 = vadd.f32 1.0, %v7087_v50  ;;  %v6608_v30 = vmul.f32 -1.442695, %v3940_v26  ;;  %v3932_v29 = vadd.f32 %v9383_v49, %v3931_v16  ;;  %v6838_v26 = vpop.f32.mrf.mxu0 }
 0x429   : > { %v7089_v0 = vpop.eup %7088  ;;  %7104 = vpow2.f32 %v6605_v25  ;;  %v6879_v51 = vpop.f32.mrf.mxu1  ;;  %v9444_v18 = vadd.f32 %v9415_v41, %v9393_v19  ;;  %v9453_v20 = vadd.f32 %v9415_v41, %v9400_v12 }
 0x42a   : > { %7106 = vrcp.f32 %v4122_v15  ;;  %v4120_v14 = vadd.f32 1.0, %v7089_v0  ;;  %v6606_v63 = vmul.f32 -1.442695, %v3932_v29  ;;  %v3953_v5 = vadd.f32 %v6879_v51, %v9383_v49 }
 0x42b   : > { %v7091_v34 = vpop.eup %7090  ;;  %7108 = vpow2.f32 %v6608_v30  ;;  %v3944_v57 = vpop.f32.mrf.mxu1 }
 0x42c   : > { %v4125_v31 = vadd.f32 1.0, %v7091_v34  ;;  %v3945_v48 = vadd.f32 %v9383_v49, %v3944_v57  ;;  %7110 = vrcp.f32 %v4120_v14  ;;  %v6611_v61 = vmul.f32 -1.442695, %v3953_v5 }
 0x42d   : > { %v7093_v52 = vpop.eup %7092  ;;  %v6880_v62 = vpop.f32.mrf.mxu1  ;;  %7112 = vpow2.f32 %v6606_v63  ;;  %v9458_v34 = vadd.f32 %v9404_v11, %v9415_v41  ;;  %v9471_v11 = vadd.f32 %v9415_v41, %v3737_v55 }
 0x42e   : > { %v4123_v3 = vadd.f32 1.0, %v7093_v52  ;;  %v3956_v32 = vadd.f32 %v6880_v62, %v9383_v49  ;;  %v6609_v10 = vmul.f32 -1.442695, %v3945_v48  ;;  %7114 = vrcp.f32 %v4125_v31  ;;  %v3740_v48 = vpop.f32.mrf.mxu0 }
 0x42f   : > { %v7095_v8 = vpop.eup %7094  ;;  %v3947_v17 = vpop.f32.mrf.mxu1  ;;  %7116 = vpow2.f32 %v6611_v61  ;;  %v9482_v55 = vadd.f32 %v9415_v41, %v3740_v48 }
 0x430   : > { %v6612_v13 = vmul.f32 -1.442695, %v3956_v32  ;;  %v3948_v1 = vadd.f32 %v9383_v49, %v3947_v17  ;;  %7118 = vrcp.f32 %v4123_v3  ;;  %v4126_v50 = vadd.f32 1.0, %v7095_v8 }
 0x431   : > { %v7097_v25 = vpop.eup %7096  ;;  %v6883_v53 = vpop.f32.mrf.mxu1  ;;  %7120 = vpow2.f32 %v6609_v10  ;;  %v9468_v3 = vadd.f32 %v9409_v54, %v9415_v41 }
 0x432   : > { %v6610_v16 = vmul.f32 -1.442695, %v3948_v1  ;;  %v3969_v15 = vadd.f32 %v6883_v53, %v9383_v49  ;;  %v4124_v29 = vadd.f32 1.0, %v7097_v25  ;;  %7122 = vpow2.f32 %v6612_v13 }
 0x433   : > { %v7099_v30 = vpop.eup %7098  ;;  %v3960_v19 = vpop.f32.mrf.mxu1  ;;  %v9479_v13 = vadd.f32 %v6838_v26, %v9415_v41  ;;  %v9493_v26 = vadd.f32 %v9415_v41, %v9276_v7  ;;  %v9506_v7 = vadd.f32 %v9415_v41, %v9344_v22  ;;  %v9521_v22 = vadd.f32 %v9415_v41, %v9348_v24 }
 0x434   : > { %v7101_v0 = vpop.eup %7100  ;;  %v6615_v51 = vmul.f32 -1.442695, %v3969_v15  ;;  %v3961_v14 = vadd.f32 %v9383_v49, %v3960_v19  ;;  %v4217_v63 = vmul.f32 %v7099_v30, %v3698_v37  ;;  %7124 = vpow2.f32 %v6610_v16 }
 0x435   : > { %v7103_v5 = vpop.eup %7102  ;;  %v4129_v57 = vadd.f32 1.0, %v7101_v0  ;;  %v6884_v12 = vpop.f32.mrf.mxu1  ;;  %7126 = vrcp.f32 %v4126_v50  ;;  %v9535_v24 = vadd.f32 %v9415_v41, %v9352_v9 }
 0x436   : > { %v7105_v31 = vpop.eup %7104  ;;  %v6613_v52 = vmul.f32 -1.442695, %v3961_v14  ;;  %v3972_v61 = vadd.f32 %v6884_v12, %v9383_v49  ;;  %v9464_v62 = vpack.c.bf16 %v4217_v63, %v4217_v63  ;;  %7128 = vpow2.f32 %v6615_v51 }
 0x437   : > { %v7107_v37 = vpop.eup %7106  ;;  %v4127_v27 = vadd.f32 1.0, %v7105_v31  ;;  %v3963_v32 = vpop.f32.mrf.mxu1  ;;  %7130 = vrcp.f32 %v4124_v29  ;;  %v4215_v25 = vmul.f32 %v7103_v5, %v3690_v46  ;;  %v9497_v46 = vadd.f32 %v9342_v47, %v9415_v41 }
 0x438   : > { %v7109_v8 = vpop.eup %7108  ;;  %v6616_v10 = vmul.f32 -1.442695, %v3972_v61  ;;  %v3964_v17 = vadd.f32 %v9383_v49, %v3963_v32  ;;  %5302 = vrot.lane.b32.xlu1 %v9464_v62, %s7223_s23  ;;  %4709 = vrot.lane.b32.xlu0 %v9464_v62, %s7234_s20  ;;  %v4218_v54 = vmul.f32 %v7107_v37, %v3701_v23  ;;  %7132 = vrcp.f32 %v4129_v57 }
 0x439   : > { %v6887_v1 = vpop.f32.mrf.mxu1  ;;  %v7111_v53 = vpop.eup %7110  ;;  %7134 = vpow2.f32 %v6613_v52  ;;  %v9489_v23 = vadd.f32 %v9274_v40, %v9415_v41  ;;  %v4130_v29 = vadd.f32 1.0, %v7109_v8  ;;  %v9508_v47 = vpack.c.bf16 %v4215_v25, %v4215_v25 }
 0x43a   : > { %v6614_v50 = vmul.f32 -1.442695, %v3964_v17  ;;  %v3985_v16 = vadd.f32 %v6887_v1, %v9383_v49  ;;  %v9485_v15 = vpack.c.bf16 %v4218_v54, %v4218_v54  ;;  %v7113_v30 = vpop.eup %7112  ;;  %7136 = vrcp.f32 %v4127_v27 }
 0x43b   : > { %v3976_v19 = vpop.f32.mrf.mxu1  ;;  %7138 = vpow2.f32 %v6616_v10  ;;  %v7115_v40 = vpop.eup %7114  ;;  %v4388_v63 = vshrl.u32 %v9464_v62, 16  ;;  %v4128_v57 = vadd.f32 1.0, %v7113_v30  ;;  %v4216_v48 = vmul.f32 %v7111_v53, %v9427_v56 }
 0x43c   : > { %v6619_v0 = vmul.f32 -1.442695, %v3985_v16  ;;  %v3977_v51 = vadd.f32 %v9383_v49, %v3976_v19  ;;  %5752 = vrot.lane.b32.xlu0 %v9464_v62, %s7235_s19  ;;  %4711 = vrot.lane.b32.xlu1 %v9485_v15, %s7234_s20  ;;  %7140 = vpow2.f32 %v6614_v50  ;;  %v7117_v5 = vpop.eup %7116  ;;  %v9517_v61 = vadd.f32 %v9346_v35, %v9415_v41 }
 0x43d   : > { %v6888_v14 = vpop.f32.mrf.mxu1  ;;  %v9513_v52 = vpop.eup %7118  ;;  %7142 = vrcp.f32 %v4130_v29  ;;  %v4391_v27 = vshll.u32 %v9464_v62, 16  ;;  %v9526_v8 = vadd.f32 %v9350_v45, %v9415_v41  ;;  %v4133_v62 = vadd.f32 1.0, %v7117_v5 }
 0x43e   : > { %v6617_v12 = vmul.f32 -1.442695, %v3977_v51  ;;  %v3988_v31 = vadd.f32 %v6888_v14, %v9383_v49  ;;  %v7121_v32 = vpop.eup %7120  ;;  %7144 = vpow2.f32 %v6619_v0  ;;  %v9537_v45 = vrot.slane %v4388_v63, 7 }
 0x43f   : > { %v3979_v37 = vpop.f32.mrf.mxu1  ;;  %v7123_v35 = vpop.eup %7122  ;;  %v9540_v53 = vpack.c.bf16 %v4216_v48, %v4216_v48  ;;  %v4131_v16 = vadd.f32 1.0, %v7121_v32  ;;  %v4221_v29 = vmul.f32 %v7115_v40, %v9431_v2  ;;  %v4835_v9 = vrot.slane %v4388_v63, 4 }
 0x440   : > { %v6620_v56 = vmul.f32 -1.442695, %v3988_v31  ;;  %v3980_v10 = vadd.f32 %v9383_v49, %v3979_v37  ;;  %5304 = vrot.lane.b32.xlu1 %v9485_v15, %s7223_s23  ;;  %4705 = vrot.lane.b32.xlu0 %v9508_v47, %s7234_s20  ;;  %7146 = vpow2.f32 %v6617_v12  ;;  %v4836_v19 = vrot.slane %v4391_v27, 5 }
 0x441   : > { %v6891_v17 = vpop.f32.mrf.mxu1  ;;  %v7125_v54 = vpop.eup %7124  ;;  %7148 = vrcp.f32 %v4128_v57  ;;  %v4134_v51 = vadd.f32 1.0, %v7123_v35  ;;  %v4399_v5 = vshll.u32 %v9485_v15, 16  ;;  %v9555_v2 = vadd.f32 %v9356_v6, %v9415_v41 }
 0x442   : > { %v6618_v1 = vmul.f32 -1.442695, %v3980_v10  ;;  %v4001_v25 = vadd.f32 %v6891_v17, %v9383_v49  ;;  %v9542_v50 = vpop.eup %7126  ;;  %7150 = vpow2.f32 %v6620_v56  ;;  %v9559_v40 = vadd.f32 %v9415_v41, %v9358_v33 }
 0x443   : > { %v3992_v30 = vpop.f32.mrf.mxu1  ;;  %v7129_v0 = vpop.eup %7128  ;;  %11454 = vst [vmem:[#allocation6_spill] sm:$0xff] %v9555_v2  ;;  %7152 = vrcp.f32 %v4133_v62  ;;  %v4132_v63 = vadd.f32 1.0, %v7125_v54  ;;  %v9565_v32 = vor.u32 %v4391_v27, %v9537_v45  ;;  %v9569_v6 = vadd.f32 %v9362_v36, %v9415_v41 }
 0x444   : > { %v3993_v14 = vadd.f32 %v9383_v49, %v3992_v30  ;;  %4707 = vrot.lane.b32.xlu1 %v9540_v53, %s7234_s20  ;;  %5298 = vrot.lane.b32.xlu0 %v9508_v47, %s7223_s23  ;;  %v9551_v57 = vpop.eup %7130  ;;  %11455 = vst [vmem:[#allocation7_spill] sm:$0xff] %v9559_v40  ;;  %7154 = vpow2.f32 %v6618_v1  ;;  %v6623_v48 = vmul.f32 -1.442695, %v4001_v25  ;;  %v4137_v33 = vadd.f32 1.0, %v7129_v0 }
 0x445   : > { %v6892_v12 = vpop.f32.mrf.mxu1  ;;  %v9561_v31 = vpop.eup %7132  ;;  %11456 = vst [vmem:[#allocation8_spill] sm:$0xff] %v9569_v6  ;;  %7156 = vrcp.f32 %v4131_v16  ;;  %v4837_v35 = vor.u32 %v4836_v19, %v4835_v9  ;;  %v9577_v27 = vpack.c.bf16 %v4221_v29, %v4221_v29  ;;  %v9579_v54 = vrot.slane %v4399_v5, 5 }
 0x446   : > { %v4004_v37 = vadd.f32 %v6892_v12, %v9383_v49  ;;  %v7135_v56 = vpop.eup %7134  ;;  %7158 = vrcp.f32 %v4134_v51  ;;  %v6621_v17 = vmul.f32 -1.442695, %v3993_v14  ;;  %v4219_v16 = vmul.f32 %v9513_v52, %v9436_v58 }
 0x447   : > { %v3995_v10 = vpop.f32.mrf.mxu1  ;;  %v9571_v62 = vpop.eup %7136  ;;  %7160 = vrcp.f32 %v4132_v63  ;;  %v4396_v30 = vshrl.u32 %v9485_v15, 16  ;;  %v4372_v0 = vshrl.u32 %v9508_v47, 16  ;;  %v4375_v29 = vshll.u32 %v9508_v47, 16 }
 0x448   : > { %5599 = vrot.lane.b32.xlu1 %v9565_v32, %s7232_s22  ;;  %5754 = vrot.lane.b32.xlu0 %v9485_v15, %s7235_s19  ;;  %v7139_v36 = vpop.eup %7138  ;;  %v6624_v1 = vmul.f32 -1.442695, %v4004_v37  ;;  %7162 = vpow2.f32 %v6623_v48  ;;  %v3996_v51 = vadd.f32 %v9383_v49, %v3995_v10  ;;  %v4838_v63 = vrot.slane %v4837_v35, 4 }
 0x449   : > { %v6895_v25 = vpop.f32.mrf.mxu1  ;;  %v7141_v9 = vpop.eup %7140  ;;  %7164 = vrcp.f32 %v4137_v33  ;;  %v4398_v12 = vrot.slane %v4396_v30, 7  ;;  %v4135_v42 = vadd.f32 1.0, %v7135_v56  ;;  %v4394_v15 = vrot.slane %v9537_v45, 4 }
 0x44a   : > { %v4017_v19 = vadd.f32 %v6895_v25, %v9383_v49  ;;  %v9588_v37 = vpop.eup %7142  ;;  %7166 = vpow2.f32 %v6621_v17  ;;  %v4138_v52 = vadd.f32 1.0, %v7139_v36  ;;  %v4136_v48 = vadd.f32 1.0, %v7141_v9 }
 0x44b   : > { %v4008_v14 = vpop.f32.mrf.mxu1  ;;  %v7145_v47 = vpop.eup %7144  ;;  %7168 = vpow2.f32 %v6624_v1  ;;  %v4401_v10 = vor.u32 %v4399_v5, %v4398_v12  ;;  %v4826_v25 = vrot.slane %v4372_v0, 4  ;;  %v6622_v40 = vmul.f32 -1.442695, %v3996_v51 }
 0x44c   : > { %v6627_v58 = vmul.f32 -1.442695, %v4017_v19  ;;  %5310 = vrot.lane.b32.xlu1 %v9577_v27, %s7223_s23  ;;  %5139 = vrot.lane.b32.xlu0 %v9565_v32, %s7236_s12  ;;  %v4009_v56 = vadd.f32 %v9383_v49, %v4008_v14  ;;  %v4827_v19 = vrot.slane %v4375_v29, 5  ;;  %v9602_v45 = vsel %vm8039_vm13, %v4838_v63, %v9579_v54 }
 0x44d   : > { %v6896_v33 = vpop.f32.mrf.mxu1  ;;  %v7147_v35 = vpop.eup %7146  ;;  %v9606_v5 = vsel %vm7942_vm10, %v4394_v15, %v4401_v10  ;;  %v9610_v36 = vadd.f32 %v9415_v41, %v9364_v39  ;;  %v4141_v1 = vadd.f32 1.0, %v7145_v47  ;;  %v4374_v9 = vrot.slane %v4372_v0, 7 }
 0x44e   : > { %v4020_v17 = vadd.f32 %v6896_v33, %v9383_v49  ;;  %v9597_v6 = vpop.eup %7148  ;;  %7170 = vpow2.f32 %v6627_v58  ;;  %4652 = vst.msk [vmem:[#allocation4 + $0x14] sm:$0xf] %vm4642_vm3, %v9606_v5  ;;  %v9620_v14 = vadd.f32 %v9368_v28, %v9415_v41  ;;  %v4139_v39 = vadd.f32 1.0, %v7147_v35 }
 0x44f   : > { %v4011_v2 = vpop.f32.mrf.mxu1  ;;  %11457 = vst [vmem:[#allocation9_spill] sm:$0xff] %v9610_v36  ;;  %7172 = vrcp.f32 %v4135_v42  ;;  %v7151_v51 = vpop.eup %7150  ;;  %v4383_v42 = vshll.u32 %v9540_v53, 16  ;;  %v6625_v12 = vmul.f32 -1.442695, %v4009_v56  ;;  %v4828_v15 = vor.u32 %v4827_v19, %v4826_v25 }
 0x450   : > { %5440 = vrot.lane.b32.xlu1 %v9602_v45, %s7237_s24  ;;  %5300 = vrot.lane.b32.xlu0 %v9540_v53, %s7223_s23  ;;  %7174 = vrcp.f32 %v4138_v52  ;;  %v9623_v63 = vpop.eup %7152  ;;  %v4012_v58 = vadd.f32 %v9383_v49, %v4011_v2  ;;  %v9626_v47 = vpack.c.bf16 %v4219_v16, %v4219_v16  ;;  %v4841_v33 = vrot.slane %v4396_v30, 4 }
 0x451   : > { %7176 = vrcp.f32 %v4136_v48  ;;  %v7155_v0 = vpop.eup %7154  ;;  %v4380_v10 = vshrl.u32 %v9540_v53, 16  ;;  %v4142_v52 = vadd.f32 1.0, %v7151_v51  ;;  %v9635_v48 = vor.u32 %v4375_v29, %v4374_v9 }
 0x452   : > { %7178 = vpow2.f32 %v6622_v40  ;;  %v9629_v28 = vpop.eup %7156  ;;  %v4222_v49 = vmul.f32 %v9542_v50, %v9440_v60  ;;  %v6628_v40 = vmul.f32 -1.442695, %v4020_v17  ;;  %v9641_v53 = vrot.slane %v4383_v42, 5 }
 0x453   : > { %7180 = vrcp.f32 %v4141_v1  ;;  %v9639_v2 = vpop.eup %7158  ;;  %v4382_v16 = vrot.slane %v4380_v10, 7  ;;  %v4140_v35 = vadd.f32 1.0, %v7155_v0  ;;  %v6626_v56 = vmul.f32 -1.442695, %v4012_v58 }
 0x454   : > { %5873 = vrot.lane.b32.xlu1 %v9602_v45, %s7225_s15  ;;  %4717 = vrot.lane.b32.xlu0 %v9577_v27, %s7234_s20  ;;  %7182 = vrcp.f32 %v4139_v39  ;;  %v9643_v30 = vpop.eup %7160  ;;  %v4829_v25 = vrot.slane %v4828_v15, 4  ;;  %v4842_v29 = vor.u32 %v4841_v33, %v9579_v54  ;;  %v4378_v1 = vrot.slane %v4374_v9, 4 }
 0x455   : > { %7184 = vpow2.f32 %v6625_v12  ;;  %v7163_v19 = vpop.eup %7162  ;;  %v4385_v51 = vor.u32 %v4383_v42, %v4382_v16  ;;  %v4220_v60 = vmul.f32 %v9551_v57, %v9444_v18  ;;  %v9654_v17 = vpack.c.bf16 %v4222_v49, %v4222_v49 }
 0x456   : > { %v9648_v50 = vpop.eup %7164  ;;  %7186 = vrcp.f32 %v4142_v52  ;;  %v4420_v39 = vshrl.u32 %v9577_v27, 16  ;;  %v11351_v54 = vshrl.u32 %v9626_v47, 16  ;;  %v9660_v42 = vadd.f32 %v9415_v41, %v9370_v59 }
 0x457   : > { %v7167_v9 = vpop.eup %7166  ;;  %7188 = vpow2.f32 %v6628_v40  ;;  %v9664_v18 = vsel %vm7942_vm10, %v4378_v1, %v4385_v51  ;;  %v4423_v57 = vshll.u32 %v9577_v27, 16  ;;  %v9669_v58 = vadd.f32 %v9374_v4, %v9415_v41 }
 0x458   : > { %5756 = vrot.lane.b32.xlu1 %v9626_v47, %s7235_s19  ;;  %5135 = vrot.lane.b32.xlu0 %v9635_v48, %s7236_s12  ;;  %11458 = vst [vmem:[#allocation10_spill] sm:$0xff] %v9660_v42  ;;  %v7169_v12 = vpop.eup %7168  ;;  %7190 = vrcp.f32 %v4140_v35  ;;  %v4145_v15 = vadd.f32 1.0, %v7163_v19  ;;  %v9674_v0 = vsel %vm8039_vm13, %v4829_v25, %v9641_v53  ;;  %4648 = vst.msk [vmem:[#allocation4 + $0xc] sm:$0xf] %vm4642_vm3, %v9664_v18  ;;  %v9678_v59 = vrot.slane %v4842_v29, 4 }
 0x459   : > { %11459 = vst [vmem:[#allocation11_spill] sm:$0xff] %v9669_v58  ;;  %7192 = vpow2.f32 %v6626_v56  ;;  %v9680_v33 = vpack.c.bf16 %v4220_v60, %v4220_v60  ;;  %v4832_v52 = vrot.slane %v4380_v10, 4  ;;  %v4422_v4 = vrot.slane %v4420_v39, 7 }
 0x45a   : > { %v9688_v41 = vrot.slane %v11351_v54, 7  ;;  %v4225_v40 = vmul.f32 %v9561_v31, %v9449_v44  ;;  %v11350_v16 = vshrl.u32 %v9654_v17, 16  ;;  %v4143_v10 = vadd.f32 1.0, %v7167_v9 }
 0x45b   : > { %v7171_v49 = vpop.eup %7170  ;;  %v4853_v25 = vrot.slane %v4420_v39, 4  ;;  %v4854_v19 = vrot.slane %v4423_v57, 5  ;;  %7194 = vrcp.f32 %v4145_v15  ;;  %v4223_v1 = vmul.f32 %v9571_v62, %v9453_v20  ;;  %v4649_v15 = vld [vmem:[#allocation4 + $0x10] sm:$0xf] }
 0x45c   : > { %5141 = vrot.lane.b32.xlu1 %v9606_v5, %s7236_s12  ;;  %5760 = vrot.lane.b32.xlu0 %v9577_v27, %s7235_s19  ;;  %v9693_v35 = vpop.eup %7172  ;;  %v4149_v56 = vadd.f32 1.0, %v7171_v49  ;;  %v4431_v27 = vshll.u32 %v9654_v17, 16  ;;  %v4430_v51 = vrot.slane %v11350_v16, 7  ;;  %v4146_v31 = vadd.f32 1.0, %v7169_v12 }
 0x45d   : > { %v9695_v29 = vpop.eup %7174  ;;  %v4833_v60 = vor.u32 %v4832_v52, %v9641_v53  ;;  %v4407_v39 = vshll.u32 %v9626_v47, 16  ;;  %v9716_v20 = vpack.c.bf16 %v4225_v40, %v4225_v40  ;;  %v4426_v62 = vrot.slane %v4422_v4, 4  ;;  %v4644_v52 = vld [vmem:[#allocation4 + $0x8] sm:$0xf] }
 0x45e   : > { %v9702_v44 = vpop.eup %7176  ;;  %7196 = vrcp.f32 %v4149_v56  ;;  %v4433_v53 = vor.u32 %v4431_v27, %v4430_v51  ;;  %v4226_v12 = vmul.f32 %v9588_v37, %v9458_v34  ;;  %v9722_v16 = vor.u32 %v4423_v57, %v4422_v4  ;;  %v4657_v57 = vld [vmem:[#allocation4 + $0x20] sm:$0xf] }
 0x45f   : > { %v7179_v49 = vpop.eup %7178  ;;  %7198 = vrcp.f32 %v4143_v10  ;;  %v9725_v54 = vor.u32 %v4407_v39, %v9688_v41  ;;  %v4855_v58 = vor.u32 %v4854_v19, %v4853_v25  ;;  %v4650_v34 = vsel %vm9708_vm2, %v9565_v32, %v4649_v15 }
 0x460   : > { %5436 = vrot.lane.b32.xlu1 %v9674_v0, %s7237_s24  ;;  %4965 = vrot.lane.b32.xlu0 %v9602_v45, %s7231_s21  ;;  %v9720_v56 = vpop.eup %7180  ;;  %v9729_v45 = vpack.c.bf16 %v4223_v1, %v4223_v1  ;;  %v9733_v40 = vsel %vm7942_vm10, %v4426_v62, %v4433_v53  ;;  %v11352_v37 = vshrl.u32 %v9680_v33, 16  ;;  %7200 = vrcp.f32 %v4146_v31  ;;  %4651 = vst [vmem:[#allocation4 + $0x10] sm:$0xf] %v4650_v34 }
 0x461   : > { %v9727_v42 = vpop.eup %7182  ;;  %11464 = vst [vmem:[#allocation13_spill] sm:$0xff] %v9733_v40  ;;  %v4144_v10 = vadd.f32 1.0, %v7179_v49  ;;  %v9739_v51 = vrot.slane %v4833_v60, 4  ;;  %4660 = vst.msk [vmem:[#allocation4 + $0x24] sm:$0xf] %vm4642_vm3, %v9733_v40  ;;  %v4645_v25 = vsel %vm9708_vm2, %v9635_v48, %v4644_v52  ;;  %v4415_v32 = vshll.u32 %v9680_v33, 16 }
 0x462   : > { %11463 = vst [vmem:[#allocation12_spill] sm:$0xff] %v9729_v45  ;;  %v7185_v4 = vpop.eup %7184  ;;  %v9751_v19 = vpack.c.bf16 %v4226_v12, %v4226_v12  ;;  %v4414_v1 = vrot.slane %v11352_v37, 7  ;;  %4646 = vst [vmem:[#allocation4 + $0x8] sm:$0xf] %v4645_v25  ;;  %v4452_v31 = vshrl.u32 %v9716_v20, 16  ;;  %v9758_v15 = vrot.slane %v4431_v27, 5 }
 0x463   : > { %v9756_v60 = vpop.eup %7186  ;;  %v4224_v48 = vmul.f32 %v9597_v6, %v9461_v21  ;;  %v4455_v49 = vshll.u32 %v9716_v20, 16  ;;  %v4658_v62 = vsel %vm9708_vm2, %v9722_v16, %v4657_v57  ;;  %v4856_v12 = vrot.slane %v4855_v58, 4 }
 0x464   : > { %4719 = vrot.lane.b32.xlu1 %v9654_v17, %s7234_s20  ;;  %4713 = vrot.lane.b32.xlu0 %v9626_v47, %s7234_s20  ;;  %11465 = vst [vmem:[#allocation14_spill] sm:$0xff] %v9758_v15  ;;  %v9766_v53 = vpop.eup %7188  ;;  %v4410_v52 = vrot.slane %v9688_v41, 4  ;;  %v4417_v34 = vor.u32 %v4415_v32, %v4414_v1  ;;  %4659 = vst [vmem:[#allocation4 + $0x20] sm:$0xf] %v4658_v62  ;;  %v4436_v25 = vshrl.u32 %v9729_v45, 16  ;;  %7202 = vrcp.f32 %v4144_v10 }
 0x465   : > { %v9770_v27 = vpop.eup %7190  ;;  %v11466_v21 = vshrl.u32 %v9626_v47, 16  ;;  %v9776_v37 = vrot.slane %v4407_v39, 5  ;;  %v4454_v40 = vrot.slane %v4452_v31, 7  ;;  %v9784_v58 = vrot.slane %v4415_v32, 5  ;;  %v4653_v32 = vld [vmem:[#allocation4 + $0x18] sm:$0xf] }
 0x466   : > { %v9778_v57 = vpop.eup %7192  ;;  %v9788_v41 = vsel %vm7942_vm10, %v4410_v52, %v4417_v34  ;;  %v4229_v10 = vmul.f32 %v9623_v63, %v9468_v3  ;;  %v4463_v39 = vshll.u32 %v9751_v19, 16  ;;  %v9793_v1 = vadd.f32 1.0, %v7185_v4 }
 0x467   : > { %v9774_v6 = vrot.slane %v11466_v21, 4  ;;  %11467 = vst [vmem:[#allocation15_spill] sm:$0xff] %v9784_v58  ;;  %11468 = vst [vmem:[#allocation16_spill] sm:$0xff] %v9788_v41  ;;  %v9797_v62 = vpack.c.bf16 %v4224_v48, %v4224_v48  ;;  %v4871_v21 = vrot.slane %v4452_v31, 4  ;;  %v9802_v52 = vsel %vm8039_vm13, %v4856_v12, %v9758_v15 }
 0x468   : > { %4967 = vrot.lane.b32.xlu1 %v9678_v59, %s7231_s21  ;;  %5306 = vrot.lane.b32.xlu0 %v9626_v47, %s7223_s23  ;;  %4656 = vst.msk [vmem:[#allocation4 + $0x1c] sm:$0xf] %vm4642_vm3, %v9788_v41  ;;  %v4872_v47 = vrot.slane %v4455_v49, 5  ;;  %v11469_v34 = vshrl.u32 %v9654_v17, 16  ;;  %v9808_v63 = vrot.slane %v4436_v25, 7  ;;  %v4439_v4 = vshll.u32 %v9729_v45, 16  ;;  %v9811_v58 = vpop.eup %7194 }
 0x469   : > { %v9815_v48 = vor.u32 %v4455_v49, %v4454_v40  ;;  %v9817_v36 = vrot.slane %v4463_v39, 5  ;;  %v4654_v49 = vsel %vm9708_vm2, %v9725_v54, %v4653_v32  ;;  %v4447_v15 = vshll.u32 %v9797_v62, 16 }
 0x46a   : > { %v9806_v3 = vrot.slane %v11469_v34, 4  ;;  %v4873_v41 = vor.u32 %v4872_v47, %v4871_v21  ;;  %v9823_v34 = vpack.c.bf16 %v4229_v10, %v4229_v10  ;;  %v4460_v21 = vshrl.u32 %v9751_v19, 16  ;;  %4655 = vst [vmem:[#allocation4 + $0x18] sm:$0xf] %v4654_v49 }
 0x46b   : > { %11471 = vst [vmem:[#allocation18_spill] sm:$0xff] %v9817_v36  ;;  %v7197_v12 = vpop.eup %7196  ;;  %v4862_v45 = vrot.slane %v4436_v25, 4  ;;  %v9838_v10 = vor.u32 %v4439_v4, %v9808_v63  ;;  %v4230_v32 = vmul.f32 %v9639_v2, %v9479_v13  ;;  %v4665_v25 = vld [vmem:[#allocation4 + $0x30] sm:$0xf]  ;;  %7204 = vrcp.f32 %v9793_v1 }
 0x46c   : > { %11470 = vst [vmem:[#allocation17_spill] sm:$0xff] %v9806_v3  ;;  %5762 = vrot.lane.b32.xlu1 %v9654_v17, %s7235_s19  ;;  %4961 = vrot.lane.b32.xlu0 %v9674_v0, %s7231_s21  ;;  %v4227_v3 = vmul.f32 %v9629_v28, %v9471_v11  ;;  %v9832_v47 = vmul.f32 %v7197_v12, %v9620_v14  ;;  %v4874_v31 = vrot.slane %v4873_v41, 4  ;;  %v9835_v0 = vpop.eup %7198  ;;  %v4462_v11 = vrot.slane %v4460_v21, 7 }
 0x46d   : > { %v4863_v28 = vrot.slane %v4439_v4, 5  ;;  %v4458_v12 = vrot.slane %v4454_v40, 4  ;;  %v9849_v49 = vrot.slane %v4460_v21, 4  ;;  %v9857_v4 = vrot.slane %v4447_v15, 5 }
 0x46e   : > { %11472 = vst [vmem:[#allocation19_spill] sm:$0xff] %v9832_v47  ;;  %v9845_v14 = vsel %vm8039_vm13, %v4874_v31, %v9817_v36  ;;  %v9847_v41 = vpack.c.bf16 %v4227_v3, %v4227_v3  ;;  %v9851_v47 = vpop.eup %7200  ;;  %v4465_v13 = vor.u32 %v4463_v39, %v4462_v11  ;;  %v4444_v31 = vshrl.u32 %v9797_v62, 16  ;;  %v4661_v11 = vld [vmem:[#allocation4 + $0x28] sm:$0xf]  ;;  %v11524_v38 = vld [vmem:[#allocation16_spill] sm:$0xff] }
 0x46f   : > { %11473 = vst [vmem:[#allocation20_spill] sm:$0xff] %v9845_v14  ;;  %11474 = vst [vmem:[#allocation21_spill] sm:$0xff] %v9849_v49  ;;  %v4864_v2 = vor.u32 %v4863_v28, %v4862_v45  ;;  %v9860_v3 = vpack.c.bf16 %v4230_v32, %v4230_v32  ;;  %v4228_v21 = vmul.f32 %v9643_v30, %v9482_v55  ;;  %v4484_v14 = vshrl.u32 %v9823_v34, 16 }
 0x470   : > { %5137 = vrot.lane.b32.xlu1 %v9664_v18, %s7236_s12  ;;  %5601 = vrot.lane.b32.xlu0 %v9606_v5, %s7232_s22  ;;  %11475 = vst [vmem:[#allocation22_spill] sm:$0xff] %v9857_v4  ;;  %v9869_v18 = vsel %vm7942_vm10, %v4458_v12, %v4465_v13  ;;  %v4446_v45 = vrot.slane %v4444_v31, 7  ;;  %v4666_v39 = vsel %vm9708_vm2, %v9815_v48, %v4665_v25  ;;  %v4442_v28 = vrot.slane %v9808_v63, 4 }
 0x471   : > { %11476 = vst [vmem:[#allocation23_spill] sm:$0xff] %v9860_v3  ;;  %v4865_v5 = vrot.slane %v4864_v2, 4  ;;  %4668 = vst.msk [vmem:[#allocation4 + $0x34] sm:$0xf] %vm4642_vm3, %v9869_v18  ;;  %v4486_v32 = vrot.slane %v4484_v14, 7  ;;  %v4487_v55 = vshll.u32 %v9823_v34, 16  ;;  %v9880_v12 = vpop.eup %7202  ;;  %v9891_v13 = vpack.c.bf16 %v4228_v21, %v4228_v21 }
 0x472   : > { %4667 = vst [vmem:[#allocation4 + $0x30] sm:$0xf] %v4666_v39  ;;  %v9878_v30 = vrot.slane %v4444_v31, 4  ;;  %v4449_v63 = vor.u32 %v4447_v15, %v4446_v45  ;;  %v4468_v2 = vshrl.u32 %v9847_v41, 16  ;;  %v4471_v39 = vshll.u32 %v9847_v41, 16 }
 0x473   : > { %v9889_v25 = vsel %vm8039_vm13, %v4865_v5, %v9857_v4  ;;  %v4233_v40 = vmul.f32 %v9648_v50, %v9489_v23  ;;  %v4495_v21 = vshll.u32 %v9860_v3, 16  ;;  %v4889_v45 = vrot.slane %v4484_v14, 4 }
 0x474   : > { %11477 = vst [vmem:[#allocation24_spill] sm:$0xff] %v9878_v30  ;;  %4715 = vrot.lane.b32.xlu1 %v9680_v33, %s7234_s20  ;;  %5312 = vrot.lane.b32.xlu0 %v9654_v17, %s7223_s23  ;;  %11478 = vst [vmem:[#allocation25_spill] sm:$0xff] %v9889_v25  ;;  %v4662_v17 = vsel %vm9708_vm2, %v9838_v10, %v4661_v11  ;;  %v9904_v5 = vsel %vm7942_vm10, %v4442_v28, %v4449_v63  ;;  %v4470_v15 = vrot.slane %v4468_v2, 7 }
 0x475   : > { %11479 = vst [vmem:[#allocation26_spill] sm:$0xff] %v9904_v5  ;;  %4663 = vst [vmem:[#allocation4 + $0x28] sm:$0xf] %v4662_v17  ;;  %v9910_v31 = vor.u32 %v4487_v55, %v4486_v32  ;;  %v4890_v23 = vrot.slane %v4487_v55, 5  ;;  %v4231_v50 = vmul.f32 %v9693_v35, %v9493_v26  ;;  %v9920_v14 = vpack.c.bf16 %v4233_v40, %v4233_v40 }
 0x476   : > { %4664 = vst.msk [vmem:[#allocation4 + $0x2c] sm:$0xf] %vm4642_vm3, %v9904_v5  ;;  %v9918_v11 = vor.u32 %v4471_v39, %v4470_v15  ;;  %v9922_v1 = vrot.slane %v4495_v21, 5  ;;  %v4492_v28 = vshrl.u32 %v9860_v3, 16  ;;  %v4490_v17 = vrot.slane %v4486_v32, 4 }
 0x477   : > { %v4891_v63 = vor.u32 %v4890_v23, %v4889_v45  ;;  %v4479_v55 = vshll.u32 %v9891_v13, 16  ;;  %v4880_v4 = vrot.slane %v4468_v2, 4  ;;  %v4881_v35 = vrot.slane %v4471_v39, 5  ;;  %v4673_v3 = vld [vmem:[#allocation4 + $0x40] sm:$0xf] }
 0x478   : > { %4963 = vrot.lane.b32.xlu1 %v9739_v51, %s7231_s21  ;;  %5442 = vrot.lane.b32.xlu0 %v9678_v59, %s7237_s24  ;;  %11480 = vst [vmem:[#allocation27_spill] sm:$0xff] %v9922_v1  ;;  %v4494_v26 = vrot.slane %v4492_v28, 7  ;;  %v4234_v30 = vmul.f32 %v9695_v29, %v9497_v46  ;;  %v9928_v5 = vrot.slane %v4492_v28, 4  ;;  %v9930_v49 = vpack.c.bf16 %v4231_v50, %v4231_v50 }
 0x479   : > { %v4892_v36 = vrot.slane %v4891_v63, 4  ;;  %v9932_v40 = vrot.slane %v4479_v55, 5  ;;  %v4476_v25 = vshrl.u32 %v9891_v13, 16  ;;  %v4882_v2 = vor.u32 %v4881_v35, %v4880_v4 }
 0x47a   : > { %v4497_v32 = vor.u32 %v4495_v21, %v4494_v26  ;;  %v9939_v39 = vpack.c.bf16 %v4234_v30, %v4234_v30  ;;  %v4516_v46 = vshrl.u32 %v9920_v14, 16  ;;  %v4232_v50 = vmul.f32 %v9702_v44, %v9506_v7 }
 0x47b   : > { %11481 = vst [vmem:[#allocation28_spill] sm:$0xff] %v9932_v40  ;;  %v9945_v29 = vsel %vm8039_vm13, %v4892_v36, %v9922_v1  ;;  %v4478_v23 = vrot.slane %v4476_v25, 7  ;;  %v4883_v4 = vrot.slane %v4882_v2, 4  ;;  %v9955_v30 = vrot.slane %v4476_v25, 4  ;;  %v4669_v36 = vld [vmem:[#allocation4 + $0x38] sm:$0xf] }
 0x47c   : > { %5308 = vrot.lane.b32.xlu1 %v9680_v33, %s7223_s23  ;;  %5875 = vrot.lane.b32.xlu0 %v9678_v59, %s7225_s15  ;;  %v9953_v59 = vsel %vm7942_vm10, %v4490_v17, %v4497_v32  ;;  %v4674_v21 = vsel %vm9708_vm2, %v9910_v31, %v4673_v3  ;;  %v4474_v28 = vrot.slane %v4470_v15, 4  ;;  %v9962_v26 = vpack.c.bf16 %v4232_v50, %v4232_v50  ;;  %v4681_v1 = vld [vmem:[#allocation4 + $0x50] sm:$0xf] }
 0x47d   : > { %11482 = vst [vmem:[#allocation29_spill] sm:$0xff] %v9955_v30  ;;  %4676 = vst.msk [vmem:[#allocation4 + $0x44] sm:$0xf] %vm4642_vm3, %v9953_v59  ;;  %v4481_v63 = vor.u32 %v4479_v55, %v4478_v23  ;;  %v4518_v7 = vrot.slane %v4516_v46, 7  ;;  %v9971_v44 = vsel %vm8039_vm13, %v4883_v4, %v9932_v40  ;;  %v4519_v25 = vshll.u32 %v9920_v14, 16 }
 0x47e   : > { %4675 = vst [vmem:[#allocation4 + $0x40] sm:$0xf] %v4674_v21  ;;  %v4237_v15 = vmul.f32 %v9720_v56, %v9517_v61  ;;  %v4150_v17 = vadd.f32 1.0, %v9766_v53  ;;  %v4500_v35 = vshrl.u32 %v9930_v49, 16  ;;  %v4670_v32 = vsel %vm9708_vm2, %v9918_v11, %v4669_v36 }
 0x47f   : > { %v9981_v55 = vsel %vm7942_vm10, %v4474_v28, %v4481_v63  ;;  %v4148_v2 = vadd.f32 1.0, %v9778_v57  ;;  %v9990_v23 = vor.u32 %v4519_v25, %v4518_v7  ;;  %v4503_v61 = vshll.u32 %v9930_v49, 16  ;;  %4671 = vst [vmem:[#allocation4 + $0x38] sm:$0xf] %v4670_v32  ;;  %v9996_v28 = vpop.eup %7204 }
 0x480   : > { %5758 = vrot.lane.b32.xlu1 %v9680_v33, %s7235_s19  ;;  %5147 = vrot.lane.b32.xlu0 %v9722_v16, %s7236_s12  ;;  %11483 = vst [vmem:[#allocation30_spill] sm:$0xff] %v9981_v55  ;;  %4672 = vst.msk [vmem:[#allocation4 + $0x3c] sm:$0xf] %vm4642_vm3, %v9981_v55  ;;  %v4527_v56 = vshll.u32 %v9939_v39, 16  ;;  %v4502_v53 = vrot.slane %v4500_v35, 7  ;;  %v4907_v50 = vrot.slane %v4516_v46, 4  ;;  %v4235_v21 = vmul.f32 %v9727_v42, %v9521_v22 }
 0x481   : > { %v4908_v4 = vrot.slane %v4519_v25, 5  ;;  %v10002_v57 = vpack.c.bf16 %v4237_v15, %v4237_v15  ;;  %v4524_v63 = vshrl.u32 %v9939_v39, 16  ;;  %v4511_v46 = vshll.u32 %v9962_v26, 16 }
 0x482   : > { %v10004_v36 = vrot.slane %v4527_v56, 5  ;;  %v10008_v25 = vor.u32 %v4503_v61, %v4502_v53  ;;  %v4522_v22 = vrot.slane %v4518_v7, 4  ;;  %v4898_v42 = vrot.slane %v4500_v35, 4 }
 0x483   : > { %v4909_v32 = vor.u32 %v4908_v4, %v4907_v50  ;;  %v10010_v3 = vpack.c.bf16 %v4235_v21, %v4235_v21  ;;  %v4526_v45 = vrot.slane %v4524_v63, 7  ;;  %v10014_v40 = vrot.slane %v4511_v46, 5 }
 0x484   : > { %5607 = vrot.lane.b32.xlu1 %v9722_v16, %s7232_s22  ;;  %5438 = vrot.lane.b32.xlu0 %v9739_v51, %s7237_s24  ;;  %11484 = vst [vmem:[#allocation31_spill] sm:$0xff] %v10004_v36  ;;  %v4899_v16 = vrot.slane %v4503_v61, 5  ;;  %v4238_v51 = vmul.f32 %v9756_v60, %v9526_v8  ;;  %v10016_v30 = vrot.slane %v4524_v63, 4  ;;  %v4508_v55 = vshrl.u32 %v9962_v26, 16 }
 0x485   : > { %v4910_v15 = vrot.slane %v4909_v32, 4  ;;  %11485 = vst [vmem:[#allocation32_spill] sm:$0xff] %v10014_v40  ;;  %v4529_v7 = vor.u32 %v4527_v56, %v4526_v45  ;;  %v4548_v8 = vshrl.u32 %v10002_v57, 16  ;;  %v4236_v21 = vmul.f32 %v9770_v27, %v9535_v24 }
 0x486   : > { %11486 = vst [vmem:[#allocation33_spill] sm:$0xff] %v10016_v30  ;;  %v4900_v35 = vor.u32 %v4899_v16, %v4898_v42  ;;  %v10023_v61 = vpack.c.bf16 %v4238_v51, %v4238_v51  ;;  %v4510_v4 = vrot.slane %v4508_v55, 7  ;;  %v10039_v63 = vrot.slane %v4508_v55, 4  ;;  %v4677_v51 = vld [vmem:[#allocation4 + $0x48] sm:$0xf] }
 0x487   : > { %v10029_v60 = vsel %vm8039_vm13, %v4910_v15, %v10004_v36  ;;  %v10037_v45 = vsel %vm7942_vm10, %v4522_v22, %v4529_v7  ;;  %v4682_v32 = vsel %vm9708_vm2, %v9990_v23, %v4681_v1  ;;  %v11489_v42 = vor.u32 %v9776_v37, %v9774_v6 }
 0x488   : > { %5603 = vrot.lane.b32.xlu1 %v9725_v54, %s7232_s22  ;;  %4725 = vrot.lane.b32.xlu0 %v9716_v20, %s7234_s20  ;;  %11487 = vst [vmem:[#allocation34_spill] sm:$0xff] %v10023_v61  ;;  %v4901_v56 = vrot.slane %v4900_v35, 4  ;;  %11488 = vst [vmem:[#allocation35_spill] sm:$0xff] %v10039_v63  ;;  %v4506_v24 = vrot.slane %v4502_v53, 4  ;;  %v4513_v27 = vor.u32 %v4511_v46, %v4510_v4  ;;  %v4550_v22 = vrot.slane %v4548_v8, 7  ;;  %v11492_v53 = vld [vmem:[#allocation6_spill] sm:$0xff] }
 0x489   : > { %v10047_v16 = vrot.slane %v11489_v42, 4  ;;  %4684 = vst.msk [vmem:[#allocation4 + $0x54] sm:$0xf] %vm4642_vm3, %v10037_v45  ;;  %4683 = vst [vmem:[#allocation4 + $0x50] sm:$0xf] %v4682_v32  ;;  %7206 = vrcp.f32 %v4150_v17  ;;  %v4551_v1 = vshll.u32 %v10002_v57, 16  ;;  %v10067_v17 = vpack.c.bf16 %v4236_v21, %v4236_v21 }
 0x48a   : > { %v10058_v37 = vsel %vm8039_vm13, %v4901_v56, %v10014_v40  ;;  %v10065_v55 = vsel %vm7942_vm10, %v4506_v24, %v4513_v27  ;;  %v4241_v46 = vmul.f32 %v9811_v58, %v11492_v53  ;;  %7208 = vrcp.f32 %v4148_v2  ;;  %v11496_v42 = vld [vmem:[#allocation7_spill] sm:$0xff]  ;;  %v11498_v40 = vld [vmem:[#allocation8_spill] sm:$0xff] }
 0x48b   : > { %11490 = vst [vmem:[#allocation36_spill] sm:$0xff] %v10065_v55  ;;  %11491 = vst [vmem:[#allocation37_spill] sm:$0xff] %v10067_v17  ;;  %v4535_v15 = vshll.u32 %v10010_v3, 16  ;;  %v4678_v7 = vsel %vm9708_vm2, %v10008_v25, %v4677_v51  ;;  %v4559_v35 = vshll.u32 %v10023_v61, 16  ;;  %v10079_v4 = vor.u32 %v4551_v1, %v4550_v22 }
 0x48c   : > { %5318 = vrot.lane.b32.xlu1 %v9716_v20, %s7223_s23  ;;  %5143 = vrot.lane.b32.xlu0 %v9725_v54, %s7236_s12  ;;  %v4532_v54 = vshrl.u32 %v10010_v3, 16  ;;  %4680 = vst.msk [vmem:[#allocation4 + $0x4c] sm:$0xf] %vm4642_vm3, %v10065_v55  ;;  %4679 = vst [vmem:[#allocation4 + $0x48] sm:$0xf] %v4678_v7  ;;  %v4925_v56 = vrot.slane %v4548_v8, 4  ;;  %v10085_v2 = vpack.c.bf16 %v4241_v46, %v4241_v46 }
 0x48d   : > { %11493 = vst [vmem:[#allocation6_spill] sm:$0xff] %v10079_v4  ;;  %v4926_v58 = vrot.slane %v4551_v1, 5  ;;  %v10087_v32 = vrot.slane %v4559_v35, 5  ;;  %v4239_v24 = vmul.f32 %v9835_v0, %v11496_v42  ;;  %v4556_v27 = vshrl.u32 %v10023_v61, 16  ;;  %v4689_v46 = vld [vmem:[#allocation4 + $0x60] sm:$0xf] }
 0x48e   : > { %v4534_v21 = vrot.slane %v4532_v54, 7  ;;  %11494 = vst [vmem:[#allocation38_spill] sm:$0xff] %v10085_v2  ;;  %v4554_v53 = vrot.slane %v4550_v22, 4  ;;  %v4543_v8 = vshll.u32 %v10067_v17, 16  ;;  %v4916_v1 = vrot.slane %v4532_v54, 4  ;;  %v11502_v22 = vld [vmem:[#allocation12_spill] sm:$0xff] }
 0x48f   : > { %11495 = vst [vmem:[#allocation39_spill] sm:$0xff] %v10087_v32  ;;  %v4927_v51 = vor.u32 %v4926_v58, %v4925_v56  ;;  %v4558_v6 = vrot.slane %v4556_v27, 7  ;;  %v4917_v50 = vrot.slane %v4535_v15, 5  ;;  %v10097_v55 = vpack.c.bf16 %v4239_v24, %v4239_v24  ;;  %v11505_v24 = vld [vmem:[#allocation9_spill] sm:$0xff] }
 0x490   : > { %5881 = vrot.lane.b32.xlu1 %v9802_v52, %s7225_s15  ;;  %5768 = vrot.lane.b32.xlu0 %v9716_v20, %s7235_s19  ;;  %v10093_v7 = vor.u32 %v4535_v15, %v4534_v21  ;;  %v4242_v20 = vmul.f32 %v9851_v47, %v11498_v40  ;;  %v10099_v36 = vrot.slane %v4543_v8, 5  ;;  %v10101_v0 = vrot.slane %v4556_v27, 4 }
 0x491   : > { %v4928_v63 = vrot.slane %v4927_v51, 4  ;;  %11499 = vst [vmem:[#allocation8_spill] sm:$0xff] %v10097_v55  ;;  %v4561_v54 = vor.u32 %v4559_v35, %v4558_v6  ;;  %v4918_v56 = vor.u32 %v4917_v50, %v4916_v1  ;;  %v4540_v47 = vshrl.u32 %v10067_v17, 16 }
 0x492   : > { %11497 = vst [vmem:[#allocation7_spill] sm:$0xff] %v10093_v7  ;;  %11500 = vst [vmem:[#allocation40_spill] sm:$0xff] %v10099_v36  ;;  %v10107_v15 = vpack.c.bf16 %v4242_v20, %v4242_v20  ;;  %v4690_v42 = vsel %vm9708_vm2, %v10079_v4, %v4689_v46  ;;  %v4240_v6 = vmul.f32 %v9880_v12, %v11505_v24  ;;  %v4538_v1 = vrot.slane %v4534_v21, 4  ;;  %v11508_v24 = vld [vmem:[#allocation13_spill] sm:$0xff] }
 0x493   : > { %11501 = vst [vmem:[#allocation41_spill] sm:$0xff] %v10101_v0  ;;  %v10113_v40 = vsel %vm8039_vm13, %v4928_v63, %v10087_v32  ;;  %v10124_v50 = vsel %vm7942_vm10, %v4554_v53, %v4561_v54  ;;  %v4919_v35 = vrot.slane %v4918_v56, 4  ;;  %v4542_v27 = vrot.slane %v4540_v47, 7  ;;  %4691 = vst [vmem:[#allocation4 + $0x60] sm:$0xf] %v4690_v42  ;;  %v11511_v32 = vld [vmem:[#allocation14_spill] sm:$0xff] }
 0x494   : > { %5764 = vrot.lane.b32.xlu1 %v11502_v22, %s7235_s19  ;;  %4973 = vrot.lane.b32.xlu0 %v9802_v52, %s7231_s21  ;;  %11503 = vst [vmem:[#allocation12_spill] sm:$0xff] %v10107_v15  ;;  %11504 = vst [vmem:[#allocation42_spill] sm:$0xff] %v10113_v40  ;;  %v10126_v51 = vrot.slane %v4540_v47, 4  ;;  %v4685_v63 = vld [vmem:[#allocation4 + $0x58] sm:$0xf]  ;;  %v10130_v20 = vpack.c.bf16 %v4240_v6, %v4240_v6  ;;  %v4580_v46 = vshrl.u32 %v10085_v2, 16 }
 0x495   : > { %11506 = vst [vmem:[#allocation9_spill] sm:$0xff] %v10124_v50  ;;  %4692 = vst.msk [vmem:[#allocation4 + $0x64] sm:$0xf] %vm4642_vm3, %v10124_v50  ;;  %v4583_v12 = vshll.u32 %v10085_v2, 16  ;;  %v10141_v53 = vsel %vm8039_vm13, %v4919_v35, %v10099_v36  ;;  %v4545_v54 = vor.u32 %v4543_v8, %v4542_v27  ;;  %v4564_v56 = vshrl.u32 %v10097_v55, 16  ;;  %v11510_v8 = vld [vmem:[#allocation5_spill] sm:$0xff] }
 0x496   : > { %11507 = vst [vmem:[#allocation43_spill] sm:$0xff] %v10126_v51  ;;  %11509 = vst [vmem:[#allocation13_spill] sm:$0xff] %v10141_v53  ;;  %v7207_v47 = vpop.eup %7206  ;;  %v4582_v42 = vrot.slane %v4580_v46, 7  ;;  %v4567_v6 = vshll.u32 %v10097_v55, 16  ;;  %v4686_v58 = vsel %vm9708_vm2, %v10093_v7, %v4685_v63  ;;  %v7211_v35 = vld [vmem:[%s11339_s6] ss:$0 sm:$0xff] }
 0x497   : > { %v3805_v27 = vadd.f32 %v7211_v35, %v11510_v8  ;;  %v11512_v21 = vld [vmem:[#allocation17_spill] sm:$0xff]  ;;  %v10159_v51 = vsel %vm7942_vm10, %v4538_v1, %v4545_v54  ;;  %4687 = vst [vmem:[#allocation4 + $0x58] sm:$0xf] %v4686_v58  ;;  %v4943_v0 = vrot.slane %v4580_v46, 4  ;;  %v7209_v53 = vpop.eup %7208  ;;  %v11514_v50 = vld [vmem:[#allocation15_spill] sm:$0xff]  ;;  %v4566_v55 = vrot.slane %v4564_v56, 7 }
 0x498   : > { %5149 = vrot.lane.b32.xlu1 %v11508_v24, %s7236_s12  ;;  %5448 = vrot.lane.b32.xlu0 %v9802_v52, %s7237_s24  ;;  %v4591_v52 = vshll.u32 %v10107_v15, 16  ;;  %v4860_v36 = vor.u32 %v11512_v21, %v11511_v32  ;;  %11513 = vst [vmem:[#allocation5_spill] sm:$0xff] %v10159_v51  ;;  %v4849_v63 = vsel %vm8039_vm13, %v10047_v16, %v11514_v50  ;;  %4688 = vst.msk [vmem:[#allocation4 + $0x5c] sm:$0xf] %vm4642_vm3, %v10159_v51  ;;  %v11515_v8 = vld [vmem:[#allocation10_spill] sm:$0xff]  ;;  %v11516_v2 = vld [vmem:[#allocation11_spill] sm:$0xff] }
 0x499   : > { %v4944_v35 = vrot.slane %v4583_v12, 5  ;;  %v4243_v32 = vmul.f32 %v9996_v28, %v11515_v8  ;;  %v10172_v58 = vor.u32 %v4583_v12, %v4582_v42  ;;  %v4588_v46 = vshrl.u32 %v10107_v15, 16  ;;  %v4697_v15 = vld [vmem:[#allocation4 + $0x70] sm:$0xf] }
 0x49a   : > { %v10174_v1 = vrot.slane %v4591_v52, 5  ;;  %v4575_v16 = vshll.u32 %v10130_v20, 16  ;;  %v4934_v51 = vrot.slane %v4564_v56, 4  ;;  %v4935_v40 = vrot.slane %v4567_v6, 5 }
 0x49b   : > { %v4945_v54 = vor.u32 %v4944_v35, %v4943_v0  ;;  %v10178_v21 = vpack.c.bf16 %v4243_v32, %v4243_v32  ;;  %v4586_v7 = vrot.slane %v4582_v42, 4  ;;  %v4590_v28 = vrot.slane %v4588_v46, 7 }
 0x49c   : > { %5444 = vrot.lane.b32.xlu1 %v4849_v63, %s7237_s24  ;;  %4721 = vrot.lane.b32.xlu0 %v11502_v22, %s7234_s20  ;;  %v10180_v8 = vrot.slane %v4588_v46, 4  ;;  %v4246_v4 = vmul.f32 %v7207_v47, %v11516_v2  ;;  %v4936_v12 = vor.u32 %v4935_v40, %v4934_v51  ;;  %v10183_v30 = vrot.slane %v4575_v16, 5  ;;  %v11521_v46 = vld [vmem:[#allocation19_spill] sm:$0xff] }
 0x49d   : > { %v4946_v17 = vrot.slane %v4945_v54, 4  ;;  %v4572_v61 = vshrl.u32 %v10130_v20, 16  ;;  %v4593_v0 = vor.u32 %v4591_v52, %v4590_v28  ;;  %v4596_v2 = vshrl.u32 %v10178_v21, 16 }
 0x49e   : > { %11517 = vst [vmem:[#allocation14_spill] sm:$0xff] %v10183_v30  ;;  %v10191_v42 = vpack.c.bf16 %v4246_v4, %v4246_v4  ;;  %v4937_v51 = vrot.slane %v4936_v12, 4  ;;  %v4244_v35 = vmul.f32 %v7209_v53, %v3805_v27  ;;  %v10199_v32 = vor.u32 %v4567_v6, %v4566_v55 }
 0x49f   : > { %v10197_v40 = vsel %vm8039_vm13, %v4946_v17, %v10174_v1  ;;  %v4574_v47 = vrot.slane %v4572_v61, 7  ;;  %v10205_v52 = vrot.slane %v4572_v61, 4  ;;  %v4698_v4 = vsel %vm9708_vm2, %v10172_v58, %v4697_v15 }
 0x4a0   : > { %5877 = vrot.lane.b32.xlu1 %v4849_v63, %s7225_s15  ;;  %5314 = vrot.lane.b32.xlu0 %v11502_v22, %s7223_s23  ;;  %11518 = vst [vmem:[#allocation17_spill] sm:$0xff] %v10191_v42  ;;  %v10203_v22 = vsel %vm7942_vm10, %v4586_v7, %v4593_v0  ;;  %v10215_v17 = vsel %vm8039_vm13, %v4937_v51, %v10183_v30  ;;  %v4570_v53 = vrot.slane %v4566_v55, 4  ;;  %4699 = vst [vmem:[#allocation4 + $0x70] sm:$0xf] %v4698_v4 }
 0x4a1   : > { %11519 = vst [vmem:[#allocation15_spill] sm:$0xff] %v10205_v52  ;;  %4700 = vst.msk [vmem:[#allocation4 + $0x74] sm:$0xf] %vm4642_vm3, %v10203_v22  ;;  %v4577_v6 = vor.u32 %v4575_v16, %v4574_v47  ;;  %v10217_v27 = vpack.c.bf16 %v4244_v35, %v4244_v35  ;;  %v4599_v7 = vshll.u32 %v10178_v21, 16  ;;  %v4952_v15 = vrot.slane %v4596_v2, 4 }
 0x4a2   : > { %v10227_v54 = vpack.c.bf16 %v11521_v46, %v11521_v46  ;;  %v4598_v16 = vrot.slane %v4596_v2, 7  ;;  %v11406_v12 = vshrl.u32 %v10191_v42, 16  ;;  %v4861_v0 = vrot.slane %v4860_v36, 4 }
 0x4a3   : > { %11520 = vst [vmem:[#allocation10_spill] sm:$0xff] %v10217_v27  ;;  %v10231_v55 = vsel %vm7942_vm10, %v4570_v53, %v4577_v6  ;;  %v4607_v28 = vshll.u32 %v10217_v27, 16  ;;  %v4953_v51 = vrot.slane %v4599_v7, 5  ;;  %v5131_v2 = vshll.u32 %v10191_v42, 16  ;;  %v4701_v42 = vld [vmem:[#allocation4 + $0x78] sm:$0xf] }
 0x4a4   : > { %4727 = vrot.lane.b32.xlu1 %v9751_v19, %s7234_s20  ;;  %4969 = vrot.lane.b32.xlu0 %v4849_v63, %s7231_s21  ;;  %11522 = vst [vmem:[#allocation11_spill] sm:$0xff] %v10231_v55  ;;  %v4693_v63 = vld [vmem:[#allocation4 + $0x68] sm:$0xf]  ;;  %4696 = vst.msk [vmem:[#allocation4 + $0x6c] sm:$0xf] %vm4642_vm3, %v10231_v55  ;;  %v5120_v47 = vshrl.u32 %v10227_v54, 16  ;;  %v10253_v56 = vor.u32 %v4599_v7, %v4598_v16 }
 0x4a5   : > { %v10238_v35 = vrot.slane %v4607_v28, 5  ;;  %v5130_v4 = vrot.slane %v11406_v12, 7  ;;  %v4604_v53 = vshrl.u32 %v10217_v27, 16  ;;  %v4954_v36 = vor.u32 %v4953_v51, %v4952_v15 }
 0x4a6   : > { %v10247_v6 = vrot.slane %v5120_v47, 7  ;;  %v4694_v61 = vsel %vm9708_vm2, %v10199_v32, %v4693_v63  ;;  %v4602_v51 = vrot.slane %v4598_v16, 4  ;;  %v5427_v63 = vrot.slane %v5120_v47, 4 }
 0x4a7   : > { %v5133_v12 = vor.u32 %v5131_v2, %v5130_v4  ;;  %v4606_v30 = vrot.slane %v4604_v53, 7  ;;  %4695 = vst [vmem:[#allocation4 + $0x68] sm:$0xf] %v4694_v61  ;;  %v10255_v52 = vrot.slane %v4604_v53, 4  ;;  %v11523_v4 = vshll.u32 %v10227_v54, 16 }
 0x4a8   : > { %4975 = vrot.lane.b32.xlu1 %v4861_v0, %s7231_s21  ;;  %5609 = vrot.lane.b32.xlu0 %v11508_v24, %s7232_s22  ;;  %v4955_v24 = vrot.slane %v4954_v36, 4  ;;  %v5126_v15 = vrot.slane %v10247_v6, 4 }
 0x4a9   : > { %v4609_v46 = vor.u32 %v4607_v28, %v4606_v30  ;;  %v5428_v61 = vrot.slane %v11523_v4, 5  ;;  %v10282_v28 = vrot.slane %v5131_v2, 5 }
 0x4aa   : > { %v10257_v27 = vpop.permute.xlu1 %5302  ;;  %v4710_v55 = vpop.permute.xlu0 %4709  ;;  %v10272_v16 = vsel %vm8039_vm13, %v4955_v24, %v10238_v35  ;;  %v10276_v30 = vsel %vm7942_vm10, %v5126_v15, %v5133_v12 }
 0x4ab   : > { %4798 = vst.msk [vmem:[#allocation4 + $0x10] sm:$0xf] %vm4795_vm5, %v4710_v55  ;;  %v10280_v55 = vsel %vm7942_vm10, %v4602_v51, %v4609_v46  ;;  %v5429_v47 = vor.u32 %v5428_v61, %v5427_v63  ;;  %v11525_v46 = vshrl.u32 %v9680_v33, 16  ;;  %vm6207_vm10 = vcmask 1041408  }
 0x4ac   : > { %5770 = vrot.lane.b32.xlu1 %v9751_v19, %s7235_s19  ;;  %5320 = vrot.lane.b32.xlu0 %v9751_v19, %s7223_s23  ;;  %v4702_v19 = vsel %vm9708_vm2, %v10253_v56, %v4701_v42  ;;  %4704 = vst.msk [vmem:[#allocation4 + $0x7c] sm:$0xf] %vm4642_vm3, %v10280_v55  ;;  %vm5842_vm3 = vcmask 257248   ;;  %vm11542_vm2 = vmmov %vm11533_vm7  ;;  %vm6158_vm7 = vcmask 293888  }
 0x4ad   : > { %4703 = vst [vmem:[#allocation4 + $0x78] sm:$0xf] %v4702_v19  ;;  %v5430_v12 = vrot.slane %v5429_v47, 4  ;;  %v4850_v24 = vrot.slane %v11525_v46, 4 }
 0x4ae   : > { %v10287_v53 = vpop.permute.xlu0 %5752  ;;  %v4712_v36 = vpop.permute.xlu1 %4711 }
 0x4af   : > { %4799 = vst.msk [vmem:[#allocation4 + $0x14] sm:$0xf] %vm4795_vm5, %v4712_v36  ;;  %v10298_v9 = vsel %vm8039_vm13, %v5430_v12, %v10282_v28  ;;  %v4851_v63 = vor.u32 %v4850_v24, %v11514_v50  ;;  %v7033_v50 = vld [vmem:[%s11342_s9 + $0x8] sm:$0xff]   ;;  %v7034_v36 = vld [vmem:[%s11342_s9] sm:$0xff]   ;;  %vm5231_vm13 = vcmask 126048  }
 0x4b0   : > { %5145 = vrot.lane.b32.xlu1 %v11524_v38, %s7236_s12  ;;  %5450 = vrot.lane.b32.xlu0 %v4861_v0, %s7237_s24  ;;  %vm10351_vm8 = vmand %vm5231_vm13, %vm11526_vm6 }
 0x4b1   : > { %v4852_v4 = vrot.slane %v4851_v63, 4  ;;  %vm11548_vm6 = vmmov %vm11542_vm2 }
 0x4b2   : > { %v10300_v42 = vpop.permute.xlu1 %5304  ;;  %v4706_v2 = vpop.permute.xlu0 %4705  ;;  %vm10495_vm1 = vmand %vm5963_vm4, %vm11548_vm6 }
 0x4b3   : > { %4796 = vst.msk [vmem:[#allocation4 + $0x8] sm:$0xf] %vm4795_vm5, %v4706_v2 }
 0x4b4   : > { %5605 = vrot.lane.b32.xlu1 %v11524_v38, %s7232_s22  ;;  %5883 = vrot.lane.b32.xlu0 %v4861_v0, %s7225_s15  ;;  %v7032_v0 = vld [vmem:[%s11342_s9 + $0x10] ss:$0 sps:$4 sm:$0x33]  }
 0x4b5   : > { %6948 = vmatprep.subr.msk.bf16.mxu0 %vm6207_vm10, %v7032_v0  ;;  %v6209_v61 = vsel %vm6207_vm10, %v7032_v0, 0  ;;  %vm10461_vm10 = vmand %vm5532_vm11, %vm11542_vm2  ;;  %vm6372_vm2 = vcmask 23552  }
 0x4b6   : > { %v4708_v15 = vpop.permute.xlu1 %4707  ;;  %v5299_v51 = vpop.permute.xlu0 %5298  ;;  %6898 = vmatpush3.bf16.msra.mxu0 %v6209_v61 }
 0x4b7   : > { %4797 = vst.msk [vmem:[#allocation4 + $0xc] sm:$0xf] %vm4795_vm5, %v4708_v15  ;;  %6899 = vmatprep.subr.bf16.mxu0 %v7033_v50 }
 0x4b8   : > { %4723 = vrot.lane.b32.xlu1 %v9797_v62, %s7234_s20  ;;  %5155 = vrot.lane.b32.xlu0 %v9815_v48, %s7236_s12 }
 0x4ba   : > { %v10314_v43 = vpop.permute.xlu1 %5599  ;;  %v10316_v33 = vpop.permute.xlu0 %5754  ;;  %6900 = vmatpush3.bf16.msra.mxu0 %v7033_v50  ;;  %v11529_v50 = vld [vmem:[#allocation20_spill] sm:$0xff] }
 0x4bb   : > { %6901 = vmatprep.subr.bf16.mxu0 %v7034_v36 }
 0x4bc   : > { %4971 = vrot.lane.b32.xlu1 %v4852_v4, %s7231_s21  ;;  %5446 = vrot.lane.b32.xlu0 %v4852_v4, %s7237_s24 }
 0x4be   : > { %v10326_v47 = vpop.permute.xlu1 %5310  ;;  %v10328_v19 = vpop.permute.xlu0 %5139  ;;  %6902 = vmatpush3.bf16.msra.mxu0 %v7034_v36 }
 0x4c0   : > { %5316 = vrot.lane.b32.xlu1 %v9797_v62, %s7223_s23  ;;  %5766 = vrot.lane.b32.xlu0 %v9797_v62, %s7235_s19 }
 0x4c2   : > { %v10337_v12 = vpop.permute.xlu1 %5440  ;;  %v10339_v38 = vpop.permute.xlu0 %5300 }
 0x4c4   : > { %5615 = vrot.lane.b32.xlu1 %v9815_v48, %s7232_s22  ;;  %5879 = vrot.lane.b32.xlu0 %v4852_v4, %s7225_s15  ;;  %v5233_v48 = vld [vmem:[#allocation4] sm:$0xf] }
 0x4c6   : > { %v5874_v2 = vpop.permute.xlu1 %5873  ;;  %v4718_v46 = vpop.permute.xlu0 %4717 }
 0x4c7   : > { %4802 = vst.msk [vmem:[#allocation4 + $0x20] sm:$0xf] %vm4795_vm5, %v4718_v46 }
 0x4c8   : > { %5611 = vrot.lane.b32.xlu1 %v9838_v10, %s7232_s22  ;;  %4733 = vrot.lane.b32.xlu0 %v9823_v34, %s7234_s20 }
 0x4ca   : > { %v10355_v24 = vpop.permute.xlu1 %5756  ;;  %v5136_v15 = vpop.permute.xlu0 %5135 }
 0x4cb   : > { %v5234_v63 = vsel %vm10351_vm8, %v5136_v15, %v5233_v48  ;;  %v5059_v15 = vld [vmem:[#allocation4 + $0x14] sm:$0xf] }
 0x4cc   : > { %5235 = vst [vmem:[#allocation4] sm:$0xf] %v5234_v63  ;;  %5326 = vrot.lane.b32.xlu1 %v9823_v34, %s7223_s23  ;;  %5151 = vrot.lane.b32.xlu0 %v9838_v10, %s7236_s12 }
 0x4cd   : > { %5395 = vst.msk [vmem:[#allocation4] sm:$0xf] %vm5394_vm9, %v5299_v51 }
 0x4ce   : > { %v10364_v4 = vpop.permute.xlu1 %5141  ;;  %v10366_v0 = vpop.permute.xlu0 %5760 }
 0x4d0   : > { %5889 = vrot.lane.b32.xlu1 %v11529_v50, %s7225_s15  ;;  %5776 = vrot.lane.b32.xlu0 %v9823_v34, %s7235_s19 }
 0x4d2   : > { %v5437_v61 = vpop.permute.xlu1 %5436  ;;  %v4966_v36 = vpop.permute.xlu0 %4965 }
 0x4d3   : > { %5533 = vst.msk [vmem:[#allocation4] sm:$0xf] %vm5532_vm11, %v5437_v61 }
 0x4d4   : > { %5058 = vst.msk [vmem:[#allocation4 + $0x10] sm:$0xf] %vm5051_vm12, %v4966_v36  ;;  %5772 = vrot.lane.b32.xlu1 %v9847_v41, %s7235_s19  ;;  %4981 = vrot.lane.b32.xlu0 %v11529_v50, %s7231_s21 }
 0x4d6   : > { %v4720_v10 = vpop.permute.xlu1 %4719  ;;  %v4714_v51 = vpop.permute.xlu0 %4713 }
 0x4d7   : > { %4803 = vst.msk [vmem:[#allocation4 + $0x24] sm:$0xf] %vm4795_vm5, %v4720_v10  ;;  %4800 = vst.msk [vmem:[#allocation4 + $0x18] sm:$0xf] %vm4795_vm5, %v4714_v51  ;;  %v11536_v10 = vld [vmem:[#allocation25_spill] sm:$0xff] }
 0x4d8   : > { %5157 = vrot.lane.b32.xlu1 %v9869_v18, %s7236_s12  ;;  %5456 = vrot.lane.b32.xlu0 %v11529_v50, %s7237_s24 }
 0x4da   : > { %v5691_v48 = vld [vmem:[#allocation4] sm:$0xf]  ;;  %v4968_v63 = vpop.permute.xlu1 %4967  ;;  %v10396_v61 = vpop.permute.xlu0 %5306 }
 0x4db   : > { %v5692_v36 = vsel %vm10380_vm15, %v10314_v43, %v5691_v48  ;;  %v5060_v50 = vsel %vm10392_vm0, %v4968_v63, %v5059_v15  ;;  %v11538_v63 = vld [vmem:[#allocation21_spill] sm:$0xff] }
 0x4dc   : > { %5693 = vst [vmem:[#allocation4] sm:$0xf] %v5692_v36  ;;  %5061 = vst [vmem:[#allocation4 + $0x14] sm:$0xf] %v5060_v50  ;;  %5452 = vrot.lane.b32.xlu1 %v11536_v10, %s7237_s24  ;;  %4729 = vrot.lane.b32.xlu0 %v9847_v41, %s7234_s20  ;;  %v11539_v36 = vld [vmem:[#allocation18_spill] sm:$0xff] }
 0x4dd   : > { %5843 = vst.msk [vmem:[#allocation4] sm:$0xf] %vm5842_vm3, %v10287_v53  ;;  %v11537_v53 = vld [vmem:[#allocation23_spill] sm:$0xff] }
 0x4de   : > { %5964 = vst.msk [vmem:[#allocation4] sm:$0xf] %vm5963_vm4, %v5874_v2  ;;  %v10410_v51 = vpop.permute.xlu1 %5762  ;;  %v4962_v7 = vpop.permute.xlu0 %4961 }
 0x4df   : > { %5052 = vst.msk [vmem:[#allocation4 + $0x8] sm:$0xf] %vm5051_vm12, %v4962_v7 }
 0x4e0   : > { %5885 = vrot.lane.b32.xlu1 %v11536_v10, %s7225_s15  ;;  %5322 = vrot.lane.b32.xlu0 %v9847_v41, %s7223_s23  ;;  %v11540_v41 = vor.u32 %v11538_v63, %v11539_v36 }
 0x4e2   : > { %v5138_v43 = vpop.permute.xlu1 %5137  ;;  %v5602_v48 = vpop.permute.xlu0 %5601  ;;  %v4879_v50 = vrot.slane %v11540_v41, 4 }
 0x4e3   : > { %5237 = vst.msk [vmem:[#allocation4 + $0x4] sm:$0xf] %vm5231_vm13, %v5138_v43 }
 0x4e4   : > { %5396 = vst.msk [vmem:[#allocation4 + $0x4] sm:$0xf] %vm5394_vm9, %v10339_v38  ;;  %4735 = vrot.lane.b32.xlu1 %v11537_v53, %s7234_s20  ;;  %4977 = vrot.lane.b32.xlu0 %v11536_v10, %s7231_s21  ;;  %v5055_v10 = vld [vmem:[#allocation4 + $0xc] sm:$0xf] }
 0x4e6   : > { %v5238_v7 = vld [vmem:[#allocation4 + $0x8] sm:$0xf]  ;;  %v4716_v2 = vpop.permute.xlu1 %4715  ;;  %v10424_v15 = vpop.permute.xlu0 %5312 }
 0x4e7   : > { %v5239_v43 = vsel %vm10351_vm8, %v10328_v19, %v5238_v7  ;;  %4801 = vst.msk [vmem:[#allocation4 + $0x1c] sm:$0xf] %vm4795_vm5, %v4716_v2 }
 0x4e8   : > { %5240 = vst [vmem:[#allocation4 + $0x8] sm:$0xf] %v5239_v43  ;;  %4983 = vrot.lane.b32.xlu1 %v4879_v50, %s7231_s21  ;;  %5617 = vrot.lane.b32.xlu0 %v9869_v18, %s7232_s22 }
 0x4e9   : > { %5397 = vst.msk [vmem:[#allocation4 + $0x8] sm:$0xf] %vm5394_vm9, %v10257_v27 }
 0x4ea   : > { %5539 = vst.msk [vmem:[#allocation4 + $0x8] sm:$0xf] %vm5532_vm11, %v10337_v12  ;;  %v4964_v38 = vpop.permute.xlu1 %4963  ;;  %v5443_v63 = vpop.permute.xlu0 %5442  ;;  %v11541_v12 = vld [vmem:[#allocation26_spill] sm:$0xff] }
 0x4eb   : > { %v5056_v19 = vsel %vm10392_vm0, %v4964_v38, %v5055_v10  ;;  %v5536_v41 = vld [vmem:[#allocation4 + $0x4] sm:$0xf] }
 0x4ec   : > { %5057 = vst [vmem:[#allocation4 + $0xc] sm:$0xf] %v5056_v19  ;;  %5778 = vrot.lane.b32.xlu1 %v11537_v53, %s7235_s19  ;;  %5328 = vrot.lane.b32.xlu0 %v11537_v53, %s7223_s23  ;;  %v11545_v19 = vld [vmem:[#allocation24_spill] sm:$0xff] }
 0x4ed   : > { %5241 = vst.msk [vmem:[#allocation4 + $0xc] sm:$0xf] %vm5231_vm13, %v10364_v4 }
 0x4ee   : > { %5398 = vst.msk [vmem:[#allocation4 + $0xc] sm:$0xf] %vm5394_vm9, %v10300_v42  ;;  %v10450_v18 = vpop.permute.xlu1 %5308  ;;  %v5876_v27 = vpop.permute.xlu0 %5875 }
 0x4f0   : > { %5153 = vrot.lane.b32.xlu1 %v11541_v12, %s7236_s12  ;;  %5458 = vrot.lane.b32.xlu0 %v4879_v50, %s7237_s24 }
 0x4f1   : > { %v5696_v10 = vld [vmem:[#allocation4 + $0x8] sm:$0xf] }
 0x4f2   : > { %v10455_v7 = vpop.permute.xlu1 %5758  ;;  %v10457_v2 = vpop.permute.xlu0 %5147 }
 0x4f4   : > { %5613 = vrot.lane.b32.xlu1 %v11541_v12, %s7232_s22  ;;  %5891 = vrot.lane.b32.xlu0 %v4879_v50, %s7225_s15  ;;  %v11546_v12 = vld [vmem:[#allocation22_spill] sm:$0xff] }
 0x4f5   : > { %v5540_v42 = vld [vmem:[#allocation4 + $0xc] sm:$0xf] }
 0x4f6   : > { %v5541_v4 = vsel %vm10461_vm10, %v5443_v63, %v5540_v42  ;;  %v10470_v36 = vpop.permute.xlu1 %5607  ;;  %v5439_v43 = vpop.permute.xlu0 %5438  ;;  %v11547_v42 = vor.u32 %v11545_v19, %v11546_v12 }
 0x4f7   : > { %5542 = vst [vmem:[#allocation4 + $0xc] sm:$0xf] %v5541_v4  ;;  %v5537_v38 = vsel %vm10461_vm10, %v5439_v43, %v5536_v41 }
 0x4f8   : > { %5538 = vst [vmem:[#allocation4 + $0x4] sm:$0xf] %v5537_v38  ;;  %4731 = vrot.lane.b32.xlu1 %v9891_v13, %s7234_s20  ;;  %5163 = vrot.lane.b32.xlu0 %v9910_v31, %s7236_s12  ;;  %v4870_v4 = vrot.slane %v11547_v42, 4 }
 0x4f9   : > { %5695 = vst.msk [vmem:[#allocation4 + $0x4] sm:$0xf] %vm5689_vm14, %v5602_v48  ;;  %v5242_v48 = vld [vmem:[#allocation4 + $0x10] sm:$0xf] }
 0x4fa   : > { %5844 = vst.msk [vmem:[#allocation4 + $0x4] sm:$0xf] %vm5842_vm3, %v10316_v33  ;;  %v5604_v50 = vpop.permute.xlu1 %5603  ;;  %v4726_v63 = vpop.permute.xlu0 %4725 }
 0x4fb   : > { %v5697_v41 = vsel %vm10380_vm15, %v5604_v50, %v5696_v10  ;;  %4806 = vst.msk [vmem:[#allocation4 + $0x30] sm:$0xf] %vm4795_vm5, %v4726_v63 }
 0x4fc   : > { %5698 = vst [vmem:[#allocation4 + $0x8] sm:$0xf] %v5697_v41  ;;  %4979 = vrot.lane.b32.xlu1 %v4870_v4, %s7231_s21  ;;  %5454 = vrot.lane.b32.xlu0 %v4870_v4, %s7237_s24 }
 0x4fd   : > { %5845 = vst.msk [vmem:[#allocation4 + $0x8] sm:$0xf] %vm5842_vm3, %v10355_v24 }
 0x4fe   : > { %v10491_v33 = vpop.permute.xlu1 %5318  ;;  %v5144_v43 = vpop.permute.xlu0 %5143 }
 0x4ff   : > { %v5243_v50 = vsel %vm10351_vm8, %v5144_v43, %v5242_v48 }
 0x500   : > { %5244 = vst [vmem:[#allocation4 + $0x10] sm:$0xf] %v5243_v50  ;;  %5324 = vrot.lane.b32.xlu1 %v9891_v13, %s7223_s23  ;;  %5774 = vrot.lane.b32.xlu0 %v9891_v13, %s7235_s19 }
 0x501   : > { %v5967_v24 = vld [vmem:[#allocation4 + $0x4] sm:$0xf]  ;;  %5399 = vst.msk [vmem:[#allocation4 + $0x10] sm:$0xf] %vm5394_vm9, %v10396_v61 }
 0x502   : > { %v5968_v10 = vsel %vm10495_vm1, %v5876_v27, %v5967_v24  ;;  %v5882_v63 = vpop.permute.xlu1 %5881  ;;  %v10509_v19 = vpop.permute.xlu0 %5768 }
 0x503   : > { %5969 = vst [vmem:[#allocation4 + $0x4] sm:$0xf] %v5968_v10 }
 0x504   : > { %5623 = vrot.lane.b32.xlu1 %v9910_v31, %s7232_s22  ;;  %5887 = vrot.lane.b32.xlu0 %v4870_v4, %s7225_s15 }
 0x506   : > { %v10514_v12 = vpop.permute.xlu1 %5764  ;;  %v4974_v42 = vpop.permute.xlu0 %4973 }
 0x507   : > { %5066 = vst.msk [vmem:[#allocation4 + $0x20] sm:$0xf] %vm5051_vm12, %v4974_v42 }
 0x508   : > { %5619 = vrot.lane.b32.xlu1 %v9918_v11, %s7232_s22  ;;  %4741 = vrot.lane.b32.xlu0 %v9920_v14, %s7234_s20 }
 0x50a   : > { %v10521_v13 = vpop.permute.xlu1 %5149  ;;  %v5449_v61 = vpop.permute.xlu0 %5448  ;;  %v7031_v27 = vld [vmem:[#allocation4] sm:$0xff]  }
 0x50b   : > { %6903 = vmatprep.mubr.msk.bf16.mxu0 %vm6158_vm7, %v7031_v27 }
 0x50c   : > { %5334 = vrot.lane.b32.xlu1 %v9920_v14, %s7223_s23  ;;  %5159 = vrot.lane.b32.xlu0 %v9918_v11, %s7236_s12 }
 0x50e   : > { %v5445_v31 = vpop.permute.xlu1 %5444  ;;  %v4722_v4 = vpop.permute.xlu0 %4721 }
 0x50f   : > { %5543 = vst.msk [vmem:[#allocation4 + $0x10] sm:$0xf] %vm5532_vm11, %v5445_v31 }
 0x510   : > { %4804 = vst.msk [vmem:[#allocation4 + $0x28] sm:$0xf] %vm4795_vm5, %v4722_v4  ;;  %5897 = vrot.lane.b32.xlu1 %v9945_v29, %s7225_s15  ;;  %5784 = vrot.lane.b32.xlu0 %v9920_v14, %s7235_s19  ;;  %v5067_v14 = vld [vmem:[#allocation4 + $0x24] sm:$0xf] }
 0x512   : > { %v5878_v41 = vpop.permute.xlu1 %5877  ;;  %v10534_v48 = vpop.permute.xlu0 %5314 }
 0x513   : > { %5970 = vst.msk [vmem:[#allocation4 + $0x8] sm:$0xf] %vm5963_vm4, %v5878_v41  ;;  %v11551_v41 = vld [vmem:[#allocation27_spill] sm:$0xff] }
 0x514   : > { %5780 = vrot.lane.b32.xlu1 %v9930_v49, %s7235_s19  ;;  %4989 = vrot.lane.b32.xlu0 %v9945_v29, %s7231_s21 }
 0x516   : > { %v5700_v11 = vld [vmem:[#allocation4 + $0x10] sm:$0xf]  ;;  %v4728_v43 = vpop.permute.xlu1 %4727  ;;  %v4970_v50 = vpop.permute.xlu0 %4969 }
 0x517   : > { %v5701_v24 = vsel %vm10380_vm15, %v10470_v36, %v5700_v11  ;;  %4807 = vst.msk [vmem:[#allocation4 + $0x34] sm:$0xf] %vm4795_vm5, %v4728_v43 }
 0x518   : > { %5062 = vst.msk [vmem:[#allocation4 + $0x18] sm:$0xf] %vm5051_vm12, %v4970_v50  ;;  %5702 = vst [vmem:[#allocation4 + $0x10] sm:$0xf] %v5701_v24  ;;  %5165 = vrot.lane.b32.xlu1 %v9953_v59, %s7236_s12  ;;  %5464 = vrot.lane.b32.xlu0 %v9945_v29, %s7237_s24  ;;  %v11553_v24 = vld [vmem:[#allocation30_spill] sm:$0xff] }
 0x519   : > { %5847 = vst.msk [vmem:[#allocation4 + $0x10] sm:$0xf] %vm5842_vm3, %v10366_v0 }
 0x51a   : > { %5974 = vst.msk [vmem:[#allocation4 + $0x10] sm:$0xf] %vm5963_vm4, %v5882_v63  ;;  %v4976_v10 = vpop.permute.xlu1 %4975  ;;  %v5610_v42 = vpop.permute.xlu0 %5609 }
 0x51b   : > { %v5068_v36 = vsel %vm10392_vm0, %v4976_v10, %v5067_v14 }
 0x51c   : > { %5069 = vst [vmem:[#allocation4 + $0x24] sm:$0xf] %v5068_v36  ;;  %5460 = vrot.lane.b32.xlu1 %v9971_v44, %s7237_s24  ;;  %4737 = vrot.lane.b32.xlu0 %v9930_v49, %s7234_s20 }
 0x51e   : > { %v10559_v29 = vpop.permute.xlu1 %5770  ;;  %v10561_v31 = vpop.permute.xlu0 %5320 }
 0x51f   : > { %v5246_v27 = vld [vmem:[#allocation4 + $0x18] sm:$0xf] }
 0x520   : > { %v5247_v0 = vsel %vm10351_vm8, %v10457_v2, %v5246_v27  ;;  %5893 = vrot.lane.b32.xlu1 %v9971_v44, %s7225_s15  ;;  %5330 = vrot.lane.b32.xlu0 %v9930_v49, %s7223_s23  ;;  %v11555_v27 = vld [vmem:[#allocation28_spill] sm:$0xff] }
 0x521   : > { %5248 = vst [vmem:[#allocation4 + $0x18] sm:$0xf] %v5247_v0 }
 0x522   : > { %5401 = vst.msk [vmem:[#allocation4 + $0x18] sm:$0xf] %vm5394_vm9, %v10326_v47  ;;  %v5146_v63 = vpop.permute.xlu1 %5145  ;;  %v5451_v4 = vpop.permute.xlu0 %5450  ;;  %v11552_v47 = vor.u32 %v9928_v5, %v11551_v41  ;;  %v5063_v5 = vld [vmem:[#allocation4 + $0x1c] sm:$0xf] }
 0x523   : > { %5547 = vst.msk [vmem:[#allocation4 + $0x18] sm:$0xf] %vm5532_vm11, %v5449_v61 }
 0x524   : > { %5245 = vst.msk [vmem:[#allocation4 + $0x14] sm:$0xf] %vm5231_vm13, %v5146_v63  ;;  %4743 = vrot.lane.b32.xlu1 %v9939_v39, %s7234_s20  ;;  %4985 = vrot.lane.b32.xlu0 %v9971_v44, %s7231_s21  ;;  %v4897_v11 = vrot.slane %v11552_v47, 4 }
 0x525   : > { %5400 = vst.msk [vmem:[#allocation4 + $0x14] sm:$0xf] %vm5394_vm9, %v10450_v18 }
 0x526   : > { %v5606_v2 = vpop.permute.xlu1 %5605  ;;  %v5884_v49 = vpop.permute.xlu0 %5883 }
 0x527   : > { %5699 = vst.msk [vmem:[#allocation4 + $0xc] sm:$0xf] %vm5689_vm14, %v5606_v2 }
 0x528   : > { %5846 = vst.msk [vmem:[#allocation4 + $0xc] sm:$0xf] %vm5842_vm3, %v10455_v7  ;;  %4991 = vrot.lane.b32.xlu1 %v4897_v11, %s7231_s21  ;;  %5625 = vrot.lane.b32.xlu0 %v9953_v59, %s7232_s22 }
 0x52a   : > { %v4724_v18 = vpop.permute.xlu1 %4723  ;;  %v10589_v61 = vpop.permute.xlu0 %5155 }
 0x52b   : > { %4805 = vst.msk [vmem:[#allocation4 + $0x2c] sm:$0xf] %vm4795_vm5, %v4724_v18 }
 0x52c   : > { %5786 = vrot.lane.b32.xlu1 %v9939_v39, %s7235_s19  ;;  %5336 = vrot.lane.b32.xlu0 %v9939_v39, %s7223_s23  ;;  %v5544_v43 = vld [vmem:[#allocation4 + $0x14] sm:$0xf] }
 0x52e   : > { %v4972_v44 = vpop.permute.xlu1 %4971  ;;  %v5447_v7 = vpop.permute.xlu0 %5446 }
 0x52f   : > { %v5064_v50 = vsel %vm10392_vm0, %v4972_v44, %v5063_v5  ;;  %v5545_v59 = vsel %vm10461_vm10, %v5447_v7, %v5544_v43  ;;  %v5250_v43 = vld [vmem:[#allocation4 + $0x20] sm:$0xf] }
 0x530   : > { %5065 = vst [vmem:[#allocation4 + $0x1c] sm:$0xf] %v5064_v50  ;;  %5546 = vst [vmem:[#allocation4 + $0x14] sm:$0xf] %v5545_v59  ;;  %5161 = vrot.lane.b32.xlu1 %v11553_v24, %s7236_s12  ;;  %5466 = vrot.lane.b32.xlu0 %v4897_v11, %s7237_s24 }
 0x531   : > { %5249 = vst.msk [vmem:[#allocation4 + $0x1c] sm:$0xf] %vm5231_vm13, %v10521_v13  ;;  %v5971_v13 = vld [vmem:[#allocation4 + $0xc] sm:$0xf] }
 0x532   : > { %5703 = vst.msk [vmem:[#allocation4 + $0x14] sm:$0xf] %vm5689_vm14, %v5610_v42  ;;  %v10610_v39 = vpop.permute.xlu1 %5316  ;;  %v10612_v14 = vpop.permute.xlu0 %5766  ;;  %v11554_v42 = vld [vmem:[#allocation29_spill] sm:$0xff] }
 0x533   : > { %5402 = vst.msk [vmem:[#allocation4 + $0x1c] sm:$0xf] %vm5394_vm9, %v10424_v15  ;;  %v11556_v0 = vor.u32 %v11554_v42, %v11555_v27 }
 0x534   : > { %5848 = vst.msk [vmem:[#allocation4 + $0x14] sm:$0xf] %vm5842_vm3, %v10410_v51  ;;  %5621 = vrot.lane.b32.xlu1 %v11553_v24, %s7232_s22  ;;  %5899 = vrot.lane.b32.xlu0 %v4897_v11, %s7225_s15  ;;  %v5704_v11 = vld [vmem:[#allocation4 + $0x18] sm:$0xf] }
 0x535   : > { %v4888_v15 = vrot.slane %v11556_v0, 4 }
 0x536   : > { %v10617_v10 = vpop.permute.xlu1 %5615  ;;  %v5880_v36 = vpop.permute.xlu0 %5879 }
 0x537   : > { %v5972_v51 = vsel %vm10495_vm1, %v5880_v36, %v5971_v13 }
 0x538   : > { %5973 = vst [vmem:[#allocation4 + $0xc] sm:$0xf] %v5972_v51  ;;  %4739 = vrot.lane.b32.xlu1 %v9962_v26, %s7234_s20  ;;  %5462 = vrot.lane.b32.xlu0 %v4888_v15, %s7237_s24 }
 0x53a   : > { %v5548_v2 = vld [vmem:[#allocation4 + $0x1c] sm:$0xf]  ;;  %v5612_v47 = vpop.permute.xlu1 %5611  ;;  %v4734_v18 = vpop.permute.xlu0 %4733 }
 0x53b   : > { %v5975_v63 = vld [vmem:[#allocation4 + $0x14] sm:$0xf]  ;;  %v5549_v5 = vsel %vm10461_vm10, %v5451_v4, %v5548_v2  ;;  %v5705_v44 = vsel %vm10380_vm15, %v5612_v47, %v5704_v11  ;;  %4810 = vst.msk [vmem:[#allocation4 + $0x40] sm:$0xf] %vm4795_vm5, %v4734_v18 }
 0x53c   : > { %v5976_v41 = vsel %vm10495_vm1, %v5884_v49, %v5975_v63  ;;  %5550 = vst [vmem:[#allocation4 + $0x1c] sm:$0xf] %v5549_v5  ;;  %5706 = vst [vmem:[#allocation4 + $0x18] sm:$0xf] %v5705_v44  ;;  %4987 = vrot.lane.b32.xlu1 %v4888_v15, %s7231_s21  ;;  %5782 = vrot.lane.b32.xlu0 %v9962_v26, %s7235_s19 }
 0x53d   : > { %5977 = vst [vmem:[#allocation4 + $0x14] sm:$0xf] %v5976_v41  ;;  %5849 = vst.msk [vmem:[#allocation4 + $0x18] sm:$0xf] %vm5842_vm3, %v10514_v12 }
 0x53e   : > { %v10639_v49 = vpop.permute.xlu1 %5326  ;;  %v5152_v4 = vpop.permute.xlu0 %5151 }
 0x53f   : > { %v5251_v7 = vsel %vm10351_vm8, %v5152_v4, %v5250_v43  ;;  %v7035_v50 = vld [vmem:[#allocation4 + $0x8] sm:$0xff]   ;;  %v11559_v43 = vld [vmem:[#allocation31_spill] sm:$0xff] }
 0x540   : > { %5252 = vst [vmem:[#allocation4 + $0x20] sm:$0xf] %v5251_v7  ;;  %5332 = vrot.lane.b32.xlu1 %v9962_v26, %s7223_s23  ;;  %5895 = vrot.lane.b32.xlu0 %v4888_v15, %s7225_s15 }
 0x541   : > { %5403 = vst.msk [vmem:[#allocation4 + $0x20] sm:$0xf] %vm5394_vm9, %v10534_v48  ;;  %6904 = vmatmul.mubr.msk.bf16.vlgmr.msra.gmra.mxu0 %vm6158_vm7, %v7035_v50 }
 0x542   : > { %v5890_v12 = vpop.permute.xlu1 %5889  ;;  %v10649_v59 = vpop.permute.xlu0 %5776 }
 0x544   : > { %v7036_v24 = vld [vmem:[#allocation4 + $0x10] sm:$0xff]   ;;  %5171 = vrot.lane.b32.xlu1 %v9990_v23, %s7236_s12  ;;  %4749 = vrot.lane.b32.xlu0 %v10002_v57, %s7234_s20 }
 0x545   : > { %6907 = vmatprep.mubr.msk.bf16.mxu0 %vm6158_vm7, %v7036_v24 }
 0x546   : > { %v10656_v26 = vpop.permute.xlu1 %5772  ;;  %v4982_v13 = vpop.permute.xlu0 %4981 }
 0x547   : > { %5074 = vst.msk [vmem:[#allocation4 + $0x30] sm:$0xf] %vm5051_vm12, %v4982_v13 }
 0x548   : > { %5631 = vrot.lane.b32.xlu1 %v9990_v23, %s7232_s22  ;;  %5167 = vrot.lane.b32.xlu0 %v10008_v25, %s7236_s12 }
 0x54a   : > { %v10663_v48 = vpop.permute.xlu1 %5157  ;;  %v5457_v36 = vpop.permute.xlu0 %5456 }
 0x54c   : > { %5627 = vrot.lane.b32.xlu1 %v10008_v25, %s7232_s22  ;;  %5792 = vrot.lane.b32.xlu0 %v10002_v57, %s7235_s19 }
 0x54e   : > { %v5453_v42 = vpop.permute.xlu1 %5452  ;;  %v4730_v27 = vpop.permute.xlu0 %4729 }
 0x54f   : > { %5551 = vst.msk [vmem:[#allocation4 + $0x20] sm:$0xf] %vm5532_vm11, %v5453_v42 }
 0x550   : > { %4808 = vst.msk [vmem:[#allocation4 + $0x38] sm:$0xf] %vm4795_vm5, %v4730_v27  ;;  %5342 = vrot.lane.b32.xlu1 %v10002_v57, %s7223_s23  ;;  %4997 = vrot.lane.b32.xlu0 %v10029_v60, %s7231_s21  ;;  %v11561_v27 = vld [vmem:[#allocation36_spill] sm:$0xff] }
 0x552   : > { %v5886_v23 = vpop.permute.xlu1 %5885  ;;  %v10675_v0 = vpop.permute.xlu0 %5322 }
 0x553   : > { %5978 = vst.msk [vmem:[#allocation4 + $0x18] sm:$0xf] %vm5963_vm4, %v5886_v23 }
 0x554   : > { %5905 = vrot.lane.b32.xlu1 %v10029_v60, %s7225_s15  ;;  %5472 = vrot.lane.b32.xlu0 %v10029_v60, %s7237_s24  ;;  %v5075_v60 = vld [vmem:[#allocation4 + $0x34] sm:$0xf] }
 0x556   : > { %v5708_v25 = vld [vmem:[#allocation4 + $0x20] sm:$0xf]  ;;  %v4736_v15 = vpop.permute.xlu1 %4735  ;;  %v4978_v51 = vpop.permute.xlu0 %4977 }
 0x557   : > { %v5709_v57 = vsel %vm10380_vm15, %v10617_v10, %v5708_v25  ;;  %4811 = vst.msk [vmem:[#allocation4 + $0x44] sm:$0xf] %vm4795_vm5, %v4736_v15  ;;  %v11562_v15 = vld [vmem:[#allocation35_spill] sm:$0xff] }
 0x558   : > { %5070 = vst.msk [vmem:[#allocation4 + $0x28] sm:$0xf] %vm5051_vm12, %v4978_v51  ;;  %5710 = vst [vmem:[#allocation4 + $0x20] sm:$0xf] %v5709_v57  ;;  %5788 = vrot.lane.b32.xlu1 %v10010_v3, %s7235_s19  ;;  %4745 = vrot.lane.b32.xlu0 %v10010_v3, %s7234_s20  ;;  %v11563_v51 = vld [vmem:[#allocation32_spill] sm:$0xff] }
 0x559   : > { %5851 = vst.msk [vmem:[#allocation4 + $0x20] sm:$0xf] %vm5842_vm3, %v10509_v19 }
 0x55a   : > { %5982 = vst.msk [vmem:[#allocation4 + $0x20] sm:$0xf] %vm5963_vm4, %v5890_v12  ;;  %v4984_v63 = vpop.permute.xlu1 %4983  ;;  %v5618_v2 = vpop.permute.xlu0 %5617 }
 0x55b   : > { %v5076_v10 = vsel %vm10392_vm0, %v4984_v63, %v5075_v60  ;;  %v11565_v60 = vld [vmem:[#allocation37_spill] sm:$0xff] }
 0x55c   : > { %5077 = vst [vmem:[#allocation4 + $0x34] sm:$0xf] %v5076_v10  ;;  %5173 = vrot.lane.b32.xlu1 %v10037_v45, %s7236_s12  ;;  %5338 = vrot.lane.b32.xlu0 %v10010_v3, %s7223_s23 }
 0x55e   : > { %v10700_v47 = vpop.permute.xlu1 %5778  ;;  %v10702_v11 = vpop.permute.xlu0 %5328 }
 0x55f   : > { %v5254_v41 = vld [vmem:[#allocation4 + $0x28] sm:$0xf] }
 0x560   : > { %v5255_v19 = vsel %vm10351_vm8, %v10589_v61, %v5254_v41  ;;  %5468 = vrot.lane.b32.xlu1 %v10058_v37, %s7237_s24  ;;  %4993 = vrot.lane.b32.xlu0 %v10058_v37, %s7231_s21 }
 0x561   : > { %5256 = vst [vmem:[#allocation4 + $0x28] sm:$0xf] %v5255_v19 }
 0x562   : > { %5405 = vst.msk [vmem:[#allocation4 + $0x28] sm:$0xf] %vm5394_vm9, %v10491_v33  ;;  %v5154_v3 = vpop.permute.xlu1 %5153  ;;  %v5459_v18 = vpop.permute.xlu0 %5458  ;;  %v11557_v33 = vld [vmem:[#allocation34_spill] sm:$0xff] }
 0x563   : > { %5555 = vst.msk [vmem:[#allocation4 + $0x28] sm:$0xf] %vm5532_vm11, %v5457_v36 }
 0x564   : > { %5253 = vst.msk [vmem:[#allocation4 + $0x24] sm:$0xf] %vm5231_vm13, %v5154_v3  ;;  %5901 = vrot.lane.b32.xlu1 %v10058_v37, %s7225_s15  ;;  %5633 = vrot.lane.b32.xlu0 %v10037_v45, %s7232_s22  ;;  %v11558_v37 = vld [vmem:[#allocation33_spill] sm:$0xff] }
 0x565   : > { %5404 = vst.msk [vmem:[#allocation4 + $0x24] sm:$0xf] %vm5394_vm9, %v10610_v39  ;;  %v11560_v4 = vor.u32 %v11558_v37, %v11559_v43 }
 0x566   : > { %v5614_v61 = vpop.permute.xlu1 %5613  ;;  %v5892_v5 = vpop.permute.xlu0 %5891 }
 0x567   : > { %5707 = vst.msk [vmem:[#allocation4 + $0x1c] sm:$0xf] %vm5689_vm14, %v5614_v61  ;;  %v4915_v45 = vrot.slane %v11560_v4, 4 }
 0x568   : > { %5850 = vst.msk [vmem:[#allocation4 + $0x1c] sm:$0xf] %vm5842_vm3, %v10612_v14  ;;  %4751 = vrot.lane.b32.xlu1 %v11557_v33, %s7234_s20  ;;  %5344 = vrot.lane.b32.xlu0 %v11557_v33, %s7223_s23  ;;  %v5071_v14 = vld [vmem:[#allocation4 + $0x2c] sm:$0xf] }
 0x56a   : > { %v4732_v39 = vpop.permute.xlu1 %4731  ;;  %v10728_v44 = vpop.permute.xlu0 %5163  ;;  %v5712_v19 = vld [vmem:[#allocation4 + $0x28] sm:$0xf] }
 0x56b   : > { %4809 = vst.msk [vmem:[#allocation4 + $0x3c] sm:$0xf] %vm4795_vm5, %v4732_v39  ;;  %v5258_v39 = vld [vmem:[#allocation4 + $0x30] sm:$0xf] }
 0x56c   : > { %4999 = vrot.lane.b32.xlu1 %v4915_v45, %s7231_s21  ;;  %5474 = vrot.lane.b32.xlu0 %v4915_v45, %s7237_s24  ;;  %v5552_v50 = vld [vmem:[#allocation4 + $0x24] sm:$0xf] }
 0x56e   : > { %v4980_v7 = vpop.permute.xlu1 %4979  ;;  %v5455_v12 = vpop.permute.xlu0 %5454 }
 0x56f   : > { %v5072_v24 = vsel %vm10392_vm0, %v4980_v7, %v5071_v14  ;;  %v5553_v13 = vsel %vm10461_vm10, %v5455_v12, %v5552_v50  ;;  %v11566_v14 = vld [vmem:[#allocation6_spill] sm:$0xff] }
 0x570   : > { %5073 = vst [vmem:[#allocation4 + $0x2c] sm:$0xf] %v5072_v24  ;;  %5554 = vst [vmem:[#allocation4 + $0x24] sm:$0xf] %v5553_v13  ;;  %5794 = vrot.lane.b32.xlu1 %v11557_v33, %s7235_s19  ;;  %5907 = vrot.lane.b32.xlu0 %v4915_v45, %s7225_s15  ;;  %v11567_v7 = vld [vmem:[#allocation38_spill] sm:$0xff] }
 0x571   : > { %5257 = vst.msk [vmem:[#allocation4 + $0x2c] sm:$0xf] %vm5231_vm13, %v10663_v48  ;;  %v5979_v48 = vld [vmem:[#allocation4 + $0x1c] sm:$0xf] }
 0x572   : > { %5711 = vst.msk [vmem:[#allocation4 + $0x24] sm:$0xf] %vm5689_vm14, %v5618_v2  ;;  %v10750_v36 = vpop.permute.xlu1 %5324  ;;  %v10752_v42 = vpop.permute.xlu0 %5774 }
 0x573   : > { %5406 = vst.msk [vmem:[#allocation4 + $0x2c] sm:$0xf] %vm5394_vm9, %v10561_v31  ;;  %v11564_v31 = vor.u32 %v11562_v15, %v11563_v51 }
 0x574   : > { %5852 = vst.msk [vmem:[#allocation4 + $0x24] sm:$0xf] %vm5842_vm3, %v10559_v29  ;;  %5629 = vrot.lane.b32.xlu1 %v11561_v27, %s7232_s22  ;;  %5169 = vrot.lane.b32.xlu0 %v11561_v27, %s7236_s12 }
 0x575   : > { %v4906_v57 = vrot.slane %v11564_v31, 4  ;;  %v11570_v31 = vld [vmem:[#allocation8_spill] sm:$0xff] }
 0x576   : > { %v10758_v23 = vpop.permute.xlu1 %5623  ;;  %v5888_v25 = vpop.permute.xlu0 %5887 }
 0x577   : > { %v5980_v29 = vsel %vm10495_vm1, %v5888_v25, %v5979_v48  ;;  %v11569_v25 = vld [vmem:[#allocation42_spill] sm:$0xff] }
 0x578   : > { %5981 = vst [vmem:[#allocation4 + $0x1c] sm:$0xf] %v5980_v29  ;;  %4747 = vrot.lane.b32.xlu1 %v11565_v60, %s7234_s20  ;;  %5470 = vrot.lane.b32.xlu0 %v4906_v57, %s7237_s24 }
 0x57a   : > { %v5556_v2 = vld [vmem:[#allocation4 + $0x2c] sm:$0xf]  ;;  %v5620_v41 = vpop.permute.xlu1 %5619  ;;  %v4742_v3 = vpop.permute.xlu0 %4741 }
 0x57b   : > { %v5983_v63 = vld [vmem:[#allocation4 + $0x24] sm:$0xf]  ;;  %v5557_v61 = vsel %vm10461_vm10, %v5459_v18, %v5556_v2  ;;  %v5713_v33 = vsel %vm10380_vm15, %v5620_v41, %v5712_v19  ;;  %4814 = vst.msk [vmem:[#allocation4 + $0x50] sm:$0xf] %vm4795_vm5, %v4742_v3 }
 0x57c   : > { %v5984_v10 = vsel %vm10495_vm1, %v5892_v5, %v5983_v63  ;;  %5558 = vst [vmem:[#allocation4 + $0x2c] sm:$0xf] %v5557_v61  ;;  %5714 = vst [vmem:[#allocation4 + $0x28] sm:$0xf] %v5713_v33  ;;  %4995 = vrot.lane.b32.xlu1 %v4906_v57, %s7231_s21  ;;  %5790 = vrot.lane.b32.xlu0 %v11565_v60, %s7235_s19  ;;  %v5083_v2 = vld [vmem:[#allocation4 + $0x44] sm:$0xf] }
 0x57d   : > { %5985 = vst [vmem:[#allocation4 + $0x24] sm:$0xf] %v5984_v10  ;;  %5853 = vst.msk [vmem:[#allocation4 + $0x28] sm:$0xf] %vm5842_vm3, %v10656_v26  ;;  %v11571_v19 = vld [vmem:[#allocation9_spill] sm:$0xff] }
 0x57e   : > { %v10780_v5 = vpop.permute.xlu1 %5334  ;;  %v5160_v18 = vpop.permute.xlu0 %5159 }
 0x57f   : > { %v5259_v37 = vsel %vm10351_vm8, %v5160_v18, %v5258_v39  ;;  %v7037_v43 = vld [vmem:[#allocation4 + $0x18] sm:$0xff]   ;;  %v11572_v39 = vld [vmem:[#allocation13_spill] sm:$0xff] }
 0x580   : > { %5260 = vst [vmem:[#allocation4 + $0x30] sm:$0xf] %v5259_v37  ;;  %5340 = vrot.lane.b32.xlu1 %v11565_v60, %s7223_s23  ;;  %5903 = vrot.lane.b32.xlu0 %v4906_v57, %s7225_s15 }
 0x581   : > { %5407 = vst.msk [vmem:[#allocation4 + $0x30] sm:$0xf] %vm5394_vm9, %v10675_v0  ;;  %6908 = vmatmul.mubr.msk.bf16.gmra.mxu0 %vm6158_vm7, %v7037_v43  ;;  %v11568_v0 = vld [vmem:[#allocation7_spill] sm:$0xff] }
 0x582   : > { %v5898_v26 = vpop.permute.xlu1 %5897  ;;  %v10790_v4 = vpop.permute.xlu0 %5784 }
 0x584   : > { %v7038_v45 = vld [vmem:[#allocation4 + $0x20] sm:$0xff]   ;;  %5179 = vrot.lane.b32.xlu1 %v11566_v14, %s7236_s12  ;;  %4757 = vrot.lane.b32.xlu0 %v11567_v7, %s7234_s20 }
 0x585   : > { %6911 = vmatprep.mubr.msk.bf16.mxu0 %vm6158_vm7, %v7038_v45  ;;  %v11574_v45 = vld [vmem:[#allocation41_spill] sm:$0xff] }
 0x586   : > { %v10797_v50 = vpop.permute.xlu1 %5780  ;;  %v4990_v12 = vpop.permute.xlu0 %4989 }
 0x587   : > { %5082 = vst.msk [vmem:[#allocation4 + $0x40] sm:$0xf] %vm5051_vm12, %v4990_v12 }
 0x588   : > { %5639 = vrot.lane.b32.xlu1 %v11566_v14, %s7232_s22  ;;  %5175 = vrot.lane.b32.xlu0 %v11568_v0, %s7236_s12  ;;  %v11575_v14 = vld [vmem:[#allocation39_spill] sm:$0xff] }
 0x58a   : > { %v10804_v24 = vpop.permute.xlu1 %5165  ;;  %v5465_v13 = vpop.permute.xlu0 %5464 }
 0x58c   : > { %5635 = vrot.lane.b32.xlu1 %v11568_v0, %s7232_s22  ;;  %5350 = vrot.lane.b32.xlu0 %v11567_v7, %s7223_s23 }
 0x58e   : > { %v5461_v27 = vpop.permute.xlu1 %5460  ;;  %v4738_v48 = vpop.permute.xlu0 %4737 }
 0x58f   : > { %5559 = vst.msk [vmem:[#allocation4 + $0x30] sm:$0xf] %vm5532_vm11, %v5461_v27 }
 0x590   : > { %4812 = vst.msk [vmem:[#allocation4 + $0x48] sm:$0xf] %vm4795_vm5, %v4738_v48  ;;  %5913 = vrot.lane.b32.xlu1 %v11569_v25, %s7225_s15  ;;  %5800 = vrot.lane.b32.xlu0 %v11567_v7, %s7235_s19  ;;  %v11576_v7 = vor.u32 %v11574_v45, %v11575_v14 }
 0x592   : > { %v5894_v15 = vpop.permute.xlu1 %5893  ;;  %v10816_v51 = vpop.permute.xlu0 %5330  ;;  %v4933_v12 = vrot.slane %v11576_v7, 4 }
 0x593   : > { %5986 = vst.msk [vmem:[#allocation4 + $0x28] sm:$0xf] %vm5963_vm4, %v5894_v15 }
 0x594   : > { %5346 = vrot.lane.b32.xlu1 %v11570_v31, %s7223_s23  ;;  %5005 = vrot.lane.b32.xlu0 %v11569_v25, %s7231_s21 }
 0x596   : > { %v5716_v57 = vld [vmem:[#allocation4 + $0x30] sm:$0xf]  ;;  %v4744_v29 = vpop.permute.xlu1 %4743  ;;  %v4986_v60 = vpop.permute.xlu0 %4985 }
 0x597   : > { %v5717_v63 = vsel %vm10380_vm15, %v10758_v23, %v5716_v57  ;;  %4815 = vst.msk [vmem:[#allocation4 + $0x54] sm:$0xf] %vm4795_vm5, %v4744_v29  ;;  %v11577_v29 = vld [vmem:[#allocation5_spill] sm:$0xff] }
 0x598   : > { %5078 = vst.msk [vmem:[#allocation4 + $0x38] sm:$0xf] %vm5051_vm12, %v4986_v60  ;;  %5718 = vst [vmem:[#allocation4 + $0x30] sm:$0xf] %v5717_v63  ;;  %5796 = vrot.lane.b32.xlu1 %v11570_v31, %s7235_s19  ;;  %5480 = vrot.lane.b32.xlu0 %v11569_v25, %s7237_s24 }
 0x599   : > { %5855 = vst.msk [vmem:[#allocation4 + $0x30] sm:$0xf] %vm5842_vm3, %v10649_v59 }
 0x59a   : > { %5990 = vst.msk [vmem:[#allocation4 + $0x30] sm:$0xf] %vm5963_vm4, %v5898_v26  ;;  %v4992_v10 = vpop.permute.xlu1 %4991  ;;  %v5626_v41 = vpop.permute.xlu0 %5625 }
 0x59b   : > { %v5084_v23 = vsel %vm10392_vm0, %v4992_v10, %v5083_v2  ;;  %v11578_v2 = vld [vmem:[#allocation43_spill] sm:$0xff] }
 0x59c   : > { %5085 = vst [vmem:[#allocation4 + $0x44] sm:$0xf] %v5084_v23  ;;  %5181 = vrot.lane.b32.xlu1 %v11571_v19, %s7236_s12  ;;  %4753 = vrot.lane.b32.xlu0 %v11570_v31, %s7234_s20 }
 0x59e   : > { %v10841_v61 = vpop.permute.xlu1 %5786  ;;  %v10843_v33 = vpop.permute.xlu0 %5336 }
 0x59f   : > { %v5262_v3 = vld [vmem:[#allocation4 + $0x38] sm:$0xf] }
 0x5a0   : > { %v5263_v59 = vsel %vm10351_vm8, %v10728_v44, %v5262_v3  ;;  %5476 = vrot.lane.b32.xlu1 %v11572_v39, %s7237_s24  ;;  %5001 = vrot.lane.b32.xlu0 %v11572_v39, %s7231_s21 }
 0x5a1   : > { %5264 = vst [vmem:[#allocation4 + $0x38] sm:$0xf] %v5263_v59  ;;  %v5266_v59 = vld [vmem:[#allocation4 + $0x40] sm:$0xf] }
 0x5a2   : > { %5409 = vst.msk [vmem:[#allocation4 + $0x38] sm:$0xf] %vm5394_vm9, %v10639_v49  ;;  %v5162_v18 = vpop.permute.xlu1 %5161  ;;  %v5467_v37 = vpop.permute.xlu0 %5466  ;;  %v11573_v49 = vld [vmem:[#allocation12_spill] sm:$0xff] }
 0x5a3   : > { %5563 = vst.msk [vmem:[#allocation4 + $0x38] sm:$0xf] %vm5532_vm11, %v5465_v13 }
 0x5a4   : > { %5261 = vst.msk [vmem:[#allocation4 + $0x34] sm:$0xf] %vm5231_vm13, %v5162_v18  ;;  %5909 = vrot.lane.b32.xlu1 %v11572_v39, %s7225_s15  ;;  %5641 = vrot.lane.b32.xlu0 %v11571_v19, %s7232_s22 }
 0x5a5   : > { %5408 = vst.msk [vmem:[#allocation4 + $0x34] sm:$0xf] %vm5394_vm9, %v10750_v36 }
 0x5a6   : > { %v5622_v44 = vpop.permute.xlu1 %5621  ;;  %v5900_v43 = vpop.permute.xlu0 %5899 }
 0x5a7   : > { %5715 = vst.msk [vmem:[#allocation4 + $0x2c] sm:$0xf] %vm5689_vm14, %v5622_v44 }
 0x5a8   : > { %5854 = vst.msk [vmem:[#allocation4 + $0x2c] sm:$0xf] %vm5842_vm3, %v10752_v42  ;;  %4759 = vrot.lane.b32.xlu1 %v11573_v49, %s7234_s20  ;;  %5352 = vrot.lane.b32.xlu0 %v11573_v49, %s7223_s23  ;;  %v5079_v42 = vld [vmem:[#allocation4 + $0x3c] sm:$0xf] }
 0x5aa   : > { %v4740_v36 = vpop.permute.xlu1 %4739  ;;  %v5463_v26 = vpop.permute.xlu0 %5462 }
 0x5ab   : > { %4813 = vst.msk [vmem:[#allocation4 + $0x4c] sm:$0xf] %vm4795_vm5, %v4740_v36  ;;  %v5720_v36 = vld [vmem:[#allocation4 + $0x38] sm:$0xf] }
 0x5ac   : > { %v5560_v0 = vld [vmem:[#allocation4 + $0x34] sm:$0xf]  ;;  %5007 = vrot.lane.b32.xlu1 %v4933_v12, %s7231_s21  ;;  %5482 = vrot.lane.b32.xlu0 %v4933_v12, %s7237_s24 }
 0x5ad   : > { %v5561_v13 = vsel %vm10461_vm10, %v5463_v26, %v5560_v0 }
 0x5ae   : > { %5562 = vst [vmem:[#allocation4 + $0x34] sm:$0xf] %v5561_v13  ;;  %v4988_v27 = vpop.permute.xlu1 %4987  ;;  %v10878_v48 = vpop.permute.xlu0 %5782 }
 0x5af   : > { %5719 = vst.msk [vmem:[#allocation4 + $0x34] sm:$0xf] %vm5689_vm14, %v5626_v41  ;;  %v5080_v25 = vsel %vm10392_vm0, %v4988_v27, %v5079_v42  ;;  %v5987_v31 = vld [vmem:[#allocation4 + $0x2c] sm:$0xf] }
 0x5b0   : > { %5856 = vst.msk [vmem:[#allocation4 + $0x34] sm:$0xf] %vm5842_vm3, %v10700_v47  ;;  %5081 = vst [vmem:[#allocation4 + $0x3c] sm:$0xf] %v5080_v25  ;;  %5802 = vrot.lane.b32.xlu1 %v11573_v49, %s7235_s19  ;;  %5915 = vrot.lane.b32.xlu0 %v4933_v12, %s7225_s15 }
 0x5b1   : > { %5265 = vst.msk [vmem:[#allocation4 + $0x3c] sm:$0xf] %vm5231_vm13, %v10804_v24 }
 0x5b2   : > { %5410 = vst.msk [vmem:[#allocation4 + $0x3c] sm:$0xf] %vm5394_vm9, %v10702_v11  ;;  %v10891_v15 = vpop.permute.xlu1 %5332  ;;  %v5896_v57 = vpop.permute.xlu0 %5895  ;;  %v11579_v11 = vld [vmem:[#allocation40_spill] sm:$0xff] }
 0x5b3   : > { %v5988_v47 = vsel %vm10495_vm1, %v5896_v57, %v5987_v31  ;;  %v11580_v10 = vor.u32 %v11578_v2, %v11579_v11  ;;  %v11582_v11 = vld [vmem:[#allocation17_spill] sm:$0xff] }
 0x5b4   : > { %5989 = vst [vmem:[#allocation4 + $0x2c] sm:$0xf] %v5988_v47  ;;  %5637 = vrot.lane.b32.xlu1 %v11577_v29, %s7232_s22  ;;  %5177 = vrot.lane.b32.xlu0 %v11577_v29, %s7236_s12 }
 0x5b5   : > { %v4924_v41 = vrot.slane %v11580_v10, 4 }
 0x5b6   : > { %v10899_v63 = vpop.permute.xlu1 %5171  ;;  %v4750_v24 = vpop.permute.xlu0 %4749 }
 0x5b7   : > { %v5991_v60 = vld [vmem:[#allocation4 + $0x34] sm:$0xf]  ;;  %4818 = vst.msk [vmem:[#allocation4 + $0x60] sm:$0xf] %vm4795_vm5, %v4750_v24  ;;  %v11581_v24 = vor.u32 %v10180_v8, %v10174_v1 }
 0x5b8   : > { %v5992_v23 = vsel %vm10495_vm1, %v5900_v43, %v5991_v60  ;;  %4755 = vrot.lane.b32.xlu1 %v10130_v20, %s7234_s20  ;;  %5478 = vrot.lane.b32.xlu0 %v4924_v41, %s7237_s24 }
 0x5b9   : > { %5993 = vst [vmem:[#allocation4 + $0x34] sm:$0xf] %v5992_v23  ;;  %v5564_v19 = vld [vmem:[#allocation4 + $0x3c] sm:$0xf]  ;;  %v4951_v2 = vrot.slane %v11581_v24, 4 }
 0x5ba   : > { %v5632_v3 = vpop.permute.xlu1 %5631  ;;  %v5168_v39 = vpop.permute.xlu0 %5167  ;;  %v5565_v18 = vsel %vm10461_vm10, %v5467_v37, %v5564_v19  ;;  %v5087_v23 = vld [vmem:[#allocation4 + $0x4c] sm:$0xf] }
 0x5bb   : > { %v5267_v44 = vsel %vm10351_vm8, %v5168_v39, %v5266_v59  ;;  %v7039_v49 = vld [vmem:[#allocation4 + $0x28] sm:$0xff]   ;;  %5566 = vst [vmem:[#allocation4 + $0x3c] sm:$0xf] %v5565_v18 }
 0x5bc   : > { %5268 = vst [vmem:[#allocation4 + $0x40] sm:$0xf] %v5267_v44  ;;  %5003 = vrot.lane.b32.xlu1 %v4924_v41, %s7231_s21  ;;  %5798 = vrot.lane.b32.xlu0 %v10130_v20, %s7235_s19  ;;  %v11584_v39 = vld [vmem:[#allocation10_spill] sm:$0xff] }
 0x5bd   : > { %5411 = vst.msk [vmem:[#allocation4 + $0x40] sm:$0xf] %vm5394_vm9, %v10816_v51  ;;  %6912 = vmatmul.mubr.msk.bf16.gmra.mxu0 %vm6158_vm7, %v7039_v49 }
 0x5be   : > { %v5628_v43 = vpop.permute.xlu1 %5627  ;;  %v10920_v26 = vpop.permute.xlu0 %5792 }
 0x5bf   : > { %v5721_v37 = vsel %vm10380_vm15, %v5628_v43, %v5720_v36  ;;  %v11585_v43 = vld [vmem:[#allocation15_spill] sm:$0xff]  ;;  %v11586_v36 = vld [vmem:[#allocation14_spill] sm:$0xff] }
 0x5c0   : > { %v7040_v45 = vld [vmem:[#allocation4 + $0x30] sm:$0xff]   ;;  %5722 = vst [vmem:[#allocation4 + $0x38] sm:$0xf] %v5721_v37  ;;  %5348 = vrot.lane.b32.xlu1 %v10130_v20, %s7223_s23  ;;  %5911 = vrot.lane.b32.xlu0 %v4924_v41, %s7225_s15  ;;  %v11587_v37 = vor.u32 %v11585_v43, %v11586_v36 }
 0x5c1   : > { %5857 = vst.msk [vmem:[#allocation4 + $0x38] sm:$0xf] %vm5842_vm3, %v10797_v50  ;;  %6915 = vmatprep.mubr.msk.bf16.mxu0 %vm6158_vm7, %v7040_v45  ;;  %v11583_v41 = vld [vmem:[#allocation11_spill] sm:$0xff] }
 0x5c2   : > { %v10930_v51 = vpop.permute.xlu1 %5342  ;;  %v4998_v14 = vpop.permute.xlu0 %4997  ;;  %v4942_v45 = vrot.slane %v11587_v37, 4 }
 0x5c3   : > { %5090 = vst.msk [vmem:[#allocation4 + $0x50] sm:$0xf] %vm5051_vm12, %v4998_v14 }
 0x5c4   : > { %5187 = vrot.lane.b32.xlu1 %v10172_v58, %s7236_s12  ;;  %5647 = vrot.lane.b32.xlu0 %v10172_v58, %s7232_s22 }
 0x5c6   : > { %v5906_v7 = vpop.permute.xlu1 %5905  ;;  %v5473_v20 = vpop.permute.xlu0 %5472 }
 0x5c8   : > { %5643 = vrot.lane.b32.xlu1 %v10199_v32, %s7232_s22  ;;  %5183 = vrot.lane.b32.xlu0 %v10199_v32, %s7236_s12 }
 0x5ca   : > { %v10941_v50 = vpop.permute.xlu1 %5788  ;;  %v4746_v12 = vpop.permute.xlu0 %4745 }
 0x5cb   : > { %4816 = vst.msk [vmem:[#allocation4 + $0x58] sm:$0xf] %vm4795_vm5, %v4746_v12 }
 0x5cc   : > { %5921 = vrot.lane.b32.xlu1 %v10197_v40, %s7225_s15  ;;  %5013 = vrot.lane.b32.xlu0 %v10197_v40, %s7231_s21 }
 0x5ce   : > { %v10948_v58 = vpop.permute.xlu1 %5173  ;;  %v10950_v0 = vpop.permute.xlu0 %5338 }
 0x5d0   : > { %5354 = vrot.lane.b32.xlu1 %v10178_v21, %s7223_s23  ;;  %5488 = vrot.lane.b32.xlu0 %v10197_v40, %s7237_s24 }
 0x5d2   : > { %v5469_v32 = vpop.permute.xlu1 %5468  ;;  %v4994_v13 = vpop.permute.xlu0 %4993 }
 0x5d3   : > { %5567 = vst.msk [vmem:[#allocation4 + $0x40] sm:$0xf] %vm5532_vm11, %v5469_v32 }
 0x5d4   : > { %5086 = vst.msk [vmem:[#allocation4 + $0x48] sm:$0xf] %vm5051_vm12, %v4994_v13  ;;  %5189 = vrot.lane.b32.xlu1 %v10203_v22, %s7236_s12  ;;  %4761 = vrot.lane.b32.xlu0 %v10178_v21, %s7234_s20 }
 0x5d6   : > { %v5902_v42 = vpop.permute.xlu1 %5901  ;;  %v5634_v27 = vpop.permute.xlu0 %5633 }
 0x5d7   : > { %5994 = vst.msk [vmem:[#allocation4 + $0x38] sm:$0xf] %vm5963_vm4, %v5902_v42 }
 0x5d8   : > { %5484 = vrot.lane.b32.xlu1 %v10215_v17, %s7237_s24  ;;  %5804 = vrot.lane.b32.xlu0 %v10178_v21, %s7235_s19  ;;  %v5091_v21 = vld [vmem:[#allocation4 + $0x54] sm:$0xf] }
 0x5da   : > { %v5724_v40 = vld [vmem:[#allocation4 + $0x40] sm:$0xf]  ;;  %v4752_v31 = vpop.permute.xlu1 %4751  ;;  %v10967_v57 = vpop.permute.xlu0 %5344 }
 0x5db   : > { %v5270_v25 = vld [vmem:[#allocation4 + $0x48] sm:$0xf]  ;;  %v5725_v47 = vsel %vm10380_vm15, %v5632_v3, %v5724_v40  ;;  %4819 = vst.msk [vmem:[#allocation4 + $0x64] sm:$0xf] %vm4795_vm5, %v4752_v31 }
 0x5dc   : > { %v5271_v29 = vsel %vm10351_vm8, %v10899_v63, %v5270_v25  ;;  %5726 = vst [vmem:[#allocation4 + $0x40] sm:$0xf] %v5725_v47  ;;  %5917 = vrot.lane.b32.xlu1 %v10215_v17, %s7225_s15  ;;  %5009 = vrot.lane.b32.xlu0 %v10215_v17, %s7231_s21 }
 0x5dd   : > { %5272 = vst [vmem:[#allocation4 + $0x48] sm:$0xf] %v5271_v29  ;;  %5859 = vst.msk [vmem:[#allocation4 + $0x40] sm:$0xf] %vm5842_vm3, %v10790_v4 }
 0x5de   : > { %5413 = vst.msk [vmem:[#allocation4 + $0x48] sm:$0xf] %vm5394_vm9, %v10780_v5  ;;  %v5000_v60 = vpop.permute.xlu1 %4999  ;;  %v5475_v63 = vpop.permute.xlu0 %5474 }
 0x5df   : > { %5998 = vst.msk [vmem:[#allocation4 + $0x40] sm:$0xf] %vm5963_vm4, %v5906_v7  ;;  %v5092_v17 = vsel %vm10392_vm0, %v5000_v60, %v5091_v21 }
 0x5e0   : > { %5571 = vst.msk [vmem:[#allocation4 + $0x48] sm:$0xf] %vm5532_vm11, %v5473_v20  ;;  %5093 = vst [vmem:[#allocation4 + $0x54] sm:$0xf] %v5092_v17  ;;  %5015 = vrot.lane.b32.xlu1 %v4951_v2, %s7231_s21  ;;  %5649 = vrot.lane.b32.xlu0 %v10203_v22, %s7232_s22 }
 0x5e2   : > { %v10993_v5 = vpop.permute.xlu1 %5794  ;;  %v5908_v4 = vpop.permute.xlu0 %5907  ;;  %v5099_v43 = vld [vmem:[#allocation4 + $0x64] sm:$0xf] }
 0x5e4   : > { %5810 = vrot.lane.b32.xlu1 %v11582_v11, %s7235_s19  ;;  %5490 = vrot.lane.b32.xlu0 %v4951_v2, %s7237_s24 }
 0x5e6   : > { %v5630_v10 = vpop.permute.xlu1 %5629  ;;  %v5170_v1 = vpop.permute.xlu0 %5169 }
 0x5e7   : > { %5723 = vst.msk [vmem:[#allocation4 + $0x3c] sm:$0xf] %vm5689_vm14, %v5630_v10  ;;  %v5728_v31 = vld [vmem:[#allocation4 + $0x48] sm:$0xf]  ;;  %v11588_v10 = vshll.u32 %v10227_v54, 16 }
 0x5e8   : > { %5269 = vst.msk [vmem:[#allocation4 + $0x44] sm:$0xf] %vm5231_vm13, %v5170_v1  ;;  %5360 = vrot.lane.b32.xlu1 %v11582_v11, %s7223_s23  ;;  %5923 = vrot.lane.b32.xlu0 %v4951_v2, %s7225_s15 }
 0x5e9   : > { %5858 = vst.msk [vmem:[#allocation4 + $0x3c] sm:$0xf] %vm5842_vm3, %v10878_v48  ;;  %v5125_v1 = vor.u32 %v11588_v10, %v10247_v6  ;;  %v11590_v6 = vor.u32 %v10255_v52, %v10238_v35 }
 0x5ea   : > { %5412 = vst.msk [vmem:[#allocation4 + $0x44] sm:$0xf] %vm5394_vm9, %v10891_v15  ;;  %v4748_v8 = vpop.permute.xlu1 %4747  ;;  %v5471_v22 = vpop.permute.xlu0 %5470 }
 0x5eb   : > { %4817 = vst.msk [vmem:[#allocation4 + $0x5c] sm:$0xf] %vm4795_vm5, %v4748_v8 }
 0x5ec   : > { %5645 = vrot.lane.b32.xlu1 %v11583_v41, %s7232_s22  ;;  %5185 = vrot.lane.b32.xlu0 %v11583_v41, %s7236_s12 }
 0x5ee   : > { %v4996_v48 = vpop.permute.xlu1 %4995  ;;  %v11012_v19 = vpop.permute.xlu0 %5790 }
 0x5ef   : > { %v5088_v3 = vsel %vm10392_vm0, %v4996_v48, %v5087_v23 }
 0x5f0   : > { %5089 = vst [vmem:[#allocation4 + $0x4c] sm:$0xf] %v5088_v3  ;;  %4763 = vrot.lane.b32.xlu1 %v11584_v39, %s7234_s20  ;;  %5356 = vrot.lane.b32.xlu0 %v11584_v39, %s7223_s23  ;;  %v5995_v44 = vld [vmem:[#allocation4 + $0x3c] sm:$0xf] }
 0x5f1   : > { %v5568_v15 = vld [vmem:[#allocation4 + $0x44] sm:$0xf]  ;;  %5273 = vst.msk [vmem:[#allocation4 + $0x4c] sm:$0xf] %vm5231_vm13, %v10948_v58  ;;  %v5274_v58 = vld [vmem:[#allocation4 + $0x50] sm:$0xf] }
 0x5f2   : > { %v5569_v59 = vsel %vm10461_vm10, %v5471_v22, %v5568_v15  ;;  %5414 = vst.msk [vmem:[#allocation4 + $0x4c] sm:$0xf] %vm5394_vm9, %v10843_v33  ;;  %v11027_v18 = vpop.permute.xlu1 %5340  ;;  %v5904_v49 = vpop.permute.xlu0 %5903 }
 0x5f3   : > { %5570 = vst [vmem:[#allocation4 + $0x44] sm:$0xf] %v5569_v59  ;;  %v5996_v14 = vsel %vm10495_vm1, %v5904_v49, %v5995_v44 }
 0x5f4   : > { %5727 = vst.msk [vmem:[#allocation4 + $0x44] sm:$0xf] %vm5689_vm14, %v5634_v27  ;;  %5997 = vst [vmem:[#allocation4 + $0x3c] sm:$0xf] %v5996_v14  ;;  %5011 = vrot.lane.b32.xlu1 %v4942_v45, %s7231_s21  ;;  %5806 = vrot.lane.b32.xlu0 %v11584_v39, %s7235_s19 }
 0x5f5   : > { %5860 = vst.msk [vmem:[#allocation4 + $0x44] sm:$0xf] %vm5842_vm3, %v10841_v61 }
 0x5f6   : > { %v11039_v33 = vpop.permute.xlu1 %5179  ;;  %v4758_v7 = vpop.permute.xlu0 %4757 }
 0x5f7   : > { %4822 = vst.msk [vmem:[#allocation4 + $0x70] sm:$0xf] %vm4795_vm5, %v4758_v7 }
 0x5f8   : > { %5486 = vrot.lane.b32.xlu1 %v4942_v45, %s7237_s24  ;;  %5919 = vrot.lane.b32.xlu0 %v4942_v45, %s7225_s15 }
 0x5f9   : > { %v5572_v61 = vld [vmem:[#allocation4 + $0x4c] sm:$0xf] }
 0x5fa   : > { %v11044_v12 = vpop.permute.xlu1 %5639  ;;  %v5176_v32 = vpop.permute.xlu0 %5175  ;;  %v5573_v13 = vsel %vm10461_vm10, %v5475_v63, %v5572_v61 }
 0x5fb   : > { %v5275_v27 = vsel %vm10351_vm8, %v5176_v32, %v5274_v58  ;;  %v7041_v40 = vld [vmem:[#allocation4 + $0x38] sm:$0xff]   ;;  %5574 = vst [vmem:[#allocation4 + $0x4c] sm:$0xf] %v5573_v13 }
 0x5fc   : > { %v5999_v20 = vld [vmem:[#allocation4 + $0x44] sm:$0xf]  ;;  %5276 = vst [vmem:[#allocation4 + $0x50] sm:$0xf] %v5275_v27  ;;  %5651 = vrot.lane.b32.xlu1 %v10253_v56, %s7232_s22  ;;  %5191 = vrot.lane.b32.xlu0 %v10253_v56, %s7236_s12 }
 0x5fd   : > { %v6000_v42 = vsel %vm10495_vm1, %v5908_v4, %v5999_v20  ;;  %5415 = vst.msk [vmem:[#allocation4 + $0x50] sm:$0xf] %vm5394_vm9, %v10950_v0  ;;  %6916 = vmatmul.mubr.msk.bf16.gmra.mxu0 %vm6158_vm7, %v7041_v40 }
 0x5fe   : > { %6001 = vst [vmem:[#allocation4 + $0x44] sm:$0xf] %v6000_v42  ;;  %v5636_v25 = vpop.permute.xlu1 %5635  ;;  %v11060_v47 = vpop.permute.xlu0 %5350 }
 0x5ff   : > { %v5729_v29 = vsel %vm10380_vm15, %v5636_v25, %v5728_v31 }
 0x600   : > { %5730 = vst [vmem:[#allocation4 + $0x48] sm:$0xf] %v5729_v29  ;;  %5492 = vrot.lane.b32.xlu1 %v10272_v16, %s7237_s24  ;;  %5017 = vrot.lane.b32.xlu0 %v10272_v16, %s7231_s21 }
 0x601   : > { %5861 = vst.msk [vmem:[#allocation4 + $0x48] sm:$0xf] %vm5842_vm3, %v10941_v50  ;;  %v6905_v56 = vpop.f32.mrf.mxu0 }
 0x602   : > { %v5914_v0 = vpop.permute.xlu1 %5913  ;;  %v11075_v21 = vpop.permute.xlu0 %5800  ;;  %6375 = vst.msk [vmem:[%s11065_s14 + $0x10] sm:$0xff] %vm6372_vm2, %v6905_v56 }
 0x603   : > { %v6245_v60 = vpop.f32.mrf.mxu0 }
 0x604   : > { %5197 = vrot.lane.b32.xlu1 %v10276_v30, %s7236_s12  ;;  %5657 = vrot.lane.b32.xlu0 %v10276_v30, %s7232_s22  ;;  %6373 = vst.msk [vmem:[%s11065_s14] sm:$0xff] %vm6372_vm2, %v6245_v60 }
 0x605   : > { %v7042_v63 = vld [vmem:[#allocation4 + $0x40] sm:$0xff]   ;;  %v6906_v24 = vpop.f32.mrf.mxu0 }
 0x606   : > { %6919 = vmatprep.mubr.msk.bf16.mxu0 %vm6158_vm7, %v7042_v63  ;;  %v11086_v50 = vpop.permute.xlu1 %5346  ;;  %v5006_v2 = vpop.permute.xlu0 %5005  ;;  %6376 = vst.msk [vmem:[%s11065_s14 + $0x18] sm:$0xff] %vm6372_vm2, %v6906_v24 }
 0x607   : > { %5098 = vst.msk [vmem:[#allocation4 + $0x60] sm:$0xf] %vm5051_vm12, %v5006_v2  ;;  %v6248_v17 = vpop.f32.mrf.mxu0 }
 0x608   : > { %5925 = vrot.lane.b32.xlu1 %v10272_v16, %s7225_s15  ;;  %5193 = vrot.lane.b32.xlu0 %v10280_v55, %s7236_s12  ;;  %6374 = vst.msk [vmem:[%s11065_s14 + $0x8] sm:$0xff] %vm6372_vm2, %v6248_v17  ;;  %v11589_v16 = vshrl.u32 %v11582_v11, 16 }
 0x60a   : > { %v11097_v30 = vpop.permute.xlu1 %5796  ;;  %v5481_v4 = vpop.permute.xlu0 %5480  ;;  %v5433_v41 = vrot.slane %v11589_v16, 4 }
 0x60c   : > { %5653 = vrot.lane.b32.xlu1 %v10280_v55, %s7232_s22  ;;  %5655 = vrot.lane.b32.xlu0 %v5125_v1, %s7232_s22  ;;  %v4960_v55 = vrot.slane %v11590_v6, 4  ;;  %v5434_v15 = vor.u32 %v5433_v41, %v10282_v28 }
 0x60e   : > { %v5182_v8 = vpop.permute.xlu1 %5181  ;;  %v4754_v22 = vpop.permute.xlu0 %4753  ;;  %v5435_v59 = vrot.slane %v5434_v15, 4 }
 0x60f   : > { %4820 = vst.msk [vmem:[#allocation4 + $0x68] sm:$0xf] %vm4795_vm5, %v4754_v22 }
 0x610   : > { %5195 = vrot.lane.b32.xlu1 %v5125_v1, %s7236_s12  ;;  %5808 = vrot.lane.b32.xlu0 %v10227_v54, %s7235_s19 }
 0x612   : > { %v5477_v23 = vpop.permute.xlu1 %5476  ;;  %v5002_v48 = vpop.permute.xlu0 %5001 }
 0x613   : > { %5575 = vst.msk [vmem:[#allocation4 + $0x50] sm:$0xf] %vm5532_vm11, %v5477_v23 }
 0x614   : > { %5094 = vst.msk [vmem:[#allocation4 + $0x58] sm:$0xf] %vm5051_vm12, %v5002_v48  ;;  %5019 = vrot.lane.b32.xlu1 %v4960_v55, %s7231_s21  ;;  %5494 = vrot.lane.b32.xlu0 %v4960_v55, %s7237_s24 }
 0x616   : > { %v5910_v11 = vpop.permute.xlu1 %5909  ;;  %v5642_v3 = vpop.permute.xlu0 %5641 }
 0x617   : > { %6002 = vst.msk [vmem:[#allocation4 + $0x48] sm:$0xf] %vm5963_vm4, %v5910_v11 }
 0x618   : > { %5931 = vrot.lane.b32.xlu1 %v5435_v59, %s7225_s15  ;;  %5927 = vrot.lane.b32.xlu0 %v4960_v55, %s7225_s15 }
 0x61a   : > { %v5732_v52 = vld [vmem:[#allocation4 + $0x50] sm:$0xf]  ;;  %v4760_v28 = vpop.permute.xlu1 %4759  ;;  %v11122_v39 = vpop.permute.xlu0 %5352 }
 0x61b   : > { %v5278_v35 = vld [vmem:[#allocation4 + $0x58] sm:$0xf]  ;;  %v5733_v44 = vsel %vm10380_vm15, %v11044_v12, %v5732_v52  ;;  %4823 = vst.msk [vmem:[#allocation4 + $0x74] sm:$0xf] %vm4795_vm5, %v4760_v28 }
 0x61c   : > { %v5279_v49 = vsel %vm10351_vm8, %v11039_v33, %v5278_v35  ;;  %5734 = vst [vmem:[#allocation4 + $0x50] sm:$0xf] %v5733_v44  ;;  %5498 = vrot.lane.b32.xlu1 %v5435_v59, %s7237_s24  ;;  %5358 = vrot.lane.b32.xlu0 %v10227_v54, %s7223_s23 }
 0x61d   : > { %5280 = vst [vmem:[#allocation4 + $0x58] sm:$0xf] %v5279_v49  ;;  %5863 = vst.msk [vmem:[#allocation4 + $0x50] sm:$0xf] %vm5842_vm3, %v10920_v26 }
 0x61e   : > { %5417 = vst.msk [vmem:[#allocation4 + $0x58] sm:$0xf] %vm5394_vm9, %v10930_v51  ;;  %v5008_v36 = vpop.permute.xlu1 %5007  ;;  %v5483_v37 = vpop.permute.xlu0 %5482 }
 0x61f   : > { %6006 = vst.msk [vmem:[#allocation4 + $0x50] sm:$0xf] %vm5963_vm4, %v5914_v0  ;;  %v5100_v45 = vsel %vm10392_vm0, %v5008_v36, %v5099_v43  ;;  %v5282_v0 = vld [vmem:[#allocation4 + $0x60] sm:$0xf] }
 0x620   : > { %5579 = vst.msk [vmem:[#allocation4 + $0x58] sm:$0xf] %vm5532_vm11, %v5481_v4  ;;  %5101 = vst [vmem:[#allocation4 + $0x64] sm:$0xf] %v5100_v45  ;;  %5496 = vrot.lane.b32.xlu1 %v10298_v9, %s7237_s24  ;;  %5929 = vrot.lane.b32.xlu0 %v10298_v9, %s7225_s15  ;;  %v5095_v9 = vld [vmem:[#allocation4 + $0x5c] sm:$0xf] }
 0x622   : > { %v11146_v54 = vpop.permute.xlu1 %5802  ;;  %v5916_v26 = vpop.permute.xlu0 %5915 }
 0x626   : > { %v5638_v51 = vpop.permute.xlu1 %5637  ;;  %v5178_v14 = vpop.permute.xlu0 %5177 }
 0x627   : > { %5731 = vst.msk [vmem:[#allocation4 + $0x4c] sm:$0xf] %vm5689_vm14, %v5638_v51  ;;  %v5736_v56 = vld [vmem:[#allocation4 + $0x58] sm:$0xf] }
 0x628   : > { %5277 = vst.msk [vmem:[#allocation4 + $0x54] sm:$0xf] %vm5231_vm13, %v5178_v14 }
 0x629   : > { %5862 = vst.msk [vmem:[#allocation4 + $0x4c] sm:$0xf] %vm5842_vm3, %v11012_v19 }
 0x62a   : > { %5416 = vst.msk [vmem:[#allocation4 + $0x54] sm:$0xf] %vm5394_vm9, %v11027_v18  ;;  %v4756_v33 = vpop.permute.xlu1 %4755  ;;  %v5479_v7 = vpop.permute.xlu0 %5478 }
 0x62b   : > { %4821 = vst.msk [vmem:[#allocation4 + $0x6c] sm:$0xf] %vm4795_vm5, %v4756_v33 }
 0x62e   : > { %v5004_v61 = vpop.permute.xlu1 %5003  ;;  %v11155_v20 = vpop.permute.xlu0 %5798 }
 0x62f   : > { %v5096_v58 = vsel %vm10392_vm0, %v5004_v61, %v5095_v9 }
 0x630   : > { %5097 = vst [vmem:[#allocation4 + $0x5c] sm:$0xf] %v5096_v58  ;;  %v6003_v18 = vld [vmem:[#allocation4 + $0x4c] sm:$0xf] }
 0x631   : > { %v5576_v12 = vld [vmem:[#allocation4 + $0x54] sm:$0xf]  ;;  %5281 = vst.msk [vmem:[#allocation4 + $0x5c] sm:$0xf] %vm5231_vm13, %v5182_v8 }
 0x632   : > { %v5577_v32 = vsel %vm10461_vm10, %v5479_v7, %v5576_v12  ;;  %5418 = vst.msk [vmem:[#allocation4 + $0x5c] sm:$0xf] %vm5394_vm9, %v10967_v57  ;;  %v11165_v19 = vpop.permute.xlu1 %5348  ;;  %v5912_v13 = vpop.permute.xlu0 %5911 }
 0x633   : > { %5578 = vst [vmem:[#allocation4 + $0x54] sm:$0xf] %v5577_v32  ;;  %v6004_v42 = vsel %vm10495_vm1, %v5912_v13, %v6003_v18 }
 0x634   : > { %5735 = vst.msk [vmem:[#allocation4 + $0x54] sm:$0xf] %vm5689_vm14, %v5642_v3  ;;  %6005 = vst [vmem:[#allocation4 + $0x4c] sm:$0xf] %v6004_v42  ;;  %v5107_v3 = vld [vmem:[#allocation4 + $0x74] sm:$0xf] }
 0x635   : > { %5864 = vst.msk [vmem:[#allocation4 + $0x54] sm:$0xf] %vm5842_vm3, %v10993_v5 }
 0x636   : > { %v5188_v27 = vpop.permute.xlu1 %5187  ;;  %v5648_v40 = vpop.permute.xlu0 %5647 }
 0x639   : > { %v5580_v25 = vld [vmem:[#allocation4 + $0x5c] sm:$0xf] }
 0x63a   : > { %v5644_v29 = vpop.permute.xlu1 %5643  ;;  %v5184_v60 = vpop.permute.xlu0 %5183  ;;  %v5581_v57 = vsel %vm10461_vm10, %v5483_v37, %v5580_v25 }
 0x63b   : > { %v5737_v5 = vsel %vm10380_vm15, %v5644_v29, %v5736_v56  ;;  %v5283_v24 = vsel %vm10351_vm8, %v5184_v60, %v5282_v0  ;;  %v7043_v2 = vld [vmem:[#allocation4 + $0x48] sm:$0xff]   ;;  %5582 = vst [vmem:[#allocation4 + $0x5c] sm:$0xf] %v5581_v57 }
 0x63c   : > { %v6007_v31 = vld [vmem:[#allocation4 + $0x54] sm:$0xf]  ;;  %5738 = vst [vmem:[#allocation4 + $0x58] sm:$0xf] %v5737_v5  ;;  %5284 = vst [vmem:[#allocation4 + $0x60] sm:$0xf] %v5283_v24  ;;  %6920 = vmatmul.mubr.msk.bf16.gmra.mxu0 %vm6158_vm7, %v7043_v2 }
 0x63d   : > { %v6008_v63 = vsel %vm10495_vm1, %v5916_v26, %v6007_v31  ;;  %5865 = vst.msk [vmem:[#allocation4 + $0x58] sm:$0xf] %vm5842_vm3, %v11097_v30 }
 0x63e   : > { %6009 = vst [vmem:[#allocation4 + $0x54] sm:$0xf] %v6008_v63  ;;  %5419 = vst.msk [vmem:[#allocation4 + $0x60] sm:$0xf] %vm5394_vm9, %v11086_v50  ;;  %v5922_v17 = vpop.permute.xlu1 %5921  ;;  %v5014_v4 = vpop.permute.xlu0 %5013 }
 0x63f   : > { %5106 = vst.msk [vmem:[#allocation4 + $0x70] sm:$0xf] %vm5051_vm12, %v5014_v4 }
 0x641   : > { %v6909_v10 = vpop.f32.mrf.mxu0 }
 0x642   : > { %v11185_v1 = vpop.permute.xlu1 %5354  ;;  %v5489_v8 = vpop.permute.xlu0 %5488  ;;  %6379 = vst.msk [vmem:[%s11065_s14 + $0x30] sm:$0xff] %vm6372_vm2, %v6909_v10 }
 0x643   : > { %v6261_v22 = vpop.f32.mrf.mxu0 }
 0x644   : > { %6377 = vst.msk [vmem:[%s11065_s14 + $0x20] sm:$0xff] %vm6372_vm2, %v6261_v22 }
 0x645   : > { %v7044_v16 = vld [vmem:[#allocation4 + $0x50] sm:$0xff]   ;;  %v6910_v30 = vpop.f32.mrf.mxu0 }
 0x646   : > { %6923 = vmatprep.mubr.msk.bf16.mxu0 %vm6158_vm7, %v7044_v16  ;;  %v5190_v50 = vpop.permute.xlu1 %5189  ;;  %v4762_v41 = vpop.permute.xlu0 %4761  ;;  %6380 = vst.msk [vmem:[%s11065_s14 + $0x38] sm:$0xff] %vm6372_vm2, %v6910_v30 }
 0x647   : > { %4824 = vst.msk [vmem:[#allocation4 + $0x78] sm:$0xf] %vm4795_vm5, %v4762_v41  ;;  %v6264_v23 = vpop.f32.mrf.mxu0 }
 0x648   : > { %6378 = vst.msk [vmem:[%s11065_s14 + $0x28] sm:$0xff] %vm6372_vm2, %v6264_v23 }
 0x64a   : > { %v5485_v48 = vpop.permute.xlu1 %5484  ;;  %v5805_v6 = vpop.permute.xlu0 %5804 }
 0x64b   : > { %5583 = vst.msk [vmem:[#allocation4 + $0x60] sm:$0xf] %vm5532_vm11, %v5485_v48 }
 0x64e   : > { %v5918_v55 = vpop.permute.xlu1 %5917  ;;  %v5010_v15 = vpop.permute.xlu0 %5009 }
 0x64f   : > { %6010 = vst.msk [vmem:[#allocation4 + $0x58] sm:$0xf] %vm5963_vm4, %v5918_v55 }
 0x650   : > { %5102 = vst.msk [vmem:[#allocation4 + $0x68] sm:$0xf] %vm5051_vm12, %v5010_v15 }
 0x652   : > { %v5740_v11 = vld [vmem:[#allocation4 + $0x60] sm:$0xf]  ;;  %v5016_v59 = vpop.permute.xlu1 %5015  ;;  %v5650_v52 = vpop.permute.xlu0 %5649 }
 0x653   : > { %v5741_v35 = vsel %vm10380_vm15, %v5648_v40, %v5740_v11  ;;  %v5108_v28 = vsel %vm10392_vm0, %v5016_v59, %v5107_v3 }
 0x654   : > { %5742 = vst [vmem:[#allocation4 + $0x60] sm:$0xf] %v5741_v35  ;;  %5109 = vst [vmem:[#allocation4 + $0x74] sm:$0xf] %v5108_v28 }
 0x655   : > { %5867 = vst.msk [vmem:[#allocation4 + $0x60] sm:$0xf] %vm5842_vm3, %v11075_v21 }
 0x656   : > { %6014 = vst.msk [vmem:[#allocation4 + $0x60] sm:$0xf] %vm5963_vm4, %v5922_v17  ;;  %v11207_v49 = vpop.permute.xlu1 %5810  ;;  %v5491_v43 = vpop.permute.xlu0 %5490 }
 0x657   : > { %v5286_v44 = vld [vmem:[#allocation4 + $0x68] sm:$0xf] }
 0x658   : > { %v5287_v36 = vsel %vm10351_vm8, %v5188_v27, %v5286_v44 }
 0x659   : > { %5288 = vst [vmem:[#allocation4 + $0x68] sm:$0xf] %v5287_v36 }
 0x65a   : > { %5421 = vst.msk [vmem:[#allocation4 + $0x68] sm:$0xf] %vm5394_vm9, %v11060_v47  ;;  %v11214_v37 = vpop.permute.xlu1 %5360  ;;  %v5924_v45 = vpop.permute.xlu0 %5923  ;;  %v5103_v47 = vld [vmem:[#allocation4 + $0x6c] sm:$0xf] }
 0x65b   : > { %5587 = vst.msk [vmem:[#allocation4 + $0x68] sm:$0xf] %vm5532_vm11, %v5489_v8 }
 0x65e   : > { %v5646_v26 = vpop.permute.xlu1 %5645  ;;  %v5186_v21 = vpop.permute.xlu0 %5185 }
 0x65f   : > { %5739 = vst.msk [vmem:[#allocation4 + $0x5c] sm:$0xf] %vm5689_vm14, %v5646_v26 }
 0x660   : > { %5285 = vst.msk [vmem:[#allocation4 + $0x64] sm:$0xf] %vm5231_vm13, %v5186_v21 }
 0x661   : > { %5866 = vst.msk [vmem:[#allocation4 + $0x5c] sm:$0xf] %vm5842_vm3, %v11155_v20 }
 0x662   : > { %5420 = vst.msk [vmem:[#allocation4 + $0x64] sm:$0xf] %vm5394_vm9, %v11165_v19  ;;  %v4764_v51 = vpop.permute.xlu1 %4763  ;;  %v5357_v14 = vpop.permute.xlu0 %5356  ;;  %v5744_v13 = vld [vmem:[#allocation4 + $0x68] sm:$0xf] }
 0x663   : > { %4825 = vst.msk [vmem:[#allocation4 + $0x7c] sm:$0xf] %vm4795_vm5, %v4764_v51 }
 0x666   : > { %v5012_v33 = vpop.permute.xlu1 %5011  ;;  %v5807_v7 = vpop.permute.xlu0 %5806 }
 0x667   : > { %v5104_v9 = vsel %vm10392_vm0, %v5012_v33, %v5103_v47 }
 0x668   : > { %5105 = vst [vmem:[#allocation4 + $0x6c] sm:$0xf] %v5104_v9  ;;  %v6011_v12 = vld [vmem:[#allocation4 + $0x5c] sm:$0xf] }
 0x669   : > { %5289 = vst.msk [vmem:[#allocation4 + $0x6c] sm:$0xf] %vm5231_vm13, %v5190_v50  ;;  %v5584_v20 = vld [vmem:[#allocation4 + $0x64] sm:$0xf] }
 0x66a   : > { %5422 = vst.msk [vmem:[#allocation4 + $0x6c] sm:$0xf] %vm5394_vm9, %v11122_v39  ;;  %v5487_v61 = vpop.permute.xlu1 %5486  ;;  %v5920_v58 = vpop.permute.xlu0 %5919  ;;  %v5290_v39 = vld [vmem:[#allocation4 + $0x70] sm:$0xf]  ;;  %v5111_v48 = vld [vmem:[#allocation4 + $0x7c] sm:$0xf] }
 0x66b   : > { %v5585_v32 = vsel %vm10461_vm10, %v5487_v61, %v5584_v20  ;;  %v6012_v19 = vsel %vm10495_vm1, %v5920_v58, %v6011_v12 }
 0x66c   : > { %5586 = vst [vmem:[#allocation4 + $0x64] sm:$0xf] %v5585_v32  ;;  %6013 = vst [vmem:[#allocation4 + $0x5c] sm:$0xf] %v6012_v19 }
 0x66d   : > { %5743 = vst.msk [vmem:[#allocation4 + $0x64] sm:$0xf] %vm5689_vm14, %v5650_v52 }
 0x66e   : > { %5868 = vst.msk [vmem:[#allocation4 + $0x64] sm:$0xf] %vm5842_vm3, %v11146_v54  ;;  %v5652_v18 = vpop.permute.xlu1 %5651  ;;  %v5192_v42 = vpop.permute.xlu0 %5191 }
 0x66f   : > { %v5745_v27 = vsel %vm10380_vm15, %v5652_v18, %v5744_v13  ;;  %v5291_v40 = vsel %vm10351_vm8, %v5192_v42, %v5290_v39 }
 0x670   : > { %5746 = vst [vmem:[#allocation4 + $0x68] sm:$0xf] %v5745_v27  ;;  %5292 = vst [vmem:[#allocation4 + $0x70] sm:$0xf] %v5291_v40 }
 0x671   : > { %5869 = vst.msk [vmem:[#allocation4 + $0x68] sm:$0xf] %vm5842_vm3, %v5805_v6  ;;  %v5588_v25 = vld [vmem:[#allocation4 + $0x6c] sm:$0xf] }
 0x672   : > { %5423 = vst.msk [vmem:[#allocation4 + $0x70] sm:$0xf] %vm5394_vm9, %v11185_v1  ;;  %v5493_v31 = vpop.permute.xlu1 %5492  ;;  %v5018_v54 = vpop.permute.xlu0 %5017  ;;  %v5589_v29 = vsel %vm10461_vm10, %v5491_v43, %v5588_v25 }
 0x673   : > { %5591 = vst.msk [vmem:[#allocation4 + $0x70] sm:$0xf] %vm5532_vm11, %v5493_v31  ;;  %v7045_v56 = vld [vmem:[#allocation4 + $0x58] sm:$0xff]   ;;  %5590 = vst [vmem:[#allocation4 + $0x6c] sm:$0xf] %v5589_v29 }
 0x674   : > { %5110 = vst.msk [vmem:[#allocation4 + $0x78] sm:$0xf] %vm5051_vm12, %v5018_v54  ;;  %6924 = vmatmul.mubr.msk.bf16.gmra.mxu0 %vm6158_vm7, %v7045_v56 }
 0x675   : > { %v6015_v0 = vld [vmem:[#allocation4 + $0x64] sm:$0xf] }
 0x676   : > { %v6016_v60 = vsel %vm10495_vm1, %v5924_v45, %v6015_v0  ;;  %v5198_v57 = vpop.permute.xlu1 %5197  ;;  %v5658_v63 = vpop.permute.xlu0 %5657 }
 0x677   : > { %6017 = vst [vmem:[#allocation4 + $0x64] sm:$0xf] %v6016_v60 }
 0x67a   : > { %v5926_v5 = vpop.permute.xlu1 %5925  ;;  %v5194_v24 = vpop.permute.xlu0 %5193  ;;  %v5748_v4 = vld [vmem:[#allocation4 + $0x70] sm:$0xf] }
 0x67b   : > { %6018 = vst.msk [vmem:[#allocation4 + $0x68] sm:$0xf] %vm5963_vm4, %v5926_v5  ;;  %v5294_v50 = vld [vmem:[#allocation4 + $0x78] sm:$0xf] }
 0x67c   : > { %5293 = vst.msk [vmem:[#allocation4 + $0x74] sm:$0xf] %vm5231_vm13, %v5194_v24 }
 0x67d   : > { %5424 = vst.msk [vmem:[#allocation4 + $0x74] sm:$0xf] %vm5394_vm9, %v5357_v14  ;;  %v6913_v2 = vpop.f32.mrf.mxu0 }
 0x67e   : > { %v5654_v17 = vpop.permute.xlu1 %5653  ;;  %v5656_v10 = vpop.permute.xlu0 %5655  ;;  %6383 = vst.msk [vmem:[%s11065_s14 + $0x50] sm:$0xff] %vm6372_vm2, %v6913_v2  ;;  %v7046_v1 = vld [vmem:[#allocation4 + $0x60] sm:$0xff]  }
 0x67f   : > { %5747 = vst.msk [vmem:[#allocation4 + $0x6c] sm:$0xf] %vm5689_vm14, %v5654_v17  ;;  %v5749_v8 = vsel %vm10380_vm15, %v5656_v10, %v5748_v4  ;;  %v6277_v22 = vpop.f32.mrf.mxu0  ;;  %6927 = vmatprep.mubr.msk.bf16.mxu0 %vm6158_vm7, %v7046_v1 }
 0x680   : > { %5870 = vst.msk [vmem:[#allocation4 + $0x6c] sm:$0xf] %vm5842_vm3, %v5807_v7  ;;  %5750 = vst [vmem:[#allocation4 + $0x70] sm:$0xf] %v5749_v8 }
 0x681   : > { %6381 = vst.msk [vmem:[%s11065_s14 + $0x40] sm:$0xff] %vm6372_vm2, %v6277_v22  ;;  %v6914_v16 = vpop.f32.mrf.mxu0 }
 0x682   : > { %v5196_v30 = vpop.permute.xlu1 %5195  ;;  %v5809_v41 = vpop.permute.xlu0 %5808  ;;  %6384 = vst.msk [vmem:[%s11065_s14 + $0x58] sm:$0xff] %vm6372_vm2, %v6914_v16 }
 0x683   : > { %v5295_v23 = vsel %vm10351_vm8, %v5196_v30, %v5294_v50  ;;  %5871 = vst.msk [vmem:[#allocation4 + $0x70] sm:$0xf] %vm5842_vm3, %v5809_v41  ;;  %v6280_v34 = vpop.f32.mrf.mxu0 }
 0x684   : > { %5296 = vst [vmem:[#allocation4 + $0x78] sm:$0xf] %v5295_v23  ;;  %6382 = vst.msk [vmem:[%s11065_s14 + $0x48] sm:$0xff] %vm6372_vm2, %v6280_v34  ;;  %v5592_v55 = vld [vmem:[#allocation4 + $0x74] sm:$0xf] }
 0x686   : > { %v5020_v6 = vpop.permute.xlu1 %5019  ;;  %v5495_v15 = vpop.permute.xlu0 %5494 }
 0x687   : > { %v5112_v11 = vsel %vm10392_vm0, %v5020_v6, %v5111_v48  ;;  %v5593_v3 = vsel %vm10461_vm10, %v5495_v15, %v5592_v55  ;;  %v6019_v59 = vld [vmem:[#allocation4 + $0x6c] sm:$0xf] }
 0x688   : > { %5113 = vst [vmem:[#allocation4 + $0x7c] sm:$0xf] %v5112_v11  ;;  %5594 = vst [vmem:[#allocation4 + $0x74] sm:$0xf] %v5593_v3 }
 0x689   : > { %5297 = vst.msk [vmem:[#allocation4 + $0x7c] sm:$0xf] %vm5231_vm13, %v5198_v57 }
 0x68a   : > { %5751 = vst.msk [vmem:[#allocation4 + $0x74] sm:$0xf] %vm5689_vm14, %v5658_v63  ;;  %v5932_v62 = vpop.permute.xlu1 %5931  ;;  %v5928_v52 = vpop.permute.xlu0 %5927 }
 0x68b   : > { %5426 = vst.msk [vmem:[#allocation4 + $0x7c] sm:$0xf] %vm5394_vm9, %v11214_v37  ;;  %v6020_v46 = vsel %vm10495_vm1, %v5928_v52, %v6019_v59 }
 0x68c   : > { %5872 = vst.msk [vmem:[#allocation4 + $0x74] sm:$0xf] %vm5842_vm3, %v11207_v49  ;;  %6021 = vst [vmem:[#allocation4 + $0x6c] sm:$0xf] %v6020_v46 }
 0x68e   : > { %v5499_v35 = vpop.permute.xlu1 %5498  ;;  %v5359_v28 = vpop.permute.xlu0 %5358 }
 0x68f   : > { %5425 = vst.msk [vmem:[#allocation4 + $0x78] sm:$0xf] %vm5394_vm9, %v5359_v28 }
 0x692   : > { %v5596_v43 = vld [vmem:[#allocation4 + $0x7c] sm:$0xf]  ;;  %v5497_v37 = vpop.permute.xlu1 %5496  ;;  %v5930_v45 = vpop.permute.xlu0 %5929 }
 0x693   : > { %v6023_v44 = vld [vmem:[#allocation4 + $0x74] sm:$0xf]  ;;  %v5597_v49 = vsel %vm10461_vm10, %v5499_v35, %v5596_v43  ;;  %5595 = vst.msk [vmem:[#allocation4 + $0x78] sm:$0xf] %vm5532_vm11, %v5497_v37  ;;  %v7047_v26 = vld [vmem:[#allocation4 + $0x68] sm:$0xff]  }
 0x694   : > { %v6024_v36 = vsel %vm10495_vm1, %v5932_v62, %v6023_v44  ;;  %5598 = vst [vmem:[#allocation4 + $0x7c] sm:$0xf] %v5597_v49  ;;  %6022 = vst.msk [vmem:[#allocation4 + $0x70] sm:$0xf] %vm5963_vm4, %v5930_v45  ;;  %6928 = vmatmul.mubr.msk.bf16.gmra.mxu0 %vm6158_vm7, %v7047_v26 }
 0x695   : > { %6025 = vst [vmem:[#allocation4 + $0x74] sm:$0xf] %v6024_v36 }
 0x69b   : > { %v7049_v21 = vld [vmem:[#allocation4 + $0x78] sm:$0xff]  }
 0x69c   : > { %v7048_v38 = vld [vmem:[#allocation4 + $0x70] sm:$0xff]  }
 0x69d   : > { %6931 = vmatprep.mubr.msk.bf16.mxu0 %vm6158_vm7, %v7048_v38 }
 0x69e   : > { %6932 = vmatmul.mubr.msk.bf16.gmra.mxu0 %vm6158_vm7, %v7049_v21 }
 0x6bd   : > { %v6917_v53 = vpop.f32.mrf.mxu0 }
 0x6be   : > { %6387 = vst.msk [vmem:[%s11065_s14 + $0x70] sm:$0xff] %vm6372_vm2, %v6917_v53 }
 0x6bf   : > { %v6293_v51 = vpop.f32.mrf.mxu0 }
 0x6c0   : > { %6385 = vst.msk [vmem:[%s11065_s14 + $0x60] sm:$0xff] %vm6372_vm2, %v6293_v51 }
 0x6c1   : > { %v6918_v14 = vpop.f32.mrf.mxu0 }
 0x6c2   : > { %6388 = vst.msk [vmem:[%s11065_s14 + $0x78] sm:$0xff] %vm6372_vm2, %v6918_v14 }
 0x6c3   : > { %v6296_v47 = vpop.f32.mrf.mxu0 }
 0x6c4   : > { %6386 = vst.msk [vmem:[%s11065_s14 + $0x68] sm:$0xff] %vm6372_vm2, %v6296_v47 }
 0x6fc   : > { %v6921_v33 = vpop.f32.mrf.mxu0 }
 0x6fd   : > { %6391 = vst.msk [vmem:[%s11065_s14 + $0x90] sm:$0xff] %vm6372_vm2, %v6921_v33 }
 0x6fe   : > { %v6309_v7 = vpop.f32.mrf.mxu0 }
 0x6ff   : > { %6389 = vst.msk [vmem:[%s11065_s14 + $0x80] sm:$0xff] %vm6372_vm2, %v6309_v7 }
 0x700   : > { %v6922_v9 = vpop.f32.mrf.mxu0 }
 0x701   : > { %6392 = vst.msk [vmem:[%s11065_s14 + $0x98] sm:$0xff] %vm6372_vm2, %v6922_v9 }
 0x702   : > { %v6312_v61 = vpop.f32.mrf.mxu0 }
 0x703   : > { %6390 = vst.msk [vmem:[%s11065_s14 + $0x88] sm:$0xff] %vm6372_vm2, %v6312_v61 }
 0x734   : > { %v6925_v20 = vpop.f32.mrf.mxu0 }
 0x735   : > { %6395 = vst.msk [vmem:[%s11065_s14 + $0xb0] sm:$0xff] %vm6372_vm2, %v6925_v20 }
 0x736   : > { %v6325_v12 = vpop.f32.mrf.mxu0 }
 0x737   : > { %6393 = vst.msk [vmem:[%s11065_s14 + $0xa0] sm:$0xff] %vm6372_vm2, %v6325_v12 }
 0x738   : > { %v6926_v58 = vpop.f32.mrf.mxu0 }
 0x739   : > { %6396 = vst.msk [vmem:[%s11065_s14 + $0xb8] sm:$0xff] %vm6372_vm2, %v6926_v58 }
 0x73a   : > { %v6328_v32 = vpop.f32.mrf.mxu0 }
 0x73b   : > { %6394 = vst.msk [vmem:[%s11065_s14 + $0xa8] sm:$0xff] %vm6372_vm2, %v6328_v32 }
 0x754   : > { %v6929_v19 = vpop.f32.mrf.mxu0 }
 0x755   : > { %6399 = vst.msk [vmem:[%s11065_s14 + $0xd0] sm:$0xff] %vm6372_vm2, %v6929_v19 }
 0x756   : > { %v6341_v18 = vpop.f32.mrf.mxu0 }
 0x757   : > { %6397 = vst.msk [vmem:[%s11065_s14 + $0xc0] sm:$0xff] %vm6372_vm2, %v6341_v18 }
 0x758   : > { %v6930_v13 = vpop.f32.mrf.mxu0 }
 0x759   : > { %6400 = vst.msk [vmem:[%s11065_s14 + $0xd8] sm:$0xff] %vm6372_vm2, %v6930_v13 }
 0x75a   : > { %v6344_v39 = vpop.f32.mrf.mxu0 }
 0x75b   : > { %6398 = vst.msk [vmem:[%s11065_s14 + $0xc8] sm:$0xff] %vm6372_vm2, %v6344_v39 }
 0x75e   : > { %v6933_v42 = vpop.f32.mrf.mxu0 }
 0x75f   : > { %6403 = vst.msk [vmem:[%s11065_s14 + $0xf0] sm:$0xff] %vm6372_vm2, %v6933_v42 }
 0x760   : > { %v6357_v27 = vpop.f32.mrf.mxu0 }
 0x761   : > { %6401 = vst.msk [vmem:[%s11065_s14 + $0xe0] sm:$0xff] %vm6372_vm2, %v6357_v27 }
 0x762   : > { %v6934_v40 = vpop.f32.mrf.mxu0 }
 0x763   : > { %6404 = vst.msk [vmem:[%s11065_s14 + $0xf8] sm:$0xff] %vm6372_vm2, %v6934_v40 }
 0x764   : > { %v6360_v25 = vpop.f32.mrf.mxu0 }
 0x765   : > { %6402 = vst.msk [vmem:[%s11065_s14 + $0xe8] sm:$0xff] %vm6372_vm2, %v6360_v25 }
 0x766 PF: > { %s20_s13 = sadd.s32 1, %s7218_s13  }
 0x767   : > { %p17_p4 = scmp.ge.s32.totalorder %s20_s13, 4  }
 0x769   :  { %19 = sbr.rel (!%p17_p4) target bundleno = 1 (0x1), region = 93 }

</bundles_post_ra>
